<compile_context>
chip_gen: v7x
topology: tpu7x:2x2x1
jax: 0.10.0
libtpu: 0.0.40
codegen_flags: <defaults>
</compile_context>

<pallas_src>
import functools
import math

import jax
import jax.numpy as jnp
from jax import lax
from jax.experimental import pallas as pl
from jax.experimental.pallas import tpu as pltpu

# ---------------- config (bert-base dims, shallow depth, tiny batch/seq) ----
HIDDEN = 768
HEADS = 12
HEAD_DIM = HIDDEN // HEADS          # 64
INTERMEDIATE = 3072
LAYERS = 2                          # scaled down from 12 for a runnable demo
VOCAB = 128
MAX_POS = 64
H_CLS = 50
D_OUT = 3
LN_EPS = 1e-12


# ---------------------------- Pallas kernels --------------------------------
def _dense_act_kernel(x_ref, w_ref, b_ref, o_ref, *, activation):
    y = jnp.dot(x_ref[...], w_ref[...], preferred_element_type=jnp.float32)
    y = y + b_ref[...]
    if activation == "relu":
        y = jnp.maximum(y, 0.0)
    elif activation == "gelu":
        # TODO(synk): HF BERT uses erf-GELU; tanh approximation used here.
        y = 0.5 * y * (1.0 + jnp.tanh(0.7978845608028654 * (y + 0.044715 * y * y * y)))
    o_ref[...] = y.astype(o_ref.dtype)


def dense_act(x, w, b, activation="none", tn=768):
    """act(x @ w + b); N-tiled so weight tiles stream & double-buffer."""
    M, K = x.shape
    N = w.shape[1]
    tn = min(tn, N)
    assert N % tn == 0
    return pl.pallas_call(
        functools.partial(_dense_act_kernel, activation=activation),
        out_shape=jax.ShapeDtypeStruct((M, N), jnp.bfloat16),
        grid=(N // tn,),
        in_specs=[
            pl.BlockSpec((M, K), lambda j: (0, 0)),
            pl.BlockSpec((K, tn), lambda j: (0, j)),
            pl.BlockSpec((1, tn), lambda j: (0, j)),
        ],
        out_specs=pl.BlockSpec((M, tn), lambda j: (0, j)),
        compiler_params=pltpu.CompilerParams(dimension_semantics=("parallel",)),
    )(x, w, b.reshape(1, N))


def _dense_res_ln_kernel(x_ref, w_ref, b_ref, res_ref, g_ref, beta_ref, o_ref,
                         acc_ref):
    k = pl.program_id(0)

    @pl.when(k == 0)
    def _():
        acc_ref[...] = jnp.zeros_like(acc_ref)

    acc_ref[...] += jnp.dot(x_ref[...], w_ref[...],
                            preferred_element_type=jnp.float32)

    @pl.when(k == pl.num_programs(0) - 1)
    def _():
        y = acc_ref[...] + b_ref[...] + res_ref[...].astype(jnp.float32)
        mean = jnp.mean(y, axis=-1, keepdims=True)
        var = jnp.mean((y - mean) ** 2, axis=-1, keepdims=True)
        inv = lax.rsqrt(var + LN_EPS)
        o_ref[...] = ((y - mean) * inv * g_ref[...] + beta_ref[...]).astype(o_ref.dtype)


def dense_res_ln(x, w, b, res, gamma, beta, tk=384):
    """LayerNorm(x @ w + b + res); K-tiled with a resident f32 accumulator."""
    M, K = x.shape
    N = w.shape[1]
    tk = min(tk, K)
    assert K % tk == 0
    return pl.pallas_call(
        _dense_res_ln_kernel,
        out_shape=jax.ShapeDtypeStruct((M, N), jnp.bfloat16),
        grid=(K // tk,),
        in_specs=[
            pl.BlockSpec((M, tk), lambda k: (0, k)),
            pl.BlockSpec((tk, N), lambda k: (k, 0)),
            pl.BlockSpec((1, N), lambda k: (0, 0)),
            pl.BlockSpec((M, N), lambda k: (0, 0)),
            pl.BlockSpec((1, N), lambda k: (0, 0)),
            pl.BlockSpec((1, N), lambda k: (0, 0)),
        ],
        out_specs=pl.BlockSpec((M, N), lambda k: (0, 0)),
        scratch_shapes=[pltpu.VMEM((M, N), jnp.float32)],
        compiler_params=pltpu.CompilerParams(dimension_semantics=("arbitrary",)),
    )(x, w, b.reshape(1, N), res, gamma.reshape(1, N), beta.reshape(1, N))


def _ln_kernel(x_ref, g_ref, b_ref, o_ref):
    x = x_ref[...].astype(jnp.float32)
    mean = jnp.mean(x, axis=-1, keepdims=True)
    var = jnp.mean((x - mean) ** 2, axis=-1, keepdims=True)
    inv = lax.rsqrt(var + LN_EPS)
    o_ref[...] = ((x - mean) * inv * g_ref[...] + b_ref[...]).astype(o_ref.dtype)


def layernorm(x, gamma, beta):
    """LayerNorm(x) only (no dummy zero residual)."""
    M, N = x.shape
    return pl.pallas_call(
        _ln_kernel,
        out_shape=jax.ShapeDtypeStruct((M, N), jnp.bfloat16),
        grid=(1,),
        in_specs=[
            pl.BlockSpec((M, N), lambda i: (0, 0)),
            pl.BlockSpec((1, N), lambda i: (0, 0)),
            pl.BlockSpec((1, N), lambda i: (0, 0)),
        ],
        out_specs=pl.BlockSpec((M, N), lambda i: (0, 0)),
    )(x, gamma.reshape(1, N), beta.reshape(1, N))


def _attention_kernel(qkv_ref, mb_ref, o_ref, *, heads, head_dim, scale):
    # qkv_ref: (S, 3*H*Dh) packed [Q | K | V]; all heads handled per grid step.
    mb = mb_ref[0]                                  # (1, S) additive mask bias
    hidden = heads * head_dim
    for h in range(heads):                          # static unrolled head loop
        q = qkv_ref[:, pl.ds(h * head_dim, head_dim)]               # (S, Dh)
        k = qkv_ref[:, pl.ds(hidden + h * head_dim, head_dim)]      # (S, Dh)
        v = qkv_ref[:, pl.ds(2 * hidden + h * head_dim, head_dim)]  # (S, Dh)
        s = lax.dot_general(q, k, (((1,), (1,)), ((), ())),
                            preferred_element_type=jnp.float32) * scale + mb
        m = jnp.max(s, axis=-1, keepdims=True)
        p = jnp.exp(s - m)
        inv = pl.reciprocal(jnp.sum(p, axis=-1, keepdims=True), approx=True)
        p = (p * inv).astype(jnp.bfloat16)
        o_ref[:, pl.ds(h * head_dim, head_dim)] = jnp.dot(
            p, v, preferred_element_type=jnp.float32).astype(o_ref.dtype)


def attention(qkv, mask_bias, B, S):
    """qkv:(B*S, 3*HIDDEN) packed; mask_bias:(B,1,S) additive (-1e4 on pads)."""
    return pl.pallas_call(
        functools.partial(_attention_kernel, heads=HEADS, head_dim=HEAD_DIM,
                          scale=1.0 / math.sqrt(HEAD_DIM)),
        out_shape=jax.ShapeDtypeStruct((B * S, HIDDEN), jnp.bfloat16),
        grid=(B,),
        in_specs=[
            pl.BlockSpec((S, 3 * HIDDEN), lambda b: (b, 0)),
            pl.BlockSpec((1, 1, S), lambda b: (b, 0, 0)),
        ],
        out_specs=pl.BlockSpec((S, HIDDEN), lambda b: (b, 0)),
        compiler_params=pltpu.CompilerParams(dimension_semantics=("parallel",)),
    )(qkv, mask_bias)


def _classifier_kernel(x_ref, w1_ref, b1_ref, w2_ref, b2_ref, o_ref):
    x = x_ref[...].astype(jnp.float32)
    h = jnp.dot(x, w1_ref[...].astype(jnp.float32),
                preferred_element_type=jnp.float32) + b1_ref[...]
    h = jnp.maximum(h, 0.0)                                         # ReLU
    y = jnp.dot(h, w2_ref[...].astype(jnp.float32),
                preferred_element_type=jnp.float32) + b2_ref[...]
    o_ref[...] = y.astype(o_ref.dtype)


def classifier(cls_hidden, w1, b1, w2, b2):
    """Fused Linear(768,50) -> ReLU -> Linear(50,3); 50-wide stays in VMEM."""
    B = cls_hidden.shape[0]
    return pl.pallas_call(
        _classifier_kernel,
        out_shape=jax.ShapeDtypeStruct((B, D_OUT), jnp.float32),
        grid=(1,),
        in_specs=[
            pl.BlockSpec((B, HIDDEN), lambda i: (0, 0)),
            pl.BlockSpec((HIDDEN, H_CLS), lambda i: (0, 0)),
            pl.BlockSpec((1, H_CLS), lambda i: (0, 0)),
            pl.BlockSpec((H_CLS, D_OUT), lambda i: (0, 0)),
            pl.BlockSpec((1, D_OUT), lambda i: (0, 0)),
        ],
        out_specs=pl.BlockSpec((B, D_OUT), lambda i: (0, 0)),
    )(cls_hidden, w1, b1.reshape(1, H_CLS), w2, b2.reshape(1, D_OUT))


# ---------------------------- parameter init --------------------------------
def init_params(key):
    def nrm(k, shape, dtype=jnp.bfloat16, scale=0.02):
        return (scale * jax.random.normal(k, shape, dtype=jnp.float32)).astype(dtype)

    keys = iter(jax.random.split(key, 8 + LAYERS * 8))
    p = {
        "word_emb": nrm(next(keys), (VOCAB, HIDDEN), jnp.float32),
        "pos_emb": nrm(next(keys), (MAX_POS, HIDDEN), jnp.float32),
        "type_emb": nrm(next(keys), (2, HIDDEN), jnp.float32),
        "emb_ln_g": jnp.ones((HIDDEN,), jnp.float32),
        "emb_ln_b": jnp.zeros((HIDDEN,), jnp.float32),
        "layers": [],
        # classifier: Linear(768,50) -> ReLU -> Linear(50,3)
        "wc1": nrm(next(keys), (HIDDEN, H_CLS), jnp.float32),
        "bc1": jnp.zeros((H_CLS,), jnp.float32),
        "wc2": nrm(next(keys), (H_CLS, D_OUT), jnp.float32),
        "bc2": jnp.zeros((D_OUT,), jnp.float32),
    }
    for _ in range(LAYERS):
        lyr = {
            # fused Q|K|V projection weight (bf16, streamed in N tiles)
            "wqkv": nrm(next(keys), (HIDDEN, 3 * HIDDEN)),
            "bqkv": jnp.zeros((3 * HIDDEN,), jnp.float32),
            "wo": nrm(next(keys), (HIDDEN, HIDDEN)),
            "bo": jnp.zeros((HIDDEN,), jnp.float32),
            "ln1_g": jnp.ones((HIDDEN,), jnp.float32),
            "ln1_b": jnp.zeros((HIDDEN,), jnp.float32),
            "w1": nrm(next(keys), (HIDDEN, INTERMEDIATE)),
            "b1": jnp.zeros((INTERMEDIATE,), jnp.float32),
            "w2": nrm(next(keys), (INTERMEDIATE, HIDDEN)),
            "b2": jnp.zeros((HIDDEN,), jnp.float32),
            "ln2_g": jnp.ones((HIDDEN,), jnp.float32),
            "ln2_b": jnp.zeros((HIDDEN,), jnp.float32),
        }
        p["layers"].append(lyr)
    return p


# ---------------------------- model forward ---------------------------------
def bert_layer(x, lp, mask_bias, B, S):
    # x: (B*S, HIDDEN) bf16
    qkv = dense_act(x, lp["wqkv"], lp["bqkv"])                     # (B*S, 2304)
    ctx = attention(qkv, mask_bias, B, S)                          # (B*S, 768)
    # fused: attn-out projection + residual + LayerNorm
    x = dense_res_ln(ctx, lp["wo"], lp["bo"], x, lp["ln1_g"], lp["ln1_b"])
    # FFN: w1+GELU (N-tiled), then fused w2 + residual + LayerNorm (K-tiled)
    h1 = dense_act(x, lp["w1"], lp["b1"], activation="gelu")       # (B*S, 3072)
    x = dense_res_ln(h1, lp["w2"], lp["b2"], x, lp["ln2_g"], lp["ln2_b"])
    return x


def bert_class_forward(params, input_ids, attention_mask):
    B, S = input_ids.shape
    # --- embeddings (gather is plain-JAX glue) ---
    tok = jnp.take(params["word_emb"], input_ids, axis=0)          # (B,S,H)
    pos = params["pos_emb"][:S][None, :, :]                        # (1,S,H)
    typ = params["type_emb"][0][None, None, :]                     # token_type_ids == 0
    emb = (tok + pos + typ).reshape(B * S, HIDDEN)
    x = layernorm(emb, params["emb_ln_g"], params["emb_ln_b"])     # bf16

    # extended attention mask: (1 - mask) * -10000, broadcast over heads/queries
    mask_bias = ((1.0 - attention_mask.astype(jnp.float32)) * -10000.0)[:, None, :]

    for lp in params["layers"]:
        x = bert_layer(x, lp, mask_bias, B, S)

    # outputs[0][:, 0, :] -> CLS token hidden state
    cls = x.reshape(B, S, HIDDEN)[:, 0, :]                         # (B, 768)

    # fused classifier head: Linear -> ReLU -> Linear
    logits = classifier(cls, params["wc1"], params["bc1"],
                        params["wc2"], params["bc2"])              # (B, 3) f32
    return logits


# ---------------------------------- main -------------------------------------
if __name__ == "__main__":
    key = jax.random.PRNGKey(0)
    k_ids, k_params = jax.random.split(key)

    B, S = 2, 8
    input_ids = jax.random.randint(k_ids, (B, S), 0, VOCAB, dtype=jnp.int32)
    attention_mask = jnp.ones((B, S), dtype=jnp.int32).at[1, 6:].set(0)

    params = init_params(k_params)
    logits = jax.jit(bert_class_forward)(params, input_ids, attention_mask)
    logits = jax.block_until_ready(logits)

    assert logits.shape == (B, D_OUT) and logits.dtype == jnp.float32
    assert bool(jnp.all(jnp.isfinite(logits)))
    print("KERNEL_OK")
</pallas_src>

<mosaic_0001>
module attributes {stable_mosaic.version = 11 : i64} {
  func.func @_dense_res_ln_kernel(%arg0: i32, %arg1: memref<16x384xbf16, #tpu.memory_space<vmem>>, %arg2: memref<384x768xbf16, #tpu.memory_space<vmem>>, %arg3: memref<1x768xf32, #tpu.memory_space<vmem>>, %arg4: memref<16x768xbf16, #tpu.memory_space<vmem>>, %arg5: memref<1x768xf32, #tpu.memory_space<vmem>>, %arg6: memref<1x768xf32, #tpu.memory_space<vmem>>, %arg7: memref<16x768xbf16, #tpu.memory_space<vmem>>, %arg8: memref<16x768xf32, #tpu.memory_space<vmem>>) attributes {dimension_semantics = [#tpu.dimension_semantics<arbitrary>], iteration_bounds = array<i64: 2>, scalar_prefetch = 0 : i64, scratch_operands = 1 : i64, tpu.core_type = #tpu.core_type<tc>, window_params = [{transform_indices = @transform_0, window_bounds = array<i64: 16, 384>}, {transform_indices = @transform_1, window_bounds = array<i64: 384, 768>}, {pipeline_mode = #tpu.pipeline_mode<synchronous>, transform_indices = @transform_2, window_bounds = array<i64: 1, 768>}, {pipeline_mode = #tpu.pipeline_mode<synchronous>, transform_indices = @transform_3, window_bounds = array<i64: 16, 768>}, {pipeline_mode = #tpu.pipeline_mode<synchronous>, transform_indices = @transform_4, window_bounds = array<i64: 1, 768>}, {pipeline_mode = #tpu.pipeline_mode<synchronous>, transform_indices = @transform_5, window_bounds = array<i64: 1, 768>}, {pipeline_mode = #tpu.pipeline_mode<synchronous>, transform_indices = @transform_6, window_bounds = array<i64: 16, 768>}]} {
    %c0_i32 = arith.constant 0 : i32
    %0 = arith.cmpi eq, %arg0, %c0_i32 : i32
    %1 = arith.extui %0 : i1 to i32
    %c0_i32_0 = arith.constant 0 : i32
    %2 = arith.cmpi ne, %1, %c0_i32_0 : i32
    scf.if %2 {
      %cst_9 = arith.constant 0.000000e+00 : f32
      %12 = vector.broadcast %cst_9 : f32 to vector<16x768xf32>
      %c0_10 = arith.constant 0 : index
      %c0_11 = arith.constant 0 : index
      %13 = vector.load %arg8[%c0_10, %c0_11] : memref<16x768xf32, #tpu.memory_space<vmem>>, vector<16x768xf32>
      tpu.vector_store %arg8[%c0_10, %c0_11], %12 {strides = array<i32>} : memref<16x768xf32, #tpu.memory_space<vmem>>, vector<16x768xf32>,
    } else {
    }
    %c0 = arith.constant 0 : index
    %c0_1 = arith.constant 0 : index
    %3 = vector.load %arg8[%c0, %c0_1] : memref<16x768xf32, #tpu.memory_space<vmem>>, vector<16x768xf32>
    %c0_2 = arith.constant 0 : index
    %c0_3 = arith.constant 0 : index
    %4 = vector.load %arg1[%c0_2, %c0_3] : memref<16x384xbf16, #tpu.memory_space<vmem>>, vector<16x384xbf16>
    %c0_4 = arith.constant 0 : index
    %c0_5 = arith.constant 0 : index
    %5 = vector.load %arg2[%c0_4, %c0_5] : memref<384x768xbf16, #tpu.memory_space<vmem>>, vector<384x768xbf16>
    %cst = arith.constant dense<0.000000e+00> : vector<16x768xf32>
    %6 = tpu.matmul %4, %5, %cst {dimension_numbers = #tpu.dot_dimension_numbers<[1], [0], [0], [1], [0, 0, 1, 1], [], []>} : vector<16x384xbf16>, vector<384x768xbf16>, vector<16x768xf32> -> vector<16x768xf32>
    %7 = arith.addf %3, %6 : vector<16x768xf32>
    %c0_6 = arith.constant 0 : index
    %c0_7 = arith.constant 0 : index
    %8 = vector.load %arg8[%c0_6, %c0_7] : memref<16x768xf32, #tpu.memory_space<vmem>>, vector<16x768xf32>
    tpu.vector_store %arg8[%c0_6, %c0_7], %7 {strides = array<i32>} : memref<16x768xf32, #tpu.memory_space<vmem>>, vector<16x768xf32>,
    %c1_i32 = arith.constant 1 : i32
    %9 = arith.cmpi eq, %arg0, %c1_i32 : i32
    %10 = arith.extui %9 : i1 to i32
    %c0_i32_8 = arith.constant 0 : i32
    %11 = arith.cmpi ne, %10, %c0_i32_8 : i32
    scf.if %11 {
      %c0_9 = arith.constant 0 : index
      %c0_10 = arith.constant 0 : index
      %12 = vector.load %arg8[%c0_9, %c0_10] : memref<16x768xf32, #tpu.memory_space<vmem>>, vector<16x768xf32>
      %c0_11 = arith.constant 0 : index
      %c0_12 = arith.constant 0 : index
      %13 = vector.load %arg3[%c0_11, %c0_12] : memref<1x768xf32, #tpu.memory_space<vmem>>, vector<1x768xf32>
      %14 = vector.broadcast %13 : vector<1x768xf32> to vector<16x768xf32>
      %15 = arith.addf %12, %14 : vector<16x768xf32>
      %c0_13 = arith.constant 0 : index
      %c0_14 = arith.constant 0 : index
      %16 = vector.load %arg4[%c0_13, %c0_14] : memref<16x768xbf16, #tpu.memory_space<vmem>>, vector<16x768xbf16>
      %17 = arith.extf %16 : vector<16x768xbf16> to vector<16x768xf32>
      %18 = arith.addf %15, %17 : vector<16x768xf32>
      %cst_15 = arith.constant dense<0.000000e+00> : vector<16xf32>
      %19 = vector.multi_reduction <add>, %18, %cst_15 [1] : vector<16x768xf32> to vector<16xf32>
      %20 = vector.shape_cast %19 : vector<16xf32> to vector<16x1xf32>
      %cst_16 = arith.constant 7.680000e+02 : f32
      %21 = vector.broadcast %cst_16 : f32 to vector<16x1xf32>
      %22 = arith.divf %20, %21 : vector<16x1xf32>
      %23 = vector.broadcast %22 : vector<16x1xf32> to vector<16x768xf32>
      %24 = arith.subf %18, %23 : vector<16x768xf32>
      %25 = arith.mulf %24, %24 : vector<16x768xf32>
      %cst_17 = arith.constant dense<0.000000e+00> : vector<16xf32>
      %26 = vector.multi_reduction <add>, %25, %cst_17 [1] : vector<16x768xf32> to vector<16xf32>
      %27 = vector.shape_cast %26 : vector<16xf32> to vector<16x1xf32>
      %cst_18 = arith.constant 7.680000e+02 : f32
      %28 = vector.broadcast %cst_18 : f32 to vector<16x1xf32>
      %29 = arith.divf %27, %28 : vector<16x1xf32>
      %cst_19 = arith.constant 9.99999996E-13 : f32
      %30 = vector.broadcast %cst_19 : f32 to vector<16x1xf32>
      %31 = arith.addf %29, %30 : vector<16x1xf32>
      %32 = math.rsqrt %31 : vector<16x1xf32>
      %33 = vector.broadcast %22 : vector<16x1xf32> to vector<16x768xf32>
      %34 = arith.subf %18, %33 : vector<16x768xf32>
      %35 = vector.broadcast %32 : vector<16x1xf32> to vector<16x768xf32>
      %36 = arith.mulf %34, %35 : vector<16x768xf32>
      %c0_20 = arith.constant 0 : index
      %c0_21 = arith.constant 0 : index
      %37 = vector.load %arg5[%c0_20, %c0_21] : memref<1x768xf32, #tpu.memory_space<vmem>>, vector<1x768xf32>
      %38 = vector.broadcast %37 : vector<1x768xf32> to vector<16x768xf32>
      %39 = arith.mulf %36, %38 : vector<16x768xf32>
      %c0_22 = arith.constant 0 : index
      %c0_23 = arith.constant 0 : index
      %40 = vector.load %arg6[%c0_22, %c0_23] : memref<1x768xf32, #tpu.memory_space<vmem>>, vector<1x768xf32>
      %41 = vector.broadcast %40 : vector<1x768xf32> to vector<16x768xf32>
      %42 = arith.addf %39, %41 : vector<16x768xf32>
      %43 = arith.truncf %42 : vector<16x768xf32> to vector<16x768xbf16>
      %c0_24 = arith.constant 0 : index
      %c0_25 = arith.constant 0 : index
      %44 = vector.load %arg7[%c0_24, %c0_25] : memref<16x768xbf16, #tpu.memory_space<vmem>>, vector<16x768xbf16>
      tpu.vector_store %arg7[%c0_24, %c0_25], %43 {strides = array<i32>} : memref<16x768xbf16, #tpu.memory_space<vmem>>, vector<16x768xbf16>,
    } else {
    }
    return
  }
  func.func @transform_0(%arg0: i32) -> (i32, i32) {
    %c0_i32 = arith.constant 0 : i32
    %c0_i32_0 = arith.constant 0 : i32
    return %c0_i32, %arg0 : i32, i32
  }
  func.func @transform_1(%arg0: i32) -> (i32, i32) {
    %c0_i32 = arith.constant 0 : i32
    %c0_i32_0 = arith.constant 0 : i32
    return %arg0, %c0_i32 : i32, i32
  }
  func.func @transform_2(%arg0: i32) -> (i32, i32) {
    %c0_i32 = arith.constant 0 : i32
    %c0_i32_0 = arith.constant 0 : i32
    %c0_i32_1 = arith.constant 0 : i32
    return %c0_i32, %c0_i32_0 : i32, i32
  }
  func.func @transform_3(%arg0: i32) -> (i32, i32) {
    %c0_i32 = arith.constant 0 : i32
    %c0_i32_0 = arith.constant 0 : i32
    %c0_i32_1 = arith.constant 0 : i32
    return %c0_i32, %c0_i32_0 : i32, i32
  }
  func.func @transform_4(%arg0: i32) -> (i32, i32) {
    %c0_i32 = arith.constant 0 : i32
    %c0_i32_0 = arith.constant 0 : i32
    %c0_i32_1 = arith.constant 0 : i32
    return %c0_i32, %c0_i32_0 : i32, i32
  }
  func.func @transform_5(%arg0: i32) -> (i32, i32) {
    %c0_i32 = arith.constant 0 : i32
    %c0_i32_0 = arith.constant 0 : i32
    %c0_i32_1 = arith.constant 0 : i32
    return %c0_i32, %c0_i32_0 : i32, i32
  }
  func.func @transform_6(%arg0: i32) -> (i32, i32) {
    %c0_i32 = arith.constant 0 : i32
    %c0_i32_0 = arith.constant 0 : i32
    %c0_i32_1 = arith.constant 0 : i32
    return %c0_i32, %c0_i32_0 : i32, i32
  }
}

module attributes {stable_mosaic.version = 11 : i64} {
  func.func @_attention_kernel(%arg0: i32, %arg1: memref<8x2304xbf16, #tpu.memory_space<vmem>>, %arg2: memref<1x1x8xf32, #tpu.memory_space<vmem>>, %arg3: memref<8x768xbf16, #tpu.memory_space<vmem>>) attributes {dimension_semantics = [#tpu.dimension_semantics<parallel>], iteration_bounds = array<i64: 2>, scalar_prefetch = 0 : i64, scratch_operands = 0 : i64, tpu.core_type = #tpu.core_type<tc>, window_params = [{transform_indices = @transform_0, window_bounds = array<i64: 8, 2304>}, {transform_indices = @transform_1, window_bounds = array<i64: 1, 1, 8>}, {transform_indices = @transform_2, window_bounds = array<i64: 8, 768>}]} {
    %c0 = arith.constant 0 : index
    %c0_0 = arith.constant 0 : index
    %c0_1 = arith.constant 0 : index
    %0 = vector.load %arg2[%c0, %c0_0, %c0_1] : memref<1x1x8xf32, #tpu.memory_space<vmem>>, vector<1x1x8xf32>
    %1 = vector.shape_cast %0 : vector<1x1x8xf32> to vector<1x8xf32>
    %c0_2 = arith.constant 0 : index
    %c0_3 = arith.constant 0 : index
    %2 = vector.load %arg1[%c0_2, %c0_3] : memref<8x2304xbf16, #tpu.memory_space<vmem>>, vector<8x64xbf16>
    %c0_4 = arith.constant 0 : index
    %c768 = arith.constant 768 : index
    %3 = vector.load %arg1[%c0_4, %c768] : memref<8x2304xbf16, #tpu.memory_space<vmem>>, vector<8x64xbf16>
    %c0_5 = arith.constant 0 : index
    %c1536 = arith.constant 1536 : index
    %4 = vector.load %arg1[%c0_5, %c1536] : memref<8x2304xbf16, #tpu.memory_space<vmem>>, vector<8x64xbf16>
    %cst = arith.constant dense<0.000000e+00> : vector<8x8xf32>
    %5 = tpu.matmul %2, %3, %cst {dimension_numbers = #tpu.dot_dimension_numbers<[1], [1], [0], [0], [0, 0, 1, 0], [], []>} : vector<8x64xbf16>, vector<8x64xbf16>, vector<8x8xf32> -> vector<8x8xf32>
    %cst_6 = arith.constant 1.250000e-01 : f32
    %6 = vector.broadcast %cst_6 : f32 to vector<8x8xf32>
    %7 = arith.mulf %5, %6 : vector<8x8xf32>
    %8 = vector.broadcast %1 : vector<1x8xf32> to vector<8x8xf32>
    %9 = arith.addf %7, %8 : vector<8x8xf32>
    %cst_7 = arith.constant dense<0xFF800000> : vector<8xf32>
    %10 = vector.multi_reduction <maximumf>, %9, %cst_7 [1] : vector<8x8xf32> to vector<8xf32>
    %11 = vector.shape_cast %10 : vector<8xf32> to vector<8x1xf32>
    %12 = vector.broadcast %11 : vector<8x1xf32> to vector<8x8xf32>
    %13 = arith.subf %9, %12 : vector<8x8xf32>
    %14 = math.exp %13 : vector<8x8xf32>
    %cst_8 = arith.constant dense<0.000000e+00> : vector<8xf32>
    %15 = vector.multi_reduction <add>, %14, %cst_8 [1] : vector<8x8xf32> to vector<8xf32>
    %16 = vector.shape_cast %15 : vector<8xf32> to vector<8x1xf32>
    %17 = tpu.reciprocal %16 {approx = true} : vector<8x1xf32> -> vector<8x1xf32>
    %18 = vector.broadcast %17 : vector<8x1xf32> to vector<8x8xf32>
    %19 = arith.mulf %14, %18 : vector<8x8xf32>
    %20 = arith.truncf %19 : vector<8x8xf32> to vector<8x8xbf16>
    %cst_9 = arith.constant dense<0.000000e+00> : vector<8x64xf32>
    %21 = tpu.matmul %20, %4, %cst_9 {dimension_numbers = #tpu.dot_dimension_numbers<[1], [0], [0], [1], [0, 0, 1, 1], [], []>} : vector<8x8xbf16>, vector<8x64xbf16>, vector<8x64xf32> -> vector<8x64xf32>
    %22 = arith.truncf %21 : vector<8x64xf32> to vector<8x64xbf16>
    %c0_10 = arith.constant 0 : index
    %c0_11 = arith.constant 0 : index
    %23 = vector.load %arg3[%c0_10, %c0_11] : memref<8x768xbf16, #tpu.memory_space<vmem>>, vector<8x64xbf16>
    tpu.vector_store %arg3[%c0_10, %c0_11], %22 {strides = array<i32>} : memref<8x768xbf16, #tpu.memory_space<vmem>>, vector<8x64xbf16>,
    %c0_12 = arith.constant 0 : index
    %c64 = arith.constant 64 : index
    %24 = vector.load %arg1[%c0_12, %c64] : memref<8x2304xbf16, #tpu.memory_space<vmem>>, vector<8x64xbf16>
    %c0_13 = arith.constant 0 : index
    %c832 = arith.constant 832 : index
    %25 = vector.load %arg1[%c0_13, %c832] : memref<8x2304xbf16, #tpu.memory_space<vmem>>, vector<8x64xbf16>
    %c0_14 = arith.constant 0 : index
    %c1600 = arith.constant 1600 : index
    %26 = vector.load %arg1[%c0_14, %c1600] : memref<8x2304xbf16, #tpu.memory_space<vmem>>, vector<8x64xbf16>
    %cst_15 = arith.constant dense<0.000000e+00> : vector<8x8xf32>
    %27 = tpu.matmul %24, %25, %cst_15 {dimension_numbers = #tpu.dot_dimension_numbers<[1], [1], [0], [0], [0, 0, 1, 0], [], []>} : vector<8x64xbf16>, vector<8x64xbf16>, vector<8x8xf32> -> vector<8x8xf32>
    %cst_16 = arith.constant 1.250000e-01 : f32
    %28 = vector.broadcast %cst_16 : f32 to vector<8x8xf32>
    %29 = arith.mulf %27, %28 : vector<8x8xf32>
    %30 = vector.broadcast %1 : vector<1x8xf32> to vector<8x8xf32>
    %31 = arith.addf %29, %30 : vector<8x8xf32>
    %cst_17 = arith.constant dense<0xFF800000> : vector<8xf32>
    %32 = vector.multi_reduction <maximumf>, %31, %cst_17 [1] : vector<8x8xf32> to vector<8xf32>
    %33 = vector.shape_cast %32 : vector<8xf32> to vector<8x1xf32>
    %34 = vector.broadcast %33 : vector<8x1xf32> to vector<8x8xf32>
    %35 = arith.subf %31, %34 : vector<8x8xf32>
    %36 = math.exp %35 : vector<8x8xf32>
    %cst_18 = arith.constant dense<0.000000e+00> : vector<8xf32>
    %37 = vector.multi_reduction <add>, %36, %cst_18 [1] : vector<8x8xf32> to vector<8xf32>
    %38 = vector.shape_cast %37 : vector<8xf32> to vector<8x1xf32>
    %39 = tpu.reciprocal %38 {approx = true} : vector<8x1xf32> -> vector<8x1xf32>
    %40 = vector.broadcast %39 : vector<8x1xf32> to vector<8x8xf32>
    %41 = arith.mulf %36, %40 : vector<8x8xf32>
    %42 = arith.truncf %41 : vector<8x8xf32> to vector<8x8xbf16>
    %cst_19 = arith.constant dense<0.000000e+00> : vector<8x64xf32>
    %43 = tpu.matmul %42, %26, %cst_19 {dimension_numbers = #tpu.dot_dimension_numbers<[1], [0], [0], [1], [0, 0, 1, 1], [], []>} : vector<8x8xbf16>, vector<8x64xbf16>, vector<8x64xf32> -> vector<8x64xf32>
    %44 = arith.truncf %43 : vector<8x64xf32> to vector<8x64xbf16>
    %c0_20 = arith.constant 0 : index
    %c64_21 = arith.constant 64 : index
    %45 = vector.load %arg3[%c0_20, %c64_21] : memref<8x768xbf16, #tpu.memory_space<vmem>>, vector<8x64xbf16>
    tpu.vector_store %arg3[%c0_20, %c64_21], %44 {strides = array<i32>} : memref<8x768xbf16, #tpu.memory_space<vmem>>, vector<8x64xbf16>,
    %c0_22 = arith.constant 0 : index
    %c128 = arith.constant 128 : index
    %46 = vector.load %arg1[%c0_22, %c128] : memref<8x2304xbf16, #tpu.memory_space<vmem>>, vector<8x64xbf16>
    %c0_23 = arith.constant 0 : index
    %c896 = arith.constant 896 : index
    %47 = vector.load %arg1[%c0_23, %c896] : memref<8x2304xbf16, #tpu.memory_space<vmem>>, vector<8x64xbf16>
    %c0_24 = arith.constant 0 : index
    %c1664 = arith.constant 1664 : index
    %48 = vector.load %arg1[%c0_24, %c1664] : memref<8x2304xbf16, #tpu.memory_space<vmem>>, vector<8x64xbf16>
    %cst_25 = arith.constant dense<0.000000e+00> : vector<8x8xf32>
    %49 = tpu.matmul %46, %47, %cst_25 {dimension_numbers = #tpu.dot_dimension_numbers<[1], [1], [0], [0], [0, 0, 1, 0], [], []>} : vector<8x64xbf16>, vector<8x64xbf16>, vector<8x8xf32> -> vector<8x8xf32>
    %cst_26 = arith.constant 1.250000e-01 : f32
    %50 = vector.broadcast %cst_26 : f32 to vector<8x8xf32>
    %51 = arith.mulf %49, %50 : vector<8x8xf32>
    %52 = vector.broadcast %1 : vector<1x8xf32> to vector<8x8xf32>
    %53 = arith.addf %51, %52 : vector<8x8xf32>
    %cst_27 = arith.constant dense<0xFF800000> : vector<8xf32>
    %54 = vector.multi_reduction <maximumf>, %53, %cst_27 [1] : vector<8x8xf32> to vector<8xf32>
    %55 = vector.shape_cast %54 : vector<8xf32> to vector<8x1xf32>
    %56 = vector.broadcast %55 : vector<8x1xf32> to vector<8x8xf32>
    %57 = arith.subf %53, %56 : vector<8x8xf32>
    %58 = math.exp %57 : vector<8x8xf32>
    %cst_28 = arith.constant dense<0.000000e+00> : vector<8xf32>
    %59 = vector.multi_reduction <add>, %58, %cst_28 [1] : vector<8x8xf32> to vector<8xf32>
    %60 = vector.shape_cast %59 : vector<8xf32> to vector<8x1xf32>
    %61 = tpu.reciprocal %60 {approx = true} : vector<8x1xf32> -> vector<8x1xf32>
    %62 = vector.broadcast %61 : vector<8x1xf32> to vector<8x8xf32>
    %63 = arith.mulf %58, %62 : vector<8x8xf32>
    %64 = arith.truncf %63 : vector<8x8xf32> to vector<8x8xbf16>
    %cst_29 = arith.constant dense<0.000000e+00> : vector<8x64xf32>
    %65 = tpu.matmul %64, %48, %cst_29 {dimension_numbers = #tpu.dot_dimension_numbers<[1], [0], [0], [1], [0, 0, 1, 1], [], []>} : vector<8x8xbf16>, vector<8x64xbf16>, vector<8x64xf32> -> vector<8x64xf32>
    %66 = arith.truncf %65 : vector<8x64xf32> to vector<8x64xbf16>
    %c0_30 = arith.constant 0 : index
    %c128_31 = arith.constant 128 : index
    %67 = vector.load %arg3[%c0_30, %c128_31] : memref<8x768xbf16, #tpu.memory_space<vmem>>, vector<8x64xbf16>
    tpu.vector_store %arg3[%c0_30, %c128_31], %66 {strides = array<i32>} : memref<8x768xbf16, #tpu.memory_space<vmem>>, vector<8x64xbf16>,
    %c0_32 = arith.constant 0 : index
    %c192 = arith.constant 192 : index
    %68 = vector.load %arg1[%c0_32, %c192] : memref<8x2304xbf16, #tpu.memory_space<vmem>>, vector<8x64xbf16>
    %c0_33 = arith.constant 0 : index
    %c960 = arith.constant 960 : index
    %69 = vector.load %arg1[%c0_33, %c960] : memref<8x2304xbf16, #tpu.memory_space<vmem>>, vector<8x64xbf16>
    %c0_34 = arith.constant 0 : index
    %c1728 = arith.constant 1728 : index
    %70 = vector.load %arg1[%c0_34, %c1728] : memref<8x2304xbf16, #tpu.memory_space<vmem>>, vector<8x64xbf16>
    %cst_35 = arith.constant dense<0.000000e+00> : vector<8x8xf32>
    %71 = tpu.matmul %68, %69, %cst_35 {dimension_numbers = #tpu.dot_dimension_numbers<[1], [1], [0], [0], [0, 0, 1, 0], [], []>} : vector<8x64xbf16>, vector<8x64xbf16>, vector<8x8xf32> -> vector<8x8xf32>
    %cst_36 = arith.constant 1.250000e-01 : f32
    %72 = vector.broadcast %cst_36 : f32 to vector<8x8xf32>
    %73 = arith.mulf %71, %72 : vector<8x8xf32>
    %74 = vector.broadcast %1 : vector<1x8xf32> to vector<8x8xf32>
    %75 = arith.addf %73, %74 : vector<8x8xf32>
    %cst_37 = arith.constant dense<0xFF800000> : vector<8xf32>
    %76 = vector.multi_reduction <maximumf>, %75, %cst_37 [1] : vector<8x8xf32> to vector<8xf32>
    %77 = vector.shape_cast %76 : vector<8xf32> to vector<8x1xf32>
    %78 = vector.broadcast %77 : vector<8x1xf32> to vector<8x8xf32>
    %79 = arith.subf %75, %78 : vector<8x8xf32>
    %80 = math.exp %79 : vector<8x8xf32>
    %cst_38 = arith.constant dense<0.000000e+00> : vector<8xf32>
    %81 = vector.multi_reduction <add>, %80, %cst_38 [1] : vector<8x8xf32> to vector<8xf32>
    %82 = vector.shape_cast %81 : vector<8xf32> to vector<8x1xf32>
    %83 = tpu.reciprocal %82 {approx = true} : vector<8x1xf32> -> vector<8x1xf32>
    %84 = vector.broadcast %83 : vector<8x1xf32> to vector<8x8xf32>
    %85 = arith.mulf %80, %84 : vector<8x8xf32>
    %86 = arith.truncf %85 : vector<8x8xf32> to vector<8x8xbf16>
    %cst_39 = arith.constant dense<0.000000e+00> : vector<8x64xf32>
    %87 = tpu.matmul %86, %70, %cst_39 {dimension_numbers = #tpu.dot_dimension_numbers<[1], [0], [0], [1], [0, 0, 1, 1], [], []>} : vector<8x8xbf16>, vector<8x64xbf16>, vector<8x64xf32> -> vector<8x64xf32>
    %88 = arith.truncf %87 : vector<8x64xf32> to vector<8x64xbf16>
    %c0_40 = arith.constant 0 : index
    %c192_41 = arith.constant 192 : index
    %89 = vector.load %arg3[%c0_40, %c192_41] : memref<8x768xbf16, #tpu.memory_space<vmem>>, vector<8x64xbf16>
    tpu.vector_store %arg3[%c0_40, %c192_41], %88 {strides = array<i32>} : memref<8x768xbf16, #tpu.memory_space<vmem>>, vector<8x64xbf16>,
    %c0_42 = arith.constant 0 : index
    %c256 = arith.constant 256 : index
    %90 = vector.load %arg1[%c0_42, %c256] : memref<8x2304xbf16, #tpu.memory_space<vmem>>, vector<8x64xbf16>
    %c0_43 = arith.constant 0 : index
    %c1024 = arith.constant 1024 : index
    %91 = vector.load %arg1[%c0_43, %c1024] : memref<8x2304xbf16, #tpu.memory_space<vmem>>, vector<8x64xbf16>
    %c0_44 = arith.constant 0 : index
    %c1792 = arith.constant 1792 : index
    %92 = vector.load %arg1[%c0_44, %c1792] : memref<8x2304xbf16, #tpu.memory_space<vmem>>, vector<8x64xbf16>
    %cst_45 = arith.constant dense<0.000000e+00> : vector<8x8xf32>
    %93 = tpu.matmul %90, %91, %cst_45 {dimension_numbers = #tpu.dot_dimension_numbers<[1], [1], [0], [0], [0, 0, 1, 0], [], []>} : vector<8x64xbf16>, vector<8x64xbf16>, vector<8x8xf32> -> vector<8x8xf32>
    %cst_46 = arith.constant 1.250000e-01 : f32
    %94 = vector.broadcast %cst_46 : f32 to vector<8x8xf32>
    %95 = arith.mulf %93, %94 : vector<8x8xf32>
    %96 = vector.broadcast %1 : vector<1x8xf32> to vector<8x8xf32>
    %97 = arith.addf %95, %96 : vector<8x8xf32>
    %cst_47 = arith.constant dense<0xFF800000> : vector<8xf32>
    %98 = vector.multi_reduction <maximumf>, %97, %cst_47 [1] : vector<8x8xf32> to vector<8xf32>
    %99 = vector.shape_cast %98 : vector<8xf32> to vector<8x1xf32>
    %100 = vector.broadcast %99 : vector<8x1xf32> to vector<8x8xf32>
    %101 = arith.subf %97, %100 : vector<8x8xf32>
    %102 = math.exp %101 : vector<8x8xf32>
    %cst_48 = arith.constant dense<0.000000e+00> : vector<8xf32>
    %103 = vector.multi_reduction <add>, %102, %cst_48 [1] : vector<8x8xf32> to vector<8xf32>
    %104 = vector.shape_cast %103 : vector<8xf32> to vector<8x1xf32>
    %105 = tpu.reciprocal %104 {approx = true} : vector<8x1xf32> -> vector<8x1xf32>
    %106 = vector.broadcast %105 : vector<8x1xf32> to vector<8x8xf32>
    %107 = arith.mulf %102, %106 : vector<8x8xf32>
    %108 = arith.truncf %107 : vector<8x8xf32> to vector<8x8xbf16>
    %cst_49 = arith.constant dense<0.000000e+00> : vector<8x64xf32>
    %109 = tpu.matmul %108, %92, %cst_49 {dimension_numbers = #tpu.dot_dimension_numbers<[1], [0], [0], [1], [0, 0, 1, 1], [], []>} : vector<8x8xbf16>, vector<8x64xbf16>, vector<8x64xf32> -> vector<8x64xf32>
    %110 = arith.truncf %109 : vector<8x64xf32> to vector<8x64xbf16>
    %c0_50 = arith.constant 0 : index
    %c256_51 = arith.constant 256 : index
    %111 = vector.load %arg3[%c0_50, %c256_51] : memref<8x768xbf16, #tpu.memory_space<vmem>>, vector<8x64xbf16>
    tpu.vector_store %arg3[%c0_50, %c256_51], %110 {strides = array<i32>} : memref<8x768xbf16, #tpu.memory_space<vmem>>, vector<8x64xbf16>,
    %c0_52 = arith.constant 0 : index
    %c320 = arith.constant 320 : index
    %112 = vector.load %arg1[%c0_52, %c320] : memref<8x2304xbf16, #tpu.memory_space<vmem>>, vector<8x64xbf16>
    %c0_53 = arith.constant 0 : index
    %c1088 = arith.constant 1088 : index
    %113 = vector.load %arg1[%c0_53, %c1088] : memref<8x2304xbf16, #tpu.memory_space<vmem>>, vector<8x64xbf16>
    %c0_54 = arith.constant 0 : index
    %c1856 = arith.constant 1856 : index
    %114 = vector.load %arg1[%c0_54, %c1856] : memref<8x2304xbf16, #tpu.memory_space<vmem>>, vector<8x64xbf16>
    %cst_55 = arith.constant dense<0.000000e+00> : vector<8x8xf32>
    %115 = tpu.matmul %112, %113, %cst_55 {dimension_numbers = #tpu.dot_dimension_numbers<[1], [1], [0], [0], [0, 0, 1, 0], [], []>} : vector<8x64xbf16>, vector<8x64xbf16>, vector<8x8xf32> -> vector<8x8xf32>
    %cst_56 = arith.constant 1.250000e-01 : f32
    %116 = vector.broadcast %cst_56 : f32 to vector<8x8xf32>
    %117 = arith.mulf %115, %116 : vector<8x8xf32>
    %118 = vector.broadcast %1 : vector<1x8xf32> to vector<8x8xf32>
    %119 = arith.addf %117, %118 : vector<8x8xf32>
    %cst_57 = arith.constant dense<0xFF800000> : vector<8xf32>
    %120 = vector.multi_reduction <maximumf>, %119, %cst_57 [1] : vector<8x8xf32> to vector<8xf32>
    %121 = vector.shape_cast %120 : vector<8xf32> to vector<8x1xf32>
    %122 = vector.broadcast %121 : vector<8x1xf32> to vector<8x8xf32>
    %123 = arith.subf %119, %122 : vector<8x8xf32>
    %124 = math.exp %123 : vector<8x8xf32>
    %cst_58 = arith.constant dense<0.000000e+00> : vector<8xf32>
    %125 = vector.multi_reduction <add>, %124, %cst_58 [1] : vector<8x8xf32> to vector<8xf32>
    %126 = vector.shape_cast %125 : vector<8xf32> to vector<8x1xf32>
    %127 = tpu.reciprocal %126 {approx = true} : vector<8x1xf32> -> vector<8x1xf32>
    %128 = vector.broadcast %127 : vector<8x1xf32> to vector<8x8xf32>
    %129 = arith.mulf %124, %128 : vector<8x8xf32>
    %130 = arith.truncf %129 : vector<8x8xf32> to vector<8x8xbf16>
    %cst_59 = arith.constant dense<0.000000e+00> : vector<8x64xf32>
    %131 = tpu.matmul %130, %114, %cst_59 {dimension_numbers = #tpu.dot_dimension_numbers<[1], [0], [0], [1], [0, 0, 1, 1], [], []>} : vector<8x8xbf16>, vector<8x64xbf16>, vector<8x64xf32> -> vector<8x64xf32>
    %132 = arith.truncf %131 : vector<8x64xf32> to vector<8x64xbf16>
    %c0_60 = arith.constant 0 : index
    %c320_61 = arith.constant 320 : index
    %133 = vector.load %arg3[%c0_60, %c320_61] : memref<8x768xbf16, #tpu.memory_space<vmem>>, vector<8x64xbf16>
    tpu.vector_store %arg3[%c0_60, %c320_61], %132 {strides = array<i32>} : memref<8x768xbf16, #tpu.memory_space<vmem>>, vector<8x64xbf16>,
    %c0_62 = arith.constant 0 : index
    %c384 = arith.constant 384 : index
    %134 = vector.load %arg1[%c0_62, %c384] : memref<8x2304xbf16, #tpu.memory_space<vmem>>, vector<8x64xbf16>
    %c0_63 = arith.constant 0 : index
    %c1152 = arith.constant 1152 : index
    %135 = vector.load %arg1[%c0_63, %c1152] : memref<8x2304xbf16, #tpu.memory_space<vmem>>, vector<8x64xbf16>
    %c0_64 = arith.constant 0 : index
    %c1920 = arith.constant 1920 : index
    %136 = vector.load %arg1[%c0_64, %c1920] : memref<8x2304xbf16, #tpu.memory_space<vmem>>, vector<8x64xbf16>
    %cst_65 = arith.constant dense<0.000000e+00> : vector<8x8xf32>
    %137 = tpu.matmul %134, %135, %cst_65 {dimension_numbers = #tpu.dot_dimension_numbers<[1], [1], [0], [0], [0, 0, 1, 0], [], []>} : vector<8x64xbf16>, vector<8x64xbf16>, vector<8x8xf32> -> vector<8x8xf32>
    %cst_66 = arith.constant 1.250000e-01 : f32
    %138 = vector.broadcast %cst_66 : f32 to vector<8x8xf32>
    %139 = arith.mulf %137, %138 : vector<8x8xf32>
    %140 = vector.broadcast %1 : vector<1x8xf32> to vector<8x8xf32>
    %141 = arith.addf %139, %140 : vector<8x8xf32>
    %cst_67 = arith.constant dense<0xFF800000> : vector<8xf32>
    %142 = vector.multi_reduction <maximumf>, %141, %cst_67 [1] : vector<8x8xf32> to vector<8xf32>
    %143 = vector.shape_cast %142 : vector<8xf32> to vector<8x1xf32>
    %144 = vector.broadcast %143 : vector<8x1xf32> to vector<8x8xf32>
    %145 = arith.subf %141, %144 : vector<8x8xf32>
    %146 = math.exp %145 : vector<8x8xf32>
    %cst_68 = arith.constant dense<0.000000e+00> : vector<8xf32>
    %147 = vector.multi_reduction <add>, %146, %cst_68 [1] : vector<8x8xf32> to vector<8xf32>
    %148 = vector.shape_cast %147 : vector<8xf32> to vector<8x1xf32>
    %149 = tpu.reciprocal %148 {approx = true} : vector<8x1xf32> -> vector<8x1xf32>
    %150 = vector.broadcast %149 : vector<8x1xf32> to vector<8x8xf32>
    %151 = arith.mulf %146, %150 : vector<8x8xf32>
    %152 = arith.truncf %151 : vector<8x8xf32> to vector<8x8xbf16>
    %cst_69 = arith.constant dense<0.000000e+00> : vector<8x64xf32>
    %153 = tpu.matmul %152, %136, %cst_69 {dimension_numbers = #tpu.dot_dimension_numbers<[1], [0], [0], [1], [0, 0, 1, 1], [], []>} : vector<8x8xbf16>, vector<8x64xbf16>, vector<8x64xf32> -> vector<8x64xf32>
    %154 = arith.truncf %153 : vector<8x64xf32> to vector<8x64xbf16>
    %c0_70 = arith.constant 0 : index
    %c384_71 = arith.constant 384 : index
    %155 = vector.load %arg3[%c0_70, %c384_71] : memref<8x768xbf16, #tpu.memory_space<vmem>>, vector<8x64xbf16>
    tpu.vector_store %arg3[%c0_70, %c384_71], %154 {strides = array<i32>} : memref<8x768xbf16, #tpu.memory_space<vmem>>, vector<8x64xbf16>,
    %c0_72 = arith.constant 0 : index
    %c448 = arith.constant 448 : index
    %156 = vector.load %arg1[%c0_72, %c448] : memref<8x2304xbf16, #tpu.memory_space<vmem>>, vector<8x64xbf16>
    %c0_73 = arith.constant 0 : index
    %c1216 = arith.constant 1216 : index
    %157 = vector.load %arg1[%c0_73, %c1216] : memref<8x2304xbf16, #tpu.memory_space<vmem>>, vector<8x64xbf16>
    %c0_74 = arith.constant 0 : index
    %c1984 = arith.constant 1984 : index
    %158 = vector.load %arg1[%c0_74, %c1984] : memref<8x2304xbf16, #tpu.memory_space<vmem>>, vector<8x64xbf16>
    %cst_75 = arith.constant dense<0.000000e+00> : vector<8x8xf32>
    %159 = tpu.matmul %156, %157, %cst_75 {dimension_numbers = #tpu.dot_dimension_numbers<[1], [1], [0], [0], [0, 0, 1, 0], [], []>} : vector<8x64xbf16>, vector<8x64xbf16>, vector<8x8xf32> -> vector<8x8xf32>
    %cst_76 = arith.constant 1.250000e-01 : f32
    %160 = vector.broadcast %cst_76 : f32 to vector<8x8xf32>
    %161 = arith.mulf %159, %160 : vector<8x8xf32>
    %162 = vector.broadcast %1 : vector<1x8xf32> to vector<8x8xf32>
    %163 = arith.addf %161, %162 : vector<8x8xf32>
    %cst_77 = arith.constant dense<0xFF800000> : vector<8xf32>
    %164 = vector.multi_reduction <maximumf>, %163, %cst_77 [1] : vector<8x8xf32> to vector<8xf32>
    %165 = vector.shape_cast %164 : vector<8xf32> to vector<8x1xf32>
    %166 = vector.broadcast %165 : vector<8x1xf32> to vector<8x8xf32>
    %167 = arith.subf %163, %166 : vector<8x8xf32>
    %168 = math.exp %167 : vector<8x8xf32>
    %cst_78 = arith.constant dense<0.000000e+00> : vector<8xf32>
    %169 = vector.multi_reduction <add>, %168, %cst_78 [1] : vector<8x8xf32> to vector<8xf32>
    %170 = vector.shape_cast %169 : vector<8xf32> to vector<8x1xf32>
    %171 = tpu.reciprocal %170 {approx = true} : vector<8x1xf32> -> vector<8x1xf32>
    %172 = vector.broadcast %171 : vector<8x1xf32> to vector<8x8xf32>
    %173 = arith.mulf %168, %172 : vector<8x8xf32>
    %174 = arith.truncf %173 : vector<8x8xf32> to vector<8x8xbf16>
    %cst_79 = arith.constant dense<0.000000e+00> : vector<8x64xf32>
    %175 = tpu.matmul %174, %158, %cst_79 {dimension_numbers = #tpu.dot_dimension_numbers<[1], [0], [0], [1], [0, 0, 1, 1], [], []>} : vector<8x8xbf16>, vector<8x64xbf16>, vector<8x64xf32> -> vector<8x64xf32>
    %176 = arith.truncf %175 : vector<8x64xf32> to vector<8x64xbf16>
    %c0_80 = arith.constant 0 : index
    %c448_81 = arith.constant 448 : index
    %177 = vector.load %arg3[%c0_80, %c448_81] : memref<8x768xbf16, #tpu.memory_space<vmem>>, vector<8x64xbf16>
    tpu.vector_store %arg3[%c0_80, %c448_81], %176 {strides = array<i32>} : memref<8x768xbf16, #tpu.memory_space<vmem>>, vector<8x64xbf16>,
    %c0_82 = arith.constant 0 : index
    %c512 = arith.constant 512 : index
    %178 = vector.load %arg1[%c0_82, %c512] : memref<8x2304xbf16, #tpu.memory_space<vmem>>, vector<8x64xbf16>
    %c0_83 = arith.constant 0 : index
    %c1280 = arith.constant 1280 : index
    %179 = vector.load %arg1[%c0_83, %c1280] : memref<8x2304xbf16, #tpu.memory_space<vmem>>, vector<8x64xbf16>
    %c0_84 = arith.constant 0 : index
    %c2048 = arith.constant 2048 : index
    %180 = vector.load %arg1[%c0_84, %c2048] : memref<8x2304xbf16, #tpu.memory_space<vmem>>, vector<8x64xbf16>
    %cst_85 = arith.constant dense<0.000000e+00> : vector<8x8xf32>
    %181 = tpu.matmul %178, %179, %cst_85 {dimension_numbers = #tpu.dot_dimension_numbers<[1], [1], [0], [0], [0, 0, 1, 0], [], []>} : vector<8x64xbf16>, vector<8x64xbf16>, vector<8x8xf32> -> vector<8x8xf32>
    %cst_86 = arith.constant 1.250000e-01 : f32
    %182 = vector.broadcast %cst_86 : f32 to vector<8x8xf32>
    %183 = arith.mulf %181, %182 : vector<8x8xf32>
    %184 = vector.broadcast %1 : vector<1x8xf32> to vector<8x8xf32>
    %185 = arith.addf %183, %184 : vector<8x8xf32>
    %cst_87 = arith.constant dense<0xFF800000> : vector<8xf32>
    %186 = vector.multi_reduction <maximumf>, %185, %cst_87 [1] : vector<8x8xf32> to vector<8xf32>
    %187 = vector.shape_cast %186 : vector<8xf32> to vector<8x1xf32>
    %188 = vector.broadcast %187 : vector<8x1xf32> to vector<8x8xf32>
    %189 = arith.subf %185, %188 : vector<8x8xf32>
    %190 = math.exp %189 : vector<8x8xf32>
    %cst_88 = arith.constant dense<0.000000e+00> : vector<8xf32>
    %191 = vector.multi_reduction <add>, %190, %cst_88 [1] : vector<8x8xf32> to vector<8xf32>
    %192 = vector.shape_cast %191 : vector<8xf32> to vector<8x1xf32>
    %193 = tpu.reciprocal %192 {approx = true} : vector<8x1xf32> -> vector<8x1xf32>
    %194 = vector.broadcast %193 : vector<8x1xf32> to vector<8x8xf32>
    %195 = arith.mulf %190, %194 : vector<8x8xf32>
    %196 = arith.truncf %195 : vector<8x8xf32> to vector<8x8xbf16>
    %cst_89 = arith.constant dense<0.000000e+00> : vector<8x64xf32>
    %197 = tpu.matmul %196, %180, %cst_89 {dimension_numbers = #tpu.dot_dimension_numbers<[1], [0], [0], [1], [0, 0, 1, 1], [], []>} : vector<8x8xbf16>, vector<8x64xbf16>, vector<8x64xf32> -> vector<8x64xf32>
    %198 = arith.truncf %197 : vector<8x64xf32> to vector<8x64xbf16>
    %c0_90 = arith.constant 0 : index
    %c512_91 = arith.constant 512 : index
    %199 = vector.load %arg3[%c0_90, %c512_91] : memref<8x768xbf16, #tpu.memory_space<vmem>>, vector<8x64xbf16>
    tpu.vector_store %arg3[%c0_90, %c512_91], %198 {strides = array<i32>} : memref<8x768xbf16, #tpu.memory_space<vmem>>, vector<8x64xbf16>,
    %c0_92 = arith.constant 0 : index
    %c576 = arith.constant 576 : index
    %200 = vector.load %arg1[%c0_92, %c576] : memref<8x2304xbf16, #tpu.memory_space<vmem>>, vector<8x64xbf16>
    %c0_93 = arith.constant 0 : index
    %c1344 = arith.constant 1344 : index
    %201 = vector.load %arg1[%c0_93, %c1344] : memref<8x2304xbf16, #tpu.memory_space<vmem>>, vector<8x64xbf16>
    %c0_94 = arith.constant 0 : index
    %c2112 = arith.constant 2112 : index
    %202 = vector.load %arg1[%c0_94, %c2112] : memref<8x2304xbf16, #tpu.memory_space<vmem>>, vector<8x64xbf16>
    %cst_95 = arith.constant dense<0.000000e+00> : vector<8x8xf32>
    %203 = tpu.matmul %200, %201, %cst_95 {dimension_numbers = #tpu.dot_dimension_numbers<[1], [1], [0], [0], [0, 0, 1, 0], [], []>} : vector<8x64xbf16>, vector<8x64xbf16>, vector<8x8xf32> -> vector<8x8xf32>
    %cst_96 = arith.constant 1.250000e-01 : f32
    %204 = vector.broadcast %cst_96 : f32 to vector<8x8xf32>
    %205 = arith.mulf %203, %204 : vector<8x8xf32>
    %206 = vector.broadcast %1 : vector<1x8xf32> to vector<8x8xf32>
    %207 = arith.addf %205, %206 : vector<8x8xf32>
    %cst_97 = arith.constant dense<0xFF800000> : vector<8xf32>
    %208 = vector.multi_reduction <maximumf>, %207, %cst_97 [1] : vector<8x8xf32> to vector<8xf32>
    %209 = vector.shape_cast %208 : vector<8xf32> to vector<8x1xf32>
    %210 = vector.broadcast %209 : vector<8x1xf32> to vector<8x8xf32>
    %211 = arith.subf %207, %210 : vector<8x8xf32>
    %212 = math.exp %211 : vector<8x8xf32>
    %cst_98 = arith.constant dense<0.000000e+00> : vector<8xf32>
    %213 = vector.multi_reduction <add>, %212, %cst_98 [1] : vector<8x8xf32> to vector<8xf32>
    %214 = vector.shape_cast %213 : vector<8xf32> to vector<8x1xf32>
    %215 = tpu.reciprocal %214 {approx = true} : vector<8x1xf32> -> vector<8x1xf32>
    %216 = vector.broadcast %215 : vector<8x1xf32> to vector<8x8xf32>
    %217 = arith.mulf %212, %216 : vector<8x8xf32>
    %218 = arith.truncf %217 : vector<8x8xf32> to vector<8x8xbf16>
    %cst_99 = arith.constant dense<0.000000e+00> : vector<8x64xf32>
    %219 = tpu.matmul %218, %202, %cst_99 {dimension_numbers = #tpu.dot_dimension_numbers<[1], [0], [0], [1], [0, 0, 1, 1], [], []>} : vector<8x8xbf16>, vector<8x64xbf16>, vector<8x64xf32> -> vector<8x64xf32>
    %220 = arith.truncf %219 : vector<8x64xf32> to vector<8x64xbf16>
    %c0_100 = arith.constant 0 : index
    %c576_101 = arith.constant 576 : index
    %221 = vector.load %arg3[%c0_100, %c576_101] : memref<8x768xbf16, #tpu.memory_space<vmem>>, vector<8x64xbf16>
    tpu.vector_store %arg3[%c0_100, %c576_101], %220 {strides = array<i32>} : memref<8x768xbf16, #tpu.memory_space<vmem>>, vector<8x64xbf16>,
    %c0_102 = arith.constant 0 : index
    %c640 = arith.constant 640 : index
    %222 = vector.load %arg1[%c0_102, %c640] : memref<8x2304xbf16, #tpu.memory_space<vmem>>, vector<8x64xbf16>
    %c0_103 = arith.constant 0 : index
    %c1408 = arith.constant 1408 : index
    %223 = vector.load %arg1[%c0_103, %c1408] : memref<8x2304xbf16, #tpu.memory_space<vmem>>, vector<8x64xbf16>
    %c0_104 = arith.constant 0 : index
    %c2176 = arith.constant 2176 : index
    %224 = vector.load %arg1[%c0_104, %c2176] : memref<8x2304xbf16, #tpu.memory_space<vmem>>, vector<8x64xbf16>
    %cst_105 = arith.constant dense<0.000000e+00> : vector<8x8xf32>
    %225 = tpu.matmul %222, %223, %cst_105 {dimension_numbers = #tpu.dot_dimension_numbers<[1], [1], [0], [0], [0, 0, 1, 0], [], []>} : vector<8x64xbf16>, vector<8x64xbf16>, vector<8x8xf32> -> vector<8x8xf32>
    %cst_106 = arith.constant 1.250000e-01 : f32
    %226 = vector.broadcast %cst_106 : f32 to vector<8x8xf32>
    %227 = arith.mulf %225, %226 : vector<8x8xf32>
    %228 = vector.broadcast %1 : vector<1x8xf32> to vector<8x8xf32>
    %229 = arith.addf %227, %228 : vector<8x8xf32>
    %cst_107 = arith.constant dense<0xFF800000> : vector<8xf32>
    %230 = vector.multi_reduction <maximumf>, %229, %cst_107 [1] : vector<8x8xf32> to vector<8xf32>
    %231 = vector.shape_cast %230 : vector<8xf32> to vector<8x1xf32>
    %232 = vector.broadcast %231 : vector<8x1xf32> to vector<8x8xf32>
    %233 = arith.subf %229, %232 : vector<8x8xf32>
    %234 = math.exp %233 : vector<8x8xf32>
    %cst_108 = arith.constant dense<0.000000e+00> : vector<8xf32>
    %235 = vector.multi_reduction <add>, %234, %cst_108 [1] : vector<8x8xf32> to vector<8xf32>
    %236 = vector.shape_cast %235 : vector<8xf32> to vector<8x1xf32>
    %237 = tpu.reciprocal %236 {approx = true} : vector<8x1xf32> -> vector<8x1xf32>
    %238 = vector.broadcast %237 : vector<8x1xf32> to vector<8x8xf32>
    %239 = arith.mulf %234, %238 : vector<8x8xf32>
    %240 = arith.truncf %239 : vector<8x8xf32> to vector<8x8xbf16>
    %cst_109 = arith.constant dense<0.000000e+00> : vector<8x64xf32>
    %241 = tpu.matmul %240, %224, %cst_109 {dimension_numbers = #tpu.dot_dimension_numbers<[1], [0], [0], [1], [0, 0, 1, 1], [], []>} : vector<8x8xbf16>, vector<8x64xbf16>, vector<8x64xf32> -> vector<8x64xf32>
    %242 = arith.truncf %241 : vector<8x64xf32> to vector<8x64xbf16>
    %c0_110 = arith.constant 0 : index
    %c640_111 = arith.constant 640 : index
    %243 = vector.load %arg3[%c0_110, %c640_111] : memref<8x768xbf16, #tpu.memory_space<vmem>>, vector<8x64xbf16>
    tpu.vector_store %arg3[%c0_110, %c640_111], %242 {strides = array<i32>} : memref<8x768xbf16, #tpu.memory_space<vmem>>, vector<8x64xbf16>,
    %c0_112 = arith.constant 0 : index
    %c704 = arith.constant 704 : index
    %244 = vector.load %arg1[%c0_112, %c704] : memref<8x2304xbf16, #tpu.memory_space<vmem>>, vector<8x64xbf16>
    %c0_113 = arith.constant 0 : index
    %c1472 = arith.constant 1472 : index
    %245 = vector.load %arg1[%c0_113, %c1472] : memref<8x2304xbf16, #tpu.memory_space<vmem>>, vector<8x64xbf16>
    %c0_114 = arith.constant 0 : index
    %c2240 = arith.constant 2240 : index
    %246 = vector.load %arg1[%c0_114, %c2240] : memref<8x2304xbf16, #tpu.memory_space<vmem>>, vector<8x64xbf16>
    %cst_115 = arith.constant dense<0.000000e+00> : vector<8x8xf32>
    %247 = tpu.matmul %244, %245, %cst_115 {dimension_numbers = #tpu.dot_dimension_numbers<[1], [1], [0], [0], [0, 0, 1, 0], [], []>} : vector<8x64xbf16>, vector<8x64xbf16>, vector<8x8xf32> -> vector<8x8xf32>
    %cst_116 = arith.constant 1.250000e-01 : f32
    %248 = vector.broadcast %cst_116 : f32 to vector<8x8xf32>
    %249 = arith.mulf %247, %248 : vector<8x8xf32>
    %250 = vector.broadcast %1 : vector<1x8xf32> to vector<8x8xf32>
    %251 = arith.addf %249, %250 : vector<8x8xf32>
    %cst_117 = arith.constant dense<0xFF800000> : vector<8xf32>
    %252 = vector.multi_reduction <maximumf>, %251, %cst_117 [1] : vector<8x8xf32> to vector<8xf32>
    %253 = vector.shape_cast %252 : vector<8xf32> to vector<8x1xf32>
    %254 = vector.broadcast %253 : vector<8x1xf32> to vector<8x8xf32>
    %255 = arith.subf %251, %254 : vector<8x8xf32>
    %256 = math.exp %255 : vector<8x8xf32>
    %cst_118 = arith.constant dense<0.000000e+00> : vector<8xf32>
    %257 = vector.multi_reduction <add>, %256, %cst_118 [1] : vector<8x8xf32> to vector<8xf32>
    %258 = vector.shape_cast %257 : vector<8xf32> to vector<8x1xf32>
    %259 = tpu.reciprocal %258 {approx = true} : vector<8x1xf32> -> vector<8x1xf32>
    %260 = vector.broadcast %259 : vector<8x1xf32> to vector<8x8xf32>
    %261 = arith.mulf %256, %260 : vector<8x8xf32>
    %262 = arith.truncf %261 : vector<8x8xf32> to vector<8x8xbf16>
    %cst_119 = arith.constant dense<0.000000e+00> : vector<8x64xf32>
    %263 = tpu.matmul %262, %246, %cst_119 {dimension_numbers = #tpu.dot_dimension_numbers<[1], [0], [0], [1], [0, 0, 1, 1], [], []>} : vector<8x8xbf16>, vector<8x64xbf16>, vector<8x64xf32> -> vector<8x64xf32>
    %264 = arith.truncf %263 : vector<8x64xf32> to vector<8x64xbf16>
    %c0_120 = arith.constant 0 : index
    %c704_121 = arith.constant 704 : index
    %265 = vector.load %arg3[%c0_120, %c704_121] : memref<8x768xbf16, #tpu.memory_space<vmem>>, vector<8x64xbf16>
    tpu.vector_store %arg3[%c0_120, %c704_121], %264 {strides = array<i32>} : memref<8x768xbf16, #tpu.memory_space<vmem>>, vector<8x64xbf16>,
    return
  }
  func.func @transform_0(%arg0: i32) -> (i32, i32) {
    %c0_i32 = arith.constant 0 : i32
    %c0_i32_0 = arith.constant 0 : i32
    return %arg0, %c0_i32 : i32, i32
  }
  func.func @transform_1(%arg0: i32) -> (i32, i32, i32) {
    %c0_i32 = arith.constant 0 : i32
    %c0_i32_0 = arith.constant 0 : i32
    %c0_i32_1 = arith.constant 0 : i32
    return %arg0, %c0_i32, %c0_i32_0 : i32, i32, i32
  }
  func.func @transform_2(%arg0: i32) -> (i32, i32) {
    %c0_i32 = arith.constant 0 : i32
    %c0_i32_0 = arith.constant 0 : i32
    return %arg0, %c0_i32 : i32, i32
  }
}

module attributes {stable_mosaic.version = 11 : i64} {
  func.func @_dense_act_kernel(%arg0: i32, %arg1: memref<16x768xbf16, #tpu.memory_space<vmem>>, %arg2: memref<768x768xbf16, #tpu.memory_space<vmem>>, %arg3: memref<1x768xf32, #tpu.memory_space<vmem>>, %arg4: memref<16x768xbf16, #tpu.memory_space<vmem>>) attributes {dimension_semantics = [#tpu.dimension_semantics<parallel>], iteration_bounds = array<i64: 3>, scalar_prefetch = 0 : i64, scratch_operands = 0 : i64, tpu.core_type = #tpu.core_type<tc>, window_params = [{pipeline_mode = #tpu.pipeline_mode<synchronous>, transform_indices = @transform_0, window_bounds = array<i64: 16, 768>}, {transform_indices = @transform_1, window_bounds = array<i64: 768, 768>}, {transform_indices = @transform_2, window_bounds = array<i64: 1, 768>}, {transform_indices = @transform_3, window_bounds = array<i64: 16, 768>}]} {
    %c0 = arith.constant 0 : index
    %c0_0 = arith.constant 0 : index
    %0 = vector.load %arg1[%c0, %c0_0] : memref<16x768xbf16, #tpu.memory_space<vmem>>, vector<16x768xbf16>
    %c0_1 = arith.constant 0 : index
    %c0_2 = arith.constant 0 : index
    %1 = vector.load %arg2[%c0_1, %c0_2] : memref<768x768xbf16, #tpu.memory_space<vmem>>, vector<768x768xbf16>
    %cst = arith.constant dense<0.000000e+00> : vector<16x768xf32>
    %2 = tpu.matmul %0, %1, %cst {dimension_numbers = #tpu.dot_dimension_numbers<[1], [0], [0], [1], [0, 0, 1, 1], [], []>} : vector<16x768xbf16>, vector<768x768xbf16>, vector<16x768xf32> -> vector<16x768xf32>
    %c0_3 = arith.constant 0 : index
    %c0_4 = arith.constant 0 : index
    %3 = vector.load %arg3[%c0_3, %c0_4] : memref<1x768xf32, #tpu.memory_space<vmem>>, vector<1x768xf32>
    %4 = vector.broadcast %3 : vector<1x768xf32> to vector<16x768xf32>
    %5 = arith.addf %2, %4 : vector<16x768xf32>
    %6 = arith.truncf %5 : vector<16x768xf32> to vector<16x768xbf16>
    %c0_5 = arith.constant 0 : index
    %c0_6 = arith.constant 0 : index
    %7 = vector.load %arg4[%c0_5, %c0_6] : memref<16x768xbf16, #tpu.memory_space<vmem>>, vector<16x768xbf16>
    tpu.vector_store %arg4[%c0_5, %c0_6], %6 {strides = array<i32>} : memref<16x768xbf16, #tpu.memory_space<vmem>>, vector<16x768xbf16>,
    return
  }
  func.func @transform_0(%arg0: i32) -> (i32, i32) {
    %c0_i32 = arith.constant 0 : i32
    %c0_i32_0 = arith.constant 0 : i32
    %c0_i32_1 = arith.constant 0 : i32
    return %c0_i32, %c0_i32_0 : i32, i32
  }
  func.func @transform_1(%arg0: i32) -> (i32, i32) {
    %c0_i32 = arith.constant 0 : i32
    %c0_i32_0 = arith.constant 0 : i32
    return %c0_i32, %arg0 : i32, i32
  }
  func.func @transform_2(%arg0: i32) -> (i32, i32) {
    %c0_i32 = arith.constant 0 : i32
    %c0_i32_0 = arith.constant 0 : i32
    return %c0_i32, %arg0 : i32, i32
  }
  func.func @transform_3(%arg0: i32) -> (i32, i32) {
    %c0_i32 = arith.constant 0 : i32
    %c0_i32_0 = arith.constant 0 : i32
    return %c0_i32, %arg0 : i32, i32
  }
}

module attributes {stable_mosaic.version = 11 : i64} {
  func.func @_ln_kernel(%arg0: i32, %arg1: memref<16x768xf32, #tpu.memory_space<vmem>>, %arg2: memref<1x768xf32, #tpu.memory_space<vmem>>, %arg3: memref<1x768xf32, #tpu.memory_space<vmem>>, %arg4: memref<16x768xbf16, #tpu.memory_space<vmem>>) attributes {dimension_semantics = [#tpu.dimension_semantics<arbitrary>], iteration_bounds = array<i64: 1>, scalar_prefetch = 0 : i64, scratch_operands = 0 : i64, tpu.core_type = #tpu.core_type<tc>, window_params = [{pipeline_mode = #tpu.pipeline_mode<synchronous>, transform_indices = @transform_0, window_bounds = array<i64: 16, 768>}, {pipeline_mode = #tpu.pipeline_mode<synchronous>, transform_indices = @transform_1, window_bounds = array<i64: 1, 768>}, {pipeline_mode = #tpu.pipeline_mode<synchronous>, transform_indices = @transform_2, window_bounds = array<i64: 1, 768>}, {pipeline_mode = #tpu.pipeline_mode<synchronous>, transform_indices = @transform_3, window_bounds = array<i64: 16, 768>}]} {
    %c0 = arith.constant 0 : index
    %c0_0 = arith.constant 0 : index
    %0 = vector.load %arg1[%c0, %c0_0] : memref<16x768xf32, #tpu.memory_space<vmem>>, vector<16x768xf32>
    %cst = arith.constant dense<0.000000e+00> : vector<16xf32>
    %1 = vector.multi_reduction <add>, %0, %cst [1] : vector<16x768xf32> to vector<16xf32>
    %2 = vector.shape_cast %1 : vector<16xf32> to vector<16x1xf32>
    %cst_1 = arith.constant 7.680000e+02 : f32
    %3 = vector.broadcast %cst_1 : f32 to vector<16x1xf32>
    %4 = arith.divf %2, %3 : vector<16x1xf32>
    %5 = vector.broadcast %4 : vector<16x1xf32> to vector<16x768xf32>
    %6 = arith.subf %0, %5 : vector<16x768xf32>
    %7 = arith.mulf %6, %6 : vector<16x768xf32>
    %cst_2 = arith.constant dense<0.000000e+00> : vector<16xf32>
    %8 = vector.multi_reduction <add>, %7, %cst_2 [1] : vector<16x768xf32> to vector<16xf32>
    %9 = vector.shape_cast %8 : vector<16xf32> to vector<16x1xf32>
    %cst_3 = arith.constant 7.680000e+02 : f32
    %10 = vector.broadcast %cst_3 : f32 to vector<16x1xf32>
    %11 = arith.divf %9, %10 : vector<16x1xf32>
    %cst_4 = arith.constant 9.99999996E-13 : f32
    %12 = vector.broadcast %cst_4 : f32 to vector<16x1xf32>
    %13 = arith.addf %11, %12 : vector<16x1xf32>
    %14 = math.rsqrt %13 : vector<16x1xf32>
    %15 = vector.broadcast %4 : vector<16x1xf32> to vector<16x768xf32>
    %16 = arith.subf %0, %15 : vector<16x768xf32>
    %17 = vector.broadcast %14 : vector<16x1xf32> to vector<16x768xf32>
    %18 = arith.mulf %16, %17 : vector<16x768xf32>
    %c0_5 = arith.constant 0 : index
    %c0_6 = arith.constant 0 : index
    %19 = vector.load %arg2[%c0_5, %c0_6] : memref<1x768xf32, #tpu.memory_space<vmem>>, vector<1x768xf32>
    %20 = vector.broadcast %19 : vector<1x768xf32> to vector<16x768xf32>
    %21 = arith.mulf %18, %20 : vector<16x768xf32>
    %c0_7 = arith.constant 0 : index
    %c0_8 = arith.constant 0 : index
    %22 = vector.load %arg3[%c0_7, %c0_8] : memref<1x768xf32, #tpu.memory_space<vmem>>, vector<1x768xf32>
    %23 = vector.broadcast %22 : vector<1x768xf32> to vector<16x768xf32>
    %24 = arith.addf %21, %23 : vector<16x768xf32>
    %25 = arith.truncf %24 : vector<16x768xf32> to vector<16x768xbf16>
    %c0_9 = arith.constant 0 : index
    %c0_10 = arith.constant 0 : index
    %26 = vector.load %arg4[%c0_9, %c0_10] : memref<16x768xbf16, #tpu.memory_space<vmem>>, vector<16x768xbf16>
    tpu.vector_store %arg4[%c0_9, %c0_10], %25 {strides = array<i32>} : memref<16x768xbf16, #tpu.memory_space<vmem>>, vector<16x768xbf16>,
    return
  }
  func.func @transform_0(%arg0: i32) -> (i32, i32) {
    %c0_i32 = arith.constant 0 : i32
    %c0_i32_0 = arith.constant 0 : i32
    %c0_i32_1 = arith.constant 0 : i32
    return %c0_i32, %c0_i32_0 : i32, i32
  }
  func.func @transform_1(%arg0: i32) -> (i32, i32) {
    %c0_i32 = arith.constant 0 : i32
    %c0_i32_0 = arith.constant 0 : i32
    %c0_i32_1 = arith.constant 0 : i32
    return %c0_i32, %c0_i32_0 : i32, i32
  }
  func.func @transform_2(%arg0: i32) -> (i32, i32) {
    %c0_i32 = arith.constant 0 : i32
    %c0_i32_0 = arith.constant 0 : i32
    %c0_i32_1 = arith.constant 0 : i32
    return %c0_i32, %c0_i32_0 : i32, i32
  }
  func.func @transform_3(%arg0: i32) -> (i32, i32) {
    %c0_i32 = arith.constant 0 : i32
    %c0_i32_0 = arith.constant 0 : i32
    %c0_i32_1 = arith.constant 0 : i32
    return %c0_i32, %c0_i32_0 : i32, i32
  }
}

module attributes {stable_mosaic.version = 11 : i64} {
  func.func @_dense_act_kernel(%arg0: i32, %arg1: memref<16x768xbf16, #tpu.memory_space<vmem>>, %arg2: memref<768x768xbf16, #tpu.memory_space<vmem>>, %arg3: memref<1x768xf32, #tpu.memory_space<vmem>>, %arg4: memref<16x768xbf16, #tpu.memory_space<vmem>>) attributes {dimension_semantics = [#tpu.dimension_semantics<parallel>], iteration_bounds = array<i64: 4>, scalar_prefetch = 0 : i64, scratch_operands = 0 : i64, tpu.core_type = #tpu.core_type<tc>, window_params = [{pipeline_mode = #tpu.pipeline_mode<synchronous>, transform_indices = @transform_0, window_bounds = array<i64: 16, 768>}, {transform_indices = @transform_1, window_bounds = array<i64: 768, 768>}, {transform_indices = @transform_2, window_bounds = array<i64: 1, 768>}, {transform_indices = @transform_3, window_bounds = array<i64: 16, 768>}]} {
    %c0 = arith.constant 0 : index
    %c0_0 = arith.constant 0 : index
    %0 = vector.load %arg1[%c0, %c0_0] : memref<16x768xbf16, #tpu.memory_space<vmem>>, vector<16x768xbf16>
    %c0_1 = arith.constant 0 : index
    %c0_2 = arith.constant 0 : index
    %1 = vector.load %arg2[%c0_1, %c0_2] : memref<768x768xbf16, #tpu.memory_space<vmem>>, vector<768x768xbf16>
    %cst = arith.constant dense<0.000000e+00> : vector<16x768xf32>
    %2 = tpu.matmul %0, %1, %cst {dimension_numbers = #tpu.dot_dimension_numbers<[1], [0], [0], [1], [0, 0, 1, 1], [], []>} : vector<16x768xbf16>, vector<768x768xbf16>, vector<16x768xf32> -> vector<16x768xf32>
    %c0_3 = arith.constant 0 : index
    %c0_4 = arith.constant 0 : index
    %3 = vector.load %arg3[%c0_3, %c0_4] : memref<1x768xf32, #tpu.memory_space<vmem>>, vector<1x768xf32>
    %4 = vector.broadcast %3 : vector<1x768xf32> to vector<16x768xf32>
    %5 = arith.addf %2, %4 : vector<16x768xf32>
    %cst_5 = arith.constant 5.000000e-01 : f32
    %6 = vector.broadcast %cst_5 : f32 to vector<16x768xf32>
    %7 = arith.mulf %6, %5 : vector<16x768xf32>
    %cst_6 = arith.constant 4.471500e-02 : f32
    %8 = vector.broadcast %cst_6 : f32 to vector<16x768xf32>
    %9 = arith.mulf %8, %5 : vector<16x768xf32>
    %10 = arith.mulf %9, %5 : vector<16x768xf32>
    %11 = arith.mulf %10, %5 : vector<16x768xf32>
    %12 = arith.addf %5, %11 : vector<16x768xf32>
    %cst_7 = arith.constant 0.797884583 : f32
    %13 = vector.broadcast %cst_7 : f32 to vector<16x768xf32>
    %14 = arith.mulf %13, %12 : vector<16x768xf32>
    %15 = math.tanh %14 : vector<16x768xf32>
    %cst_8 = arith.constant 1.000000e+00 : f32
    %16 = vector.broadcast %cst_8 : f32 to vector<16x768xf32>
    %17 = arith.addf %16, %15 : vector<16x768xf32>
    %18 = arith.mulf %7, %17 : vector<16x768xf32>
    %19 = arith.truncf %18 : vector<16x768xf32> to vector<16x768xbf16>
    %c0_9 = arith.constant 0 : index
    %c0_10 = arith.constant 0 : index
    %20 = vector.load %arg4[%c0_9, %c0_10] : memref<16x768xbf16, #tpu.memory_space<vmem>>, vector<16x768xbf16>
    tpu.vector_store %arg4[%c0_9, %c0_10], %19 {strides = array<i32>} : memref<16x768xbf16, #tpu.memory_space<vmem>>, vector<16x768xbf16>,
    return
  }
  func.func @transform_0(%arg0: i32) -> (i32, i32) {
    %c0_i32 = arith.constant 0 : i32
    %c0_i32_0 = arith.constant 0 : i32
    %c0_i32_1 = arith.constant 0 : i32
    return %c0_i32, %c0_i32_0 : i32, i32
  }
  func.func @transform_1(%arg0: i32) -> (i32, i32) {
    %c0_i32 = arith.constant 0 : i32
    %c0_i32_0 = arith.constant 0 : i32
    return %c0_i32, %arg0 : i32, i32
  }
  func.func @transform_2(%arg0: i32) -> (i32, i32) {
    %c0_i32 = arith.constant 0 : i32
    %c0_i32_0 = arith.constant 0 : i32
    return %c0_i32, %arg0 : i32, i32
  }
  func.func @transform_3(%arg0: i32) -> (i32, i32) {
    %c0_i32 = arith.constant 0 : i32
    %c0_i32_0 = arith.constant 0 : i32
    return %c0_i32, %arg0 : i32, i32
  }
}

module attributes {stable_mosaic.version = 11 : i64} {
  func.func @_dense_res_ln_kernel(%arg0: i32, %arg1: memref<16x384xbf16, #tpu.memory_space<vmem>>, %arg2: memref<384x768xbf16, #tpu.memory_space<vmem>>, %arg3: memref<1x768xf32, #tpu.memory_space<vmem>>, %arg4: memref<16x768xbf16, #tpu.memory_space<vmem>>, %arg5: memref<1x768xf32, #tpu.memory_space<vmem>>, %arg6: memref<1x768xf32, #tpu.memory_space<vmem>>, %arg7: memref<16x768xbf16, #tpu.memory_space<vmem>>, %arg8: memref<16x768xf32, #tpu.memory_space<vmem>>) attributes {dimension_semantics = [#tpu.dimension_semantics<arbitrary>], iteration_bounds = array<i64: 8>, scalar_prefetch = 0 : i64, scratch_operands = 1 : i64, tpu.core_type = #tpu.core_type<tc>, window_params = [{transform_indices = @transform_0, window_bounds = array<i64: 16, 384>}, {transform_indices = @transform_1, window_bounds = array<i64: 384, 768>}, {pipeline_mode = #tpu.pipeline_mode<synchronous>, transform_indices = @transform_2, window_bounds = array<i64: 1, 768>}, {pipeline_mode = #tpu.pipeline_mode<synchronous>, transform_indices = @transform_3, window_bounds = array<i64: 16, 768>}, {pipeline_mode = #tpu.pipeline_mode<synchronous>, transform_indices = @transform_4, window_bounds = array<i64: 1, 768>}, {pipeline_mode = #tpu.pipeline_mode<synchronous>, transform_indices = @transform_5, window_bounds = array<i64: 1, 768>}, {pipeline_mode = #tpu.pipeline_mode<synchronous>, transform_indices = @transform_6, window_bounds = array<i64: 16, 768>}]} {
    %c0_i32 = arith.constant 0 : i32
    %0 = arith.cmpi eq, %arg0, %c0_i32 : i32
    %1 = arith.extui %0 : i1 to i32
    %c0_i32_0 = arith.constant 0 : i32
    %2 = arith.cmpi ne, %1, %c0_i32_0 : i32
    scf.if %2 {
      %cst_9 = arith.constant 0.000000e+00 : f32
      %12 = vector.broadcast %cst_9 : f32 to vector<16x768xf32>
      %c0_10 = arith.constant 0 : index
      %c0_11 = arith.constant 0 : index
      %13 = vector.load %arg8[%c0_10, %c0_11] : memref<16x768xf32, #tpu.memory_space<vmem>>, vector<16x768xf32>
      tpu.vector_store %arg8[%c0_10, %c0_11], %12 {strides = array<i32>} : memref<16x768xf32, #tpu.memory_space<vmem>>, vector<16x768xf32>,
    } else {
    }
    %c0 = arith.constant 0 : index
    %c0_1 = arith.constant 0 : index
    %3 = vector.load %arg8[%c0, %c0_1] : memref<16x768xf32, #tpu.memory_space<vmem>>, vector<16x768xf32>
    %c0_2 = arith.constant 0 : index
    %c0_3 = arith.constant 0 : index
    %4 = vector.load %arg1[%c0_2, %c0_3] : memref<16x384xbf16, #tpu.memory_space<vmem>>, vector<16x384xbf16>
    %c0_4 = arith.constant 0 : index
    %c0_5 = arith.constant 0 : index
    %5 = vector.load %arg2[%c0_4, %c0_5] : memref<384x768xbf16, #tpu.memory_space<vmem>>, vector<384x768xbf16>
    %cst = arith.constant dense<0.000000e+00> : vector<16x768xf32>
    %6 = tpu.matmul %4, %5, %cst {dimension_numbers = #tpu.dot_dimension_numbers<[1], [0], [0], [1], [0, 0, 1, 1], [], []>} : vector<16x384xbf16>, vector<384x768xbf16>, vector<16x768xf32> -> vector<16x768xf32>
    %7 = arith.addf %3, %6 : vector<16x768xf32>
    %c0_6 = arith.constant 0 : index
    %c0_7 = arith.constant 0 : index
    %8 = vector.load %arg8[%c0_6, %c0_7] : memref<16x768xf32, #tpu.memory_space<vmem>>, vector<16x768xf32>
    tpu.vector_store %arg8[%c0_6, %c0_7], %7 {strides = array<i32>} : memref<16x768xf32, #tpu.memory_space<vmem>>, vector<16x768xf32>,
    %c7_i32 = arith.constant 7 : i32
    %9 = arith.cmpi eq, %arg0, %c7_i32 : i32
    %10 = arith.extui %9 : i1 to i32
    %c0_i32_8 = arith.constant 0 : i32
    %11 = arith.cmpi ne, %10, %c0_i32_8 : i32
    scf.if %11 {
      %c0_9 = arith.constant 0 : index
      %c0_10 = arith.constant 0 : index
      %12 = vector.load %arg8[%c0_9, %c0_10] : memref<16x768xf32, #tpu.memory_space<vmem>>, vector<16x768xf32>
      %c0_11 = arith.constant 0 : index
      %c0_12 = arith.constant 0 : index
      %13 = vector.load %arg3[%c0_11, %c0_12] : memref<1x768xf32, #tpu.memory_space<vmem>>, vector<1x768xf32>
      %14 = vector.broadcast %13 : vector<1x768xf32> to vector<16x768xf32>
      %15 = arith.addf %12, %14 : vector<16x768xf32>
      %c0_13 = arith.constant 0 : index
      %c0_14 = arith.constant 0 : index
      %16 = vector.load %arg4[%c0_13, %c0_14] : memref<16x768xbf16, #tpu.memory_space<vmem>>, vector<16x768xbf16>
      %17 = arith.extf %16 : vector<16x768xbf16> to vector<16x768xf32>
      %18 = arith.addf %15, %17 : vector<16x768xf32>
      %cst_15 = arith.constant dense<0.000000e+00> : vector<16xf32>
      %19 = vector.multi_reduction <add>, %18, %cst_15 [1] : vector<16x768xf32> to vector<16xf32>
      %20 = vector.shape_cast %19 : vector<16xf32> to vector<16x1xf32>
      %cst_16 = arith.constant 7.680000e+02 : f32
      %21 = vector.broadcast %cst_16 : f32 to vector<16x1xf32>
      %22 = arith.divf %20, %21 : vector<16x1xf32>
      %23 = vector.broadcast %22 : vector<16x1xf32> to vector<16x768xf32>
      %24 = arith.subf %18, %23 : vector<16x768xf32>
      %25 = arith.mulf %24, %24 : vector<16x768xf32>
      %cst_17 = arith.constant dense<0.000000e+00> : vector<16xf32>
      %26 = vector.multi_reduction <add>, %25, %cst_17 [1] : vector<16x768xf32> to vector<16xf32>
      %27 = vector.shape_cast %26 : vector<16xf32> to vector<16x1xf32>
      %cst_18 = arith.constant 7.680000e+02 : f32
      %28 = vector.broadcast %cst_18 : f32 to vector<16x1xf32>
      %29 = arith.divf %27, %28 : vector<16x1xf32>
      %cst_19 = arith.constant 9.99999996E-13 : f32
      %30 = vector.broadcast %cst_19 : f32 to vector<16x1xf32>
      %31 = arith.addf %29, %30 : vector<16x1xf32>
      %32 = math.rsqrt %31 : vector<16x1xf32>
      %33 = vector.broadcast %22 : vector<16x1xf32> to vector<16x768xf32>
      %34 = arith.subf %18, %33 : vector<16x768xf32>
      %35 = vector.broadcast %32 : vector<16x1xf32> to vector<16x768xf32>
      %36 = arith.mulf %34, %35 : vector<16x768xf32>
      %c0_20 = arith.constant 0 : index
      %c0_21 = arith.constant 0 : index
      %37 = vector.load %arg5[%c0_20, %c0_21] : memref<1x768xf32, #tpu.memory_space<vmem>>, vector<1x768xf32>
      %38 = vector.broadcast %37 : vector<1x768xf32> to vector<16x768xf32>
      %39 = arith.mulf %36, %38 : vector<16x768xf32>
      %c0_22 = arith.constant 0 : index
      %c0_23 = arith.constant 0 : index
      %40 = vector.load %arg6[%c0_22, %c0_23] : memref<1x768xf32, #tpu.memory_space<vmem>>, vector<1x768xf32>
      %41 = vector.broadcast %40 : vector<1x768xf32> to vector<16x768xf32>
      %42 = arith.addf %39, %41 : vector<16x768xf32>
      %43 = arith.truncf %42 : vector<16x768xf32> to vector<16x768xbf16>
      %c0_24 = arith.constant 0 : index
      %c0_25 = arith.constant 0 : index
      %44 = vector.load %arg7[%c0_24, %c0_25] : memref<16x768xbf16, #tpu.memory_space<vmem>>, vector<16x768xbf16>
      tpu.vector_store %arg7[%c0_24, %c0_25], %43 {strides = array<i32>} : memref<16x768xbf16, #tpu.memory_space<vmem>>, vector<16x768xbf16>,
    } else {
    }
    return
  }
  func.func @transform_0(%arg0: i32) -> (i32, i32) {
    %c0_i32 = arith.constant 0 : i32
    %c0_i32_0 = arith.constant 0 : i32
    return %c0_i32, %arg0 : i32, i32
  }
  func.func @transform_1(%arg0: i32) -> (i32, i32) {
    %c0_i32 = arith.constant 0 : i32
    %c0_i32_0 = arith.constant 0 : i32
    return %arg0, %c0_i32 : i32, i32
  }
  func.func @transform_2(%arg0: i32) -> (i32, i32) {
    %c0_i32 = arith.constant 0 : i32
    %c0_i32_0 = arith.constant 0 : i32
    %c0_i32_1 = arith.constant 0 : i32
    return %c0_i32, %c0_i32_0 : i32, i32
  }
  func.func @transform_3(%arg0: i32) -> (i32, i32) {
    %c0_i32 = arith.constant 0 : i32
    %c0_i32_0 = arith.constant 0 : i32
    %c0_i32_1 = arith.constant 0 : i32
    return %c0_i32, %c0_i32_0 : i32, i32
  }
  func.func @transform_4(%arg0: i32) -> (i32, i32) {
    %c0_i32 = arith.constant 0 : i32
    %c0_i32_0 = arith.constant 0 : i32
    %c0_i32_1 = arith.constant 0 : i32
    return %c0_i32, %c0_i32_0 : i32, i32
  }
  func.func @transform_5(%arg0: i32) -> (i32, i32) {
    %c0_i32 = arith.constant 0 : i32
    %c0_i32_0 = arith.constant 0 : i32
    %c0_i32_1 = arith.constant 0 : i32
    return %c0_i32, %c0_i32_0 : i32, i32
  }
  func.func @transform_6(%arg0: i32) -> (i32, i32) {
    %c0_i32 = arith.constant 0 : i32
    %c0_i32_0 = arith.constant 0 : i32
    %c0_i32_1 = arith.constant 0 : i32
    return %c0_i32, %c0_i32_0 : i32, i32
  }
}

module attributes {stable_mosaic.version = 11 : i64} {
  func.func @_dense_act_kernel(%arg0: i32, %arg1: memref<16x768xbf16, #tpu.memory_space<vmem>>, %arg2: memref<768x768xbf16, #tpu.memory_space<vmem>>, %arg3: memref<1x768xf32, #tpu.memory_space<vmem>>, %arg4: memref<16x768xbf16, #tpu.memory_space<vmem>>) attributes {dimension_semantics = [#tpu.dimension_semantics<parallel>], iteration_bounds = array<i64: 3>, scalar_prefetch = 0 : i64, scratch_operands = 0 : i64, tpu.core_type = #tpu.core_type<tc>, window_params = [{pipeline_mode = #tpu.pipeline_mode<synchronous>, transform_indices = @transform_0, window_bounds = array<i64: 16, 768>}, {transform_indices = @transform_1, window_bounds = array<i64: 768, 768>}, {transform_indices = @transform_2, window_bounds = array<i64: 1, 768>}, {transform_indices = @transform_3, window_bounds = array<i64: 16, 768>}]} {
    %c0 = arith.constant 0 : index
    %c0_0 = arith.constant 0 : index
    %0 = vector.load %arg1[%c0, %c0_0] : memref<16x768xbf16, #tpu.memory_space<vmem>>, vector<16x768xbf16>
    %c0_1 = arith.constant 0 : index
    %c0_2 = arith.constant 0 : index
    %1 = vector.load %arg2[%c0_1, %c0_2] : memref<768x768xbf16, #tpu.memory_space<vmem>>, vector<768x768xbf16>
    %cst = arith.constant dense<0.000000e+00> : vector<16x768xf32>
    %2 = tpu.matmul %0, %1, %cst {dimension_numbers = #tpu.dot_dimension_numbers<[1], [0], [0], [1], [0, 0, 1, 1], [], []>} : vector<16x768xbf16>, vector<768x768xbf16>, vector<16x768xf32> -> vector<16x768xf32>
    %c0_3 = arith.constant 0 : index
    %c0_4 = arith.constant 0 : index
    %3 = vector.load %arg3[%c0_3, %c0_4] : memref<1x768xf32, #tpu.memory_space<vmem>>, vector<1x768xf32>
    %4 = vector.broadcast %3 : vector<1x768xf32> to vector<16x768xf32>
    %5 = arith.addf %2, %4 : vector<16x768xf32>
    %6 = arith.truncf %5 : vector<16x768xf32> to vector<16x768xbf16>
    %c0_5 = arith.constant 0 : index
    %c0_6 = arith.constant 0 : index
    %7 = vector.load %arg4[%c0_5, %c0_6] : memref<16x768xbf16, #tpu.memory_space<vmem>>, vector<16x768xbf16>
    tpu.vector_store %arg4[%c0_5, %c0_6], %6 {strides = array<i32>} : memref<16x768xbf16, #tpu.memory_space<vmem>>, vector<16x768xbf16>,
    return
  }
  func.func @transform_0(%arg0: i32) -> (i32, i32) {
    %c0_i32 = arith.constant 0 : i32
    %c0_i32_0 = arith.constant 0 : i32
    %c0_i32_1 = arith.constant 0 : i32
    return %c0_i32, %c0_i32_0 : i32, i32
  }
  func.func @transform_1(%arg0: i32) -> (i32, i32) {
    %c0_i32 = arith.constant 0 : i32
    %c0_i32_0 = arith.constant 0 : i32
    return %c0_i32, %arg0 : i32, i32
  }
  func.func @transform_2(%arg0: i32) -> (i32, i32) {
    %c0_i32 = arith.constant 0 : i32
    %c0_i32_0 = arith.constant 0 : i32
    return %c0_i32, %arg0 : i32, i32
  }
  func.func @transform_3(%arg0: i32) -> (i32, i32) {
    %c0_i32 = arith.constant 0 : i32
    %c0_i32_0 = arith.constant 0 : i32
    return %c0_i32, %arg0 : i32, i32
  }
}

module attributes {stable_mosaic.version = 11 : i64} {
  func.func @_classifier_kernel(%arg0: i32, %arg1: memref<2x768xbf16, #tpu.memory_space<vmem>>, %arg2: memref<768x50xf32, #tpu.memory_space<vmem>>, %arg3: memref<1x50xf32, #tpu.memory_space<vmem>>, %arg4: memref<50x3xf32, #tpu.memory_space<vmem>>, %arg5: memref<1x3xf32, #tpu.memory_space<vmem>>, %arg6: memref<2x3xf32, #tpu.memory_space<vmem>>) attributes {dimension_semantics = [#tpu.dimension_semantics<arbitrary>], iteration_bounds = array<i64: 1>, scalar_prefetch = 0 : i64, scratch_operands = 0 : i64, tpu.core_type = #tpu.core_type<tc>, window_params = [{pipeline_mode = #tpu.pipeline_mode<synchronous>, transform_indices = @transform_0, window_bounds = array<i64: 2, 768>}, {pipeline_mode = #tpu.pipeline_mode<synchronous>, transform_indices = @transform_1, window_bounds = array<i64: 768, 50>}, {pipeline_mode = #tpu.pipeline_mode<synchronous>, transform_indices = @transform_2, window_bounds = array<i64: 1, 50>}, {pipeline_mode = #tpu.pipeline_mode<synchronous>, transform_indices = @transform_3, window_bounds = array<i64: 50, 3>}, {pipeline_mode = #tpu.pipeline_mode<synchronous>, transform_indices = @transform_4, window_bounds = array<i64: 1, 3>}, {pipeline_mode = #tpu.pipeline_mode<synchronous>, transform_indices = @transform_5, window_bounds = array<i64: 2, 3>}]} {
    %c0 = arith.constant 0 : index
    %c0_0 = arith.constant 0 : index
    %0 = vector.load %arg1[%c0, %c0_0] : memref<2x768xbf16, #tpu.memory_space<vmem>>, vector<2x768xbf16>
    %1 = arith.extf %0 : vector<2x768xbf16> to vector<2x768xf32>
    %c0_1 = arith.constant 0 : index
    %c0_2 = arith.constant 0 : index
    %2 = vector.load %arg2[%c0_1, %c0_2] : memref<768x50xf32, #tpu.memory_space<vmem>>, vector<768x50xf32>
    %cst = arith.constant dense<0.000000e+00> : vector<2x50xf32>
    %3 = tpu.matmul %1, %2, %cst {dimension_numbers = #tpu.dot_dimension_numbers<[1], [0], [0], [1], [0, 0, 1, 1], [], []>} : vector<2x768xf32>, vector<768x50xf32>, vector<2x50xf32> -> vector<2x50xf32>
    %c0_3 = arith.constant 0 : index
    %c0_4 = arith.constant 0 : index
    %4 = vector.load %arg3[%c0_3, %c0_4] : memref<1x50xf32, #tpu.memory_space<vmem>>, vector<1x50xf32>
    %5 = vector.broadcast %4 : vector<1x50xf32> to vector<2x50xf32>
    %6 = arith.addf %3, %5 : vector<2x50xf32>
    %cst_5 = arith.constant 0.000000e+00 : f32
    %7 = vector.broadcast %cst_5 : f32 to vector<2x50xf32>
    %8 = arith.maximumf %6, %7 : vector<2x50xf32>
    %c0_6 = arith.constant 0 : index
    %c0_7 = arith.constant 0 : index
    %9 = vector.load %arg4[%c0_6, %c0_7] : memref<50x3xf32, #tpu.memory_space<vmem>>, vector<50x3xf32>
    %cst_8 = arith.constant dense<0.000000e+00> : vector<2x3xf32>
    %10 = tpu.matmul %8, %9, %cst_8 {dimension_numbers = #tpu.dot_dimension_numbers<[1], [0], [0], [1], [0, 0, 1, 1], [], []>} : vector<2x50xf32>, vector<50x3xf32>, vector<2x3xf32> -> vector<2x3xf32>
    %c0_9 = arith.constant 0 : index
    %c0_10 = arith.constant 0 : index
    %11 = vector.load %arg5[%c0_9, %c0_10] : memref<1x3xf32, #tpu.memory_space<vmem>>, vector<1x3xf32>
    %12 = vector.broadcast %11 : vector<1x3xf32> to vector<2x3xf32>
    %13 = arith.addf %10, %12 : vector<2x3xf32>
    %c0_11 = arith.constant 0 : index
    %c0_12 = arith.constant 0 : index
    %14 = vector.load %arg6[%c0_11, %c0_12] : memref<2x3xf32, #tpu.memory_space<vmem>>, vector<2x3xf32>
    tpu.vector_store %arg6[%c0_11, %c0_12], %13 {strides = array<i32>} : memref<2x3xf32, #tpu.memory_space<vmem>>, vector<2x3xf32>,
    return
  }
  func.func @transform_0(%arg0: i32) -> (i32, i32) {
    %c0_i32 = arith.constant 0 : i32
    %c0_i32_0 = arith.constant 0 : i32
    %c0_i32_1 = arith.constant 0 : i32
    return %c0_i32, %c0_i32_0 : i32, i32
  }
  func.func @transform_1(%arg0: i32) -> (i32, i32) {
    %c0_i32 = arith.constant 0 : i32
    %c0_i32_0 = arith.constant 0 : i32
    %c0_i32_1 = arith.constant 0 : i32
    return %c0_i32, %c0_i32_0 : i32, i32
  }
  func.func @transform_2(%arg0: i32) -> (i32, i32) {
    %c0_i32 = arith.constant 0 : i32
    %c0_i32_0 = arith.constant 0 : i32
    %c0_i32_1 = arith.constant 0 : i32
    return %c0_i32, %c0_i32_0 : i32, i32
  }
  func.func @transform_3(%arg0: i32) -> (i32, i32) {
    %c0_i32 = arith.constant 0 : i32
    %c0_i32_0 = arith.constant 0 : i32
    %c0_i32_1 = arith.constant 0 : i32
    return %c0_i32, %c0_i32_0 : i32, i32
  }
  func.func @transform_4(%arg0: i32) -> (i32, i32) {
    %c0_i32 = arith.constant 0 : i32
    %c0_i32_0 = arith.constant 0 : i32
    %c0_i32_1 = arith.constant 0 : i32
    return %c0_i32, %c0_i32_0 : i32, i32
  }
  func.func @transform_5(%arg0: i32) -> (i32, i32) {
    %c0_i32 = arith.constant 0 : i32
    %c0_i32_0 = arith.constant 0 : i32
    %c0_i32_1 = arith.constant 0 : i32
    return %c0_i32, %c0_i32_0 : i32, i32
  }
}

</mosaic_0001>

<bundles_post_ra>
// kernel: bert_class_forward.12
= control target key start
LH: loop header
LB: loop body
LE: loop exit
PB: predicated region body
PF: predicated region fallthrough
CT: control target
= control target key end

     0   :  { %v101_v61 = vlaneseq  ;;  %s384_s0 = inlined_call_operand.vmem [shape: f32[16,768], index: 0, kind: input, shape index: {}]   ;;  %s385_s1 = inlined_call_operand.vmem [shape: f32[1,768], index: 1, kind: input, shape index: {}]   ;;  %s386_s2 = inlined_call_operand.vmem [shape: f32[1,768], index: 2, kind: input, shape index: {}]   ;;  %s387_s3 = inlined_call_operand.vmem [shape: bf16[16,768], index: 3, kind: output, shape index: {}]  }
   0x1   :  { %v14_v0 = vld [vmem:[%s384_s0] sm:$0xff]  ;;  %v15_v1 = vld [vmem:[%s384_s0 + $0x8] sm:$0xff]  ;;  %v16_v2 = vld [vmem:[%s384_s0 + $0x10] sm:$0xff] }
   0x2   :  { %v17_v3 = vld [vmem:[%s384_s0 + $0x18] sm:$0xff]  ;;  %v26_v4 = vadd.f32 %v15_v1, %v14_v0  ;;  %v20_v5 = vld [vmem:[%s384_s0 + $0x30] sm:$0xff]  ;;  %v22_v7 = vld [vmem:[%s384_s0 + $0x40] sm:$0xff] }
   0x3   :  { %v21_v6 = vld [vmem:[%s384_s0 + $0x38] sm:$0xff]  ;;  %v18_v10 = vld [vmem:[%s384_s0 + $0x20] sm:$0xff]  ;;  %v23_v11 = vld [vmem:[%s384_s0 + $0x48] sm:$0xff] }
   0x4   :  { %v27_v8 = vadd.f32 %v26_v4, %v16_v2  ;;  %v33_v9 = vadd.f32 %v21_v6, %v20_v5  ;;  %v19_v14 = vld [vmem:[%s384_s0 + $0x28] sm:$0xff]  ;;  %v24_v15 = vld [vmem:[%s384_s0 + $0x50] sm:$0xff]  ;;  %v25_v18 = vld [vmem:[%s384_s0 + $0x58] sm:$0xff] }
   0x6   :  { %v28_v12 = vadd.f32 %v27_v8, %v17_v3  ;;  %v34_v13 = vadd.f32 %v33_v9, %v22_v7 }
   0x8   :  { %v29_v16 = vadd.f32 %v28_v12, %v18_v10  ;;  %v35_v17 = vadd.f32 %v34_v13, %v23_v11 }
   0xa   :  { %v30_v19 = vadd.f32 %v29_v16, %v19_v14  ;;  %v36_v20 = vadd.f32 %v35_v17, %v24_v15 }
   0xc   :  { %31 = vadd.xlane.f32.xlu0 %v30_v19  ;;  %v37_v21 = vadd.f32 %v36_v20, %v25_v18 }
  0x10   :  { %38 = vadd.xlane.f32.xlu0 %v37_v21 }
  0x99   :  { %v32_v22 = vpop.xlane.xlu0 %31 }
  0x9a   :  { %v41_v23 = vmul.f32 0.0013020834, %v32_v22 }
  0x9c   :  { %v305_v24 = vsub.f32 %v14_v0, %v41_v23  ;;  %v307_v25 = vsub.f32 %v15_v1, %v41_v23  ;;  %v309_v26 = vsub.f32 %v16_v2, %v41_v23  ;;  %v311_v28 = vsub.f32 %v17_v3, %v41_v23 }
  0x9d   :  { %v39_v27 = vpop.xlane.xlu0 %38  ;;  %v317_v32 = vsub.f32 %v18_v10, %v41_v23  ;;  %v48_v38 = vsub.f32 %v19_v14, %v41_v23  ;;  %v102_v1 = vshrl.u32 %v101_v61, 7 }
  0x9e   :  { %v42_v29 = vmul.f32 0.0013020834, %v39_v27  ;;  %v55_v30 = vmul.f32 %v305_v24, %v305_v24  ;;  %v56_v31 = vmul.f32 %v307_v25, %v307_v25  ;;  %v57_v33 = vmul.f32 %v309_v26, %v309_v26 }
  0x9f   :  { %v58_v39 = vmul.f32 %v311_v28, %v311_v28  ;;  %v59_v44 = vmul.f32 %v317_v32, %v317_v32  ;;  %v60_v49 = vmul.f32 %v48_v38, %v48_v38  ;;  %v103_v4 = vsub.s32 0, %v102_v1 }
  0xa0   :  { %v67_v34 = vadd.f32 %v56_v31, %v55_v30  ;;  %v321_v35 = vsub.f32 %v20_v5, %v42_v29  ;;  %v323_v36 = vsub.f32 %v21_v6, %v42_v29  ;;  %v325_v37 = vsub.f32 %v22_v7, %v42_v29  ;;  %v99_v6 = vld [vmem:[%s385_s1] sm:$0x3f] }
  0xa1   :  { %v329_v41 = vsub.f32 %v23_v11, %v42_v29  ;;  %v337_v46 = vsub.f32 %v24_v15, %v42_v29  ;;  %v341_v51 = vsub.f32 %v25_v18, %v42_v29  ;;  %v107_v5 = vsub.s32 1, %v102_v1  ;;  %v143_v11 = vld [vmem:[%s386_s2] sm:$0x3f] }
  0xa2   :  { %v68_v40 = vadd.f32 %v67_v34, %v57_v33  ;;  %v61_v42 = vmul.f32 %v321_v35, %v321_v35  ;;  %v62_v43 = vmul.f32 %v323_v36, %v323_v36  ;;  %v63_v47 = vmul.f32 %v325_v37, %v325_v37 }
  0xa3   :  { %v64_v52 = vmul.f32 %v329_v41, %v329_v41  ;;  %v65_v55 = vmul.f32 %v337_v46, %v337_v46  ;;  %v66_v57 = vmul.f32 %v341_v51, %v341_v51  ;;  %v111_v7 = vsub.s32 2, %v102_v1 }
  0xa4   :  { %v69_v45 = vadd.f32 %v68_v40, %v58_v39  ;;  %v74_v48 = vadd.f32 %v62_v43, %v61_v42  ;;  %v115_v8 = vsub.s32 3, %v102_v1  ;;  %v119_v9 = vsub.s32 4, %v102_v1 }
  0xa5   :  { %v123_v10 = vsub.s32 5, %v102_v1  ;;  %v104_v12 = vrot.slane %v99_v6, %v103_v4  ;;  %v108_v13 = vrot.slane %v99_v6, %v107_v5  ;;  %v112_v14 = vrot.slane %v99_v6, %v111_v7 }
  0xa6   :  { %v70_v50 = vadd.f32 %v69_v45, %v59_v44  ;;  %v75_v53 = vadd.f32 %v74_v48, %v63_v47  ;;  %v116_v15 = vrot.slane %v99_v6, %v115_v8  ;;  %v120_v16 = vrot.slane %v99_v6, %v119_v9 }
  0xa7   :  { %v124_v17 = vrot.slane %v99_v6, %v123_v10  ;;  %v148_v19 = vrot.slane %v143_v11, %v103_v4  ;;  %v152_v20 = vrot.slane %v143_v11, %v107_v5  ;;  %v156_v21 = vrot.slane %v143_v11, %v111_v7 }
  0xa8   :  { %v71_v54 = vadd.f32 %v70_v50, %v60_v49  ;;  %v76_v56 = vadd.f32 %v75_v53, %v64_v52  ;;  %v160_v22 = vrot.slane %v143_v11, %v115_v8  ;;  %v164_v31 = vrot.slane %v143_v11, %v119_v9 }
  0xa9   :  { %v168_v33 = vrot.slane %v143_v11, %v123_v10 }
  0xaa   :  { %72 = vadd.xlane.f32.xlu1 %v71_v54  ;;  %v77_v58 = vadd.f32 %v76_v56, %v65_v55 }
  0xac   :  { %v78_v59 = vadd.f32 %v77_v58, %v66_v57 }
  0xae   :  { %79 = vadd.xlane.f32.xlu1 %v78_v59 }
 0x137   :  { %v73_v60 = vpop.xlane.xlu1 %72 }
 0x138   :  { %v81_v62 = vmul.f32 0.0013020834, %v73_v60 }
 0x13a   :  { %v83_v63 = vadd.f32 1e-12, %v81_v62 }
 0x13b   :  { %v80_v0 = vpop.xlane.xlu1 %79 }
 0x13c   :  { %245 = vrsqrt.f32 %v83_v63  ;;  %v82_v2 = vmul.f32 0.0013020834, %v80_v0 }
 0x13e   :  { %v84_v3 = vadd.f32 1e-12, %v82_v2 }
 0x140   :  { %247 = vrsqrt.f32 %v84_v3 }
 0x146   :  { %v246_v18 = vpop.eup %245 }
 0x147   :  { %v87_v23 = vmul.f32 %v246_v18, %v305_v24  ;;  %v88_v27 = vmul.f32 %v246_v18, %v307_v25  ;;  %v89_v29 = vmul.f32 %v246_v18, %v309_v26  ;;  %v90_v30 = vmul.f32 %v246_v18, %v311_v28 }
 0x148   :  { %v91_v34 = vmul.f32 %v246_v18, %v317_v32  ;;  %v92_v39 = vmul.f32 %v246_v18, %v48_v38 }
 0x149   :  { %v131_v40 = vmul.f32 %v104_v12, %v87_v23  ;;  %v132_v42 = vmul.f32 %v108_v13, %v88_v27  ;;  %v133_v43 = vmul.f32 %v112_v14, %v89_v29  ;;  %v134_v44 = vmul.f32 %v116_v15, %v90_v30 }
 0x14a   :  { %v248_v45 = vpop.eup %247  ;;  %v135_v47 = vmul.f32 %v120_v16, %v91_v34  ;;  %v136_v48 = vmul.f32 %v124_v17, %v92_v39 }
 0x14b   :  { %v175_v49 = vadd.f32 %v148_v19, %v131_v40  ;;  %v176_v24 = vadd.f32 %v152_v20, %v132_v42  ;;  %v177_v50 = vadd.f32 %v156_v21, %v133_v43  ;;  %v178_v25 = vadd.f32 %v160_v22, %v134_v44 }
 0x14c   :  { %v179_v52 = vadd.f32 %v164_v31, %v135_v47  ;;  %v180_v26 = vadd.f32 %v168_v33, %v136_v48  ;;  %v93_v28 = vmul.f32 %v248_v45, %v321_v35  ;;  %v94_v53 = vmul.f32 %v248_v45, %v323_v36 }
 0x14d   :  { %v239_v54 = vpack.c.bf16 %v176_v24, %v175_v49  ;;  %v240_v32 = vpack.c.bf16 %v178_v25, %v177_v50  ;;  %v95_v38 = vmul.f32 %v248_v45, %v325_v37  ;;  %v96_v55 = vmul.f32 %v248_v45, %v329_v41 }
 0x14e   :  { %v241_v56 = vpack.c.bf16 %v180_v26, %v179_v52  ;;  %v97_v57 = vmul.f32 %v248_v45, %v337_v46  ;;  %v98_v58 = vmul.f32 %v248_v45, %v341_v51  ;;  %v137_v59 = vmul.f32 %v104_v12, %v93_v28 }
 0x14f   :  { %223 = vst [vmem:[%s387_s3] sm:$0xff] %v239_v54  ;;  %224 = vst [vmem:[%s387_s3 + $0x8] sm:$0xff] %v240_v32  ;;  %v138_v35 = vmul.f32 %v108_v13, %v94_v53  ;;  %v139_v36 = vmul.f32 %v112_v14, %v95_v38  ;;  %v140_v60 = vmul.f32 %v116_v15, %v96_v55 }
 0x150   :  { %225 = vst [vmem:[%s387_s3 + $0x10] sm:$0xff] %v241_v56  ;;  %v141_v37 = vmul.f32 %v120_v16, %v97_v57  ;;  %v142_v41 = vmul.f32 %v124_v17, %v98_v58  ;;  %v181_v46 = vadd.f32 %v148_v19, %v137_v59 }
 0x151   :  { %v182_v51 = vadd.f32 %v152_v20, %v138_v35  ;;  %v183_v61 = vadd.f32 %v156_v21, %v139_v36  ;;  %v184_v62 = vadd.f32 %v160_v22, %v140_v60 }
 0x152   :  { %v185_v63 = vadd.f32 %v164_v31, %v141_v37  ;;  %v186_v0 = vadd.f32 %v168_v33, %v142_v41 }
 0x153   :  { %v242_v1 = vpack.c.bf16 %v182_v51, %v181_v46  ;;  %v243_v2 = vpack.c.bf16 %v184_v62, %v183_v61 }
 0x154   :  { %v244_v3 = vpack.c.bf16 %v186_v0, %v185_v63 }
 0x155   :  { %226 = vst [vmem:[%s387_s3 + $0x18] sm:$0xff] %v242_v1  ;;  %227 = vst [vmem:[%s387_s3 + $0x20] sm:$0xff] %v243_v2 }
 0x156   :  { %228 = vst [vmem:[%s387_s3 + $0x28] sm:$0xff] %v244_v3 }

// kernel: bert_class_forward.14
= control target key start
LH: loop header
LB: loop body
LE: loop exit
PB: predicated region body
PF: predicated region fallthrough
CT: control target
= control target key end

     0   :  { %s2054_s9 = smov 0   ;;  %s2413_s0 = inlined_call_operand.vmem [shape: bf16[16,2304], index: 0, kind: input, shape index: {}]   ;;  %s2414_s1 = inlined_call_operand.vmem [shape: f32[2,1,8], index: 1, kind: input, shape index: {}]   ;;  %s2415_s2 = inlined_call_operand.vmem [shape: bf16[16,768], index: 2, kind: output, shape index: {}]  }
   0x1 LB: > { %s1693_s10 = sadd.s32 4294967295, %s2034_s9   ;;  %p1697_p0 = scmp.ge.s32.totalorder %s2034_s9, 1  ;;  %s2034_s9 = sphi %s2054_s9, %s12_s9  }
   0x2   : > { %p120_p1 = scmp.lt.s32.totalorder %s2034_s9, 3 }
   0x4   : > { %p121_p2 = pnand %p1697_p0, %p120_p1 }
   0x5   : > { %p145_p3 = scmp.lt.s32.totalorder (!%p121_p2), %s1693_s10, 1  ;;  %v2036_v0 = vmov (!%p121_p2), 0.0   ;;  %vm2037_vm0 = vmmov (!%p121_p2), 0   ;;  %vm163_vm1 = vcmask (!%p121_p2), 523264   ;;  %vm218_vm2 = vcmask (!%p121_p2), 64512   ;;  %s2038_s18 = smov (!%p121_p2), 64  }
   0x6   : > { %124 = sbr.rel (%p121_p2) target bundleno = 1574 (0x626), region = 28  ;;  %1805 = vmatprep.subr.bf16.mxu0 (!%p121_p2), %v2036_v0  ;;  %1807 = vmatprep.mubr.msk.bf16.mxu0 (!%p121_p2), %vm2037_vm0, %v2036_v0  ;;  %vm234_vm3 = vcmask (!%p121_p2), 1043456   ;;  %vm279_vm4 = vcmask (!%p121_p2), 519168   ;;  %vm412_vm5 = vcmask (!%p121_p2), 1043968  }
   0x7   : > { %1811 = vmatprep.subr.bf16.mxu1 (!%p121_p2), %v2036_v0  ;;  %1813 = vmatprep.mubr.msk.bf16.mxu1 (!%p121_p2), %vm2037_vm0, %v2036_v0 }
   0xd   : > { %s2417_s10 = smov (!%p145_p3, %s1693_s10), 1 }
   0xe   : > { %s1949_s11 = smul.u32 72, %s2417_s10  ;;  %s152_s17 = scalar_lea.vmem %s2414_s1, %s2417_s10 }
   0xf   : > { %v2087_v5 = vld [vmem:[%s152_s17] ss:$0 sm:$0xff]  ;;  %s1950_s19 = smul.u32 24, %s2417_s10 }
  0x10   : > { %s2074_s14 = scalar_lea.vmem %s2413_s0, %s1949_s11 }
  0x11   : > { %v161_v1 = vld [vmem:[%s2074_s14 + $0x18] sm:$0xf]  ;;  %v160_v3 = vld [vmem:[%s2074_s14] sm:$0xf]  ;;  %v1965_v14 = vld [vmem:[%s2074_s14 + $0x4] ss:$0 sps:$4 sm:$0xff]   ;;  %s2188_s22 = scalar_lea.vmem %s2415_s2, %s1950_s19 }
  0x12   : > { %v168_v2 = vsel %vm163_vm1, %v161_v1, 0  ;;  %v1962_v12 = vld [vmem:[%s2074_s14 + $0x18] ss:$0 sps:$4 sm:$0xff]   ;;  %v1963_v13 = vld [vmem:[%s2074_s14] ss:$0 sps:$4 sm:$0xff]  }
  0x13   : > { %1806 = vmatpush3.bf16.xpose.msra.mxu0 %v168_v2  ;;  %292 = vrot.lane.b32.xlu1 %v1962_v12, %s2038_s18  ;;  %v1966_v15 = vld [vmem:[%s2074_s14 + $0x20] ss:$0 sps:$4 sm:$0xff]   ;;  %v1967_v16 = vld [vmem:[%s2074_s14 + $0x8] ss:$0 sps:$4 sm:$0xff]   ;;  %v1968_v17 = vld [vmem:[%s2074_s14 + $0x24] ss:$0 sps:$4 sm:$0xff]  }
  0x14   : > { %1823 = vmatprep.subr.bf16.mxu0 %v2036_v0  ;;  %v1969_v18 = vld [vmem:[%s2074_s14 + $0xc] ss:$0 sps:$4 sm:$0xff]   ;;  %v1970_v19 = vld [vmem:[%s2074_s14 + $0x28] ss:$0 sps:$4 sm:$0xff]   ;;  %v162_v26 = vld [vmem:[%s2074_s14 + $0x30] sm:$0xf] }
  0x15   : > { %v1972_v20 = vld [vmem:[%s2074_s14 + $0x2c] ss:$0 sps:$4 sm:$0xff]   ;;  %v236_v27 = vsel %vm234_vm3, %v162_v26, 0  ;;  %v1964_v28 = vld [vmem:[%s2074_s14 + $0x1c] ss:$0 sps:$4 sm:$0xff]  }
  0x16   : > { %1812 = vmatpush3.bf16.msra.mxu1 %v236_v27  ;;  %v1971_v29 = vld [vmem:[%s2074_s14 + $0x10] ss:$0 sps:$4 sm:$0xff]   ;;  %v1973_v30 = vld [vmem:[%s2074_s14 + $0x14] ss:$0 sps:$4 sm:$0xff]   ;;  %v415_v37 = vld [vmem:[%s2074_s14 + $0x1c] sm:$0xf] }
  0x17   : > { %287 = vrot.lane.b32.xlu1 %v1963_v13, %s2038_s18  ;;  %1817 = vmatprep.subr.bf16.mxu1 %v2036_v0  ;;  %v421_v39 = vsel %vm163_vm1, %v415_v37, 0  ;;  %v414_v41 = vld [vmem:[%s2074_s14 + $0x4] sm:$0xf]  ;;  %v658_v43 = vld [vmem:[%s2074_s14 + $0x20] sm:$0xf] }
  0x18   : > { %v664_v45 = vsel %vm163_vm1, %v658_v43, 0  ;;  %v657_v47 = vld [vmem:[%s2074_s14 + $0x8] sm:$0xf]  ;;  %v901_v49 = vld [vmem:[%s2074_s14 + $0x24] sm:$0xf] }
  0x19   : > { %v907_v51 = vsel %vm163_vm1, %v901_v49, 0  ;;  %v900_v53 = vld [vmem:[%s2074_s14 + $0xc] sm:$0xf]  ;;  %v1144_v55 = vld [vmem:[%s2074_s14 + $0x28] sm:$0xf] }
  0x1a   : > { %1808 = vmatmul.mubr.msk.bf16.vlgmr.msra.gmra.mrb[0].mxu0 %vm163_vm1, %v160_v3  ;;  %v1150_v57 = vsel %vm163_vm1, %v1144_v55, 0  ;;  %v1143_v59 = vld [vmem:[%s2074_s14 + $0x10] sm:$0xf]  ;;  %v1387_v61 = vld [vmem:[%s2074_s14 + $0x2c] sm:$0xf] }
  0x1b   : > { %1825 = vmatprep.mubr.msk.bf16.mxu0 %vm2037_vm0, %v2036_v0  ;;  %531 = vrot.lane.b32.xlu1 %v1965_v14, %s2038_s18  ;;  %v1393_v63 = vsel %vm163_vm1, %v1387_v61, 0  ;;  %v1386_v2 = vld [vmem:[%s2074_s14 + $0x14] sm:$0xf] }
  0x1f   : > { %779 = vrot.lane.b32.xlu1 %v1966_v15, %s2038_s18 }
  0x23   : > { %774 = vrot.lane.b32.xlu1 %v1967_v16, %s2038_s18 }
  0x27   : > { %1022 = vrot.lane.b32.xlu1 %v1968_v17, %s2038_s18 }
  0x2b   : > { %1017 = vrot.lane.b32.xlu1 %v1969_v18, %s2038_s18 }
  0x2f   : > { %1265 = vrot.lane.b32.xlu1 %v1970_v19, %s2038_s18 }
  0x33   : > { %1508 = vrot.lane.b32.xlu1 %v1972_v20, %s2038_s18 }
  0x85   : > { %v293_v33 = vpop.permute.xlu1 %292 }
  0x86   : > { %v298_v35 = vsel %vm163_vm1, %v293_v33, 0 }
  0x89   : > { %v288_v38 = vpop.permute.xlu1 %287 }
  0x8d   : > { %v532_v44 = vpop.permute.xlu1 %531 }
  0x91   : > { %v780_v46 = vpop.permute.xlu1 %779 }
  0x92   : > { %v785_v48 = vsel %vm163_vm1, %v780_v46, 0 }
  0x95   : > { %v775_v50 = vpop.permute.xlu1 %774 }
  0x99   : > { %v1023_v52 = vpop.permute.xlu1 %1022 }
  0x9a   : > { %v1028_v54 = vsel %vm163_vm1, %v1023_v52, 0 }
  0x9d   : > { %v1018_v56 = vpop.permute.xlu1 %1017 }
  0xa1   : > { %v1266_v58 = vpop.permute.xlu1 %1265 }
  0xa2   : > { %v1271_v60 = vsel %vm163_vm1, %v1266_v58, 0 }
  0xa5   : > { %v1509_v1 = vpop.permute.xlu1 %1508 }
  0xa6   : > { %v1514_v3 = vsel %vm163_vm1, %v1509_v1, 0 }
  0xed   : > { %v204_v4 = vpop.f32.mrb[0].mxu0 }
  0xee   : > { %v210_v6 = vmul.f32 0.125, %v204_v4  ;;  %v1809_v7 = vpop.f32.mrb[1].mxu0 }
  0xef   : > { %v207_v8 = vpop.f32.mrb[2].mxu0 }
  0xf0   : > { %v1810_v9 = vpop.f32.mrb[3].mxu0  ;;  %v217_v10 = vadd.f32 %v2087_v5, %v210_v6 }
  0xf2   : > { %v219_v11 = vsel %vm218_vm2, %v217_v10, -inf }
  0xf3   : > { %220 = vmax.xlane.f32.xlu0 %v219_v11 }
 0x180   : > { %v221_v21 = vpop.xlane.xlu0 %220 }
 0x181   : > { %v222_v22 = vsub.f32 %v217_v10, %v221_v21 }
 0x183   : > { %v223_v23 = vmul.f32 1.442695, %v222_v22 }
 0x185   : > { %1980 = vpow2.f32 %v223_v23 }
 0x18f   : > { %v1981_v24 = vpop.eup %1980 }
 0x190   : > { %v225_v25 = vsel %vm218_vm2, %v1981_v24, 0.0 }
 0x191   : > { %226 = vadd.xlane.f32.xlu0 %v225_v25 }
 0x1a7   : > { %536 = vrot.lane.b32.xlu0 %v1964_v28, %s2038_s18 }
 0x1ab   : > { %1260 = vrot.lane.b32.xlu0 %v1971_v29, %s2038_s18 }
 0x1af   : > { %1503 = vrot.lane.b32.xlu0 %v1973_v30, %s2038_s18 }
 0x21e   : > { %v227_v31 = vpop.xlane.xlu0 %226 }
 0x21f   : > { %1982 = vrcp.f32 %v227_v31 }
 0x222   : > { %v537_v40 = vpop.permute.xlu0 %536 }
 0x223   : > { %v542_v42 = vsel %vm163_vm1, %v537_v40, 0 }
 0x226   : > { %v1261_v62 = vpop.permute.xlu0 %1260 }
 0x229   : > { %v1983_v32 = vpop.eup %1982 }
 0x22a   : > { %v229_v34 = vmul.f32 %v1983_v32, %v1981_v24  ;;  %v1504_v4 = vpop.permute.xlu0 %1503 }
 0x22c   : > { %v230_v36 = vpack.c.bf16 %v229_v34, %v229_v34 }
 0x22e   : > { %1814 = vmatmul.mubr.msk.bf16.vlgmr.msra.gmra.mrb[0].mxu1 %vm218_vm2, %v230_v36 }
 0x22f   : > { %1818 = vmatpush3.bf16.xpose.msra.mxu1 %v298_v35  ;;  %1819 = vmatprep.mubr.msk.bf16.mxu1 %vm2037_vm0, %v2036_v0 }
 0x230   : > { %1829 = vmatprep.subr.bf16.mxu1 %v2036_v0 }
 0x236   : > { %1820 = vmatmul.mubr.msk.bf16.vlgmr.msra.gmra.mrb[4].mxu1 %vm163_vm1, %v288_v38 }
 0x237   : > { %1830 = vmatpush3.bf16.xpose.msra.mxu1 %v421_v39  ;;  %1831 = vmatprep.mubr.msk.bf16.mxu1 %vm2037_vm0, %v2036_v0 }
 0x238   : > { %1841 = vmatprep.subr.bf16.mxu1 %v2036_v0 }
 0x23e   : > { %1832 = vmatmul.mubr.msk.bf16.vlgmr.msra.gmra.mrb[8].mxu1 %vm163_vm1, %v414_v41 }
 0x23f   : > { %1842 = vmatpush3.bf16.xpose.msra.mxu1 %v542_v42  ;;  %1843 = vmatprep.mubr.msk.bf16.mxu1 %vm2037_vm0, %v2036_v0 }
 0x240   : > { %1853 = vmatprep.subr.bf16.mxu1 %v2036_v0 }
 0x246   : > { %1844 = vmatmul.mubr.msk.bf16.vlgmr.msra.gmra.mrb[12].mxu1 %vm163_vm1, %v532_v44 }
 0x247   : > { %1854 = vmatpush3.bf16.xpose.msra.mxu1 %v664_v45  ;;  %1855 = vmatprep.mubr.msk.bf16.mxu1 %vm2037_vm0, %v2036_v0 }
 0x248   : > { %1865 = vmatprep.subr.bf16.mxu1 %v2036_v0 }
 0x24e   : > { %1856 = vmatmul.mubr.msk.bf16.vlgmr.msra.gmra.mrb[16].mxu1 %vm163_vm1, %v657_v47 }
 0x24f   : > { %1866 = vmatpush3.bf16.xpose.msra.mxu1 %v785_v48  ;;  %1867 = vmatprep.mubr.msk.bf16.mxu1 %vm2037_vm0, %v2036_v0 }
 0x250   : > { %1877 = vmatprep.subr.bf16.mxu1 %v2036_v0 }
 0x256   : > { %1868 = vmatmul.mubr.msk.bf16.vlgmr.msra.gmra.mrb[20].mxu1 %vm163_vm1, %v775_v50 }
 0x257   : > { %1878 = vmatpush3.bf16.xpose.msra.mxu1 %v907_v51  ;;  %1879 = vmatprep.mubr.msk.bf16.mxu1 %vm2037_vm0, %v2036_v0 }
 0x258   : > { %1889 = vmatprep.subr.bf16.mxu1 %v2036_v0 }
 0x25e   : > { %1880 = vmatmul.mubr.msk.bf16.vlgmr.msra.gmra.mrb[24].mxu1 %vm163_vm1, %v900_v53 }
 0x25f   : > { %1890 = vmatpush3.bf16.xpose.msra.mxu1 %v1028_v54  ;;  %1891 = vmatprep.mubr.msk.bf16.mxu1 %vm2037_vm0, %v2036_v0 }
 0x260   : > { %1901 = vmatprep.subr.bf16.mxu1 %v2036_v0 }
 0x266   : > { %1892 = vmatmul.mubr.msk.bf16.vlgmr.msra.gmra.mrb[28].mxu1 %vm163_vm1, %v1018_v56 }
 0x267   : > { %1902 = vmatpush3.bf16.xpose.msra.mxu1 %v1150_v57  ;;  %1903 = vmatprep.mubr.msk.bf16.mxu1 %vm2037_vm0, %v2036_v0 }
 0x268   : > { %1913 = vmatprep.subr.bf16.mxu1 %v2036_v0 }
 0x26e   : > { %1904 = vmatmul.mubr.msk.bf16.vlgmr.msra.gmra.mrb[32].mxu1 %vm163_vm1, %v1143_v59 }
 0x26f   : > { %1914 = vmatpush3.bf16.xpose.msra.mxu1 %v1271_v60  ;;  %1915 = vmatprep.mubr.msk.bf16.mxu1 %vm2037_vm0, %v2036_v0 }
 0x270   : > { %1925 = vmatprep.subr.bf16.mxu1 %v2036_v0 }
 0x276   : > { %1916 = vmatmul.mubr.msk.bf16.vlgmr.msra.gmra.mrb[36].mxu1 %vm163_vm1, %v1261_v62 }
 0x277   : > { %1926 = vmatpush3.bf16.xpose.msra.mxu1 %v1393_v63  ;;  %1927 = vmatprep.mubr.msk.bf16.mxu1 %vm2037_vm0, %v2036_v0 }
 0x278   : > { %1937 = vmatprep.subr.bf16.mxu1 %v2036_v0 }
 0x27e   : > { %1928 = vmatmul.mubr.msk.bf16.vlgmr.msra.gmra.mrb[40].mxu1 %vm163_vm1, %v1386_v2 }
 0x27f   : > { %1938 = vmatpush3.bf16.xpose.msra.mxu1 %v1514_v3  ;;  %1939 = vmatprep.mubr.msk.bf16.mxu1 %vm2037_vm0, %v2036_v0 }
 0x286   : > { %1940 = vmatmul.mubr.msk.bf16.vlgmr.msra.gmra.mrb[44].mxu1 %vm163_vm1, %v1504_v4 }
 0x301   : > { %v272_v6 = vpop.f32.mrb[0].mxu1 }
 0x302   : > { %v278_v7 = vpack.c.bf16 %v272_v6, %v272_v6  ;;  %v1815_v8 = vpop.f32.mrb[1].mxu1 }
 0x303   : > { %v275_v9 = vpop.f32.mrb[2].mxu1 }
 0x304   : > { %280 = vst.msk [vmem:[%s2188_s22] sm:$0xf] %vm279_vm4, %v278_v7  ;;  %v1816_v10 = vpop.f32.mrb[3].mxu1 }
 0x309   : > { %v334_v11 = vpop.f32.mrb[4].mxu1 }
 0x30a   : > { %v340_v12 = vmul.f32 0.125, %v334_v11  ;;  %v1821_v13 = vpop.f32.mrb[5].mxu1 }
 0x30b   : > { %v337_v14 = vpop.f32.mrb[6].mxu1 }
 0x30c   : > { %v1822_v15 = vpop.f32.mrb[7].mxu1  ;;  %v2193_v16 = vadd.f32 %v2087_v5, %v340_v12 }
 0x30e   : > { %v342_v17 = vsel %vm218_vm2, %v2193_v16, -inf }
 0x30f   : > { %343 = vmax.xlane.f32.xlu1 %v342_v17 }
 0x311   : > { %v457_v18 = vpop.f32.mrb[8].mxu1 }
 0x312   : > { %v463_v19 = vmul.f32 0.125, %v457_v18  ;;  %v1833_v20 = vpop.f32.mrb[9].mxu1 }
 0x313   : > { %v460_v21 = vpop.f32.mrb[10].mxu1 }
 0x314   : > { %v1834_v22 = vpop.f32.mrb[11].mxu1  ;;  %v2198_v23 = vadd.f32 %v2087_v5, %v463_v19 }
 0x316   : > { %v465_v24 = vsel %vm218_vm2, %v2198_v23, -inf }
 0x317   : > { %466 = vmax.xlane.f32.xlu0 %v465_v24 }
 0x319   : > { %v578_v25 = vpop.f32.mrb[12].mxu1 }
 0x31a   : > { %v584_v26 = vmul.f32 0.125, %v578_v25  ;;  %v1845_v27 = vpop.f32.mrb[13].mxu1 }
 0x31b   : > { %v581_v28 = vpop.f32.mrb[14].mxu1 }
 0x31c   : > { %v2203_v29 = vadd.f32 %v2087_v5, %v584_v26  ;;  %v1846_v30 = vpop.f32.mrb[15].mxu1 }
 0x31e   : > { %v586_v31 = vsel %vm218_vm2, %v2203_v29, -inf }
 0x31f   : > { %587 = vmax.xlane.f32.xlu0 %v586_v31 }
 0x321   : > { %v700_v32 = vpop.f32.mrb[16].mxu1 }
 0x322   : > { %v706_v33 = vmul.f32 0.125, %v700_v32  ;;  %v1857_v34 = vpop.f32.mrb[17].mxu1 }
 0x323   : > { %v703_v35 = vpop.f32.mrb[18].mxu1 }
 0x324   : > { %v2208_v36 = vadd.f32 %v2087_v5, %v706_v33  ;;  %v1858_v37 = vpop.f32.mrb[19].mxu1 }
 0x326   : > { %v708_v38 = vsel %vm218_vm2, %v2208_v36, -inf }
 0x327   : > { %709 = vmax.xlane.f32.xlu1 %v708_v38 }
 0x329   : > { %v821_v39 = vpop.f32.mrb[20].mxu1 }
 0x32a   : > { %v827_v40 = vmul.f32 0.125, %v821_v39  ;;  %v1869_v41 = vpop.f32.mrb[21].mxu1 }
 0x32b   : > { %v824_v42 = vpop.f32.mrb[22].mxu1 }
 0x32c   : > { %v2213_v43 = vadd.f32 %v2087_v5, %v827_v40  ;;  %v1870_v44 = vpop.f32.mrb[23].mxu1  ;;  %v1974_v42 = vld [vmem:[%s2074_s14 + $0x34] ss:$0 sps:$4 sm:$0xff]  }
 0x32d   : > { %v1975_v44 = vld [vmem:[%s2074_s14 + $0x30] ss:$0 sps:$4 sm:$0xff]  }
 0x32e   : > { %v829_v45 = vsel %vm218_vm2, %v2213_v43, -inf }
 0x32f   : > { %830 = vmax.xlane.f32.xlu0 %v829_v45 }
 0x331   : > { %v943_v46 = vpop.f32.mrb[24].mxu1 }
 0x332   : > { %v949_v47 = vmul.f32 0.125, %v943_v46  ;;  %v1881_v48 = vpop.f32.mrb[25].mxu1 }
 0x333   : > { %v946_v49 = vpop.f32.mrb[26].mxu1 }
 0x334   : > { %v2218_v50 = vadd.f32 %v2087_v5, %v949_v47  ;;  %v1882_v51 = vpop.f32.mrb[27].mxu1 }
 0x336   : > { %v951_v52 = vsel %vm218_vm2, %v2218_v50, -inf }
 0x337   : > { %952 = vmax.xlane.f32.xlu1 %v951_v52 }
 0x339   : > { %v1064_v53 = vpop.f32.mrb[28].mxu1 }
 0x33a   : > { %v1070_v54 = vmul.f32 0.125, %v1064_v53  ;;  %v1893_v55 = vpop.f32.mrb[29].mxu1 }
 0x33b   : > { %v1067_v56 = vpop.f32.mrb[30].mxu1 }
 0x33c   : > { %v2223_v57 = vadd.f32 %v2087_v5, %v1070_v54  ;;  %v1894_v58 = vpop.f32.mrb[31].mxu1 }
 0x33e   : > { %v1072_v59 = vsel %vm218_vm2, %v2223_v57, -inf }
 0x33f   : > { %1073 = vmax.xlane.f32.xlu0 %v1072_v59 }
 0x341   : > { %v1186_v60 = vpop.f32.mrb[32].mxu1 }
 0x342   : > { %v1192_v61 = vmul.f32 0.125, %v1186_v60  ;;  %v1905_v62 = vpop.f32.mrb[33].mxu1 }
 0x343   : > { %v1189_v63 = vpop.f32.mrb[34].mxu1  ;;  %v1976_v62 = vld [vmem:[%s2074_s14 + $0x38] ss:$0 sps:$4 sm:$0xff]  }
 0x344   : > { %v2228_v1 = vadd.f32 %v2087_v5, %v1192_v61  ;;  %v1906_v2 = vpop.f32.mrb[35].mxu1  ;;  %v1977_v63 = vld [vmem:[%s2074_s14 + $0x3c] ss:$0 sps:$4 sm:$0xff]  }
 0x346   : > { %v1194_v3 = vsel %vm218_vm2, %v2228_v1, -inf }
 0x347   : > { %1195 = vmax.xlane.f32.xlu1 %v1194_v3 }
 0x349   : > { %v1307_v4 = vpop.f32.mrb[36].mxu1 }
 0x34a   : > { %v1313_v6 = vmul.f32 0.125, %v1307_v4  ;;  %v1917_v7 = vpop.f32.mrb[37].mxu1 }
 0x34b   : > { %v1310_v8 = vpop.f32.mrb[38].mxu1 }
 0x34c   : > { %v2233_v9 = vadd.f32 %v2087_v5, %v1313_v6  ;;  %v1918_v10 = vpop.f32.mrb[39].mxu1 }
 0x34e   : > { %v1315_v11 = vsel %vm218_vm2, %v2233_v9, -inf }
 0x34f   : > { %1316 = vmax.xlane.f32.xlu0 %v1315_v11 }
 0x351   : > { %v1429_v12 = vpop.f32.mrb[40].mxu1 }
 0x352   : > { %v1435_v13 = vmul.f32 0.125, %v1429_v12  ;;  %v1929_v14 = vpop.f32.mrb[41].mxu1 }
 0x353   : > { %v1432_v15 = vpop.f32.mrb[42].mxu1 }
 0x354   : > { %v2238_v17 = vadd.f32 %v2087_v5, %v1435_v13  ;;  %v1930_v18 = vpop.f32.mrb[43].mxu1 }
 0x356   : > { %v1437_v19 = vsel %vm218_vm2, %v2238_v17, -inf }
 0x357   : > { %1438 = vmax.xlane.f32.xlu1 %v1437_v19 }
 0x359   : > { %v1550_v20 = vpop.f32.mrb[44].mxu1 }
 0x35a   : > { %v1556_v21 = vmul.f32 0.125, %v1550_v20  ;;  %v1941_v22 = vpop.f32.mrb[45].mxu1 }
 0x35b   : > { %v1553_v24 = vpop.f32.mrb[46].mxu1 }
 0x35c   : > { %v2243_v25 = vadd.f32 %v2087_v5, %v1556_v21  ;;  %v1942_v26 = vpop.f32.mrb[47].mxu1 }
 0x35e   : > { %v1558_v27 = vsel %vm218_vm2, %v2243_v25, -inf }
 0x35f   : > { %1559 = vmax.xlane.f32.xlu0 %v1558_v27  ;;  %v1979_v27 = vld [vmem:[%s2074_s14 + $0x44] ss:$0 sps:$4 sm:$0xff]  }
 0x39c   : > { %v344_v28 = vpop.xlane.xlu1 %343 }
 0x39d   : > { %v345_v30 = vsub.f32 %v2193_v16, %v344_v28 }
 0x39f   : > { %v346_v31 = vmul.f32 1.442695, %v345_v30 }
 0x3a1   : > { %1984 = vpow2.f32 %v346_v31 }
 0x3a4   : > { %v467_v32 = vpop.xlane.xlu0 %466 }
 0x3a5   : > { %v468_v33 = vsub.f32 %v2198_v23, %v467_v32 }
 0x3a7   : > { %v469_v34 = vmul.f32 1.442695, %v468_v33  ;;  %v416_v33 = vld [vmem:[%s2074_s14 + $0x34] sm:$0xf] }
 0x3a9   : > { %1986 = vpow2.f32 %v469_v34 }
 0x3ab   : > { %v2249_v35 = vpop.eup %1984 }
 0x3ac   : > { %v588_v5 = vpop.xlane.xlu0 %587  ;;  %v348_v37 = vsel %vm218_vm2, %v2249_v35, 0.0 }
 0x3ad   : > { %v589_v38 = vsub.f32 %v2203_v29, %v588_v5  ;;  %349 = vadd.xlane.f32.xlu1 %v348_v37  ;;  %v481_v37 = vsel %vm234_vm3, %v416_v33, 0 }
 0x3af   : > { %v590_v39 = vmul.f32 1.442695, %v589_v38 }
 0x3b1   : > { %1988 = vpow2.f32 %v590_v39 }
 0x3b3   : > { %v2254_v16 = vpop.eup %1986 }
 0x3b4   : > { %v471_v23 = vsel %vm218_vm2, %v2254_v16, 0.0  ;;  %v710_v29 = vpop.xlane.xlu1 %709 }
 0x3b5   : > { %472 = vadd.xlane.f32.xlu0 %v471_v23  ;;  %v711_v45 = vsub.f32 %v2208_v36, %v710_v29  ;;  %v659_v29 = vld [vmem:[%s2074_s14 + $0x38] sm:$0xf] }
 0x3b7   : > { %v712_v47 = vmul.f32 1.442695, %v711_v45 }
 0x3b9   : > { %1990 = vpow2.f32 %v712_v47 }
 0x3bb   : > { %v2258_v40 = vpop.eup %1988 }
 0x3bc   : > { %v592_v41 = vsel %vm218_vm2, %v2258_v40, 0.0  ;;  %v831_v46 = vpop.xlane.xlu0 %830 }
 0x3bd   : > { %593 = vadd.xlane.f32.xlu1 %v592_v41  ;;  %v832_v48 = vsub.f32 %v2213_v43, %v831_v46 }
 0x3bf   : > { %v833_v53 = vmul.f32 1.442695, %v832_v48 }
 0x3c1   : > { %1992 = vpow2.f32 %v833_v53 }
 0x3c3   : > { %v2270_v36 = vpop.eup %1990 }
 0x3c4   : > { %v953_v49 = vpop.xlane.xlu1 %952  ;;  %v714_v43 = vsel %vm218_vm2, %v2270_v36, 0.0 }
 0x3c5   : > { %v954_v52 = vsub.f32 %v2218_v50, %v953_v49 }
 0x3c7   : > { %v955_v55 = vmul.f32 1.442695, %v954_v52 }
 0x3c9   : > { %1994 = vpow2.f32 %v955_v55 }
 0x3cb   : > { %601 = vrot.lane.b32.xlu0 %v1974_v42, %s2038_s18  ;;  %v2274_v58 = vpop.eup %1992 }
 0x3cc   : > { %v1074_v51 = vpop.xlane.xlu0 %1073 }
 0x3cd   : > { %v1075_v54 = vsub.f32 %v2223_v57, %v1074_v51  ;;  %v835_v57 = vsel %vm218_vm2, %v2274_v58, 0.0 }
 0x3ce   : > { %357 = vrot.lane.b32.xlu1 %v1975_v44, %s2038_s18 }
 0x3cf   : > { %v1076_v56 = vmul.f32 1.442695, %v1075_v54 }
 0x3d1   : > { %1996 = vpow2.f32 %v1076_v56 }
 0x3d3   : > { %v2276_v50 = vpop.eup %1994 }
 0x3d4   : > { %v957_v60 = vsel %vm218_vm2, %v2276_v50, 0.0  ;;  %v1196_v3 = vpop.xlane.xlu1 %1195 }
 0x3d5   : > { %v1197_v6 = vsub.f32 %v2228_v1, %v1196_v3 }
 0x3d7   : > { %v1198_v8 = vmul.f32 1.442695, %v1197_v6 }
 0x3d9   : > { %1998 = vpow2.f32 %v1198_v8 }
 0x3db   : > { %v2280_v59 = vpop.eup %1996 }
 0x3dc   : > { %v1078_v61 = vsel %vm218_vm2, %v2280_v59, 0.0  ;;  %v1317_v2 = vpop.xlane.xlu0 %1316 }
 0x3dd   : > { %v1318_v10 = vsub.f32 %v2233_v9, %v1317_v2 }
 0x3df   : > { %v1319_v13 = vmul.f32 1.442695, %v1318_v10 }
 0x3e3   : > { %v2294_v18 = vpop.eup %1998 }
 0x3e4   : > { %v1439_v12 = vpop.xlane.xlu1 %1438  ;;  %v1200_v1 = vsel %vm218_vm2, %v2294_v18, 0.0 }
 0x3e5   : > { %v1440_v14 = vsub.f32 %v2238_v17, %v1439_v12 }
 0x3e7   : > { %v1441_v15 = vmul.f32 1.442695, %v1440_v14 }
 0x3ea   : > { %715 = vadd.xlane.f32.xlu0 %v714_v43  ;;  %v902_v43 = vld [vmem:[%s2074_s14 + $0x3c] sm:$0xf] }
 0x3ec   : > { %v1560_v4 = vpop.xlane.xlu0 %1559 }
 0x3ed   : > { %v1561_v7 = vsub.f32 %v2243_v25, %v1560_v4  ;;  %v1978_v25 = vld [vmem:[%s2074_s14 + $0x40] ss:$0 sps:$4 sm:$0xff]  }
 0x3ee   : > { %836 = vadd.xlane.f32.xlu0 %v835_v57  ;;  %v1145_v4 = vld [vmem:[%s2074_s14 + $0x40] sm:$0xf] }
 0x3ef   : > { %v1562_v11 = vmul.f32 1.442695, %v1561_v7 }
 0x3f1   : > { %2000 = vpow2.f32 %v1562_v11 }
 0x3f2   : > { %958 = vadd.xlane.f32.xlu0 %v957_v60  ;;  %1079 = vadd.xlane.f32.xlu1 %v1078_v61  ;;  %2002 = vpow2.f32 %v1319_v13 }
 0x3f3   : > { %2004 = vpow2.f32 %v1441_v15 }
 0x3fb   : > { %v2296_v19 = vpop.eup %2000 }
 0x3fc   : > { %v1564_v9 = vsel %vm218_vm2, %v2296_v19, 0.0  ;;  %v2302_v20 = vpop.eup %2002 }
 0x3fd   : > { %v1321_v17 = vsel %vm218_vm2, %v2302_v20, 0.0  ;;  %v2306_v21 = vpop.eup %2004 }
 0x3fe   : > { %v1443_v22 = vsel %vm218_vm2, %v2306_v21, 0.0 }
 0x403   : > { %844 = vrot.lane.b32.xlu1 %v1976_v62, %s2038_s18 }
 0x408   : > { %1087 = vrot.lane.b32.xlu0 %v1977_v63, %s2038_s18 }
 0x427   : > { %1201 = vadd.xlane.f32.xlu0 %v1200_v1  ;;  %1565 = vadd.xlane.f32.xlu1 %v1564_v9 }
 0x42b   : > { %1322 = vadd.xlane.f32.xlu0 %v1321_v17  ;;  %v1388_v17 = vld [vmem:[%s2074_s14 + $0x44] sm:$0xf] }
 0x42f   : > { %1444 = vadd.xlane.f32.xlu0 %v1443_v22 }
 0x43a   : > { %v350_v24 = vpop.xlane.xlu1 %349 }
 0x43b   : > { %2006 = vrcp.f32 %v350_v24 }
 0x442   : > { %v473_v26 = vpop.xlane.xlu0 %472 }
 0x443   : > { %2008 = vrcp.f32 %v473_v26 }
 0x445   : > { %1330 = vrot.lane.b32.xlu0 %v1978_v25, %s2038_s18  ;;  %v2007_v28 = vpop.eup %2006 }
 0x446   : > { %v352_v31 = vmul.f32 %v2007_v28, %v2249_v35  ;;  %v602_v39 = vpop.permute.xlu0 %601 }
 0x447   : > { %v607_v42 = vsel %vm234_vm3, %v602_v39, 0 }
 0x448   : > { %v353_v5 = vpack.c.bf16 %v352_v31, %v352_v31 }
 0x449   : > { %1573 = vrot.lane.b32.xlu0 %v1979_v27, %s2038_s18 }
 0x44a   : > { %v594_v30 = vpop.xlane.xlu1 %593 }
 0x44b   : > { %2010 = vrcp.f32 %v594_v30 }
 0x44d   : > { %v2009_v38 = vpop.eup %2008 }
 0x44e   : > { %v358_v32 = vpop.permute.xlu1 %357  ;;  %v475_v35 = vmul.f32 %v2009_v38, %v2254_v16  ;;  %v724_v16 = vsel %vm234_vm3, %v659_v29, 0 }
 0x44f   : > { %v363_v34 = vsel %vm234_vm3, %v358_v32, 0 }
 0x450   : > { %1824 = vmatpush3.bf16.msra.mxu0 %v363_v34  ;;  %v476_v23 = vpack.c.bf16 %v475_v35, %v475_v35 }
 0x451   : > { %1835 = vmatprep.subr.bf16.mxu0 %v2036_v0 }
 0x453   : > { %1826 = vmatmul.mubr.msk.bf16.vlgmr.msra.gmra.mrb[4].mxu0 %vm218_vm2, %v353_v5 }
 0x454   : > { %1836 = vmatpush3.bf16.msra.mxu0 %v481_v37  ;;  %1837 = vmatprep.mubr.msk.bf16.mxu0 %vm2037_vm0, %v2036_v0 }
 0x455   : > { %1847 = vmatprep.subr.bf16.mxu0 %v2036_v0  ;;  %v2011_v41 = vpop.eup %2010 }
 0x456   : > { %v596_v44 = vmul.f32 %v2011_v41, %v2258_v40 }
 0x458   : > { %v597_v45 = vpack.c.bf16 %v596_v44, %v596_v44 }
 0x45b   : > { %1838 = vmatmul.mubr.msk.bf16.vlgmr.msra.gmra.mrb[8].mxu0 %vm218_vm2, %v476_v23 }
 0x45c   : > { %1848 = vmatpush3.bf16.msra.mxu0 %v607_v42  ;;  %1849 = vmatprep.mubr.msk.bf16.mxu0 %vm2037_vm0, %v2036_v0 }
 0x45d   : > { %1859 = vmatprep.subr.bf16.mxu0 %v2036_v0 }
 0x463   : > { %1850 = vmatmul.mubr.msk.bf16.vlgmr.msra.gmra.mrb[12].mxu0 %vm218_vm2, %v597_v45 }
 0x464   : > { %1860 = vmatpush3.bf16.msra.mxu0 %v724_v16  ;;  %1861 = vmatprep.mubr.msk.bf16.mxu0 %vm2037_vm0, %v2036_v0 }
 0x465   : > { %1871 = vmatprep.subr.bf16.mxu0 %v2036_v0 }
 0x477   : > { %v716_v46 = vpop.xlane.xlu0 %715 }
 0x478   : > { %2012 = vrcp.f32 %v716_v46 }
 0x47b   : > { %v837_v47 = vpop.xlane.xlu0 %836 }
 0x47c   : > { %2014 = vrcp.f32 %v837_v47 }
 0x47f   : > { %v1080_v40 = vpop.xlane.xlu1 %1079  ;;  %v959_v48 = vpop.xlane.xlu0 %958 }
 0x480   : > { %2016 = vrcp.f32 %v959_v48 }
 0x481   : > { %2018 = vrcp.f32 %v1080_v40 }
 0x482   : > { %v2013_v49 = vpop.eup %2012 }
 0x483   : > { %v718_v51 = vmul.f32 %v2013_v49, %v2270_v36  ;;  %v845_v52 = vpop.permute.xlu1 %844  ;;  %v967_v36 = vsel %vm234_vm3, %v902_v43, 0 }
 0x484   : > { %v850_v54 = vsel %vm234_vm3, %v845_v52, 0 }
 0x485   : > { %v719_v53 = vpack.c.bf16 %v718_v51, %v718_v51 }
 0x486   : > { %v2015_v55 = vpop.eup %2014 }
 0x487   : > { %1862 = vmatmul.mubr.msk.bf16.vlgmr.msra.gmra.mrb[16].mxu0 %vm218_vm2, %v719_v53  ;;  %v839_v56 = vmul.f32 %v2015_v55, %v2274_v58  ;;  %v1088_v58 = vpop.permute.xlu0 %1087 }
 0x488   : > { %1872 = vmatpush3.bf16.msra.mxu0 %v850_v54  ;;  %1873 = vmatprep.mubr.msk.bf16.mxu0 %vm2037_vm0, %v2036_v0  ;;  %v1093_v2 = vsel %vm234_vm3, %v1088_v58, 0 }
 0x489   : > { %1883 = vmatprep.subr.bf16.mxu0 %v2036_v0  ;;  %v840_v57 = vpack.c.bf16 %v839_v56, %v839_v56 }
 0x48a   : > { %v2017_v60 = vpop.eup %2016 }
 0x48b   : > { %v961_v61 = vmul.f32 %v2017_v60, %v2276_v50  ;;  %v2019_v63 = vpop.eup %2018  ;;  %v1210_v50 = vsel %vm234_vm3, %v1145_v4, 0 }
 0x48c   : > { %v1082_v3 = vmul.f32 %v2019_v63, %v2280_v59 }
 0x48d   : > { %v962_v62 = vpack.c.bf16 %v961_v61, %v961_v61 }
 0x48e   : > { %v1083_v6 = vpack.c.bf16 %v1082_v3, %v1082_v3 }
 0x48f   : > { %1874 = vmatmul.mubr.msk.bf16.vlgmr.msra.gmra.mrb[20].mxu0 %vm218_vm2, %v840_v57 }
 0x490   : > { %1884 = vmatpush3.bf16.msra.mxu0 %v967_v36  ;;  %1885 = vmatprep.mubr.msk.bf16.mxu0 %vm2037_vm0, %v2036_v0 }
 0x491   : > { %1895 = vmatprep.subr.bf16.mxu0 %v2036_v0 }
 0x497   : > { %1886 = vmatmul.mubr.msk.bf16.vlgmr.msra.gmra.mrb[24].mxu0 %vm218_vm2, %v962_v62 }
 0x498   : > { %1896 = vmatpush3.bf16.msra.mxu0 %v1093_v2  ;;  %1897 = vmatprep.mubr.msk.bf16.mxu0 %vm2037_vm0, %v2036_v0 }
 0x499   : > { %1907 = vmatprep.subr.bf16.mxu0 %v2036_v0 }
 0x49f   : > { %1898 = vmatmul.mubr.msk.bf16.vlgmr.msra.gmra.mrb[28].mxu0 %vm218_vm2, %v1083_v6 }
 0x4a0   : > { %1908 = vmatpush3.bf16.msra.mxu0 %v1210_v50  ;;  %1909 = vmatprep.mubr.msk.bf16.mxu0 %vm2037_vm0, %v2036_v0 }
 0x4a1   : > { %1919 = vmatprep.subr.bf16.mxu0 %v2036_v0 }
 0x4b4   : > { %v1202_v7 = vpop.xlane.xlu0 %1201  ;;  %v1566_v1 = vpop.xlane.xlu1 %1565 }
 0x4b5   : > { %2020 = vrcp.f32 %v1202_v7 }
 0x4b8   : > { %v1323_v8 = vpop.xlane.xlu0 %1322 }
 0x4b9   : > { %2022 = vrcp.f32 %v1323_v8 }
 0x4bc   : > { %v1445_v59 = vpop.xlane.xlu0 %1444 }
 0x4bd   : > { %2024 = vrcp.f32 %v1445_v59 }
 0x4be   : > { %2026 = vrcp.f32 %v1566_v1 }
 0x4bf   : > { %v2021_v10 = vpop.eup %2020 }
 0x4c0   : > { %v1331_v11 = vpop.permute.xlu0 %1330  ;;  %v1204_v12 = vmul.f32 %v2021_v10, %v2294_v18  ;;  %v1453_v18 = vsel %vm234_vm3, %v1388_v17, 0 }
 0x4c1   : > { %v1336_v13 = vsel %vm234_vm3, %v1331_v11, 0 }
 0x4c2   : > { %v1205_v14 = vpack.c.bf16 %v1204_v12, %v1204_v12 }
 0x4c3   : > { %v2023_v15 = vpop.eup %2022 }
 0x4c4   : > { %1910 = vmatmul.mubr.msk.bf16.vlgmr.msra.gmra.mrb[32].mxu0 %vm218_vm2, %v1205_v14  ;;  %v1325_v9 = vmul.f32 %v2023_v15, %v2302_v20  ;;  %v1574_v26 = vpop.permute.xlu0 %1573 }
 0x4c5   : > { %1920 = vmatpush3.bf16.msra.mxu0 %v1336_v13  ;;  %1921 = vmatprep.mubr.msk.bf16.mxu0 %vm2037_vm0, %v2036_v0  ;;  %v1579_v20 = vsel %vm234_vm3, %v1574_v26, 0 }
 0x4c6   : > { %1931 = vmatprep.subr.bf16.mxu0 %v2036_v0  ;;  %v1326_v22 = vpack.c.bf16 %v1325_v9, %v1325_v9 }
 0x4c7   : > { %v2025_v24 = vpop.eup %2024 }
 0x4c8   : > { %v1447_v25 = vmul.f32 %v2025_v24, %v2306_v21  ;;  %v2027_v28 = vpop.eup %2026 }
 0x4c9   : > { %v1568_v30 = vmul.f32 %v2027_v28, %v2296_v19 }
 0x4ca   : > { %v1448_v27 = vpack.c.bf16 %v1447_v25, %v1447_v25 }
 0x4cb   : > { %v1569_v31 = vpack.c.bf16 %v1568_v30, %v1568_v30 }
 0x4cc   : > { %1922 = vmatmul.mubr.msk.bf16.vlgmr.msra.gmra.mrb[36].mxu0 %vm218_vm2, %v1326_v22 }
 0x4cd   : > { %1932 = vmatpush3.bf16.msra.mxu0 %v1453_v18  ;;  %1933 = vmatprep.mubr.msk.bf16.mxu0 %vm2037_vm0, %v2036_v0 }
 0x4ce   : > { %1943 = vmatprep.subr.bf16.mxu0 %v2036_v0 }
 0x4d4   : > { %1934 = vmatmul.mubr.msk.bf16.vlgmr.msra.gmra.mrb[40].mxu0 %vm218_vm2, %v1448_v27 }
 0x4d5   : > { %1944 = vmatpush3.bf16.msra.mxu0 %v1579_v20  ;;  %1945 = vmatprep.mubr.msk.bf16.mxu0 %vm2037_vm0, %v2036_v0 }
 0x4dc   : > { %1946 = vmatmul.mubr.msk.bf16.vlgmr.msra.gmra.mrb[44].mxu0 %vm218_vm2, %v1569_v31 }
 0x526   : > { %v399_v21 = vpop.f32.mrb[4].mxu0 }
 0x527   : > { %v1751_v32 = vpack.c.bf16 %v399_v21, %v399_v21  ;;  %v1827_v33 = vpop.f32.mrb[5].mxu0 }
 0x528   : > { %v402_v34 = vpop.f32.mrb[6].mxu0 }
 0x529   : > { %409 = vrot.lane.b32.xlu0 %v1751_v32, %s2038_s18  ;;  %v1828_v5 = vpop.f32.mrb[7].mxu0 }
 0x52e   : > { %v517_v37 = vpop.f32.mrb[8].mxu0 }
 0x52f   : > { %v523_v38 = vpack.c.bf16 %v517_v37, %v517_v37  ;;  %v1839_v35 = vpop.f32.mrb[9].mxu0 }
 0x530   : > { %v520_v39 = vpop.f32.mrb[10].mxu0 }
 0x531   : > { %524 = vst.msk [vmem:[%s2188_s22 + $0x4] sm:$0xf] %vm279_vm4, %v523_v38  ;;  %v1840_v0 = vpop.f32.mrb[11].mxu0 }
 0x536   : > { %v643_v23 = vpop.f32.mrb[12].mxu0 }
 0x537   : > { %v1752_v19 = vpack.c.bf16 %v643_v23, %v643_v23  ;;  %v1851_v41 = vpop.f32.mrb[13].mxu0 }
 0x538   : > { %v646_v42 = vpop.f32.mrb[14].mxu0 }
 0x539   : > { %653 = vrot.lane.b32.xlu0 %v1752_v19, %s2038_s18  ;;  %v1852_v44 = vpop.f32.mrb[15].mxu0 }
 0x55a   : > { %v760_v29 = vpop.f32.mrb[16].mxu0 }
 0x55b   : > { %v766_v45 = vpack.c.bf16 %v760_v29, %v760_v29  ;;  %v1863_v16 = vpop.f32.mrb[17].mxu0 }
 0x55c   : > { %v763_v46 = vpop.f32.mrb[18].mxu0 }
 0x55d   : > { %767 = vst.msk [vmem:[%s2188_s22 + $0x8] sm:$0xf] %vm279_vm4, %v766_v45  ;;  %v1864_v47 = vpop.f32.mrb[19].mxu0 }
 0x562   : > { %v886_v40 = vpop.f32.mrb[20].mxu0 }
 0x563   : > { %v1753_v48 = vpack.c.bf16 %v886_v40, %v886_v40  ;;  %v1875_v49 = vpop.f32.mrb[21].mxu0 }
 0x564   : > { %v889_v51 = vpop.f32.mrb[22].mxu0 }
 0x565   : > { %896 = vrot.lane.b32.xlu1 %v1753_v48, %s2038_s18  ;;  %v1876_v52 = vpop.f32.mrb[23].mxu0 }
 0x56a   : > { %v1003_v53 = vpop.f32.mrb[24].mxu0 }
 0x56b   : > { %v1009_v54 = vpack.c.bf16 %v1003_v53, %v1003_v53  ;;  %v1887_v55 = vpop.f32.mrb[25].mxu0 }
 0x56c   : > { %v1006_v56 = vpop.f32.mrb[26].mxu0 }
 0x56d   : > { %1010 = vst.msk [vmem:[%s2188_s22 + $0xc] sm:$0xf] %vm279_vm4, %v1009_v54  ;;  %v1888_v43 = vpop.f32.mrb[27].mxu0 }
 0x572   : > { %v1129_v57 = vpop.f32.mrb[28].mxu0 }
 0x573   : > { %v1754_v36 = vpack.c.bf16 %v1129_v57, %v1129_v57  ;;  %v1899_v60 = vpop.f32.mrb[29].mxu0 }
 0x574   : > { %v1132_v61 = vpop.f32.mrb[30].mxu0 }
 0x575   : > { %1139 = vrot.lane.b32.xlu0 %v1754_v36, %s2038_s18  ;;  %v1900_v58 = vpop.f32.mrb[31].mxu0 }
 0x597   : > { %v1246_v62 = vpop.f32.mrb[32].mxu0 }
 0x598   : > { %v1252_v63 = vpack.c.bf16 %v1246_v62, %v1246_v62  ;;  %v1911_v2 = vpop.f32.mrb[33].mxu0 }
 0x599   : > { %v1249_v3 = vpop.f32.mrb[34].mxu0 }
 0x59a   : > { %1253 = vst.msk [vmem:[%s2188_s22 + $0x10] sm:$0xf] %vm279_vm4, %v1252_v63  ;;  %v1912_v4 = vpop.f32.mrb[35].mxu0 }
 0x59b   : > { %v410_v6 = vpop.permute.xlu0 %409 }
 0x59c   : > { %413 = vst.msk [vmem:[%s2188_s22] sm:$0xf] %vm412_vm5, %v410_v6 }
 0x59f   : > { %v1372_v50 = vpop.f32.mrb[36].mxu0 }
 0x5a0   : > { %v1755_v7 = vpack.c.bf16 %v1372_v50, %v1372_v50  ;;  %v1923_v8 = vpop.f32.mrb[37].mxu0 }
 0x5a1   : > { %v1375_v59 = vpop.f32.mrb[38].mxu0 }
 0x5a2   : > { %1382 = vrot.lane.b32.xlu0 %v1755_v7, %s2038_s18  ;;  %v1924_v10 = vpop.f32.mrb[39].mxu0 }
 0x5a7   : > { %v1489_v11 = vpop.f32.mrb[40].mxu0 }
 0x5a8   : > { %v1495_v12 = vpack.c.bf16 %v1489_v11, %v1489_v11  ;;  %v1935_v13 = vpop.f32.mrb[41].mxu0 }
 0x5a9   : > { %v1492_v14 = vpop.f32.mrb[42].mxu0 }
 0x5aa   : > { %1496 = vst.msk [vmem:[%s2188_s22 + $0x14] sm:$0xf] %vm279_vm4, %v1495_v12  ;;  %v1936_v15 = vpop.f32.mrb[43].mxu0 }
 0x5ab   : > { %v654_v1 = vpop.permute.xlu0 %653 }
 0x5ac   : > { %656 = vst.msk [vmem:[%s2188_s22 + $0x4] sm:$0xf] %vm412_vm5, %v654_v1 }
 0x5af   : > { %v1615_v9 = vpop.f32.mrb[44].mxu0 }
 0x5b0   : > { %v1756_v17 = vpack.c.bf16 %v1615_v9, %v1615_v9  ;;  %v1947_v22 = vpop.f32.mrb[45].mxu0 }
 0x5b1   : > { %v1618_v18 = vpop.f32.mrb[46].mxu0 }
 0x5b2   : > { %1625 = vrot.lane.b32.xlu0 %v1756_v17, %s2038_s18  ;;  %v1948_v24 = vpop.f32.mrb[47].mxu0 }
 0x5d7   : > { %v897_v25 = vpop.permute.xlu1 %896 }
 0x5d8   : > { %899 = vst.msk [vmem:[%s2188_s22 + $0x8] sm:$0xf] %vm412_vm5, %v897_v25 }
 0x5e7   : > { %v1140_v26 = vpop.permute.xlu0 %1139 }
 0x5e8   : > { %1142 = vst.msk [vmem:[%s2188_s22 + $0xc] sm:$0xf] %vm412_vm5, %v1140_v26 }
 0x614   : > { %v1383_v20 = vpop.permute.xlu0 %1382 }
 0x615   : > { %1385 = vst.msk [vmem:[%s2188_s22 + $0x10] sm:$0xf] %vm412_vm5, %v1383_v20 }
 0x624   : > { %v1626_v27 = vpop.permute.xlu0 %1625 }
 0x625   : > { %1628 = vst.msk [vmem:[%s2188_s22 + $0x14] sm:$0xf] %vm412_vm5, %v1626_v27 }
 0x626 PF: > { %s12_s9 = sadd.s32 1, %s2034_s9  }
 0x627   : > { %p9_p4 = scmp.ge.s32.totalorder %s12_s9, 4  }
 0x629   :  { %11 = sbr.rel (!%p9_p4) target bundleno = 1 (0x1), region = 61 }

// kernel: bert_class_forward.15
= control target key start
LH: loop header
LB: loop body
LE: loop exit
PB: predicated region body
PF: predicated region fallthrough
CT: control target
= control target key end

     0   :  { %s2336_s21 = smov 0   ;;  %s2338_s22 = smov 0   ;;  %s2655_s0 = inlined_call_operand.vmem [shape: bf16[16,768], index: 0, kind: input, shape index: {}]   ;;  %s2656_s1 = inlined_call_operand.vmem [shape: bf16[768,768], index: 1, kind: input, shape index: {}]   ;;  %s2657_s2 = inlined_call_operand.vmem [shape: f32[1,768], index: 2, kind: input, shape index: {}]   ;;  %s2658_s3 = inlined_call_operand.vmem [shape: bf16[16,768], index: 3, kind: input, shape index: {}]   ;;  %s2659_s4 = inlined_call_operand.vmem [shape: f32[1,768], index: 4, kind: input, shape index: {}]   ;;  %s2660_s5 = inlined_call_operand.vmem [shape: f32[1,768], index: 5, kind: input, shape index: {}]   ;;  %s2661_s6 = inlined_call_operand.vmem [shape: bf16[16,768], index: 6, kind: output, shape index: {}]  }
   0x1   :  { %s2340_s23 = smov 0  }
   0x2 LB: > { %s2352_s24 = sadd.s32 4294967295, %s2297_s23   ;;  %s2355_s25 = sadd.s32 1, %s2297_s23   ;;  %s2297_s23 = sphi %s2340_s23, %s2664_s23   ;;  %s2293_s22 = sphi %s2338_s22, %s2663_s22   ;;  %s2289_s21 = sphi %s2336_s21, %s2662_s21  }
   0x3   : > { %s20_s26 = ssub.s32 %s2297_s23, %s2355_s25  ;;  %s23_s27 = sadd.s32 1, %s2293_s22 }
   0x4   : > { %p21_p0 = scmp.eq.s32.totalorder %s20_s26, 0  ;;  %p30_p1 = scmp.ne.s32.totalorder %s2293_s22, %s2289_s21 }
   0x5   : > { %p31_p2 = scmp.eq.s32.totalorder %s2297_s23, 0  ;;  %p1838_p4 = scmp.ge.s32.totalorder %s2297_s23, 2 }
   0x6   : > { %s2364_s28 = scalar_select %p21_p0, %s2293_s22, %s23_s27  }
   0x7   : > { %p32_p3 = por %p31_p2, %p30_p1  ;;  %199 = sbr.rel (%p1838_p4) target bundleno = 21 (0x15), region = 32 }
   0xe   : > { %202 = sbr.rel (!%p32_p3) target bundleno = 21 (0x15), region = 36  ;;  %s204_s29 = sand.u32 (%p32_p3), 1, %s2293_s22  }
   0xf   : > { %s2003_s30 = smul.u32 (%p32_p3), 12, %s2297_s23 }
  0x10   : > { %s2022_s7 = smul.u32 (%p32_p3), 24, %s204_s29 }
  0x11   : > { %s209_s10 = scalar_lea.vmem (%p32_p3), %s2655_s0, %s2003_s30 }
  0x12   : > { %v224_v0 = vld [vmem:[%s209_s10] sm:$0xff] (%p32_p3)  ;;  %v226_v1 = vld [vmem:[%s209_s10 + $0x18] sm:$0xff] (%p32_p3)  ;;  %v1840_v2 = vld [vmem:[%s209_s10 + $0x8] sm:$0xf] (%p32_p3)  ;;  %s206_s11 = scalar_lea.vmem (%p32_p3), [#allocation3], %s2022_s7 }
  0x13   : > { %225 = vst [vmem:[%s206_s11] sm:$0xff] (%p32_p3), %v224_v0  ;;  %227 = vst [vmem:[%s206_s11 + $0xc] sm:$0xff] (%p32_p3), %v226_v1  ;;  %v1842_v3 = vld [vmem:[%s209_s10 + $0x20] sm:$0xf] (%p32_p3) }
  0x14   : > { %1841 = vst [vmem:[%s206_s11 + $0x8] sm:$0xf] (%p32_p3), %v1840_v2  ;;  %1843 = vst [vmem:[%s206_s11 + $0x14] sm:$0xf] (%p32_p3), %v1842_v3 }
  0x15 PF: > { %p1844_p5 = scmp.ge.s32.totalorder %s2297_s23, 1  ;;  %p253_p6 = scmp.lt.s32.totalorder %s2297_s23, 3 }
  0x17   : > { %p254_p7 = pnand %p1844_p5, %p253_p6 }
  0x18   : > { %s260_s12 = sand.u32 (!%p254_p7), 1, %s2289_s21   ;;  %s291_s13 = smul.u32 (!%p254_p7), 48, %s2352_s24 }
  0x19   : > { %257 = sbr.rel (%p254_p7) target bundleno = 766 (0x2fe), region = 66  ;;  %p1846_p9 = scmp.ne.s32.totalorder (!%p254_p7), %s2352_s24, 0 }
  0x1a   : > { %s2023_s14 = smul.u32 (!%p254_p7), 24, %s260_s12  ;;  %p292_p8 = scmp.lt.s32.totalorder (!%p254_p7), %s291_s13, 95 }
  0x1c   : > { %s2381_s19 = scalar_lea.vmem (!%p254_p7), [#allocation3], %s2023_s14 }
  0x20   : > { %s2666_s13 = smov (!%p292_p8, %s291_s13), 95  ;;  %302 = sbr.rel (%p1846_p9) target bundleno = 40 (0x28), region = 74 }
  0x21   : > { %s2024_s15 = smul.u32 24, %s2666_s13  ;;  %v2299_v4 = vmov (!%p1846_p9), 0.0  }
  0x22   : > { %303 = vst [vmem:[#allocation2] sm:$0xff] (!%p1846_p9), %v2299_v4  ;;  %304 = vst [vmem:[#allocation2 + $0x8] sm:$0xff] (!%p1846_p9), %v2299_v4 }
  0x23   : > { %s2379_s18 = scalar_lea.vmem %s2656_s1, %s2024_s15  ;;  %305 = vst [vmem:[#allocation2 + $0x10] sm:$0xff] (!%p1846_p9), %v2299_v4  ;;  %306 = vst [vmem:[#allocation2 + $0x18] sm:$0xff] (!%p1846_p9), %v2299_v4 }
  0x24   : > { %307 = vst [vmem:[#allocation2 + $0x20] sm:$0xff] (!%p1846_p9), %v2299_v4  ;;  %308 = vst [vmem:[#allocation2 + $0x28] sm:$0xff] (!%p1846_p9), %v2299_v4 }
  0x25   : > { %309 = vst [vmem:[#allocation2 + $0x30] sm:$0xff] (!%p1846_p9), %v2299_v4  ;;  %310 = vst [vmem:[#allocation2 + $0x38] sm:$0xff] (!%p1846_p9), %v2299_v4 }
  0x26   : > { %311 = vst [vmem:[#allocation2 + $0x40] sm:$0xff] (!%p1846_p9), %v2299_v4  ;;  %312 = vst [vmem:[#allocation2 + $0x48] sm:$0xff] (!%p1846_p9), %v2299_v4 }
  0x27   : > { %313 = vst [vmem:[#allocation2 + $0x50] sm:$0xff] %v2299_v4  ;;  %314 = vst [vmem:[#allocation2 + $0x58] sm:$0xff] %v2299_v4 }
  0x28 PF: > { %v2051_v5 = vld [vmem:[%s2379_s18 + $0x4] ss:$24 sps:$4 sm:$0xff]   ;;  %v2300_v7 = vmov 0   ;;  %v2055_v8 = vld [vmem:[%s2379_s18] ss:$24 sps:$4 sm:$0xff]   ;;  %p1994_p10 = scmp.ne.s32.totalorder %s2352_s24, 1 }
  0x29   : > { %v2053_v6 = vld [vmem:[%s2379_s18 + $0x304] ss:$24 sps:$4 sm:$0xff]   ;;  %1286 = vmatprep.mubr.bf16.mxu0 %v2300_v7  ;;  %1211 = vmatprep.subr.bf16.mxu1 %v2051_v5  ;;  %v2056_v9 = vld [vmem:[%s2379_s18 + $0x300] ss:$24 sps:$4 sm:$0xff]   ;;  %v2057_v10 = vld [vmem:[%s2379_s18 + $0x34] ss:$24 sps:$4 sm:$0xff]  }
  0x2a   : > { %1254 = vmatprep.subr.bf16.mxu0 %v2053_v6  ;;  %1212 = vmatpush1.bf16.msra.mxu1 %v2055_v8  ;;  %v2059_v11 = vld [vmem:[%s2379_s18 + $0x334] ss:$24 sps:$4 sm:$0xff]   ;;  %v2061_v12 = vld [vmem:[%s2379_s18 + $0x30] ss:$24 sps:$4 sm:$0xff]   ;;  %v2063_v14 = vld [vmem:[%s2379_s18 + $0x64] ss:$24 sps:$4 sm:$0xff]  }
  0x2b   : > { %1255 = vmatpush1.bf16.msra.mxu0 %v2056_v9  ;;  %1213 = vmatprep.subr.bf16.mxu1 %v2057_v10  ;;  %v2062_v13 = vld [vmem:[%s2379_s18 + $0x330] ss:$24 sps:$4 sm:$0xff]   ;;  %v2065_v15 = vld [vmem:[%s2379_s18 + $0x364] ss:$24 sps:$4 sm:$0xff]   ;;  %v2067_v16 = vld [vmem:[%s2379_s18 + $0x60] ss:$24 sps:$4 sm:$0xff]  }
  0x2c   : > { %1256 = vmatprep.subr.bf16.mxu0 %v2059_v11  ;;  %v2068_v17 = vld [vmem:[%s2379_s18 + $0x360] ss:$24 sps:$4 sm:$0xff]   ;;  %v2069_v18 = vld [vmem:[%s2379_s18 + $0x94] ss:$24 sps:$4 sm:$0xff]   ;;  %v2073_v20 = vld [vmem:[%s2379_s18 + $0x90] ss:$24 sps:$4 sm:$0xff]  }
  0x2d   : > { %v2071_v19 = vld [vmem:[%s2379_s18 + $0x394] ss:$24 sps:$4 sm:$0xff]   ;;  %v2074_v21 = vld [vmem:[%s2379_s18 + $0x390] ss:$24 sps:$4 sm:$0xff]   ;;  %v2075_v22 = vld [vmem:[%s2379_s18 + $0xc4] ss:$24 sps:$4 sm:$0xff]  }
  0x2e   : > { %1214 = vmatpush1.bf16.msra.mxu1 %v2061_v12  ;;  %v2077_v23 = vld [vmem:[%s2379_s18 + $0x3c4] ss:$24 sps:$4 sm:$0xff]   ;;  %v2079_v24 = vld [vmem:[%s2379_s18 + $0xc0] ss:$24 sps:$4 sm:$0xff]   ;;  %v2081_v26 = vld [vmem:[%s2379_s18 + $0xf4] ss:$24 sps:$4 sm:$0xff]  }
  0x2f   : > { %1257 = vmatpush1.bf16.msra.mxu0 %v2062_v13  ;;  %1215 = vmatprep.subr.bf16.mxu1 %v2063_v14  ;;  %v2080_v25 = vld [vmem:[%s2379_s18 + $0x3c0] ss:$24 sps:$4 sm:$0xff]   ;;  %v2083_v27 = vld [vmem:[%s2379_s18 + $0x3f4] ss:$24 sps:$4 sm:$0xff]   ;;  %v2085_v28 = vld [vmem:[%s2379_s18 + $0xf0] ss:$24 sps:$4 sm:$0xff]  }
  0x30   : > { %1258 = vmatprep.subr.bf16.mxu0 %v2065_v15  ;;  %v2086_v29 = vld [vmem:[%s2379_s18 + $0x3f0] ss:$24 sps:$4 sm:$0xff]   ;;  %v2087_v30 = vld [vmem:[%s2379_s18 + $0x124] ss:$24 sps:$4 sm:$0xff]   ;;  %v2091_v32 = vld [vmem:[%s2379_s18 + $0x120] ss:$24 sps:$4 sm:$0xff]  }
  0x31   : > { %v2089_v31 = vld [vmem:[%s2379_s18 + $0x424] ss:$24 sps:$4 sm:$0xff]   ;;  %v2092_v33 = vld [vmem:[%s2379_s18 + $0x420] ss:$24 sps:$4 sm:$0xff]   ;;  %v2093_v34 = vld [vmem:[%s2379_s18 + $0x154] ss:$24 sps:$4 sm:$0xff]  }
  0x32   : > { %1216 = vmatpush1.bf16.msra.mxu1 %v2067_v16  ;;  %v2095_v35 = vld [vmem:[%s2379_s18 + $0x454] ss:$24 sps:$4 sm:$0xff]   ;;  %v2097_v36 = vld [vmem:[%s2379_s18 + $0x150] ss:$24 sps:$4 sm:$0xff]   ;;  %v2099_v38 = vld [vmem:[%s2379_s18 + $0x184] ss:$24 sps:$4 sm:$0xff]  }
  0x33   : > { %1259 = vmatpush1.bf16.msra.mxu0 %v2068_v17  ;;  %1217 = vmatprep.subr.bf16.mxu1 %v2069_v18  ;;  %v2098_v37 = vld [vmem:[%s2379_s18 + $0x450] ss:$24 sps:$4 sm:$0xff]   ;;  %v2103_v39 = vld [vmem:[%s2379_s18 + $0x14] ss:$24 sps:$4 sm:$0xff]   ;;  %v2104_v42 = vld [vmem:[%s2379_s18 + $0x180] ss:$24 sps:$4 sm:$0xff]  }
  0x34   : > { %1260 = vmatprep.subr.bf16.mxu0 %v2071_v19  ;;  %v2420_v40 = vld [vmem:[%s2381_s19 + $0x8] ss:$12 sps:$4 sm:$0xff]   ;;  %v2110_v44 = vld [vmem:[%s2379_s18 + $0x44] ss:$24 sps:$4 sm:$0xff]   ;;  %v2157_v16 = vld [vmem:[%s2379_s18 + $0x38] ss:$24 sps:$4 sm:$0xff]  }
  0x35   : > { %v2101_v41 = vld [vmem:[%s2379_s18 + $0x10] ss:$24 sps:$4 sm:$0xff]   ;;  %v2106_v43 = vld [vmem:[%s2379_s18 + $0x1b4] ss:$24 sps:$4 sm:$0xff]   ;;  %v2108_v45 = vld [vmem:[%s2379_s18 + $0x40] ss:$24 sps:$4 sm:$0xff]  }
  0x36   : > { %1218 = vmatpush1.bf16.msra.mxu1 %v2073_v20  ;;  %v2111_v46 = vld [vmem:[%s2379_s18 + $0x1b0] ss:$24 sps:$4 sm:$0xff]   ;;  %v2112_v47 = vld [vmem:[%s2379_s18 + $0x1e4] ss:$24 sps:$4 sm:$0xff]   ;;  %v2116_v48 = vld [vmem:[%s2379_s18 + $0x74] ss:$24 sps:$4 sm:$0xff]  }
  0x37   : > { %1261 = vmatpush1.bf16.msra.mxu0 %v2074_v21  ;;  %1219 = vmatprep.subr.bf16.mxu1 %v2075_v22  ;;  %v2114_v49 = vld [vmem:[%s2379_s18 + $0x70] ss:$24 sps:$4 sm:$0xff]   ;;  %v2117_v50 = vld [vmem:[%s2379_s18 + $0x1e0] ss:$24 sps:$4 sm:$0xff]   ;;  %v2118_v51 = vld [vmem:[%s2379_s18 + $0x214] ss:$24 sps:$4 sm:$0xff]  }
  0x38   : > { %1262 = vmatprep.subr.bf16.mxu0 %v2077_v23  ;;  %v2122_v52 = vld [vmem:[%s2379_s18 + $0xa4] ss:$24 sps:$4 sm:$0xff]   ;;  %v2120_v53 = vld [vmem:[%s2379_s18 + $0xa0] ss:$24 sps:$4 sm:$0xff]   ;;  %v2123_v54 = vld [vmem:[%s2379_s18 + $0x210] ss:$24 sps:$4 sm:$0xff]  }
  0x39   : > { %v2124_v55 = vld [vmem:[%s2379_s18 + $0x244] ss:$24 sps:$4 sm:$0xff]   ;;  %v2128_v57 = vld [vmem:[%s2379_s18 + $0xd4] ss:$24 sps:$4 sm:$0xff]   ;;  %v2126_v58 = vld [vmem:[%s2379_s18 + $0xd0] ss:$24 sps:$4 sm:$0xff]  }
  0x3a   : > { %1220 = vmatpush1.bf16.msra.mxu1 %v2079_v24  ;;  %v2148_v56 = vld [vmem:[%s2381_s19 + $0x4] ss:$12 sps:$4 sm:$0xff]   ;;  %v2129_v59 = vld [vmem:[%s2379_s18 + $0x240] ss:$24 sps:$4 sm:$0xff]   ;;  %v2130_v60 = vld [vmem:[%s2379_s18 + $0x274] ss:$24 sps:$4 sm:$0xff]  }
  0x3b   : > { %1263 = vmatpush1.bf16.msra.mxu0 %v2080_v25  ;;  %1221 = vmatprep.subr.bf16.mxu1 %v2081_v26  ;;  %v2134_v61 = vld [vmem:[%s2379_s18 + $0x104] ss:$24 sps:$4 sm:$0xff]   ;;  %v2132_v62 = vld [vmem:[%s2379_s18 + $0x100] ss:$24 sps:$4 sm:$0xff]   ;;  %v2135_v63 = vld [vmem:[%s2379_s18 + $0x270] ss:$24 sps:$4 sm:$0xff]  }
  0x3c   : > { %1264 = vmatprep.subr.bf16.mxu0 %v2083_v27  ;;  %1243 = vmatprep.mubr.bf16.mxu1 %v2148_v56  ;;  %v2136_v0 = vld [vmem:[%s2379_s18 + $0x2a4] ss:$24 sps:$4 sm:$0xff]   ;;  %v2140_v1 = vld [vmem:[%s2379_s18 + $0x134] ss:$24 sps:$4 sm:$0xff]   ;;  %v2138_v2 = vld [vmem:[%s2379_s18 + $0x130] ss:$24 sps:$4 sm:$0xff]  }
  0x3d   : > { %v2141_v3 = vld [vmem:[%s2379_s18 + $0x2a0] ss:$24 sps:$4 sm:$0xff]   ;;  %v2142_v4 = vld [vmem:[%s2379_s18 + $0x2d4] ss:$24 sps:$4 sm:$0xff]   ;;  %v2146_v5 = vld [vmem:[%s2379_s18 + $0x164] ss:$24 sps:$4 sm:$0xff]  }
  0x3e   : > { %1222 = vmatpush1.bf16.msra.mxu1 %v2085_v28  ;;  %v2144_v6 = vld [vmem:[%s2379_s18 + $0x160] ss:$24 sps:$4 sm:$0xff]   ;;  %v2147_v8 = vld [vmem:[%s2379_s18 + $0x2d0] ss:$24 sps:$4 sm:$0xff]   ;;  %v2153_v9 = vld [vmem:[%s2379_s18 + $0xc] ss:$24 sps:$4 sm:$0xff]  }
  0x3f   : > { %1265 = vmatpush1.bf16.msra.mxu0 %v2086_v29  ;;  %1223 = vmatprep.subr.bf16.mxu1 %v2087_v30  ;;  %v2156_v10 = vld [vmem:[%s2379_s18 + $0x194] ss:$24 sps:$4 sm:$0xff]   ;;  %v2151_v12 = vld [vmem:[%s2379_s18 + $0x8] ss:$24 sps:$4 sm:$0xff]   ;;  %v2162_v15 = vld [vmem:[%s2379_s18 + $0x1c4] ss:$24 sps:$4 sm:$0xff]  }
  0x40   : > { %1266 = vmatprep.subr.bf16.mxu0 %v2089_v31  ;;  %v2457_v11 = vld [vmem:[%s2381_s19] ss:$12 sps:$4 sm:$0xff]   ;;  %v2154_v13 = vld [vmem:[%s2379_s18 + $0x190] ss:$24 sps:$4 sm:$0xff]   ;;  %v2159_v14 = vld [vmem:[%s2379_s18 + $0x3c] ss:$24 sps:$4 sm:$0xff]  }
  0x41   : > { %v2160_v17 = vld [vmem:[%s2379_s18 + $0x1c0] ss:$24 sps:$4 sm:$0xff]   ;;  %v2165_v18 = vld [vmem:[%s2379_s18 + $0x6c] ss:$24 sps:$4 sm:$0xff]   ;;  %v2166_v21 = vld [vmem:[%s2379_s18 + $0x1f0] ss:$24 sps:$4 sm:$0xff]  }
  0x42   : > { %1224 = vmatpush1.bf16.msra.mxu1 %v2091_v32  ;;  %v2168_v19 = vld [vmem:[%s2379_s18 + $0x1f4] ss:$24 sps:$4 sm:$0xff]   ;;  %v2163_v20 = vld [vmem:[%s2379_s18 + $0x68] ss:$24 sps:$4 sm:$0xff]   ;;  %v2174_v23 = vld [vmem:[%s2379_s18 + $0x224] ss:$24 sps:$4 sm:$0xff]  }
  0x43   : > { %1267 = vmatpush1.bf16.msra.mxu0 %v2092_v33  ;;  %1225 = vmatprep.subr.bf16.mxu1 %v2093_v34  ;;  %v2171_v22 = vld [vmem:[%s2379_s18 + $0x9c] ss:$24 sps:$4 sm:$0xff]   ;;  %v2169_v24 = vld [vmem:[%s2379_s18 + $0x98] ss:$24 sps:$4 sm:$0xff]   ;;  %v2177_v26 = vld [vmem:[%s2379_s18 + $0xcc] ss:$24 sps:$4 sm:$0xff]  }
  0x44   : > { %1268 = vmatprep.subr.bf16.mxu0 %v2095_v35  ;;  %v2172_v25 = vld [vmem:[%s2379_s18 + $0x220] ss:$24 sps:$4 sm:$0xff]   ;;  %v2180_v27 = vld [vmem:[%s2379_s18 + $0x254] ss:$24 sps:$4 sm:$0xff]   ;;  %v2178_v29 = vld [vmem:[%s2379_s18 + $0x250] ss:$24 sps:$4 sm:$0xff]  }
  0x45   : > { %v2175_v28 = vld [vmem:[%s2379_s18 + $0xc8] ss:$24 sps:$4 sm:$0xff]   ;;  %v2183_v30 = vld [vmem:[%s2379_s18 + $0xfc] ss:$24 sps:$4 sm:$0xff]   ;;  %v2181_v32 = vld [vmem:[%s2379_s18 + $0xf8] ss:$24 sps:$4 sm:$0xff]  }
  0x46   : > { %1226 = vmatpush1.bf16.msra.mxu1 %v2097_v36  ;;  %v2186_v31 = vld [vmem:[%s2379_s18 + $0x284] ss:$24 sps:$4 sm:$0xff]   ;;  %v2184_v33 = vld [vmem:[%s2379_s18 + $0x280] ss:$24 sps:$4 sm:$0xff]   ;;  %v2192_v35 = vld [vmem:[%s2379_s18 + $0x2b4] ss:$24 sps:$4 sm:$0xff]  }
  0x47   : > { %1269 = vmatpush1.bf16.msra.mxu0 %v2098_v37  ;;  %1227 = vmatprep.subr.bf16.mxu1 %v2099_v38  ;;  %v2189_v34 = vld [vmem:[%s2379_s18 + $0x12c] ss:$24 sps:$4 sm:$0xff]   ;;  %v2187_v36 = vld [vmem:[%s2379_s18 + $0x128] ss:$24 sps:$4 sm:$0xff]   ;;  %v2195_v38 = vld [vmem:[%s2379_s18 + $0x15c] ss:$24 sps:$4 sm:$0xff]  }
  0x48   : > { %1383 = vmatprep.subr.bf16.mxu0 %v2103_v39  ;;  %v2190_v37 = vld [vmem:[%s2379_s18 + $0x2b0] ss:$24 sps:$4 sm:$0xff]   ;;  %v2198_v39 = vld [vmem:[%s2379_s18 + $0x2e4] ss:$24 sps:$4 sm:$0xff]  }
  0x4a   : > { %1287 = vmatmul.mubr.bf16.vlgmr.msra.gmra.mrb[0].mxu0 %v2420_v40  ;;  %1228 = vmatpush1.bf16.msra.mxu1 %v2104_v42  ;;  %v2196_v42 = vld [vmem:[%s2379_s18 + $0x2e0] ss:$24 sps:$4 sm:$0xff]  }
  0x4b   : > { %1384 = vmatpush1.bf16.msra.mxu0 %v2101_v41  ;;  %1229 = vmatprep.subr.bf16.mxu1 %v2106_v43  ;;  %v2193_v41 = vld [vmem:[%s2379_s18 + $0x158] ss:$24 sps:$4 sm:$0xff]   ;;  %v2201_v43 = vld [vmem:[%s2379_s18 + $0x18c] ss:$24 sps:$4 sm:$0xff]  }
  0x4c   : > { %1385 = vmatprep.subr.bf16.mxu0 %v2110_v44  ;;  %1415 = vmatprep.mubr.bf16.mxu0 %v2148_v56  ;;  %v2204_v44 = vld [vmem:[%s2379_s18 + $0x314] ss:$24 sps:$4 sm:$0xff]  }
  0x4e   : > { %1230 = vmatpush1.bf16.msra.mxu1 %v2111_v46  ;;  %v2202_v46 = vld [vmem:[%s2379_s18 + $0x310] ss:$24 sps:$4 sm:$0xff]  }
  0x4f   : > { %1386 = vmatpush1.bf16.msra.mxu0 %v2108_v45  ;;  %1231 = vmatprep.subr.bf16.mxu1 %v2112_v47  ;;  %v2199_v45 = vld [vmem:[%s2379_s18 + $0x188] ss:$24 sps:$4 sm:$0xff]   ;;  %v2207_v47 = vld [vmem:[%s2379_s18 + $0x1bc] ss:$24 sps:$4 sm:$0xff]  }
  0x50   : > { %1387 = vmatprep.subr.bf16.mxu0 %v2116_v48  ;;  %v2210_v48 = vld [vmem:[%s2379_s18 + $0x344] ss:$24 sps:$4 sm:$0xff]  }
  0x52   : > { %1232 = vmatpush1.bf16.msra.mxu1 %v2117_v50  ;;  %v2208_v50 = vld [vmem:[%s2379_s18 + $0x340] ss:$24 sps:$4 sm:$0xff]  }
  0x53   : > { %1388 = vmatpush1.bf16.msra.mxu0 %v2114_v49  ;;  %1233 = vmatprep.subr.bf16.mxu1 %v2118_v51  ;;  %v2205_v49 = vld [vmem:[%s2379_s18 + $0x1b8] ss:$24 sps:$4 sm:$0xff]   ;;  %v2213_v51 = vld [vmem:[%s2379_s18 + $0x1ec] ss:$24 sps:$4 sm:$0xff]  }
  0x54   : > { %1389 = vmatprep.subr.bf16.mxu0 %v2122_v52  ;;  %v2216_v52 = vld [vmem:[%s2379_s18 + $0x374] ss:$24 sps:$4 sm:$0xff]  }
  0x56   : > { %1234 = vmatpush1.bf16.msra.mxu1 %v2123_v54  ;;  %v2214_v54 = vld [vmem:[%s2379_s18 + $0x370] ss:$24 sps:$4 sm:$0xff]  }
  0x57   : > { %1390 = vmatpush1.bf16.msra.mxu0 %v2120_v53  ;;  %1235 = vmatprep.subr.bf16.mxu1 %v2124_v55  ;;  %v2211_v53 = vld [vmem:[%s2379_s18 + $0x1e8] ss:$24 sps:$4 sm:$0xff]   ;;  %v2219_v55 = vld [vmem:[%s2379_s18 + $0x21c] ss:$24 sps:$4 sm:$0xff]  }
  0x58   : > { %1391 = vmatprep.subr.bf16.mxu0 %v2128_v57  ;;  %v2217_v57 = vld [vmem:[%s2379_s18 + $0x218] ss:$24 sps:$4 sm:$0xff]  }
  0x5a   : > { %1236 = vmatpush1.bf16.msra.mxu1 %v2129_v59  ;;  %v2225_v59 = vld [vmem:[%s2379_s18 + $0x24c] ss:$24 sps:$4 sm:$0xff]  }
  0x5b   : > { %1392 = vmatpush1.bf16.msra.mxu0 %v2126_v58  ;;  %1237 = vmatprep.subr.bf16.mxu1 %v2130_v60  ;;  %v2220_v58 = vld [vmem:[%s2379_s18 + $0x3a0] ss:$24 sps:$4 sm:$0xff]   ;;  %v2228_v60 = vld [vmem:[%s2379_s18 + $0x3d4] ss:$24 sps:$4 sm:$0xff]  }
  0x5c   : > { %1393 = vmatprep.subr.bf16.mxu0 %v2134_v61  ;;  %v2223_v61 = vld [vmem:[%s2379_s18 + $0x248] ss:$24 sps:$4 sm:$0xff]  }
  0x5e   : > { %1238 = vmatpush1.bf16.msra.mxu1 %v2135_v63  ;;  %v2231_v63 = vld [vmem:[%s2379_s18 + $0x27c] ss:$24 sps:$4 sm:$0xff]  }
  0x5f   : > { %1394 = vmatpush1.bf16.msra.mxu0 %v2132_v62  ;;  %1239 = vmatprep.subr.bf16.mxu1 %v2136_v0  ;;  %v2226_v62 = vld [vmem:[%s2379_s18 + $0x3d0] ss:$24 sps:$4 sm:$0xff]   ;;  %v2234_v0 = vld [vmem:[%s2379_s18 + $0x404] ss:$24 sps:$4 sm:$0xff]  }
  0x60   : > { %1395 = vmatprep.subr.bf16.mxu0 %v2140_v1  ;;  %v2229_v1 = vld [vmem:[%s2379_s18 + $0x278] ss:$24 sps:$4 sm:$0xff]  }
  0x62   : > { %1240 = vmatpush1.bf16.msra.mxu1 %v2141_v3  ;;  %v2237_v3 = vld [vmem:[%s2379_s18 + $0x2ac] ss:$24 sps:$4 sm:$0xff]  }
  0x63   : > { %1396 = vmatpush1.bf16.msra.mxu0 %v2138_v2  ;;  %1241 = vmatprep.subr.bf16.mxu1 %v2142_v4  ;;  %v2232_v2 = vld [vmem:[%s2379_s18 + $0x400] ss:$24 sps:$4 sm:$0xff]   ;;  %v2240_v4 = vld [vmem:[%s2379_s18 + $0x434] ss:$24 sps:$4 sm:$0xff]  }
  0x64   : > { %1397 = vmatprep.subr.bf16.mxu0 %v2146_v5  ;;  %v2235_v5 = vld [vmem:[%s2379_s18 + $0x2a8] ss:$24 sps:$4 sm:$0xff]  }
  0x66   : > { %1242 = vmatpush1.bf16.msra.mxu1 %v2147_v8  ;;  %v2243_v8 = vld [vmem:[%s2379_s18 + $0x2dc] ss:$24 sps:$4 sm:$0xff]  }
  0x67   : > { %1398 = vmatpush1.bf16.msra.mxu0 %v2144_v6  ;;  %1297 = vmatprep.subr.bf16.mxu1 %v2153_v9  ;;  %v2238_v6 = vld [vmem:[%s2379_s18 + $0x430] ss:$24 sps:$4 sm:$0xff]   ;;  %v2246_v9 = vld [vmem:[%s2379_s18 + $0x464] ss:$24 sps:$4 sm:$0xff]  }
  0x68   : > { %1399 = vmatprep.subr.bf16.mxu0 %v2156_v10  ;;  %v2241_v10 = vld [vmem:[%s2379_s18 + $0x2d8] ss:$24 sps:$4 sm:$0xff]  }
  0x69   : > { %1244 = vmatmul.mubr.bf16.vlgmr.msra.gmra.mrb[0].mxu1 %v2457_v11 }
  0x6a   : > { %1298 = vmatpush1.bf16.msra.mxu1 %v2151_v12  ;;  %1329 = vmatprep.mubr.bf16.mxu1 %v2148_v56  ;;  %v2222_v56 = vld [vmem:[%s2379_s18 + $0x3a4] ss:$24 sps:$4 sm:$0xff]   ;;  %v2244_v12 = vld [vmem:[%s2379_s18 + $0x460] ss:$24 sps:$4 sm:$0xff]  }
  0x6b   : > { %1400 = vmatpush1.bf16.msra.mxu0 %v2154_v13  ;;  %1299 = vmatprep.subr.bf16.mxu1 %v2159_v14  ;;  %v2249_v13 = vld [vmem:[%s2379_s18 + $0x30c] ss:$24 sps:$4 sm:$0xff]   ;;  %v2247_v14 = vld [vmem:[%s2379_s18 + $0x308] ss:$24 sps:$4 sm:$0xff]  }
  0x6c   : > { %1401 = vmatprep.subr.bf16.mxu0 %v2162_v15  ;;  %v2252_v15 = vld [vmem:[%s2379_s18 + $0x33c] ss:$24 sps:$4 sm:$0xff]  }
  0x6e   : > { %1300 = vmatpush1.bf16.msra.mxu1 %v2157_v16  ;;  %v2250_v16 = vld [vmem:[%s2379_s18 + $0x338] ss:$24 sps:$4 sm:$0xff]  }
  0x6f   : > { %1402 = vmatpush1.bf16.msra.mxu0 %v2160_v17  ;;  %1301 = vmatprep.subr.bf16.mxu1 %v2165_v18  ;;  %v2255_v17 = vld [vmem:[%s2379_s18 + $0x36c] ss:$24 sps:$4 sm:$0xff]   ;;  %v2253_v18 = vld [vmem:[%s2379_s18 + $0x368] ss:$24 sps:$4 sm:$0xff]  }
  0x70   : > { %1403 = vmatprep.subr.bf16.mxu0 %v2168_v19  ;;  %v2258_v19 = vld [vmem:[%s2379_s18 + $0x39c] ss:$24 sps:$4 sm:$0xff]  }
  0x72   : > { %1302 = vmatpush1.bf16.msra.mxu1 %v2163_v20  ;;  %v2256_v20 = vld [vmem:[%s2379_s18 + $0x398] ss:$24 sps:$4 sm:$0xff]  }
  0x73   : > { %1404 = vmatpush1.bf16.msra.mxu0 %v2166_v21  ;;  %1303 = vmatprep.subr.bf16.mxu1 %v2171_v22  ;;  %v2259_v21 = vld [vmem:[%s2379_s18 + $0x3c8] ss:$24 sps:$4 sm:$0xff]   ;;  %v2264_v22 = vld [vmem:[%s2379_s18 + $0x3fc] ss:$24 sps:$4 sm:$0xff]  }
  0x74   : > { %1405 = vmatprep.subr.bf16.mxu0 %v2174_v23  ;;  %v2267_v23 = vld [vmem:[%s2379_s18 + $0x42c] ss:$24 sps:$4 sm:$0xff]  }
  0x76   : > { %1304 = vmatpush1.bf16.msra.mxu1 %v2169_v24  ;;  %v2265_v24 = vld [vmem:[%s2379_s18 + $0x428] ss:$24 sps:$4 sm:$0xff]  }
  0x77   : > { %1406 = vmatpush1.bf16.msra.mxu0 %v2172_v25  ;;  %1305 = vmatprep.subr.bf16.mxu1 %v2177_v26  ;;  %v2270_v25 = vld [vmem:[%s2379_s18 + $0x45c] ss:$24 sps:$4 sm:$0xff]   ;;  %v2268_v26 = vld [vmem:[%s2379_s18 + $0x458] ss:$24 sps:$4 sm:$0xff]  }
  0x78   : > { %1407 = vmatprep.subr.bf16.mxu0 %v2180_v27 }
  0x7a   : > { %1306 = vmatpush1.bf16.msra.mxu1 %v2175_v28 }
  0x7b   : > { %1408 = vmatpush1.bf16.msra.mxu0 %v2178_v29  ;;  %1307 = vmatprep.subr.bf16.mxu1 %v2183_v30 }
  0x7c   : > { %1409 = vmatprep.subr.bf16.mxu0 %v2186_v31  ;;  %v315_v31 = vld [vmem:[#allocation2] sm:$0xff] }
  0x7e   : > { %1308 = vmatpush1.bf16.msra.mxu1 %v2181_v32 }
  0x7f   : > { %1410 = vmatpush1.bf16.msra.mxu0 %v2184_v33  ;;  %1309 = vmatprep.subr.bf16.mxu1 %v2189_v34  ;;  %v316_v34 = vld [vmem:[#allocation2 + $0x8] sm:$0xff] }
  0x80   : > { %1411 = vmatprep.subr.bf16.mxu0 %v2192_v35 }
  0x82   : > { %1310 = vmatpush1.bf16.msra.mxu1 %v2187_v36 }
  0x83   : > { %1412 = vmatpush1.bf16.msra.mxu0 %v2190_v37  ;;  %1311 = vmatprep.subr.bf16.mxu1 %v2195_v38  ;;  %v321_v37 = vld [vmem:[#allocation2 + $0x30] sm:$0xff] }
  0x84   : > { %1413 = vmatprep.subr.bf16.mxu0 %v2198_v39 }
  0x86   : > { %1312 = vmatpush1.bf16.msra.mxu1 %v2193_v41 }
  0x87   : > { %1414 = vmatpush1.bf16.msra.mxu0 %v2196_v42  ;;  %1313 = vmatprep.subr.bf16.mxu1 %v2201_v43  ;;  %v322_v42 = vld [vmem:[#allocation2 + $0x38] sm:$0xff] }
  0x88   : > { %1426 = vmatprep.subr.bf16.mxu0 %v2204_v44 }
  0x8a   : > { %1416 = vmatmul.mubr.bf16.vlgmr.msra.gmra.mrb[4].mxu0 %v2457_v11  ;;  %1314 = vmatpush1.bf16.msra.mxu1 %v2199_v45 }
  0x8b   : > { %1427 = vmatpush1.bf16.msra.mxu0 %v2202_v46  ;;  %1315 = vmatprep.subr.bf16.mxu1 %v2207_v47  ;;  %v319_v47 = vld [vmem:[#allocation2 + $0x20] sm:$0xff] }
  0x8c   : > { %1428 = vmatprep.subr.bf16.mxu0 %v2210_v48  ;;  %1458 = vmatprep.mubr.bf16.mxu0 %v2300_v7  ;;  %v320_v48 = vld [vmem:[#allocation2 + $0x28] sm:$0xff] }
  0x8e   : > { %1316 = vmatpush1.bf16.msra.mxu1 %v2205_v49 }
  0x8f   : > { %1429 = vmatpush1.bf16.msra.mxu0 %v2208_v50  ;;  %1317 = vmatprep.subr.bf16.mxu1 %v2213_v51  ;;  %v325_v50 = vld [vmem:[#allocation2 + $0x50] sm:$0xff] }
  0x90   : > { %1430 = vmatprep.subr.bf16.mxu0 %v2216_v52 }
  0x92   : > { %1318 = vmatpush1.bf16.msra.mxu1 %v2211_v53  ;;  %v326_v53 = vld [vmem:[#allocation2 + $0x58] sm:$0xff] }
  0x93   : > { %1431 = vmatpush1.bf16.msra.mxu0 %v2214_v54  ;;  %1319 = vmatprep.subr.bf16.mxu1 %v2219_v55 }
  0x94   : > { %1432 = vmatprep.subr.bf16.mxu0 %v2222_v56 }
  0x96   : > { %1320 = vmatpush1.bf16.msra.mxu1 %v2217_v57 }
  0x97   : > { %1433 = vmatpush1.bf16.msra.mxu0 %v2220_v58  ;;  %1321 = vmatprep.subr.bf16.mxu1 %v2225_v59  ;;  %v317_v59 = vld [vmem:[#allocation2 + $0x10] sm:$0xff] }
  0x98   : > { %1434 = vmatprep.subr.bf16.mxu0 %v2228_v60  ;;  %v318_v60 = vld [vmem:[#allocation2 + $0x18] sm:$0xff] }
  0x9a   : > { %1322 = vmatpush1.bf16.msra.mxu1 %v2223_v61 }
  0x9b   : > { %1435 = vmatpush1.bf16.msra.mxu0 %v2226_v62  ;;  %1323 = vmatprep.subr.bf16.mxu1 %v2231_v63  ;;  %v323_v62 = vld [vmem:[#allocation2 + $0x40] sm:$0xff] }
  0x9c   : > { %1436 = vmatprep.subr.bf16.mxu0 %v2234_v0 }
  0x9e   : > { %1324 = vmatpush1.bf16.msra.mxu1 %v2229_v1  ;;  %v324_v1 = vld [vmem:[#allocation2 + $0x48] sm:$0xff] }
  0x9f   : > { %1437 = vmatpush1.bf16.msra.mxu0 %v2232_v2  ;;  %1325 = vmatprep.subr.bf16.mxu1 %v2237_v3 }
  0xa0   : > { %1438 = vmatprep.subr.bf16.mxu0 %v2240_v4 }
  0xa2   : > { %1326 = vmatpush1.bf16.msra.mxu1 %v2235_v5 }
  0xa3   : > { %1439 = vmatpush1.bf16.msra.mxu0 %v2238_v6  ;;  %1327 = vmatprep.subr.bf16.mxu1 %v2243_v8  ;;  %v1511_v8 = vlaneseq (!%p1994_p10) }
  0xa4   : > { %1440 = vmatprep.subr.bf16.mxu0 %v2246_v9 }
  0xa5   : > { %v1512_v9 = vshrl.u32 (!%p1994_p10), %v1511_v8, 7 }
  0xa6   : > { %1328 = vmatpush1.bf16.msra.mxu1 %v2241_v10  ;;  %v1553_v10 = vld [vmem:[%s2658_s3] sm:$0xff] (!%p1994_p10) }
  0xa7   : > { %1441 = vmatpush1.bf16.msra.mxu0 %v2244_v12  ;;  %1340 = vmatprep.subr.bf16.mxu1 %v2249_v13  ;;  %v1554_v12 = vld [vmem:[%s2658_s3 + $0x8] sm:$0xff] (!%p1994_p10)  ;;  %v1509_v13 = vld [vmem:[%s2657_s2] sm:$0x3f] (!%p1994_p10) }
  0xa9   : > { %1330 = vmatmul.mubr.bf16.vlgmr.msra.gmra.mrb[4].mxu1 %v2457_v11  ;;  %v2261_v11 = vld [vmem:[%s2379_s18 + $0x3cc] ss:$24 sps:$4 sm:$0xff]  }
  0xaa   : > { %1459 = vmatmul.mubr.bf16.vlgmr.msra.gmra.mrb[4].mxu0 %v2420_v40  ;;  %1341 = vmatpush1.bf16.msra.mxu1 %v2247_v14  ;;  %v1559_v14 = vunpack.c.l.bf16 (!%p1994_p10), %v1553_v10 }
  0xab   : > { %1372 = vmatprep.mubr.bf16.mxu1 %v2300_v7  ;;  %1342 = vmatprep.subr.bf16.mxu1 %v2252_v15  ;;  %v2262_v7 = vld [vmem:[%s2379_s18 + $0x3f8] ss:$24 sps:$4 sm:$0xff]  }
  0xae   : > { %1343 = vmatpush1.bf16.msra.mxu1 %v2250_v16  ;;  %v2554_v16 = vsub.s32 (!%p1994_p10), 0, %v1512_v9 }
  0xaf   : > { %1344 = vmatprep.subr.bf16.mxu1 %v2255_v17  ;;  %v2556_v17 = vsub.s32 (!%p1994_p10), 1, %v1512_v9 }
  0xb2   : > { %1345 = vmatpush1.bf16.msra.mxu1 %v2253_v18  ;;  %v2558_v18 = vsub.s32 (!%p1994_p10), 2, %v1512_v9 }
  0xb3   : > { %1346 = vmatprep.subr.bf16.mxu1 %v2258_v19  ;;  %v2560_v19 = vsub.s32 (!%p1994_p10), 3, %v1512_v9 }
  0xb6   : > { %1347 = vmatpush1.bf16.msra.mxu1 %v2256_v20 }
  0xb7   : > { %1348 = vmatprep.subr.bf16.mxu1 %v2261_v11 }
  0xba   : > { %1349 = vmatpush1.bf16.msra.mxu1 %v2259_v21 }
  0xbb   : > { %1350 = vmatprep.subr.bf16.mxu1 %v2264_v22  ;;  %v2562_v22 = vsub.s32 (!%p1994_p10), 4, %v1512_v9 }
  0xbe   : > { %1351 = vmatpush1.bf16.msra.mxu1 %v2262_v7  ;;  %v2564_v7 = vsub.s32 (!%p1994_p10), 5, %v1512_v9 }
  0xbf   : > { %1352 = vmatprep.subr.bf16.mxu1 %v2267_v23  ;;  %v1560_v23 = vunpack.c.h.bf16 (!%p1994_p10), %v1553_v10 }
  0xc2   : > { %1353 = vmatpush1.bf16.msra.mxu1 %v2265_v24  ;;  %v1561_v24 = vunpack.c.l.bf16 (!%p1994_p10), %v1554_v12 }
  0xc3   : > { %1354 = vmatprep.subr.bf16.mxu1 %v2270_v25  ;;  %v1514_v25 = vrot.slane (!%p1994_p10), %v1509_v13, %v2554_v16 }
  0xc6   : > { %1355 = vmatpush1.bf16.msra.mxu1 %v2268_v26  ;;  %v1518_v26 = vrot.slane (!%p1994_p10), %v1509_v13, %v2556_v17 }
  0xc9   : > { %1373 = vmatmul.mubr.bf16.vlgmr.msra.gmra.mrb[4].mxu1 %v2420_v40 }
 0x11d   : > { %v1288_v27 = vpop.f32.mrb[0].mxu0 }
 0x11e   : > { %v1290_v28 = vpop.f32.mrb[1].mxu0 }
 0x11f   : > { %v1292_v29 = vpop.f32.mrb[2].mxu0 }
 0x120   : > { %v1294_v30 = vpop.f32.mrb[3].mxu0 }
 0x13c   : > { %v1245_v32 = vpop.f32.mrb[0].mxu1 }
 0x13d   : > { %v1289_v33 = vadd.f32 %v1288_v27, %v1245_v32  ;;  %v1247_v35 = vpop.f32.mrb[1].mxu1  ;;  %v1522_v27 = vrot.slane (!%p1994_p10), %v1509_v13, %v2558_v18  ;;  %v1534_v32 = vrot.slane (!%p1994_p10), %v1509_v13, %v2564_v7 }
 0x13e   : > { %v1291_v36 = vadd.f32 %v1290_v28, %v1247_v35  ;;  %v1249_v38 = vpop.f32.mrb[2].mxu1  ;;  %v1526_v28 = vrot.slane (!%p1994_p10), %v1509_v13, %v2560_v19 }
 0x13f   : > { %v1469_v39 = vadd.f32 %v1289_v33, %v315_v31  ;;  %v1293_v41 = vadd.f32 %v1292_v29, %v1249_v38  ;;  %v1251_v43 = vpop.f32.mrb[3].mxu1  ;;  %v1555_v29 = vld [vmem:[%s2658_s3 + $0x10] sm:$0xff] (!%p1994_p10)  ;;  %v1530_v31 = vrot.slane (!%p1994_p10), %v1509_v13, %v2562_v22  ;;  %v1562_v33 = vunpack.c.h.bf16 (!%p1994_p10), %v1554_v12 }
 0x140   : > { %v1470_v44 = vadd.f32 %v1291_v36, %v316_v34  ;;  %v1295_v45 = vadd.f32 %v1294_v30, %v1251_v43 }
 0x141   : > { %1481 = vst [vmem:[#allocation2] sm:$0xff] %v1469_v39  ;;  %v1475_v40 = vadd.f32 %v1293_v41, %v321_v37  ;;  %v1563_v39 = vunpack.c.l.bf16 (!%p1994_p10), %v1555_v29 }
 0x142   : > { %1482 = vst [vmem:[#allocation2 + $0x8] sm:$0xff] %v1470_v44  ;;  %v1476_v46 = vadd.f32 %v1295_v45, %v322_v42 }
 0x143   : > { %1487 = vst [vmem:[#allocation2 + $0x30] sm:$0xff] %v1475_v40 }
 0x144   : > { %1488 = vst [vmem:[#allocation2 + $0x38] sm:$0xff] %v1476_v46 }
 0x148   : > { %v1497_v15 = vld [vmem:[#allocation2] sm:$0xff] (!%p1994_p10) }
 0x149   : > { %v1498_v20 = vld [vmem:[#allocation2 + $0x8] sm:$0xff] (!%p1994_p10)  ;;  %v1541_v34 = vadd.f32 (!%p1994_p10), %v1514_v25, %v1497_v15 }
 0x14a   : > { %v1542_v35 = vadd.f32 (!%p1994_p10), %v1518_v26, %v1498_v20  ;;  %v1503_v45 = vld [vmem:[#allocation2 + $0x30] sm:$0xff] (!%p1994_p10) }
 0x14b   : > { %v1571_v42 = vadd.f32 (!%p1994_p10), %v1559_v14, %v1541_v34  ;;  %v1504_v40 = vld [vmem:[#allocation2 + $0x38] sm:$0xff] (!%p1994_p10) }
 0x14c   : > { %v1572_v43 = vadd.f32 (!%p1994_p10), %v1560_v23, %v1542_v35 }
 0x17d   : > { %v1460_v49 = vpop.f32.mrb[4].mxu0 }
 0x17e   : > { %v1473_v51 = vadd.f32 %v1460_v49, %v319_v47  ;;  %v1462_v52 = vpop.f32.mrb[5].mxu0 }
 0x17f   : > { %v1474_v54 = vadd.f32 %v1462_v52, %v320_v48  ;;  %v1464_v55 = vpop.f32.mrb[6].mxu0  ;;  %v1564_v48 = vunpack.c.h.bf16 (!%p1994_p10), %v1555_v29  ;;  %v1556_v52 = vld [vmem:[%s2658_s3 + $0x18] sm:$0xff] (!%p1994_p10) }
 0x180   : > { %1485 = vst [vmem:[#allocation2 + $0x20] sm:$0xff] %v1473_v51  ;;  %v1479_v56 = vadd.f32 %v1464_v55, %v325_v50  ;;  %v1466_v57 = vpop.f32.mrb[7].mxu0  ;;  %v1583_v50 = vadd.f32 (!%p1994_p10), %v1572_v43, %v1571_v42 }
 0x181   : > { %1486 = vst [vmem:[#allocation2 + $0x28] sm:$0xff] %v1474_v54  ;;  %v1480_v58 = vadd.f32 %v1466_v57, %v326_v53  ;;  %v1547_v53 = vadd.f32 (!%p1994_p10), %v1514_v25, %v1503_v45  ;;  %v1557_v54 = vld [vmem:[%s2658_s3 + $0x20] sm:$0xff] (!%p1994_p10) }
 0x182   : > { %1491 = vst [vmem:[#allocation2 + $0x50] sm:$0xff] %v1479_v56 }
 0x183   : > { %1492 = vst [vmem:[#allocation2 + $0x58] sm:$0xff] %v1480_v58  ;;  %v1548_v58 = vadd.f32 (!%p1994_p10), %v1518_v26, %v1504_v40 }
 0x187   : > { %v1501_v30 = vld [vmem:[#allocation2 + $0x20] sm:$0xff] (!%p1994_p10) }
 0x188   : > { %v1502_v38 = vld [vmem:[#allocation2 + $0x28] sm:$0xff] (!%p1994_p10)  ;;  %v1545_v41 = vadd.f32 (!%p1994_p10), %v1530_v31, %v1501_v30 }
 0x189   : > { %v1546_v47 = vadd.f32 (!%p1994_p10), %v1534_v32, %v1502_v38  ;;  %v1507_v57 = vld [vmem:[#allocation2 + $0x50] sm:$0xff] (!%p1994_p10) }
 0x18a   : > { %v1575_v55 = vadd.f32 (!%p1994_p10), %v1563_v39, %v1545_v41 }
 0x19c   : > { %v1374_v61 = vpop.f32.mrb[4].mxu1  ;;  %1496 = sbr.rel (%p1994_p10) target bundleno = 766 (0x2fe), region = 78 }
 0x19d   : > { %v1471_v63 = vadd.f32 %v1374_v61, %v317_v59  ;;  %v1376_v0 = vpop.f32.mrb[5].mxu1 }
 0x19e   : > { %v1472_v2 = vadd.f32 %v1376_v0, %v318_v60  ;;  %v1378_v3 = vpop.f32.mrb[6].mxu1  ;;  %v1558_v60 = vld [vmem:[%s2658_s3 + $0x28] sm:$0xff] (!%p1994_p10)  ;;  %v1576_v0 = vadd.f32 (!%p1994_p10), %v1564_v48, %v1546_v47 }
 0x19f   : > { %1483 = vst [vmem:[#allocation2 + $0x10] sm:$0xff] %v1471_v63  ;;  %v1477_v4 = vadd.f32 %v1378_v3, %v323_v62  ;;  %v1380_v5 = vpop.f32.mrb[7].mxu1  ;;  %v1565_v62 = vunpack.c.l.bf16 (!%p1994_p10), %v1556_v52  ;;  %v1566_v63 = vunpack.c.h.bf16 (!%p1994_p10), %v1556_v52  ;;  %v1567_v3 = vunpack.c.l.bf16 (!%p1994_p10), %v1557_v54 }
 0x1a0   : > { %1484 = vst [vmem:[#allocation2 + $0x18] sm:$0xff] %v1472_v2  ;;  %v1478_v6 = vadd.f32 %v1380_v5, %v324_v1  ;;  %v1508_v2 = vld [vmem:[#allocation2 + $0x58] sm:$0xff] (!%p1994_p10)  ;;  %v1551_v5 = vadd.f32 (!%p1994_p10), %v1530_v31, %v1507_v57  ;;  %v1570_v14 = vunpack.c.h.bf16 (!%p1994_p10), %v1558_v60 }
 0x1a1   : > { %1489 = vst [vmem:[#allocation2 + $0x40] sm:$0xff] %v1477_v4  ;;  %v1568_v4 = vunpack.c.h.bf16 (!%p1994_p10), %v1557_v54  ;;  %v1577_v8 = vadd.f32 (!%p1994_p10), %v1565_v62, %v1547_v53  ;;  %v1578_v9 = vadd.f32 (!%p1994_p10), %v1566_v63, %v1548_v58  ;;  %v1552_v13 = vadd.f32 (!%p1994_p10), %v1534_v32, %v1508_v2 }
 0x1a2   : > { %1490 = vst [vmem:[#allocation2 + $0x48] sm:$0xff] %v1478_v6  ;;  %v1569_v6 = vunpack.c.l.bf16 (!%p1994_p10), %v1558_v60 }
 0x1a3   : > { %v1590_v20 = vadd.f32 %v1578_v9, %v1577_v8 }
 0x1a6   : > { %v1499_v11 = vld [vmem:[#allocation2 + $0x10] sm:$0xff] }
 0x1a7   : > { %v1500_v21 = vld [vmem:[#allocation2 + $0x18] sm:$0xff]  ;;  %v1543_v36 = vadd.f32 %v1522_v27, %v1499_v11 }
 0x1a8   : > { %v1544_v37 = vadd.f32 %v1526_v28, %v1500_v21  ;;  %v1505_v46 = vld [vmem:[#allocation2 + $0x40] sm:$0xff]  ;;  %v1581_v21 = vadd.f32 %v1569_v6, %v1551_v5 }
 0x1a9   : > { %v1573_v44 = vadd.f32 %v1561_v24, %v1543_v36  ;;  %v1506_v51 = vld [vmem:[#allocation2 + $0x48] sm:$0xff]  ;;  %v1549_v59 = vadd.f32 %v1522_v27, %v1505_v46  ;;  %v1582_v24 = vadd.f32 %v1570_v14, %v1552_v13 }
 0x1aa   : > { %v1574_v49 = vadd.f32 %v1562_v33, %v1544_v37  ;;  %v1550_v61 = vadd.f32 %v1526_v28, %v1506_v51 }
 0x1ab   : > { %v1584_v56 = vadd.f32 %v1583_v50, %v1573_v44  ;;  %v1579_v12 = vadd.f32 %v1567_v3, %v1549_v59 }
 0x1ac   : > { %v1580_v15 = vadd.f32 %v1568_v4, %v1550_v61 }
 0x1ad   : > { %v1585_v1 = vadd.f32 %v1584_v56, %v1574_v49  ;;  %v1591_v23 = vadd.f32 %v1590_v20, %v1579_v12 }
 0x1af   : > { %v1586_v10 = vadd.f32 %v1585_v1, %v1575_v55  ;;  %v1592_v25 = vadd.f32 %v1591_v23, %v1580_v15 }
 0x1b1   : > { %v1587_v11 = vadd.f32 %v1586_v10, %v1576_v0  ;;  %v1593_v26 = vadd.f32 %v1592_v25, %v1581_v21  ;;  %v1700_v10 = vld [vmem:[%s2660_s5] sm:$0x3f] }
 0x1b2   : > { %v1705_v23 = vrot.slane %v1700_v10, %v2554_v16  ;;  %v1713_v25 = vrot.slane %v1700_v10, %v2558_v18 }
 0x1b3   : > { %1588 = vadd.xlane.f32.xlu0 %v1587_v11  ;;  %v1594_v27 = vadd.f32 %v1593_v26, %v1582_v24  ;;  %v1717_v26 = vrot.slane %v1700_v10, %v2560_v19 }
 0x1b7   : > { %1595 = vadd.xlane.f32.xlu0 %v1594_v27 }
 0x240   : > { %v1589_v28 = vpop.xlane.xlu0 %1588 }
 0x241   : > { %v1598_v29 = vmul.f32 0.0013020834, %v1589_v28 }
 0x243   : > { %v1600_v30 = vsub.f32 %v1571_v42, %v1598_v29  ;;  %v1601_v31 = vsub.f32 %v1572_v43, %v1598_v29  ;;  %v1602_v33 = vsub.f32 %v1573_v44, %v1598_v29  ;;  %v1603_v34 = vsub.f32 %v1574_v49, %v1598_v29 }
 0x244   : > { %v1596_v36 = vpop.xlane.xlu0 %1595  ;;  %v1604_v37 = vsub.f32 %v1575_v55, %v1598_v29  ;;  %v1605_v45 = vsub.f32 %v1576_v0, %v1598_v29 }
 0x245   : > { %v1612_v35 = vmul.f32 %v1600_v30, %v1600_v30  ;;  %v1613_v32 = vmul.f32 %v1601_v31, %v1601_v31  ;;  %v1614_v38 = vmul.f32 %v1602_v33, %v1602_v33  ;;  %v1599_v41 = vmul.f32 0.0013020834, %v1596_v36 }
 0x246   : > { %v1615_v40 = vmul.f32 %v1603_v34, %v1603_v34  ;;  %v1616_v42 = vmul.f32 %v1604_v37, %v1604_v37  ;;  %v1617_v52 = vmul.f32 %v1605_v45, %v1605_v45  ;;  %v1725_v36 = vrot.slane %v1700_v10, %v2564_v7 }
 0x247   : > { %v1624_v39 = vadd.f32 %v1613_v32, %v1612_v35  ;;  %v2584_v47 = vsub.f32 %v1577_v8, %v1599_v41  ;;  %v2586_v48 = vsub.f32 %v1578_v9, %v1599_v41  ;;  %v2588_v50 = vsub.f32 %v1579_v12, %v1599_v41  ;;  %v1656_v8 = vld [vmem:[%s2659_s4] sm:$0x3f] }
 0x248   : > { %v2590_v44 = vsub.f32 %v1580_v15, %v1599_v41  ;;  %v2596_v54 = vsub.f32 %v1581_v21, %v1599_v41  ;;  %v1611_v58 = vsub.f32 %v1582_v24, %v1599_v41  ;;  %v1661_v12 = vrot.slane %v1656_v8, %v2554_v16 }
 0x249   : > { %v1625_v46 = vadd.f32 %v1624_v39, %v1614_v38  ;;  %v1618_v49 = vmul.f32 %v2584_v47, %v2584_v47  ;;  %v1619_v51 = vmul.f32 %v2586_v48, %v2586_v48  ;;  %v1620_v55 = vmul.f32 %v2588_v50, %v2588_v50 }
 0x24a   : > { %v1621_v59 = vmul.f32 %v2590_v44, %v2590_v44  ;;  %v1622_v61 = vmul.f32 %v2596_v54, %v2596_v54  ;;  %v1623_v63 = vmul.f32 %v1611_v58, %v1611_v58  ;;  %v1665_v13 = vrot.slane %v1656_v8, %v2556_v17 }
 0x24b   : > { %v1626_v43 = vadd.f32 %v1625_v46, %v1615_v40  ;;  %v1631_v56 = vadd.f32 %v1619_v51, %v1618_v49  ;;  %v1669_v14 = vrot.slane %v1656_v8, %v2558_v18  ;;  %v1673_v15 = vrot.slane %v1656_v8, %v2560_v19 }
 0x24c   : > { %v1677_v20 = vrot.slane %v1656_v8, %v2562_v22  ;;  %v1681_v11 = vrot.slane %v1656_v8, %v2564_v7  ;;  %v1709_v24 = vrot.slane %v1700_v10, %v2556_v17  ;;  %v1721_v32 = vrot.slane %v1700_v10, %v2562_v22 }
 0x24d   : > { %v1627_v53 = vadd.f32 %v1626_v43, %v1616_v42  ;;  %v1632_v60 = vadd.f32 %v1631_v56, %v1620_v55 }
 0x24f   : > { %v1628_v57 = vadd.f32 %v1627_v53, %v1617_v52  ;;  %v1633_v62 = vadd.f32 %v1632_v60, %v1621_v59 }
 0x251   : > { %1629 = vadd.xlane.f32.xlu1 %v1628_v57  ;;  %v1634_v0 = vadd.f32 %v1633_v62, %v1622_v61 }
 0x253   : > { %v1635_v1 = vadd.f32 %v1634_v0, %v1623_v63 }
 0x255   : > { %1636 = vadd.xlane.f32.xlu1 %v1635_v1 }
 0x2de   : > { %v1630_v2 = vpop.xlane.xlu1 %1629 }
 0x2df   : > { %v1638_v3 = vmul.f32 0.0013020834, %v1630_v2 }
 0x2e1   : > { %v1640_v4 = vadd.f32 1e-12, %v1638_v3 }
 0x2e2   : > { %v1637_v5 = vpop.xlane.xlu1 %1636 }
 0x2e3   : > { %2271 = vrsqrt.f32 %v1640_v4  ;;  %v1639_v6 = vmul.f32 0.0013020834, %v1637_v5 }
 0x2e5   : > { %v1641_v9 = vadd.f32 1e-12, %v1639_v6 }
 0x2e7   : > { %2273 = vrsqrt.f32 %v1641_v9 }
 0x2ed   : > { %v2272_v21 = vpop.eup %2271 }
 0x2ee   : > { %v1644_v27 = vmul.f32 %v2272_v21, %v1600_v30  ;;  %v1645_v28 = vmul.f32 %v2272_v21, %v1601_v31  ;;  %v1646_v29 = vmul.f32 %v2272_v21, %v1602_v33  ;;  %v1647_v35 = vmul.f32 %v2272_v21, %v1603_v34 }
 0x2ef   : > { %v1648_v38 = vmul.f32 %v2272_v21, %v1604_v37  ;;  %v1649_v39 = vmul.f32 %v2272_v21, %v1605_v45 }
 0x2f0   : > { %v1688_v41 = vmul.f32 %v1661_v12, %v1644_v27  ;;  %v1689_v40 = vmul.f32 %v1665_v13, %v1645_v28  ;;  %v1690_v46 = vmul.f32 %v1669_v14, %v1646_v29  ;;  %v1691_v16 = vmul.f32 %v1673_v15, %v1647_v35 }
 0x2f1   : > { %v1692_v42 = vmul.f32 %v1677_v20, %v1648_v38  ;;  %v1693_v17 = vmul.f32 %v1681_v11, %v1649_v39  ;;  %v2274_v33 = vpop.eup %2273 }
 0x2f2   : > { %v1732_v43 = vadd.f32 %v1705_v23, %v1688_v41  ;;  %v1733_v18 = vadd.f32 %v1709_v24, %v1689_v40  ;;  %v1734_v49 = vadd.f32 %v1713_v25, %v1690_v46  ;;  %v1735_v19 = vadd.f32 %v1717_v26, %v1691_v16 }
 0x2f3   : > { %v1736_v30 = vadd.f32 %v1721_v32, %v1692_v42  ;;  %v1737_v31 = vadd.f32 %v1725_v36, %v1693_v17  ;;  %v1650_v7 = vmul.f32 %v2274_v33, %v2584_v47  ;;  %v1651_v37 = vmul.f32 %v2274_v33, %v2586_v48 }
 0x2f4   : > { %v2004_v34 = vpack.c.bf16 %v1733_v18, %v1732_v43  ;;  %v2005_v51 = vpack.c.bf16 %v1735_v19, %v1734_v49  ;;  %v1652_v45 = vmul.f32 %v2274_v33, %v2588_v50  ;;  %v1653_v52 = vmul.f32 %v2274_v33, %v2590_v44 }
 0x2f5   : > { %v2006_v22 = vpack.c.bf16 %v1737_v31, %v1736_v30  ;;  %v1654_v53 = vmul.f32 %v2274_v33, %v2596_v54  ;;  %v1655_v55 = vmul.f32 %v2274_v33, %v1611_v58  ;;  %v1694_v47 = vmul.f32 %v1661_v12, %v1650_v7 }
 0x2f6   : > { %1780 = vst [vmem:[%s2661_s6] sm:$0xff] %v2004_v34  ;;  %1781 = vst [vmem:[%s2661_s6 + $0x8] sm:$0xff] %v2005_v51  ;;  %v1695_v48 = vmul.f32 %v1665_v13, %v1651_v37  ;;  %v1696_v50 = vmul.f32 %v1669_v14, %v1652_v45  ;;  %v1697_v56 = vmul.f32 %v1673_v15, %v1653_v52 }
 0x2f7   : > { %1782 = vst [vmem:[%s2661_s6 + $0x10] sm:$0xff] %v2006_v22  ;;  %v1698_v57 = vmul.f32 %v1677_v20, %v1654_v53  ;;  %v1699_v59 = vmul.f32 %v1681_v11, %v1655_v55  ;;  %v1738_v60 = vadd.f32 %v1705_v23, %v1694_v47 }
 0x2f8   : > { %v1739_v61 = vadd.f32 %v1709_v24, %v1695_v48  ;;  %v1740_v62 = vadd.f32 %v1713_v25, %v1696_v50  ;;  %v1741_v63 = vadd.f32 %v1717_v26, %v1697_v56 }
 0x2f9   : > { %v1742_v0 = vadd.f32 %v1721_v32, %v1698_v57  ;;  %v1743_v1 = vadd.f32 %v1725_v36, %v1699_v59 }
 0x2fa   : > { %v2007_v44 = vpack.c.bf16 %v1739_v61, %v1738_v60  ;;  %v2008_v2 = vpack.c.bf16 %v1741_v63, %v1740_v62 }
 0x2fb   : > { %v2009_v54 = vpack.c.bf16 %v1743_v1, %v1742_v0 }
 0x2fc   : > { %1783 = vst [vmem:[%s2661_s6 + $0x18] sm:$0xff] %v2007_v44  ;;  %1784 = vst [vmem:[%s2661_s6 + $0x20] sm:$0xff] %v2008_v2 }
 0x2fd   : > { %1785 = vst [vmem:[%s2661_s6 + $0x28] sm:$0xff] %v2009_v54 }
 0x2fe PF: > { %p13_p11 = scmp.ge.s32.totalorder %s2355_s25, 4   ;;  %s2662_s21 = smov %s2293_s22 }
 0x2ff   : > { %s2663_s22 = smov %s2364_s28  ;;  %s2664_s23 = smov %s2355_s25 }
 0x300   :  { %15 = sbr.rel (!%p13_p11) target bundleno = 2 (0x2), region = 118 }

// kernel: bert_class_forward.13
= control target key start
LH: loop header
LB: loop body
LE: loop exit
PB: predicated region body
PF: predicated region fallthrough
CT: control target
= control target key end

     0   :  { %8 = vsyncpa [#allocation3], 0  ;;  %s3946_s0 = inlined_call_operand.vmem [shape: bf16[16,768], index: 0, kind: input, shape index: {}]   ;;  %s3947_s1 = inlined_call_operand.hbm [shape: bf16[768,2304], index: 1, kind: input, shape index: {}]   ;;  %s3948_s2 = inlined_call_operand.vmem [shape: f32[1,2304], index: 2, kind: input, shape index: {}]   ;;  %s3949_s3 = inlined_call_operand.vmem [shape: bf16[16,2304], index: 3, kind: output, shape index: {}]  }
   0x1   :  { %10 = vsyncpa [#allocation3 + $0x1], 0  ;;  %s3469_s12 = smov 0   ;;  %s3471_s13 = smov 0  }
   0x2   :  { %s3473_s14 = smov 0   ;;  %s3475_s15 = smov 0  }
   0x3 LB: > { %s3488_s16 = sadd.s32 4294967295, %s3443_s15   ;;  %s3491_s17 = sadd.s32 1, %s3443_s15   ;;  %s3443_s15 = sphi %s3475_s15, %s3957_s15   ;;  %s3439_s14 = sphi %s3473_s14, %s3956_s14   ;;  %s3435_s13 = sphi %s3471_s13, %s3955_s13   ;;  %s3431_s12 = sphi %s3469_s12, %s3954_s12  }
   0x4   : > { %s41_s18 = ssub.s32 %s3443_s15, %s3491_s17  ;;  %s44_s19 = sadd.s32 1, %s3439_s14 }
   0x5   : > { %p42_p0 = scmp.eq.s32.totalorder %s41_s18, 0  ;;  %p51_p1 = scmp.ne.s32.totalorder %s3439_s14, %s3435_s13 }
   0x6   : > { %p52_p2 = scmp.eq.s32.totalorder %s3443_s15, 0  ;;  %p57_p3 = scmp.ne.s32.totalorder %s3435_s13, %s3431_s12 }
   0x7   : > { %s3501_s20 = scalar_select %p42_p0, %s3439_s14, %s44_s19  }
   0x8   : > { %p53_p4 = por %p52_p2, %p51_p1  ;;  %p58_p5 = scmp.eq.s32.totalorder %s3488_s16, 0 }
   0x9   : > { %p107_p6 = scmp.eq.s32.totalorder %s3488_s16, 2  ;;  %p2900_p8 = scmp.lt.s32.totalorder %s3443_s15, 3 }
   0xa   : > { %p3505_p7 = por %p58_p5, %p57_p3  ;;  %s136_s23 = sand.u32 1, %s3439_s14  }
   0xb   : > { %p3510_p9 = por %p107_p6, %p51_p1  ;;  %s2891_s24 = smul.u32 2304, %s136_s23 }
   0xc   : > { %s2847_s25 = smul.u32 384, %s3443_s15  ;;  %p3516_p10 = pnand %p2900_p8, %p53_p4 }
   0xd   : > { %s3951_s22 = scalar_select %p3510_p9, 1, 0 }
   0xe   : > { %s3523_s29 = scalar_lea.hbm %s3947_s1, %s2847_s25  ;;  %s140_s30 = scalar_lea.vmem [#allocation2], %s2891_s24 }
   0xf   : > { %s147_s4 = sshll.u32 %s140_s30, 4  ;;  %s3527_s5 = scalar_lea.sflag [#allocation3], %s136_s23  ;;  %s3525_s4 = int_to_ptr.vmem [resolvable:$true] %s147_s4 }
  0x10   : > { %s3379_s6 = scalar_lea.hbm %s3523_s29, 36864  ;;  %p3381_p12 = pneg %p3516_p10 }
  0x11   : > { %p3380_p11 = scmp.ne.s32.totalorder %s3523_s29, %s3379_s6  ;;  %s3384_s9 = scalar_lea.hbm %s3947_s1, 110592 }
  0x12   : > { %p3385_p1 = scmp.lt.u32.totalorder %s3523_s29, %s3947_s1  ;;  %p3386_p2 = scmp.lt.u32.totalorder %s3384_s9, %s3379_s6 }
  0x13   : > { %p3382_p13 = pnand %p3381_p12, %p3380_p11  ;;  %p3388_p4 = scmp.lt.u32.totalorder %s3379_s6, %s3523_s29 }
  0x14   : > { %p3387_p3 = por %p3386_p2, %p3385_p1 }
  0x15   : > { %p3383_p0 = pneg %p3382_p13 }
  0x16   : > { %p3389_p5 = por %p3388_p4, %p3387_p3 }
  0x18   : > { %p3390_p6 = pnand %p3389_p5, %p3383_p0 }
  0x1a   : > { %3393 = shalt.err (!%p3390_p6)
}
  0x1b   : > { %s3394_s12 = scalar_lea.vmem %s3525_s4, 36864  ;;  %s3445_s18 = smov [#allocation2]  }
  0x1c   : > { %p3395_p8 = scmp.ne.s32.totalorder %s3525_s4, %s3394_s12  ;;  %s3399_s19 = sshll.u32 %s3445_s18, 4  ;;  %s3400_s19 = int_to_ptr.vmem [resolvable:$false] %s3399_s19 }
  0x1d   : > { %s3401_s23 = scalar_lea.vmem %s3400_s19, 73728  ;;  %p3402_p9 = scmp.lt.s32.totalorder %s3525_s4, %s3400_s19 }
  0x1e   : > { %p3397_p11 = pnand %p3395_p8, %p3381_p12  ;;  %p3403_p1 = scmp.lt.s32.totalorder %s3401_s23, %s3394_s12 }
  0x20   : > { %p3398_p13 = pneg %p3397_p11  ;;  %p3404_p2 = por %p3403_p1, %p3402_p9 }
  0x22   : > { %p3405_p3 = pnand %p3404_p2, %p3398_p13 }
  0x24   : > { %3408 = shalt.err (!%p3405_p3)
}
  0x25   : > { %s3446_s24 = smov 1152   ;;  %s3447_s25 = smov 384  }
  0x26   : > { %s3448_s27 = smov 24   ;;  %p2543_p12 = scmp.ge.s32.totalorder %s3443_s15, 1 }
  0x27   : > { %2899 = dma.hbm_to_vmem [thread:$0]  (!%p3516_p10), %s3523_s29, 36864, %s3525_s4, %s3527_s5, %s3446_s24, %s3447_s25, %s3448_s27  }
  0x28   : > { %p163_p0 = scmp.lt.s32.totalorder %s3443_s15, 4 }
  0x2a   : > { %p164_p4 = pnand %p2543_p12, %p163_p0 }
  0x2b   : > { %s3558_s28 = sand.u32 (!%p164_p4), 1, %s3435_s13  }
  0x2c   : > { %167 = sbr.rel (%p164_p4) target bundleno = 602 (0x25a), region = 32  ;;  %s170_s6 = scalar_lea.sflag (!%p164_p4), [#allocation3], %s3558_s28 }
  0x2d   : > { %s2892_s30 = smul.u32 (!%p164_p4), 2304, %s3558_s28 }
  0x2f   : > { %s3562_s7 = scalar_lea.vmem (!%p164_p4), [#allocation2], %s2892_s30 }
  0x33   : > { %3426 = dma.done.wait (%p3505_p7), %s170_s6, 36864  }
  0x34   : > { %3428 = vsyncadd (%p3505_p7), %s170_s6, 4294930432  ;;  %v2936_v0 = vld [vmem:[%s3562_s7 + $0x4] ss:$24 sps:$4 sm:$0xff]   ;;  %v2940_v2 = vld [vmem:[%s3562_s7] ss:$24 sps:$4 sm:$0xff]   ;;  %s200_s27 = smul.u32 6, %s3488_s16 }
  0x35   : > { %v2938_v1 = vld [vmem:[%s3562_s7 + $0x304] ss:$24 sps:$4 sm:$0xff]   ;;  %2002 = vmatprep.subr.bf16.mxu1 %v2936_v0  ;;  %v2941_v3 = vld [vmem:[%s3562_s7 + $0x300] ss:$24 sps:$4 sm:$0xff]   ;;  %v2942_v4 = vld [vmem:[%s3562_s7 + $0x34] ss:$24 sps:$4 sm:$0xff]  }
  0x36   : > { %2045 = vmatprep.subr.bf16.mxu0 %v2938_v1  ;;  %2003 = vmatpush1.bf16.msra.mxu1 %v2940_v2  ;;  %v2944_v5 = vld [vmem:[%s3562_s7 + $0x334] ss:$24 sps:$4 sm:$0xff]   ;;  %v2946_v6 = vld [vmem:[%s3562_s7 + $0x30] ss:$24 sps:$4 sm:$0xff]   ;;  %v2948_v8 = vld [vmem:[%s3562_s7 + $0x64] ss:$24 sps:$4 sm:$0xff]  }
  0x37   : > { %2046 = vmatpush1.bf16.msra.mxu0 %v2941_v3  ;;  %2004 = vmatprep.subr.bf16.mxu1 %v2942_v4  ;;  %v2947_v7 = vld [vmem:[%s3562_s7 + $0x330] ss:$24 sps:$4 sm:$0xff]   ;;  %v2950_v9 = vld [vmem:[%s3562_s7 + $0x364] ss:$24 sps:$4 sm:$0xff]   ;;  %v2952_v10 = vld [vmem:[%s3562_s7 + $0x60] ss:$24 sps:$4 sm:$0xff]  }
  0x38   : > { %2047 = vmatprep.subr.bf16.mxu0 %v2944_v5  ;;  %v2953_v11 = vld [vmem:[%s3562_s7 + $0x360] ss:$24 sps:$4 sm:$0xff]   ;;  %v2954_v12 = vld [vmem:[%s3562_s7 + $0x94] ss:$24 sps:$4 sm:$0xff]   ;;  %v2958_v14 = vld [vmem:[%s3562_s7 + $0x90] ss:$24 sps:$4 sm:$0xff]  }
  0x39   : > { %v2956_v13 = vld [vmem:[%s3562_s7 + $0x394] ss:$24 sps:$4 sm:$0xff]   ;;  %v2959_v15 = vld [vmem:[%s3562_s7 + $0x390] ss:$24 sps:$4 sm:$0xff]   ;;  %v2960_v16 = vld [vmem:[%s3562_s7 + $0xc4] ss:$24 sps:$4 sm:$0xff]  }
  0x3a   : > { %2005 = vmatpush1.bf16.msra.mxu1 %v2946_v6  ;;  %v2962_v17 = vld [vmem:[%s3562_s7 + $0x3c4] ss:$24 sps:$4 sm:$0xff]   ;;  %v2964_v18 = vld [vmem:[%s3562_s7 + $0xc0] ss:$24 sps:$4 sm:$0xff]   ;;  %v2966_v20 = vld [vmem:[%s3562_s7 + $0xf4] ss:$24 sps:$4 sm:$0xff]  }
  0x3b   : > { %2048 = vmatpush1.bf16.msra.mxu0 %v2947_v7  ;;  %2006 = vmatprep.subr.bf16.mxu1 %v2948_v8  ;;  %v2965_v19 = vld [vmem:[%s3562_s7 + $0x3c0] ss:$24 sps:$4 sm:$0xff]   ;;  %v2968_v21 = vld [vmem:[%s3562_s7 + $0x3f4] ss:$24 sps:$4 sm:$0xff]   ;;  %v2970_v22 = vld [vmem:[%s3562_s7 + $0xf0] ss:$24 sps:$4 sm:$0xff]  }
  0x3c   : > { %2049 = vmatprep.subr.bf16.mxu0 %v2950_v9  ;;  %v2971_v23 = vld [vmem:[%s3562_s7 + $0x3f0] ss:$24 sps:$4 sm:$0xff]   ;;  %v2972_v24 = vld [vmem:[%s3562_s7 + $0x124] ss:$24 sps:$4 sm:$0xff]   ;;  %v2976_v26 = vld [vmem:[%s3562_s7 + $0x120] ss:$24 sps:$4 sm:$0xff]  }
  0x3d   : > { %v2974_v25 = vld [vmem:[%s3562_s7 + $0x424] ss:$24 sps:$4 sm:$0xff]   ;;  %v2977_v27 = vld [vmem:[%s3562_s7 + $0x420] ss:$24 sps:$4 sm:$0xff]   ;;  %v2978_v28 = vld [vmem:[%s3562_s7 + $0x154] ss:$24 sps:$4 sm:$0xff]  }
  0x3e   : > { %2007 = vmatpush1.bf16.msra.mxu1 %v2952_v10  ;;  %v2980_v29 = vld [vmem:[%s3562_s7 + $0x454] ss:$24 sps:$4 sm:$0xff]   ;;  %v2982_v30 = vld [vmem:[%s3562_s7 + $0x150] ss:$24 sps:$4 sm:$0xff]   ;;  %v2984_v32 = vld [vmem:[%s3562_s7 + $0x184] ss:$24 sps:$4 sm:$0xff]  }
  0x3f   : > { %2050 = vmatpush1.bf16.msra.mxu0 %v2953_v11  ;;  %2008 = vmatprep.subr.bf16.mxu1 %v2954_v12  ;;  %v2983_v31 = vld [vmem:[%s3562_s7 + $0x450] ss:$24 sps:$4 sm:$0xff]   ;;  %v2986_v33 = vld [vmem:[%s3562_s7 + $0x484] ss:$24 sps:$4 sm:$0xff]   ;;  %v2988_v34 = vld [vmem:[%s3562_s7 + $0x180] ss:$24 sps:$4 sm:$0xff]  }
  0x40   : > { %2051 = vmatprep.subr.bf16.mxu0 %v2956_v13  ;;  %v2989_v35 = vld [vmem:[%s3562_s7 + $0x480] ss:$24 sps:$4 sm:$0xff]   ;;  %v2990_v36 = vld [vmem:[%s3562_s7 + $0x1b4] ss:$24 sps:$4 sm:$0xff]   ;;  %v2994_v38 = vld [vmem:[%s3562_s7 + $0x1b0] ss:$24 sps:$4 sm:$0xff]  }
  0x41   : > { %v2992_v37 = vld [vmem:[%s3562_s7 + $0x4b4] ss:$24 sps:$4 sm:$0xff]   ;;  %v2995_v39 = vld [vmem:[%s3562_s7 + $0x4b0] ss:$24 sps:$4 sm:$0xff]   ;;  %v2996_v40 = vld [vmem:[%s3562_s7 + $0x1e4] ss:$24 sps:$4 sm:$0xff]  }
  0x42   : > { %2009 = vmatpush1.bf16.msra.mxu1 %v2958_v14  ;;  %v2998_v41 = vld [vmem:[%s3562_s7 + $0x4e4] ss:$24 sps:$4 sm:$0xff]   ;;  %v3000_v42 = vld [vmem:[%s3562_s7 + $0x1e0] ss:$24 sps:$4 sm:$0xff]   ;;  %v3002_v44 = vld [vmem:[%s3562_s7 + $0x214] ss:$24 sps:$4 sm:$0xff]  }
  0x43   : > { %2052 = vmatpush1.bf16.msra.mxu0 %v2959_v15  ;;  %2010 = vmatprep.subr.bf16.mxu1 %v2960_v16  ;;  %v3001_v43 = vld [vmem:[%s3562_s7 + $0x4e0] ss:$24 sps:$4 sm:$0xff]   ;;  %v3004_v45 = vld [vmem:[%s3562_s7 + $0x514] ss:$24 sps:$4 sm:$0xff]   ;;  %v3006_v46 = vld [vmem:[%s3562_s7 + $0x210] ss:$24 sps:$4 sm:$0xff]  }
  0x44   : > { %2053 = vmatprep.subr.bf16.mxu0 %v2962_v17  ;;  %v3007_v47 = vld [vmem:[%s3562_s7 + $0x510] ss:$24 sps:$4 sm:$0xff]   ;;  %v3619_v48 = vld [vmem:[%s3946_s0 + $0x4] ss:$24 sps:$4 sm:$0xff]   ;;  %v3012_v52 = vld [vmem:[%s3562_s7 + $0x240] ss:$24 sps:$4 sm:$0xff]  }
  0x45   : > { %v3624_v49 = vld [vmem:[%s3946_s0 + $0xc] ss:$24 sps:$4 sm:$0xff]   ;;  %2034 = vmatprep.mubr.bf16.mxu1 %v3619_v48  ;;  %v3013_v53 = vld [vmem:[%s3562_s7 + $0x540] ss:$24 sps:$4 sm:$0xff]   ;;  %v3018_v56 = vld [vmem:[%s3562_s7 + $0x270] ss:$24 sps:$4 sm:$0xff]  }
  0x46   : > { %2011 = vmatpush1.bf16.msra.mxu1 %v2964_v18  ;;  %v3008_v50 = vld [vmem:[%s3562_s7 + $0x244] ss:$24 sps:$4 sm:$0xff]   ;;  %2077 = vmatprep.mubr.bf16.mxu0 %v3624_v49  ;;  %v3014_v54 = vld [vmem:[%s3562_s7 + $0x274] ss:$24 sps:$4 sm:$0xff]   ;;  %v3019_v57 = vld [vmem:[%s3562_s7 + $0x570] ss:$24 sps:$4 sm:$0xff]  }
  0x47   : > { %2054 = vmatpush1.bf16.msra.mxu0 %v2965_v19  ;;  %2012 = vmatprep.subr.bf16.mxu1 %v2966_v20  ;;  %v3010_v51 = vld [vmem:[%s3562_s7 + $0x544] ss:$24 sps:$4 sm:$0xff]   ;;  %v3016_v55 = vld [vmem:[%s3562_s7 + $0x574] ss:$24 sps:$4 sm:$0xff]   ;;  %v3024_v60 = vld [vmem:[%s3562_s7 + $0x2a0] ss:$24 sps:$4 sm:$0xff]  }
  0x48   : > { %2055 = vmatprep.subr.bf16.mxu0 %v2968_v21  ;;  %v3020_v58 = vld [vmem:[%s3562_s7 + $0x2a4] ss:$24 sps:$4 sm:$0xff]   ;;  %v3025_v61 = vld [vmem:[%s3562_s7 + $0x5a0] ss:$24 sps:$4 sm:$0xff]   ;;  %v3026_v62 = vld [vmem:[%s3562_s7 + $0x2d4] ss:$24 sps:$4 sm:$0xff]  }
  0x49   : > { %v3022_v59 = vld [vmem:[%s3562_s7 + $0x5a4] ss:$24 sps:$4 sm:$0xff]   ;;  %v3028_v63 = vld [vmem:[%s3562_s7 + $0x5d4] ss:$24 sps:$4 sm:$0xff]   ;;  %v3030_v0 = vld [vmem:[%s3562_s7 + $0x2d0] ss:$24 sps:$4 sm:$0xff]  }
  0x4a   : > { %2013 = vmatpush1.bf16.msra.mxu1 %v2970_v22  ;;  %v3031_v1 = vld [vmem:[%s3562_s7 + $0x5d0] ss:$24 sps:$4 sm:$0xff]   ;;  %v3038_v2 = vld [vmem:[%s3562_s7 + $0x604] ss:$24 sps:$4 sm:$0xff]   ;;  %v3036_v4 = vld [vmem:[%s3562_s7 + $0x600] ss:$24 sps:$4 sm:$0xff]  }
  0x4b   : > { %2056 = vmatpush1.bf16.msra.mxu0 %v2971_v23  ;;  %2014 = vmatprep.subr.bf16.mxu1 %v2972_v24  ;;  %v3041_v3 = vld [vmem:[%s3562_s7 + $0xc] ss:$24 sps:$4 sm:$0xff]   ;;  %v3039_v5 = vld [vmem:[%s3562_s7 + $0x8] ss:$24 sps:$4 sm:$0xff]   ;;  %v3049_v9 = vld [vmem:[%s3562_s7 + $0x3c] ss:$24 sps:$4 sm:$0xff]  }
  0x4c   : > { %2057 = vmatprep.subr.bf16.mxu0 %v2974_v25  ;;  %v3651_v6 = vld [vmem:[%s3946_s0] ss:$24 sps:$4 sm:$0xff]   ;;  %v3046_v8 = vld [vmem:[%s3562_s7 + $0x634] ss:$24 sps:$4 sm:$0xff]   ;;  %v3044_v10 = vld [vmem:[%s3562_s7 + $0x630] ss:$24 sps:$4 sm:$0xff]  }
  0x4d   : > { %v3656_v7 = vld [vmem:[%s3946_s0 + $0x8] ss:$24 sps:$4 sm:$0xff]   ;;  %v3047_v11 = vld [vmem:[%s3562_s7 + $0x38] ss:$24 sps:$4 sm:$0xff]   ;;  %v3052_v12 = vld [vmem:[%s3562_s7 + $0x664] ss:$24 sps:$4 sm:$0xff]  }
  0x4e   : > { %2015 = vmatpush1.bf16.msra.mxu1 %v2976_v26  ;;  %v3055_v13 = vld [vmem:[%s3562_s7 + $0x6c] ss:$24 sps:$4 sm:$0xff]   ;;  %v3050_v14 = vld [vmem:[%s3562_s7 + $0x660] ss:$24 sps:$4 sm:$0xff]   ;;  %v3061_v17 = vld [vmem:[%s3562_s7 + $0x9c] ss:$24 sps:$4 sm:$0xff]  }
  0x4f   : > { %2058 = vmatpush1.bf16.msra.mxu0 %v2977_v27  ;;  %2016 = vmatprep.subr.bf16.mxu1 %v2978_v28  ;;  %v3053_v15 = vld [vmem:[%s3562_s7 + $0x68] ss:$24 sps:$4 sm:$0xff]   ;;  %v3058_v16 = vld [vmem:[%s3562_s7 + $0x694] ss:$24 sps:$4 sm:$0xff]   ;;  %v3059_v19 = vld [vmem:[%s3562_s7 + $0x98] ss:$24 sps:$4 sm:$0xff]  }
  0x50   : > { %2059 = vmatprep.subr.bf16.mxu0 %v2980_v29  ;;  %v3056_v18 = vld [vmem:[%s3562_s7 + $0x690] ss:$24 sps:$4 sm:$0xff]   ;;  %v3064_v20 = vld [vmem:[%s3562_s7 + $0x6c4] ss:$24 sps:$4 sm:$0xff]   ;;  %v3062_v22 = vld [vmem:[%s3562_s7 + $0x6c0] ss:$24 sps:$4 sm:$0xff]  }
  0x51   : > { %v3067_v21 = vld [vmem:[%s3562_s7 + $0xcc] ss:$24 sps:$4 sm:$0xff]   ;;  %v3065_v23 = vld [vmem:[%s3562_s7 + $0xc8] ss:$24 sps:$4 sm:$0xff]   ;;  %v3073_v25 = vld [vmem:[%s3562_s7 + $0xfc] ss:$24 sps:$4 sm:$0xff]  }
  0x52   : > { %2017 = vmatpush1.bf16.msra.mxu1 %v2982_v30  ;;  %v3070_v24 = vld [vmem:[%s3562_s7 + $0x6f4] ss:$24 sps:$4 sm:$0xff]   ;;  %v3068_v26 = vld [vmem:[%s3562_s7 + $0x6f0] ss:$24 sps:$4 sm:$0xff]   ;;  %v3076_v28 = vld [vmem:[%s3562_s7 + $0x724] ss:$24 sps:$4 sm:$0xff]  }
  0x53   : > { %2060 = vmatpush1.bf16.msra.mxu0 %v2983_v31  ;;  %2018 = vmatprep.subr.bf16.mxu1 %v2984_v32  ;;  %v3071_v27 = vld [vmem:[%s3562_s7 + $0xf8] ss:$24 sps:$4 sm:$0xff]   ;;  %v3079_v29 = vld [vmem:[%s3562_s7 + $0x12c] ss:$24 sps:$4 sm:$0xff]   ;;  %v3077_v31 = vld [vmem:[%s3562_s7 + $0x128] ss:$24 sps:$4 sm:$0xff]  }
  0x54   : > { %2061 = vmatprep.subr.bf16.mxu0 %v2986_v33  ;;  %v3074_v30 = vld [vmem:[%s3562_s7 + $0x720] ss:$24 sps:$4 sm:$0xff]   ;;  %v3082_v32 = vld [vmem:[%s3562_s7 + $0x754] ss:$24 sps:$4 sm:$0xff]   ;;  %p201_p7 = scmp.lt.s32.totalorder %s200_s27, 17  ;;  %p3953_p9 = scmp.ne.s32.totalorder %s3951_s22, 0 }
  0x55   : > { %v3085_v33 = vld [vmem:[%s3562_s7 + $0x15c] ss:$24 sps:$4 sm:$0xff]  }
  0x56   : > { %2019 = vmatpush1.bf16.msra.mxu1 %v2988_v34  ;;  %v3690_v34 = vld [vmem:[%s3946_s0 + $0x14] ss:$24 sps:$4 sm:$0xff]   ;;  %s3959_s27 = smov (!%p201_p7, %s200_s27), 17 }
  0x57   : > { %2062 = vmatpush1.bf16.msra.mxu0 %v2989_v35  ;;  %2020 = vmatprep.subr.bf16.mxu1 %v2990_v36  ;;  %v3080_v35 = vld [vmem:[%s3562_s7 + $0x750] ss:$24 sps:$4 sm:$0xff]   ;;  %s203_s15 = scalar_lea.vmem %s3948_s2, %s3959_s27 }
  0x58   : > { %2063 = vmatprep.subr.bf16.mxu0 %v2992_v37  ;;  %v3083_v36 = vld [vmem:[%s3562_s7 + $0x158] ss:$24 sps:$4 sm:$0xff]   ;;  %v3088_v37 = vld [vmem:[%s3562_s7 + $0x784] ss:$24 sps:$4 sm:$0xff]  }
  0x5a   : > { %2021 = vmatpush1.bf16.msra.mxu1 %v2994_v38  ;;  %v3091_v38 = vld [vmem:[%s3562_s7 + $0x18c] ss:$24 sps:$4 sm:$0xff]  }
  0x5b   : > { %2064 = vmatpush1.bf16.msra.mxu0 %v2995_v39  ;;  %2022 = vmatprep.subr.bf16.mxu1 %v2996_v40  ;;  %v3086_v39 = vld [vmem:[%s3562_s7 + $0x780] ss:$24 sps:$4 sm:$0xff]  }
  0x5c   : > { %2065 = vmatprep.subr.bf16.mxu0 %v2998_v41  ;;  %v3089_v40 = vld [vmem:[%s3562_s7 + $0x188] ss:$24 sps:$4 sm:$0xff]   ;;  %v3094_v41 = vld [vmem:[%s3562_s7 + $0x7b4] ss:$24 sps:$4 sm:$0xff]  }
  0x5e   : > { %2023 = vmatpush1.bf16.msra.mxu1 %v3000_v42  ;;  %v3097_v42 = vld [vmem:[%s3562_s7 + $0x1bc] ss:$24 sps:$4 sm:$0xff]  }
  0x5f   : > { %2066 = vmatpush1.bf16.msra.mxu0 %v3001_v43  ;;  %2024 = vmatprep.subr.bf16.mxu1 %v3002_v44  ;;  %v3092_v43 = vld [vmem:[%s3562_s7 + $0x7b0] ss:$24 sps:$4 sm:$0xff]  }
  0x60   : > { %2067 = vmatprep.subr.bf16.mxu0 %v3004_v45  ;;  %v3095_v44 = vld [vmem:[%s3562_s7 + $0x1b8] ss:$24 sps:$4 sm:$0xff]   ;;  %v3100_v45 = vld [vmem:[%s3562_s7 + $0x7e4] ss:$24 sps:$4 sm:$0xff]  }
  0x62   : > { %2025 = vmatpush1.bf16.msra.mxu1 %v3006_v46  ;;  %v3103_v46 = vld [vmem:[%s3562_s7 + $0x1ec] ss:$24 sps:$4 sm:$0xff]  }
  0x63   : > { %2068 = vmatpush1.bf16.msra.mxu0 %v3007_v47  ;;  %2026 = vmatprep.subr.bf16.mxu1 %v3008_v50  ;;  %v3098_v47 = vld [vmem:[%s3562_s7 + $0x7e0] ss:$24 sps:$4 sm:$0xff]  }
  0x64   : > { %2069 = vmatprep.subr.bf16.mxu0 %v3010_v51  ;;  %v3101_v50 = vld [vmem:[%s3562_s7 + $0x1e8] ss:$24 sps:$4 sm:$0xff]   ;;  %v3106_v51 = vld [vmem:[%s3562_s7 + $0x814] ss:$24 sps:$4 sm:$0xff]  }
  0x66   : > { %2027 = vmatpush1.bf16.msra.mxu1 %v3012_v52  ;;  %v3109_v52 = vld [vmem:[%s3562_s7 + $0x21c] ss:$24 sps:$4 sm:$0xff]  }
  0x67   : > { %2070 = vmatpush1.bf16.msra.mxu0 %v3013_v53  ;;  %2028 = vmatprep.subr.bf16.mxu1 %v3014_v54  ;;  %v3104_v53 = vld [vmem:[%s3562_s7 + $0x810] ss:$24 sps:$4 sm:$0xff]  }
  0x68   : > { %2071 = vmatprep.subr.bf16.mxu0 %v3016_v55  ;;  %v3107_v54 = vld [vmem:[%s3562_s7 + $0x218] ss:$24 sps:$4 sm:$0xff]   ;;  %v3112_v55 = vld [vmem:[%s3562_s7 + $0x844] ss:$24 sps:$4 sm:$0xff]  }
  0x6a   : > { %2029 = vmatpush1.bf16.msra.mxu1 %v3018_v56  ;;  %v3115_v56 = vld [vmem:[%s3562_s7 + $0x24c] ss:$24 sps:$4 sm:$0xff]  }
  0x6b   : > { %2072 = vmatpush1.bf16.msra.mxu0 %v3019_v57  ;;  %2030 = vmatprep.subr.bf16.mxu1 %v3020_v58  ;;  %v3110_v57 = vld [vmem:[%s3562_s7 + $0x840] ss:$24 sps:$4 sm:$0xff]  }
  0x6c   : > { %2073 = vmatprep.subr.bf16.mxu0 %v3022_v59  ;;  %v3113_v58 = vld [vmem:[%s3562_s7 + $0x248] ss:$24 sps:$4 sm:$0xff]   ;;  %v3118_v59 = vld [vmem:[%s3562_s7 + $0x874] ss:$24 sps:$4 sm:$0xff]  }
  0x6e   : > { %2031 = vmatpush1.bf16.msra.mxu1 %v3024_v60  ;;  %v3121_v60 = vld [vmem:[%s3562_s7 + $0x27c] ss:$24 sps:$4 sm:$0xff]  }
  0x6f   : > { %2074 = vmatpush1.bf16.msra.mxu0 %v3025_v61  ;;  %2032 = vmatprep.subr.bf16.mxu1 %v3026_v62  ;;  %v3116_v61 = vld [vmem:[%s3562_s7 + $0x870] ss:$24 sps:$4 sm:$0xff]  }
  0x70   : > { %2075 = vmatprep.subr.bf16.mxu0 %v3028_v63  ;;  %v3119_v62 = vld [vmem:[%s3562_s7 + $0x278] ss:$24 sps:$4 sm:$0xff]   ;;  %v3124_v63 = vld [vmem:[%s3562_s7 + $0x8a4] ss:$24 sps:$4 sm:$0xff]  }
  0x72   : > { %2033 = vmatpush1.bf16.msra.mxu1 %v3030_v0  ;;  %v3127_v0 = vld [vmem:[%s3562_s7 + $0x2ac] ss:$24 sps:$4 sm:$0xff]  }
  0x73   : > { %2076 = vmatpush1.bf16.msra.mxu0 %v3031_v1  ;;  %2131 = vmatprep.subr.bf16.mxu1 %v3041_v3  ;;  %v3122_v1 = vld [vmem:[%s3562_s7 + $0x8a0] ss:$24 sps:$4 sm:$0xff]   ;;  %v3130_v3 = vld [vmem:[%s3562_s7 + $0x8d4] ss:$24 sps:$4 sm:$0xff]  }
  0x74   : > { %2088 = vmatprep.subr.bf16.mxu0 %v3038_v2  ;;  %v3125_v2 = vld [vmem:[%s3562_s7 + $0x2a8] ss:$24 sps:$4 sm:$0xff]  }
  0x75   : > { %2035 = vmatmul.mubr.bf16.vlgmr.msra.gmra.mrb[0].mxu1 %v3651_v6 }
  0x76   : > { %2078 = vmatmul.mubr.bf16.vlgmr.msra.gmra.mrb[0].mxu0 %v3656_v7  ;;  %2132 = vmatpush1.bf16.msra.mxu1 %v3039_v5  ;;  %v3128_v5 = vld [vmem:[%s3562_s7 + $0x8d0] ss:$24 sps:$4 sm:$0xff]  }
  0x77   : > { %2089 = vmatpush1.bf16.msra.mxu0 %v3036_v4  ;;  %2133 = vmatprep.subr.bf16.mxu1 %v3049_v9  ;;  %v3133_v4 = vld [vmem:[%s3562_s7 + $0x2dc] ss:$24 sps:$4 sm:$0xff]   ;;  %v3139_v9 = vld [vmem:[%s3562_s7 + $0x30c] ss:$24 sps:$4 sm:$0xff]  }
  0x78   : > { %2090 = vmatprep.subr.bf16.mxu0 %v3046_v8  ;;  %2163 = vmatprep.mubr.bf16.mxu1 %v3619_v48  ;;  %v3131_v8 = vld [vmem:[%s3562_s7 + $0x2d8] ss:$24 sps:$4 sm:$0xff]  }
  0x79   : > { %2120 = vmatprep.mubr.bf16.mxu0 %v3690_v34 }
  0x7a   : > { %2134 = vmatpush1.bf16.msra.mxu1 %v3047_v11  ;;  %v3732_v11 = vld [vmem:[%s3946_s0 + $0x10] ss:$24 sps:$4 sm:$0xff]  }
  0x7b   : > { %2091 = vmatpush1.bf16.msra.mxu0 %v3044_v10  ;;  %2135 = vmatprep.subr.bf16.mxu1 %v3055_v13  ;;  %v3142_v10 = vld [vmem:[%s3562_s7 + $0x14] ss:$24 sps:$4 sm:$0xff]   ;;  %v3140_v13 = vld [vmem:[%s3562_s7 + $0x10] ss:$24 sps:$4 sm:$0xff]  }
  0x7c   : > { %2092 = vmatprep.subr.bf16.mxu0 %v3052_v12  ;;  %v3137_v12 = vld [vmem:[%s3562_s7 + $0x308] ss:$24 sps:$4 sm:$0xff]  }
  0x7e   : > { %2136 = vmatpush1.bf16.msra.mxu1 %v3053_v15  ;;  %v3148_v15 = vld [vmem:[%s3562_s7 + $0x44] ss:$24 sps:$4 sm:$0xff]  }
  0x7f   : > { %2093 = vmatpush1.bf16.msra.mxu0 %v3050_v14  ;;  %2137 = vmatprep.subr.bf16.mxu1 %v3061_v17  ;;  %v3145_v14 = vld [vmem:[%s3562_s7 + $0x33c] ss:$24 sps:$4 sm:$0xff]   ;;  %v3146_v17 = vld [vmem:[%s3562_s7 + $0x40] ss:$24 sps:$4 sm:$0xff]  }
  0x80   : > { %2094 = vmatprep.subr.bf16.mxu0 %v3058_v16  ;;  %v3143_v16 = vld [vmem:[%s3562_s7 + $0x338] ss:$24 sps:$4 sm:$0xff]  }
  0x82   : > { %2138 = vmatpush1.bf16.msra.mxu1 %v3059_v19  ;;  %v3154_v19 = vld [vmem:[%s3562_s7 + $0x74] ss:$24 sps:$4 sm:$0xff]  }
  0x83   : > { %2095 = vmatpush1.bf16.msra.mxu0 %v3056_v18  ;;  %2139 = vmatprep.subr.bf16.mxu1 %v3067_v21  ;;  %v3151_v18 = vld [vmem:[%s3562_s7 + $0x36c] ss:$24 sps:$4 sm:$0xff]   ;;  %v3152_v21 = vld [vmem:[%s3562_s7 + $0x70] ss:$24 sps:$4 sm:$0xff]  }
  0x84   : > { %2096 = vmatprep.subr.bf16.mxu0 %v3064_v20  ;;  %v3149_v20 = vld [vmem:[%s3562_s7 + $0x368] ss:$24 sps:$4 sm:$0xff]  }
  0x86   : > { %2140 = vmatpush1.bf16.msra.mxu1 %v3065_v23  ;;  %v3160_v23 = vld [vmem:[%s3562_s7 + $0xa4] ss:$24 sps:$4 sm:$0xff]  }
  0x87   : > { %2097 = vmatpush1.bf16.msra.mxu0 %v3062_v22  ;;  %2141 = vmatprep.subr.bf16.mxu1 %v3073_v25  ;;  %v3157_v22 = vld [vmem:[%s3562_s7 + $0x39c] ss:$24 sps:$4 sm:$0xff]   ;;  %v3158_v25 = vld [vmem:[%s3562_s7 + $0xa0] ss:$24 sps:$4 sm:$0xff]  }
  0x88   : > { %2098 = vmatprep.subr.bf16.mxu0 %v3070_v24  ;;  %v3155_v24 = vld [vmem:[%s3562_s7 + $0x398] ss:$24 sps:$4 sm:$0xff]  }
  0x8a   : > { %2142 = vmatpush1.bf16.msra.mxu1 %v3071_v27  ;;  %v3164_v27 = vld [vmem:[%s3562_s7 + $0xd0] ss:$24 sps:$4 sm:$0xff]  }
  0x8b   : > { %2099 = vmatpush1.bf16.msra.mxu0 %v3068_v26  ;;  %2143 = vmatprep.subr.bf16.mxu1 %v3079_v29  ;;  %v3161_v26 = vld [vmem:[%s3562_s7 + $0x3c8] ss:$24 sps:$4 sm:$0xff]   ;;  %v3172_v29 = vld [vmem:[%s3562_s7 + $0x104] ss:$24 sps:$4 sm:$0xff]  }
  0x8c   : > { %2100 = vmatprep.subr.bf16.mxu0 %v3076_v28  ;;  %v3169_v28 = vld [vmem:[%s3562_s7 + $0x3fc] ss:$24 sps:$4 sm:$0xff]  }
  0x8e   : > { %2144 = vmatpush1.bf16.msra.mxu1 %v3077_v31  ;;  %v3170_v31 = vld [vmem:[%s3562_s7 + $0x100] ss:$24 sps:$4 sm:$0xff]  }
  0x8f   : > { %2101 = vmatpush1.bf16.msra.mxu0 %v3074_v30  ;;  %2145 = vmatprep.subr.bf16.mxu1 %v3085_v33  ;;  %v3167_v30 = vld [vmem:[%s3562_s7 + $0x3f8] ss:$24 sps:$4 sm:$0xff]   ;;  %v3178_v33 = vld [vmem:[%s3562_s7 + $0x134] ss:$24 sps:$4 sm:$0xff]  }
  0x90   : > { %2102 = vmatprep.subr.bf16.mxu0 %v3082_v32  ;;  %v3175_v32 = vld [vmem:[%s3562_s7 + $0x42c] ss:$24 sps:$4 sm:$0xff]  }
  0x92   : > { %2146 = vmatpush1.bf16.msra.mxu1 %v3083_v36  ;;  %v3176_v36 = vld [vmem:[%s3562_s7 + $0x130] ss:$24 sps:$4 sm:$0xff]  }
  0x93   : > { %2103 = vmatpush1.bf16.msra.mxu0 %v3080_v35  ;;  %2147 = vmatprep.subr.bf16.mxu1 %v3091_v38  ;;  %v3173_v35 = vld [vmem:[%s3562_s7 + $0x428] ss:$24 sps:$4 sm:$0xff]   ;;  %v3184_v38 = vld [vmem:[%s3562_s7 + $0x164] ss:$24 sps:$4 sm:$0xff]  }
  0x94   : > { %2104 = vmatprep.subr.bf16.mxu0 %v3088_v37  ;;  %v3181_v37 = vld [vmem:[%s3562_s7 + $0x45c] ss:$24 sps:$4 sm:$0xff]  }
  0x96   : > { %2148 = vmatpush1.bf16.msra.mxu1 %v3089_v40  ;;  %v3182_v40 = vld [vmem:[%s3562_s7 + $0x160] ss:$24 sps:$4 sm:$0xff]  }
  0x97   : > { %2105 = vmatpush1.bf16.msra.mxu0 %v3086_v39  ;;  %2149 = vmatprep.subr.bf16.mxu1 %v3097_v42  ;;  %v3179_v39 = vld [vmem:[%s3562_s7 + $0x458] ss:$24 sps:$4 sm:$0xff]   ;;  %v3190_v42 = vld [vmem:[%s3562_s7 + $0x194] ss:$24 sps:$4 sm:$0xff]  }
  0x98   : > { %2106 = vmatprep.subr.bf16.mxu0 %v3094_v41  ;;  %v3187_v41 = vld [vmem:[%s3562_s7 + $0x48c] ss:$24 sps:$4 sm:$0xff]  }
  0x9a   : > { %2150 = vmatpush1.bf16.msra.mxu1 %v3095_v44  ;;  %v3188_v44 = vld [vmem:[%s3562_s7 + $0x190] ss:$24 sps:$4 sm:$0xff]  }
  0x9b   : > { %2107 = vmatpush1.bf16.msra.mxu0 %v3092_v43  ;;  %2151 = vmatprep.subr.bf16.mxu1 %v3103_v46  ;;  %v3185_v43 = vld [vmem:[%s3562_s7 + $0x488] ss:$24 sps:$4 sm:$0xff]   ;;  %v3196_v46 = vld [vmem:[%s3562_s7 + $0x1c4] ss:$24 sps:$4 sm:$0xff]  }
  0x9c   : > { %2108 = vmatprep.subr.bf16.mxu0 %v3100_v45  ;;  %v3193_v45 = vld [vmem:[%s3562_s7 + $0x4bc] ss:$24 sps:$4 sm:$0xff]  }
  0x9e   : > { %2152 = vmatpush1.bf16.msra.mxu1 %v3101_v50  ;;  %v3194_v50 = vld [vmem:[%s3562_s7 + $0x1c0] ss:$24 sps:$4 sm:$0xff]  }
  0x9f   : > { %2109 = vmatpush1.bf16.msra.mxu0 %v3098_v47  ;;  %2153 = vmatprep.subr.bf16.mxu1 %v3109_v52  ;;  %v3191_v47 = vld [vmem:[%s3562_s7 + $0x4b8] ss:$24 sps:$4 sm:$0xff]   ;;  %v3202_v52 = vld [vmem:[%s3562_s7 + $0x1f4] ss:$24 sps:$4 sm:$0xff]  }
  0xa0   : > { %2110 = vmatprep.subr.bf16.mxu0 %v3106_v51  ;;  %v3199_v51 = vld [vmem:[%s3562_s7 + $0x4ec] ss:$24 sps:$4 sm:$0xff]  }
  0xa2   : > { %2154 = vmatpush1.bf16.msra.mxu1 %v3107_v54  ;;  %v3200_v54 = vld [vmem:[%s3562_s7 + $0x1f0] ss:$24 sps:$4 sm:$0xff]  }
  0xa3   : > { %2111 = vmatpush1.bf16.msra.mxu0 %v3104_v53  ;;  %2155 = vmatprep.subr.bf16.mxu1 %v3115_v56  ;;  %v3197_v53 = vld [vmem:[%s3562_s7 + $0x4e8] ss:$24 sps:$4 sm:$0xff]   ;;  %v3208_v56 = vld [vmem:[%s3562_s7 + $0x224] ss:$24 sps:$4 sm:$0xff]  }
  0xa4   : > { %2112 = vmatprep.subr.bf16.mxu0 %v3112_v55  ;;  %v3205_v55 = vld [vmem:[%s3562_s7 + $0x51c] ss:$24 sps:$4 sm:$0xff]  }
  0xa6   : > { %2156 = vmatpush1.bf16.msra.mxu1 %v3113_v58  ;;  %v3206_v58 = vld [vmem:[%s3562_s7 + $0x220] ss:$24 sps:$4 sm:$0xff]  }
  0xa7   : > { %2113 = vmatpush1.bf16.msra.mxu0 %v3110_v57  ;;  %2157 = vmatprep.subr.bf16.mxu1 %v3121_v60  ;;  %v3203_v57 = vld [vmem:[%s3562_s7 + $0x518] ss:$24 sps:$4 sm:$0xff]   ;;  %v3214_v60 = vld [vmem:[%s3562_s7 + $0x254] ss:$24 sps:$4 sm:$0xff]  }
  0xa8   : > { %2114 = vmatprep.subr.bf16.mxu0 %v3118_v59  ;;  %v3211_v59 = vld [vmem:[%s3562_s7 + $0x54c] ss:$24 sps:$4 sm:$0xff]  }
  0xaa   : > { %2158 = vmatpush1.bf16.msra.mxu1 %v3119_v62  ;;  %v3212_v62 = vld [vmem:[%s3562_s7 + $0x250] ss:$24 sps:$4 sm:$0xff]  }
  0xab   : > { %2115 = vmatpush1.bf16.msra.mxu0 %v3116_v61  ;;  %2159 = vmatprep.subr.bf16.mxu1 %v3127_v0  ;;  %v3209_v61 = vld [vmem:[%s3562_s7 + $0x548] ss:$24 sps:$4 sm:$0xff]   ;;  %v3220_v0 = vld [vmem:[%s3562_s7 + $0x284] ss:$24 sps:$4 sm:$0xff]  }
  0xac   : > { %2116 = vmatprep.subr.bf16.mxu0 %v3124_v63  ;;  %v3217_v63 = vld [vmem:[%s3562_s7 + $0x57c] ss:$24 sps:$4 sm:$0xff]  }
  0xae   : > { %2160 = vmatpush1.bf16.msra.mxu1 %v3125_v2  ;;  %v3218_v2 = vld [vmem:[%s3562_s7 + $0x280] ss:$24 sps:$4 sm:$0xff]  }
  0xaf   : > { %2117 = vmatpush1.bf16.msra.mxu0 %v3122_v1  ;;  %2161 = vmatprep.subr.bf16.mxu1 %v3133_v4  ;;  %v3215_v1 = vld [vmem:[%s3562_s7 + $0x578] ss:$24 sps:$4 sm:$0xff]   ;;  %v3226_v4 = vld [vmem:[%s3562_s7 + $0x2b4] ss:$24 sps:$4 sm:$0xff]  }
  0xb0   : > { %2118 = vmatprep.subr.bf16.mxu0 %v3130_v3  ;;  %v3223_v3 = vld [vmem:[%s3562_s7 + $0x5ac] ss:$24 sps:$4 sm:$0xff]  }
  0xb2   : > { %2162 = vmatpush1.bf16.msra.mxu1 %v3131_v8  ;;  %v3224_v8 = vld [vmem:[%s3562_s7 + $0x2b0] ss:$24 sps:$4 sm:$0xff]  }
  0xb3   : > { %2119 = vmatpush1.bf16.msra.mxu0 %v3128_v5  ;;  %2174 = vmatprep.subr.bf16.mxu1 %v3139_v9  ;;  %v3221_v5 = vld [vmem:[%s3562_s7 + $0x5a8] ss:$24 sps:$4 sm:$0xff]   ;;  %v3229_v9 = vld [vmem:[%s3562_s7 + $0x5dc] ss:$24 sps:$4 sm:$0xff]  }
  0xb4   : > { %2260 = vmatprep.subr.bf16.mxu0 %v3142_v10  ;;  %v3232_v10 = vld [vmem:[%s3562_s7 + $0x2e4] ss:$24 sps:$4 sm:$0xff]  }
  0xb5   : > { %2164 = vmatmul.mubr.bf16.vlgmr.msra.gmra.mrb[4].mxu1 %v3651_v6 }
  0xb6   : > { %2121 = vmatmul.mubr.bf16.vlgmr.msra.gmra.mrb[0].mxu0 %v3732_v11  ;;  %2175 = vmatpush1.bf16.msra.mxu1 %v3137_v12  ;;  %v3227_v12 = vld [vmem:[%s3562_s7 + $0x5d8] ss:$24 sps:$4 sm:$0xff]  }
  0xb7   : > { %2261 = vmatpush1.bf16.msra.mxu0 %v3140_v13  ;;  %2176 = vmatprep.subr.bf16.mxu1 %v3145_v14  ;;  %v3230_v13 = vld [vmem:[%s3562_s7 + $0x2e0] ss:$24 sps:$4 sm:$0xff]   ;;  %v3235_v14 = vld [vmem:[%s3562_s7 + $0x60c] ss:$24 sps:$4 sm:$0xff]  }
  0xb8   : > { %2262 = vmatprep.subr.bf16.mxu0 %v3148_v15  ;;  %2206 = vmatprep.mubr.bf16.mxu1 %v3624_v49  ;;  %v3166_v49 = vld [vmem:[%s3562_s7 + $0xd4] ss:$24 sps:$4 sm:$0xff]  }
  0xb9   : > { %2292 = vmatprep.mubr.bf16.mxu0 %v3619_v48  ;;  %v3163_v48 = vld [vmem:[%s3562_s7 + $0x3cc] ss:$24 sps:$4 sm:$0xff]  }
  0xba   : > { %2177 = vmatpush1.bf16.msra.mxu1 %v3143_v16  ;;  %v3238_v15 = vld [vmem:[%s3562_s7 + $0x314] ss:$24 sps:$4 sm:$0xff]   ;;  %v3233_v16 = vld [vmem:[%s3562_s7 + $0x608] ss:$24 sps:$4 sm:$0xff]  }
  0xbb   : > { %2263 = vmatpush1.bf16.msra.mxu0 %v3146_v17  ;;  %2178 = vmatprep.subr.bf16.mxu1 %v3151_v18  ;;  %v3236_v17 = vld [vmem:[%s3562_s7 + $0x310] ss:$24 sps:$4 sm:$0xff]   ;;  %v3241_v18 = vld [vmem:[%s3562_s7 + $0x63c] ss:$24 sps:$4 sm:$0xff]  }
  0xbc   : > { %2264 = vmatprep.subr.bf16.mxu0 %v3154_v19  ;;  %v3244_v19 = vld [vmem:[%s3562_s7 + $0x344] ss:$24 sps:$4 sm:$0xff]  }
  0xbe   : > { %2179 = vmatpush1.bf16.msra.mxu1 %v3149_v20  ;;  %v3239_v20 = vld [vmem:[%s3562_s7 + $0x638] ss:$24 sps:$4 sm:$0xff]  }
  0xbf   : > { %2265 = vmatpush1.bf16.msra.mxu0 %v3152_v21  ;;  %2180 = vmatprep.subr.bf16.mxu1 %v3157_v22  ;;  %v3242_v21 = vld [vmem:[%s3562_s7 + $0x340] ss:$24 sps:$4 sm:$0xff]   ;;  %v3247_v22 = vld [vmem:[%s3562_s7 + $0x66c] ss:$24 sps:$4 sm:$0xff]  }
  0xc0   : > { %2266 = vmatprep.subr.bf16.mxu0 %v3160_v23  ;;  %v3250_v23 = vld [vmem:[%s3562_s7 + $0x374] ss:$24 sps:$4 sm:$0xff]  }
  0xc2   : > { %2181 = vmatpush1.bf16.msra.mxu1 %v3155_v24  ;;  %v3248_v24 = vld [vmem:[%s3562_s7 + $0x370] ss:$24 sps:$4 sm:$0xff]  }
  0xc3   : > { %2267 = vmatpush1.bf16.msra.mxu0 %v3158_v25  ;;  %2182 = vmatprep.subr.bf16.mxu1 %v3163_v48  ;;  %v3253_v25 = vld [vmem:[%s3562_s7 + $0x69c] ss:$24 sps:$4 sm:$0xff]  }
  0xc4   : > { %2268 = vmatprep.subr.bf16.mxu0 %v3166_v49  ;;  %v3256_v48 = vld [vmem:[%s3562_s7 + $0x3a4] ss:$24 sps:$4 sm:$0xff]   ;;  %v3251_v49 = vld [vmem:[%s3562_s7 + $0x698] ss:$24 sps:$4 sm:$0xff]  }
  0xc6   : > { %2183 = vmatpush1.bf16.msra.mxu1 %v3161_v26  ;;  %v3254_v26 = vld [vmem:[%s3562_s7 + $0x3a0] ss:$24 sps:$4 sm:$0xff]  }
  0xc7   : > { %2269 = vmatpush1.bf16.msra.mxu0 %v3164_v27  ;;  %2184 = vmatprep.subr.bf16.mxu1 %v3169_v28  ;;  %v3259_v27 = vld [vmem:[%s3562_s7 + $0x6cc] ss:$24 sps:$4 sm:$0xff]  }
  0xc8   : > { %2270 = vmatprep.subr.bf16.mxu0 %v3172_v29  ;;  %v3262_v28 = vld [vmem:[%s3562_s7 + $0x3d4] ss:$24 sps:$4 sm:$0xff]   ;;  %v3257_v29 = vld [vmem:[%s3562_s7 + $0x6c8] ss:$24 sps:$4 sm:$0xff]  }
  0xca   : > { %2185 = vmatpush1.bf16.msra.mxu1 %v3167_v30  ;;  %v3260_v30 = vld [vmem:[%s3562_s7 + $0x3d0] ss:$24 sps:$4 sm:$0xff]  }
  0xcb   : > { %2271 = vmatpush1.bf16.msra.mxu0 %v3170_v31  ;;  %2186 = vmatprep.subr.bf16.mxu1 %v3175_v32  ;;  %v3265_v31 = vld [vmem:[%s3562_s7 + $0x6fc] ss:$24 sps:$4 sm:$0xff]  }
  0xcc   : > { %2272 = vmatprep.subr.bf16.mxu0 %v3178_v33  ;;  %v3268_v32 = vld [vmem:[%s3562_s7 + $0x404] ss:$24 sps:$4 sm:$0xff]   ;;  %v3263_v33 = vld [vmem:[%s3562_s7 + $0x6f8] ss:$24 sps:$4 sm:$0xff]  }
  0xce   : > { %2187 = vmatpush1.bf16.msra.mxu1 %v3173_v35  ;;  %v3266_v35 = vld [vmem:[%s3562_s7 + $0x400] ss:$24 sps:$4 sm:$0xff]  }
  0xcf   : > { %2273 = vmatpush1.bf16.msra.mxu0 %v3176_v36  ;;  %2188 = vmatprep.subr.bf16.mxu1 %v3181_v37  ;;  %v3271_v36 = vld [vmem:[%s3562_s7 + $0x72c] ss:$24 sps:$4 sm:$0xff]  }
  0xd0   : > { %2274 = vmatprep.subr.bf16.mxu0 %v3184_v38  ;;  %v3274_v37 = vld [vmem:[%s3562_s7 + $0x434] ss:$24 sps:$4 sm:$0xff]   ;;  %v3269_v38 = vld [vmem:[%s3562_s7 + $0x728] ss:$24 sps:$4 sm:$0xff]  }
  0xd2   : > { %2189 = vmatpush1.bf16.msra.mxu1 %v3179_v39  ;;  %v3272_v39 = vld [vmem:[%s3562_s7 + $0x430] ss:$24 sps:$4 sm:$0xff]  }
  0xd3   : > { %2275 = vmatpush1.bf16.msra.mxu0 %v3182_v40  ;;  %2190 = vmatprep.subr.bf16.mxu1 %v3187_v41  ;;  %v3277_v40 = vld [vmem:[%s3562_s7 + $0x75c] ss:$24 sps:$4 sm:$0xff]  }
  0xd4   : > { %2276 = vmatprep.subr.bf16.mxu0 %v3190_v42  ;;  %v3280_v41 = vld [vmem:[%s3562_s7 + $0x464] ss:$24 sps:$4 sm:$0xff]   ;;  %v3275_v42 = vld [vmem:[%s3562_s7 + $0x758] ss:$24 sps:$4 sm:$0xff]  }
  0xd6   : > { %2191 = vmatpush1.bf16.msra.mxu1 %v3185_v43  ;;  %v3278_v43 = vld [vmem:[%s3562_s7 + $0x460] ss:$24 sps:$4 sm:$0xff]  }
  0xd7   : > { %2277 = vmatpush1.bf16.msra.mxu0 %v3188_v44  ;;  %2192 = vmatprep.subr.bf16.mxu1 %v3193_v45  ;;  %v3283_v44 = vld [vmem:[%s3562_s7 + $0x78c] ss:$24 sps:$4 sm:$0xff]  }
  0xd8   : > { %2278 = vmatprep.subr.bf16.mxu0 %v3196_v46  ;;  %v3286_v45 = vld [vmem:[%s3562_s7 + $0x494] ss:$24 sps:$4 sm:$0xff]   ;;  %v3281_v46 = vld [vmem:[%s3562_s7 + $0x788] ss:$24 sps:$4 sm:$0xff]  }
  0xda   : > { %2193 = vmatpush1.bf16.msra.mxu1 %v3191_v47  ;;  %v3284_v47 = vld [vmem:[%s3562_s7 + $0x490] ss:$24 sps:$4 sm:$0xff]  }
  0xdb   : > { %2279 = vmatpush1.bf16.msra.mxu0 %v3194_v50  ;;  %2194 = vmatprep.subr.bf16.mxu1 %v3199_v51  ;;  %v3289_v50 = vld [vmem:[%s3562_s7 + $0x7bc] ss:$24 sps:$4 sm:$0xff]  }
  0xdc   : > { %2280 = vmatprep.subr.bf16.mxu0 %v3202_v52  ;;  %v3292_v51 = vld [vmem:[%s3562_s7 + $0x4c4] ss:$24 sps:$4 sm:$0xff]   ;;  %v3287_v52 = vld [vmem:[%s3562_s7 + $0x7b8] ss:$24 sps:$4 sm:$0xff]  }
  0xde   : > { %2195 = vmatpush1.bf16.msra.mxu1 %v3197_v53  ;;  %v3290_v53 = vld [vmem:[%s3562_s7 + $0x4c0] ss:$24 sps:$4 sm:$0xff]  }
  0xdf   : > { %2281 = vmatpush1.bf16.msra.mxu0 %v3200_v54  ;;  %2196 = vmatprep.subr.bf16.mxu1 %v3205_v55  ;;  %v3295_v54 = vld [vmem:[%s3562_s7 + $0x7ec] ss:$24 sps:$4 sm:$0xff]  }
  0xe0   : > { %2282 = vmatprep.subr.bf16.mxu0 %v3208_v56  ;;  %v3298_v55 = vld [vmem:[%s3562_s7 + $0x4f4] ss:$24 sps:$4 sm:$0xff]   ;;  %v3293_v56 = vld [vmem:[%s3562_s7 + $0x7e8] ss:$24 sps:$4 sm:$0xff]  }
  0xe2   : > { %2197 = vmatpush1.bf16.msra.mxu1 %v3203_v57  ;;  %v3296_v57 = vld [vmem:[%s3562_s7 + $0x4f0] ss:$24 sps:$4 sm:$0xff]  }
  0xe3   : > { %2283 = vmatpush1.bf16.msra.mxu0 %v3206_v58  ;;  %2198 = vmatprep.subr.bf16.mxu1 %v3211_v59  ;;  %v3301_v58 = vld [vmem:[%s3562_s7 + $0x81c] ss:$24 sps:$4 sm:$0xff]  }
  0xe4   : > { %2284 = vmatprep.subr.bf16.mxu0 %v3214_v60  ;;  %v3304_v59 = vld [vmem:[%s3562_s7 + $0x524] ss:$24 sps:$4 sm:$0xff]   ;;  %v3299_v60 = vld [vmem:[%s3562_s7 + $0x818] ss:$24 sps:$4 sm:$0xff]  }
  0xe6   : > { %2199 = vmatpush1.bf16.msra.mxu1 %v3209_v61  ;;  %v3302_v61 = vld [vmem:[%s3562_s7 + $0x520] ss:$24 sps:$4 sm:$0xff]  }
  0xe7   : > { %2285 = vmatpush1.bf16.msra.mxu0 %v3212_v62  ;;  %2200 = vmatprep.subr.bf16.mxu1 %v3217_v63  ;;  %v3307_v62 = vld [vmem:[%s3562_s7 + $0x84c] ss:$24 sps:$4 sm:$0xff]  }
  0xe8   : > { %2286 = vmatprep.subr.bf16.mxu0 %v3220_v0  ;;  %v3310_v63 = vld [vmem:[%s3562_s7 + $0x554] ss:$24 sps:$4 sm:$0xff]   ;;  %v3305_v0 = vld [vmem:[%s3562_s7 + $0x848] ss:$24 sps:$4 sm:$0xff]  }
  0xea   : > { %2201 = vmatpush1.bf16.msra.mxu1 %v3215_v1  ;;  %v3308_v1 = vld [vmem:[%s3562_s7 + $0x550] ss:$24 sps:$4 sm:$0xff]  }
  0xeb   : > { %2287 = vmatpush1.bf16.msra.mxu0 %v3218_v2  ;;  %2202 = vmatprep.subr.bf16.mxu1 %v3223_v3  ;;  %v3313_v2 = vld [vmem:[%s3562_s7 + $0x87c] ss:$24 sps:$4 sm:$0xff]  }
  0xec   : > { %2288 = vmatprep.subr.bf16.mxu0 %v3226_v4  ;;  %v3316_v3 = vld [vmem:[%s3562_s7 + $0x584] ss:$24 sps:$4 sm:$0xff]   ;;  %v3311_v4 = vld [vmem:[%s3562_s7 + $0x878] ss:$24 sps:$4 sm:$0xff]  }
  0xee   : > { %2203 = vmatpush1.bf16.msra.mxu1 %v3221_v5  ;;  %v3314_v5 = vld [vmem:[%s3562_s7 + $0x580] ss:$24 sps:$4 sm:$0xff]  }
  0xef   : > { %2289 = vmatpush1.bf16.msra.mxu0 %v3224_v8  ;;  %2204 = vmatprep.subr.bf16.mxu1 %v3229_v9  ;;  %v3319_v8 = vld [vmem:[%s3562_s7 + $0x8ac] ss:$24 sps:$4 sm:$0xff]  }
  0xf0   : > { %2290 = vmatprep.subr.bf16.mxu0 %v3232_v10  ;;  %v3322_v9 = vld [vmem:[%s3562_s7 + $0x5b4] ss:$24 sps:$4 sm:$0xff]   ;;  %v3317_v10 = vld [vmem:[%s3562_s7 + $0x8a8] ss:$24 sps:$4 sm:$0xff]  }
  0xf2   : > { %2205 = vmatpush1.bf16.msra.mxu1 %v3227_v12  ;;  %v3320_v12 = vld [vmem:[%s3562_s7 + $0x5b0] ss:$24 sps:$4 sm:$0xff]  }
  0xf3   : > { %2291 = vmatpush1.bf16.msra.mxu0 %v3230_v13  ;;  %2217 = vmatprep.subr.bf16.mxu1 %v3235_v14  ;;  %v3325_v13 = vld [vmem:[%s3562_s7 + $0x8dc] ss:$24 sps:$4 sm:$0xff]  }
  0xf4   : > { %2303 = vmatprep.subr.bf16.mxu0 %v3238_v15  ;;  %v3328_v14 = vld [vmem:[%s3562_s7 + $0x5e4] ss:$24 sps:$4 sm:$0xff]   ;;  %v3323_v15 = vld [vmem:[%s3562_s7 + $0x8d8] ss:$24 sps:$4 sm:$0xff]  }
  0xf5   : > { %2207 = vmatmul.mubr.bf16.vlgmr.msra.gmra.mrb[4].mxu1 %v3656_v7  ;;  %v3377_v7 = vld [vmem:[%s3946_s0 + $0xc] ss:$24 sps:$4 sm:$0xff]  }
  0xf6   : > { %2293 = vmatmul.mubr.bf16.vlgmr.msra.gmra.mrb[4].mxu0 %v3651_v6  ;;  %2218 = vmatpush1.bf16.msra.mxu1 %v3233_v16  ;;  %v3245_v6 = vld [vmem:[%s3562_s7 + $0x668] ss:$24 sps:$4 sm:$0xff]  }
  0xf7   : > { %2304 = vmatpush1.bf16.msra.mxu0 %v3236_v17  ;;  %2219 = vmatprep.subr.bf16.mxu1 %v3241_v18  ;;  %v3326_v16 = vld [vmem:[%s3562_s7 + $0x5e0] ss:$24 sps:$4 sm:$0xff]   ;;  %v3331_v17 = vld [vmem:[%s3562_s7 + $0x614] ss:$24 sps:$4 sm:$0xff]   ;;  %v3329_v18 = vld [vmem:[%s3562_s7 + $0x610] ss:$24 sps:$4 sm:$0xff]  }
  0xf8   : > { %2305 = vmatprep.subr.bf16.mxu0 %v3244_v19  ;;  %2249 = vmatprep.mubr.bf16.mxu1 %v3690_v34  ;;  %v3334_v19 = vld [vmem:[%s3562_s7 + $0x644] ss:$24 sps:$4 sm:$0xff]  }
  0xf9   : > { %2335 = vmatprep.mubr.bf16.mxu0 %v3377_v7  ;;  %v3340_v7 = vld [vmem:[%s3562_s7 + $0x6a4] ss:$24 sps:$4 sm:$0xff]  }
  0xfa   : > { %2220 = vmatpush1.bf16.msra.mxu1 %v3239_v20  ;;  %v3378_v20 = vld [vmem:[%s3946_s0 + $0x8] ss:$24 sps:$4 sm:$0xff]  }
  0xfb   : > { %2306 = vmatpush1.bf16.msra.mxu0 %v3242_v21  ;;  %2221 = vmatprep.subr.bf16.mxu1 %v3247_v22  ;;  %v3332_v21 = vld [vmem:[%s3562_s7 + $0x640] ss:$24 sps:$4 sm:$0xff]   ;;  %v3337_v22 = vld [vmem:[%s3562_s7 + $0x674] ss:$24 sps:$4 sm:$0xff]  }
  0xfc   : > { %2307 = vmatprep.subr.bf16.mxu0 %v3250_v23  ;;  %v3335_v23 = vld [vmem:[%s3562_s7 + $0x670] ss:$24 sps:$4 sm:$0xff]  }
  0xfe   : > { %2222 = vmatpush1.bf16.msra.mxu1 %v3245_v6  ;;  %v3338_v6 = vld [vmem:[%s3562_s7 + $0x6a0] ss:$24 sps:$4 sm:$0xff]  }
  0xff   : > { %2308 = vmatpush1.bf16.msra.mxu0 %v3248_v24  ;;  %2223 = vmatprep.subr.bf16.mxu1 %v3253_v25  ;;  %v3343_v24 = vld [vmem:[%s3562_s7 + $0x6d4] ss:$24 sps:$4 sm:$0xff]   ;;  %v3341_v25 = vld [vmem:[%s3562_s7 + $0x6d0] ss:$24 sps:$4 sm:$0xff]  }
 0x100   : > { %2309 = vmatprep.subr.bf16.mxu0 %v3256_v48  ;;  %v3346_v48 = vld [vmem:[%s3562_s7 + $0x704] ss:$24 sps:$4 sm:$0xff]  }
 0x102   : > { %2224 = vmatpush1.bf16.msra.mxu1 %v3251_v49  ;;  %v3349_v49 = vld [vmem:[%s3562_s7 + $0x734] ss:$24 sps:$4 sm:$0xff]  }
 0x103   : > { %2310 = vmatpush1.bf16.msra.mxu0 %v3254_v26  ;;  %2225 = vmatprep.subr.bf16.mxu1 %v3259_v27 }
 0x104   : > { %2311 = vmatprep.subr.bf16.mxu0 %v3262_v28  ;;  %v3347_v28 = vld [vmem:[%s3562_s7 + $0x730] ss:$24 sps:$4 sm:$0xff]  }
 0x106   : > { %2226 = vmatpush1.bf16.msra.mxu1 %v3257_v29 }
 0x107   : > { %2312 = vmatpush1.bf16.msra.mxu0 %v3260_v30  ;;  %2227 = vmatprep.subr.bf16.mxu1 %v3265_v31  ;;  %v3352_v30 = vld [vmem:[%s3562_s7 + $0x764] ss:$24 sps:$4 sm:$0xff]  }
 0x108   : > { %2313 = vmatprep.subr.bf16.mxu0 %v3268_v32  ;;  %v3350_v32 = vld [vmem:[%s3562_s7 + $0x760] ss:$24 sps:$4 sm:$0xff]  }
 0x10a   : > { %2228 = vmatpush1.bf16.msra.mxu1 %v3263_v33  ;;  %v3355_v33 = vld [vmem:[%s3562_s7 + $0x794] ss:$24 sps:$4 sm:$0xff]  }
 0x10b   : > { %2314 = vmatpush1.bf16.msra.mxu0 %v3266_v35  ;;  %2229 = vmatprep.subr.bf16.mxu1 %v3271_v36  ;;  %v3353_v35 = vld [vmem:[%s3562_s7 + $0x790] ss:$24 sps:$4 sm:$0xff]   ;;  %v3358_v36 = vld [vmem:[%s3562_s7 + $0x7c4] ss:$24 sps:$4 sm:$0xff]  }
 0x10c   : > { %2315 = vmatprep.subr.bf16.mxu0 %v3274_v37  ;;  %v3356_v37 = vld [vmem:[%s3562_s7 + $0x7c0] ss:$24 sps:$4 sm:$0xff]  }
 0x10e   : > { %2230 = vmatpush1.bf16.msra.mxu1 %v3269_v38  ;;  %v3361_v38 = vld [vmem:[%s3562_s7 + $0x7f4] ss:$24 sps:$4 sm:$0xff]  }
 0x10f   : > { %2316 = vmatpush1.bf16.msra.mxu0 %v3272_v39  ;;  %2231 = vmatprep.subr.bf16.mxu1 %v3277_v40  ;;  %v3359_v39 = vld [vmem:[%s3562_s7 + $0x7f0] ss:$24 sps:$4 sm:$0xff]   ;;  %v3364_v40 = vld [vmem:[%s3562_s7 + $0x824] ss:$24 sps:$4 sm:$0xff]  }
 0x110   : > { %2317 = vmatprep.subr.bf16.mxu0 %v3280_v41  ;;  %v3362_v41 = vld [vmem:[%s3562_s7 + $0x820] ss:$24 sps:$4 sm:$0xff]  }
 0x112   : > { %2232 = vmatpush1.bf16.msra.mxu1 %v3275_v42  ;;  %v3367_v42 = vld [vmem:[%s3562_s7 + $0x854] ss:$24 sps:$4 sm:$0xff]  }
 0x113   : > { %2318 = vmatpush1.bf16.msra.mxu0 %v3278_v43  ;;  %2233 = vmatprep.subr.bf16.mxu1 %v3283_v44  ;;  %v3365_v43 = vld [vmem:[%s3562_s7 + $0x850] ss:$24 sps:$4 sm:$0xff]   ;;  %v3370_v44 = vld [vmem:[%s3562_s7 + $0x884] ss:$24 sps:$4 sm:$0xff]  }
 0x114   : > { %2319 = vmatprep.subr.bf16.mxu0 %v3286_v45  ;;  %v3368_v45 = vld [vmem:[%s3562_s7 + $0x880] ss:$24 sps:$4 sm:$0xff]  }
 0x116   : > { %2234 = vmatpush1.bf16.msra.mxu1 %v3281_v46  ;;  %v3373_v46 = vld [vmem:[%s3562_s7 + $0x8b4] ss:$24 sps:$4 sm:$0xff]  }
 0x117   : > { %2320 = vmatpush1.bf16.msra.mxu0 %v3284_v47  ;;  %2235 = vmatprep.subr.bf16.mxu1 %v3289_v50  ;;  %v3371_v47 = vld [vmem:[%s3562_s7 + $0x8b0] ss:$24 sps:$4 sm:$0xff]   ;;  %v3376_v50 = vld [vmem:[%s3562_s7 + $0x8e4] ss:$24 sps:$4 sm:$0xff]  }
 0x118   : > { %2321 = vmatprep.subr.bf16.mxu0 %v3292_v51  ;;  %v3374_v51 = vld [vmem:[%s3562_s7 + $0x8e0] ss:$24 sps:$4 sm:$0xff]  }
 0x11a   : > { %2236 = vmatpush1.bf16.msra.mxu1 %v3287_v52  ;;  %v502_v52 = vlaneseq }
 0x11b   : > { %2322 = vmatpush1.bf16.msra.mxu0 %v3290_v53  ;;  %2237 = vmatprep.subr.bf16.mxu1 %v3295_v54 }
 0x11c   : > { %2323 = vmatprep.subr.bf16.mxu0 %v3298_v55  ;;  %v503_v53 = vshrl.u32 %v502_v52, 7  ;;  %v500_v55 = vld [vmem:[%s203_s15] sm:$0x3f] }
 0x11e   : > { %2238 = vmatpush1.bf16.msra.mxu1 %v3293_v56  ;;  %v504_v54 = vsub.s32 0, %v503_v53  ;;  %v508_v56 = vsub.s32 1, %v503_v53 }
 0x11f   : > { %2324 = vmatpush1.bf16.msra.mxu0 %v3296_v57  ;;  %2239 = vmatprep.subr.bf16.mxu1 %v3301_v58 }
 0x120   : > { %2325 = vmatprep.subr.bf16.mxu0 %v3304_v59  ;;  %v505_v57 = vrot.slane %v500_v55, %v504_v54  ;;  %v509_v58 = vrot.slane %v500_v55, %v508_v56 }
 0x122   : > { %2240 = vmatpush1.bf16.msra.mxu1 %v3299_v60 }
 0x123   : > { %2326 = vmatpush1.bf16.msra.mxu0 %v3302_v61  ;;  %2241 = vmatprep.subr.bf16.mxu1 %v3307_v62 }
 0x124   : > { %2327 = vmatprep.subr.bf16.mxu0 %v3310_v63 }
 0x126   : > { %2242 = vmatpush1.bf16.msra.mxu1 %v3305_v0 }
 0x127   : > { %2328 = vmatpush1.bf16.msra.mxu0 %v3308_v1  ;;  %2243 = vmatprep.subr.bf16.mxu1 %v3313_v2 }
 0x128   : > { %2329 = vmatprep.subr.bf16.mxu0 %v3316_v3 }
 0x12a   : > { %2244 = vmatpush1.bf16.msra.mxu1 %v3311_v4 }
 0x12b   : > { %2330 = vmatpush1.bf16.msra.mxu0 %v3314_v5  ;;  %2245 = vmatprep.subr.bf16.mxu1 %v3319_v8 }
 0x12c   : > { %2331 = vmatprep.subr.bf16.mxu0 %v3322_v9 }
 0x12e   : > { %2246 = vmatpush1.bf16.msra.mxu1 %v3317_v10  ;;  %v512_v10 = vsub.s32 2, %v503_v53 }
 0x12f   : > { %2332 = vmatpush1.bf16.msra.mxu0 %v3320_v12  ;;  %2247 = vmatprep.subr.bf16.mxu1 %v3325_v13  ;;  %v516_v12 = vsub.s32 3, %v503_v53 }
 0x130   : > { %2333 = vmatprep.subr.bf16.mxu0 %v3328_v14  ;;  %v513_v13 = vrot.slane %v500_v55, %v512_v10 }
 0x131   : > { %v517_v14 = vrot.slane %v500_v55, %v516_v12 }
 0x132   : > { %2248 = vmatpush1.bf16.msra.mxu1 %v3323_v15 }
 0x133   : > { %2334 = vmatpush1.bf16.msra.mxu0 %v3326_v16 }
 0x134   : > { %2346 = vmatprep.subr.bf16.mxu0 %v3331_v17 }
 0x135   : > { %2250 = vmatmul.mubr.bf16.vlgmr.msra.gmra.mrb[4].mxu1 %v3732_v11 }
 0x136   : > { %2336 = vmatmul.mubr.bf16.vlgmr.msra.gmra.mrb[4].mxu0 %v3378_v20 }
 0x137   : > { %2347 = vmatpush1.bf16.msra.mxu0 %v3329_v18  ;;  %2378 = vmatprep.mubr.bf16.mxu0 %v3690_v34  ;;  %v3344_v34 = vld [vmem:[%s3562_s7 + $0x700] ss:$24 sps:$4 sm:$0xff]   ;;  %s2893_s7 = smul.u32 48, %s3558_s28 }
 0x138   : > { %2348 = vmatprep.subr.bf16.mxu0 %v3334_v19  ;;  %s2854_s28 = smul.u32 (%p3953_p9), 24, %s3488_s16 }
 0x139   : > { %s3913_s21 = scalar_lea.vmem [#allocation4], %s2893_s7 }
 0x13a   : > { %s2440_s4 = scalar_lea.vmem (%p3953_p9), %s3949_s3, %s2854_s28 }
 0x13b   : > { %2349 = vmatpush1.bf16.msra.mxu0 %v3332_v21 }
 0x13c   : > { %2350 = vmatprep.subr.bf16.mxu0 %v3337_v22 }
 0x13f   : > { %2351 = vmatpush1.bf16.msra.mxu0 %v3335_v23 }
 0x140   : > { %2352 = vmatprep.subr.bf16.mxu0 %v3340_v7 }
 0x143   : > { %2353 = vmatpush1.bf16.msra.mxu0 %v3338_v6  ;;  %v520_v6 = vsub.s32 4, %v503_v53 }
 0x144   : > { %2354 = vmatprep.subr.bf16.mxu0 %v3343_v24  ;;  %v524_v24 = vsub.s32 5, %v503_v53 }
 0x147   : > { %2355 = vmatpush1.bf16.msra.mxu0 %v3341_v25  ;;  %v521_v25 = vrot.slane %v500_v55, %v520_v6 }
 0x148   : > { %2356 = vmatprep.subr.bf16.mxu0 %v3346_v48  ;;  %v2036_v26 = vpop.f32.mrb[0].mxu1  ;;  %v525_v48 = vrot.slane %v500_v55, %v524_v24 }
 0x149   : > { %v2038_v27 = vpop.f32.mrb[1].mxu1  ;;  %v2037_v59 = vadd.f32 %v2036_v26, %v505_v57 }
 0x14a   : > { %v2040_v29 = vpop.f32.mrb[2].mxu1  ;;  %v2039_v60 = vadd.f32 %v2038_v27, %v509_v58 }
 0x14b   : > { %2357 = vmatpush1.bf16.msra.mxu0 %v3344_v34  ;;  %v2042_v31 = vpop.f32.mrb[3].mxu1  ;;  %v2041_v61 = vadd.f32 %v2040_v29, %v505_v57 }
 0x14c   : > { %2358 = vmatprep.subr.bf16.mxu0 %v3349_v49  ;;  %v2043_v63 = vadd.f32 %v2042_v31, %v509_v58 }
 0x14f   : > { %2359 = vmatpush1.bf16.msra.mxu0 %v3347_v28 }
 0x150   : > { %2360 = vmatprep.subr.bf16.mxu0 %v3352_v30 }
 0x153   : > { %2361 = vmatpush1.bf16.msra.mxu0 %v3350_v32 }
 0x154   : > { %2362 = vmatprep.subr.bf16.mxu0 %v3355_v33 }
 0x157   : > { %2363 = vmatpush1.bf16.msra.mxu0 %v3353_v35 }
 0x158   : > { %2364 = vmatprep.subr.bf16.mxu0 %v3358_v36 }
 0x15b   : > { %2365 = vmatpush1.bf16.msra.mxu0 %v3356_v37 }
 0x15c   : > { %2366 = vmatprep.subr.bf16.mxu0 %v3361_v38 }
 0x15f   : > { %2367 = vmatpush1.bf16.msra.mxu0 %v3359_v39 }
 0x160   : > { %2368 = vmatprep.subr.bf16.mxu0 %v3364_v40 }
 0x163   : > { %2369 = vmatpush1.bf16.msra.mxu0 %v3362_v41 }
 0x164   : > { %2370 = vmatprep.subr.bf16.mxu0 %v3367_v42 }
 0x167   : > { %2371 = vmatpush1.bf16.msra.mxu0 %v3365_v43 }
 0x168   : > { %2372 = vmatprep.subr.bf16.mxu0 %v3370_v44 }
 0x16b   : > { %2373 = vmatpush1.bf16.msra.mxu0 %v3368_v45 }
 0x16c   : > { %2374 = vmatprep.subr.bf16.mxu0 %v3373_v46 }
 0x16f   : > { %2375 = vmatpush1.bf16.msra.mxu0 %v3371_v47 }
 0x170   : > { %2376 = vmatprep.subr.bf16.mxu0 %v3376_v50 }
 0x173   : > { %2377 = vmatpush1.bf16.msra.mxu0 %v3374_v51 }
 0x176   : > { %2379 = vmatmul.mubr.bf16.vlgmr.msra.gmra.mrb[4].mxu0 %v3732_v11 }
 0x189   : > { %v2122_v62 = vpop.f32.mrb[0].mxu0 }
 0x18a   : > { %v2856_v0 = vadd.f32 %v2122_v62, %v2037_v59  ;;  %v2124_v11 = vpop.f32.mrb[1].mxu0 }
 0x18b   : > { %v2858_v1 = vadd.f32 %v2124_v11, %v2039_v60  ;;  %v2126_v2 = vpop.f32.mrb[2].mxu0 }
 0x18c   : > { %v2860_v3 = vadd.f32 %v2126_v2, %v2041_v61  ;;  %v2128_v4 = vpop.f32.mrb[3].mxu0 }
 0x18d   : > { %v2848_v5 = vpack.c.bf16 %v2858_v1, %v2856_v0  ;;  %v2862_v8 = vadd.f32 %v2128_v4, %v2043_v63 }
 0x18f   : > { %2425 = vst [vmem:[%s3913_s21] sm:$0xff] %v2848_v5  ;;  %v2851_v9 = vpack.c.bf16 %v2862_v8, %v2860_v3 }
 0x191   : > { %2428 = vst [vmem:[%s3913_s21 + $0x18] sm:$0xff] %v2851_v9 }
 0x196   : > { %v2453_v35 = vld [vmem:[%s3913_s21] sm:$0xff] (%p3953_p9) }
 0x197   : > { %2454 = vst [vmem:[%s2440_s4] sm:$0xff] (%p3953_p9), %v2453_v35 }
 0x198   : > { %v2459_v38 = vld [vmem:[%s3913_s21 + $0x18] sm:$0xff] (%p3953_p9) }
 0x199   : > { %2460 = vst [vmem:[%s2440_s4 + $0x48] sm:$0xff] (%p3953_p9), %v2459_v38 }
 0x208   : > { %v2251_v15 = vpop.f32.mrb[4].mxu1 }
 0x209   : > { %v2863_v16 = vadd.f32 %v2251_v15, %v513_v13  ;;  %v2253_v17 = vpop.f32.mrb[5].mxu1 }
 0x20a   : > { %v2864_v18 = vadd.f32 %v2253_v17, %v517_v14  ;;  %v2255_v19 = vpop.f32.mrb[6].mxu1 }
 0x20b   : > { %v2865_v20 = vadd.f32 %v2255_v19, %v513_v13  ;;  %v2257_v21 = vpop.f32.mrb[7].mxu1 }
 0x20c   : > { %v2849_v22 = vpack.c.bf16 %v2864_v18, %v2863_v16  ;;  %v2866_v23 = vadd.f32 %v2257_v21, %v517_v14 }
 0x20e   : > { %2426 = vst [vmem:[%s3913_s21 + $0x8] sm:$0xff] %v2849_v22  ;;  %v2852_v7 = vpack.c.bf16 %v2866_v23, %v2865_v20 }
 0x210   : > { %2429 = vst [vmem:[%s3913_s21 + $0x20] sm:$0xff] %v2852_v7 }
 0x215   : > { %v2455_v36 = vld [vmem:[%s3913_s21 + $0x8] sm:$0xff] (%p3953_p9) }
 0x216   : > { %2456 = vst [vmem:[%s2440_s4 + $0x8] sm:$0xff] (%p3953_p9), %v2455_v36 }
 0x217   : > { %v2461_v39 = vld [vmem:[%s3913_s21 + $0x20] sm:$0xff] (%p3953_p9) }
 0x218   : > { %2462 = vst [vmem:[%s2440_s4 + $0x50] sm:$0xff] (%p3953_p9), %v2461_v39 }
 0x249   : > { %v2380_v34 = vpop.f32.mrb[4].mxu0 }
 0x24a   : > { %v2867_v49 = vadd.f32 %v2380_v34, %v521_v25  ;;  %v2382_v26 = vpop.f32.mrb[5].mxu0 }
 0x24b   : > { %v2868_v27 = vadd.f32 %v2382_v26, %v525_v48  ;;  %v2384_v28 = vpop.f32.mrb[6].mxu0  ;;  %2437 = sbr.rel (!%p3953_p9) target bundleno = 602 (0x25a), region = 40 }
 0x24c   : > { %v2869_v29 = vadd.f32 %v2384_v28, %v521_v25  ;;  %v2386_v30 = vpop.f32.mrb[7].mxu0 }
 0x24d   : > { %v2850_v31 = vpack.c.bf16 %v2868_v27, %v2867_v49  ;;  %v2870_v32 = vadd.f32 %v2386_v30, %v525_v48 }
 0x24f   : > { %2427 = vst [vmem:[%s3913_s21 + $0x10] sm:$0xff] %v2850_v31  ;;  %v2853_v33 = vpack.c.bf16 %v2870_v32, %v2869_v29 }
 0x251   : > { %2430 = vst [vmem:[%s3913_s21 + $0x28] sm:$0xff] %v2853_v33 }
 0x256   : > { %v2457_v37 = vld [vmem:[%s3913_s21 + $0x10] sm:$0xff] }
 0x257   : > { %2458 = vst [vmem:[%s2440_s4 + $0x10] sm:$0xff] %v2457_v37 }
 0x258   : > { %v2463_v40 = vld [vmem:[%s3913_s21 + $0x28] sm:$0xff] }
 0x259   : > { %2464 = vst [vmem:[%s2440_s4 + $0x58] sm:$0xff] %v2463_v40 }
 0x25a PF: > { %p13_p10 = scmp.ge.s32.totalorder %s3491_s17, 5   ;;  %s3954_s12 = smov %s3435_s13 }
 0x25b   : > { %s3955_s13 = smov %s3439_s14  ;;  %s3956_s14 = smov %s3501_s20 }
 0x25c   : > { %s3957_s15 = smov %s3491_s17  ;;  %15 = sbr.rel (!%p13_p10) target bundleno = 3 (0x3), region = 98 }
 0x263   :  { %2480 = vsyncpa [#allocation3], 1 }
 0x264   :  { %2482 = vsyncpa [#allocation3 + $0x1], 1 }

// kernel: bert_class_forward.16
= control target key start
LH: loop header
LB: loop body
LE: loop exit
PB: predicated region body
PF: predicated region fallthrough
CT: control target
= control target key end

     0   :  { %s4107_s12 = smov 0   ;;  %s4109_s13 = smov 0   ;;  %s5129_s0 = inlined_call_operand.vmem [shape: bf16[16,768], index: 0, kind: input, shape index: {}]   ;;  %s5130_s1 = inlined_call_operand.vmem [shape: bf16[768,3072], index: 1, kind: input, shape index: {}]   ;;  %s5131_s2 = inlined_call_operand.vmem [shape: f32[1,3072], index: 2, kind: input, shape index: {}]   ;;  %s5132_s3 = inlined_call_operand.vmem [shape: bf16[16,3072], index: 3, kind: output, shape index: {}]  }
   0x1   :  { %s4111_s14 = smov 0  }
   0x2 LB: > { %s4123_s15 = sadd.s32 4294967295, %s4085_s14   ;;  %s4126_s16 = sadd.s32 1, %s4085_s14   ;;  %s4085_s14 = sphi %s4111_s14, %s5136_s14   ;;  %s4081_s13 = sphi %s4109_s13, %s5135_s13   ;;  %s4077_s12 = sphi %s4107_s12, %s5134_s12  }
   0x3   : > { %s38_s17 = ssub.s32 %s4085_s14, %s4126_s16  ;;  %s41_s18 = sadd.s32 1, %s4081_s13 }
   0x4   : > { %p39_p0 = scmp.eq.s32.totalorder %s38_s17, 0  ;;  %p48_p1 = scmp.ne.s32.totalorder %s4081_s13, %s4077_s12 }
   0x5   : > { %p49_p2 = scmp.eq.s32.totalorder %s4085_s14, 0  ;;  %p104_p3 = scmp.eq.s32.totalorder %s4123_s15, 3 }
   0x6   : > { %s4136_s19 = scalar_select %p39_p0, %s4081_s13, %s41_s18  }
   0x7   : > { %p50_p4 = por %p49_p2, %p48_p1  ;;  %p4138_p5 = por %p104_p3, %p48_p1 }
   0x8   : > { %p3218_p6 = scmp.ge.s32.totalorder %s4085_s14, 4 }
   0xa   : > { %129 = sbr.rel (%p3218_p6) target bundleno = 166 (0xa6), region = 20 }
  0x11   : > { %132 = sbr.rel (!%p50_p4) target bundleno = 166 (0xa6), region = 24  ;;  %s134_s21 = sand.u32 (%p50_p4), 1, %s4081_s13  }
  0x12   : > { %s3524_s22 = smul.u32 (%p50_p4), 24, %s4085_s14 }
  0x13   : > { %s3568_s23 = smul.u32 (%p50_p4), 2304, %s134_s21 }
  0x14   : > { %s4148_s26 = scalar_lea.vmem (%p50_p4), %s5130_s1, %s3524_s22 }
  0x15   : > { %v152_v0 = vld [vmem:[%s4148_s26] sm:$0xff] (%p50_p4)  ;;  %v154_v1 = vld [vmem:[%s4148_s26 + $0x8] sm:$0xff] (%p50_p4)  ;;  %v156_v2 = vld [vmem:[%s4148_s26 + $0x10] sm:$0xff] (%p50_p4)  ;;  %s4153_s27 = scalar_lea.vmem (%p50_p4), [#allocation2], %s3568_s23 }
  0x16   : > { %153 = vst [vmem:[%s4153_s27] sm:$0xff] (%p50_p4), %v152_v0  ;;  %155 = vst [vmem:[%s4153_s27 + $0x8] sm:$0xff] (%p50_p4), %v154_v1  ;;  %v158_v3 = vld [vmem:[%s4148_s26 + $0x60] sm:$0xff] (%p50_p4)  ;;  %v160_v4 = vld [vmem:[%s4148_s26 + $0x68] sm:$0xff] (%p50_p4) }
  0x17   : > { %157 = vst [vmem:[%s4153_s27 + $0x10] sm:$0xff] (%p50_p4), %v156_v2  ;;  %v162_v5 = vld [vmem:[%s4148_s26 + $0x70] sm:$0xff] (%p50_p4)  ;;  %159 = vst [vmem:[%s4153_s27 + $0x18] sm:$0xff] (%p50_p4), %v158_v3  ;;  %v164_v6 = vld [vmem:[%s4148_s26 + $0xc0] sm:$0xff] (%p50_p4) }
  0x18   : > { %161 = vst [vmem:[%s4153_s27 + $0x20] sm:$0xff] %v160_v4  ;;  %163 = vst [vmem:[%s4153_s27 + $0x28] sm:$0xff] %v162_v5  ;;  %v166_v7 = vld [vmem:[%s4148_s26 + $0xc8] sm:$0xff]  ;;  %v168_v8 = vld [vmem:[%s4148_s26 + $0xd0] sm:$0xff] }
  0x19   : > { %165 = vst [vmem:[%s4153_s27 + $0x30] sm:$0xff] %v164_v6  ;;  %167 = vst [vmem:[%s4153_s27 + $0x38] sm:$0xff] %v166_v7  ;;  %v170_v9 = vld [vmem:[%s4148_s26 + $0x120] sm:$0xff]  ;;  %v172_v10 = vld [vmem:[%s4148_s26 + $0x128] sm:$0xff] }
  0x1a   : > { %169 = vst [vmem:[%s4153_s27 + $0x40] sm:$0xff] %v168_v8  ;;  %v174_v11 = vld [vmem:[%s4148_s26 + $0x130] sm:$0xff]  ;;  %171 = vst [vmem:[%s4153_s27 + $0x48] sm:$0xff] %v170_v9  ;;  %v176_v12 = vld [vmem:[%s4148_s26 + $0x180] sm:$0xff] }
  0x1b   : > { %173 = vst [vmem:[%s4153_s27 + $0x50] sm:$0xff] %v172_v10  ;;  %175 = vst [vmem:[%s4153_s27 + $0x58] sm:$0xff] %v174_v11  ;;  %v178_v13 = vld [vmem:[%s4148_s26 + $0x188] sm:$0xff]  ;;  %v180_v14 = vld [vmem:[%s4148_s26 + $0x190] sm:$0xff] }
  0x1c   : > { %177 = vst [vmem:[%s4153_s27 + $0x60] sm:$0xff] %v176_v12  ;;  %179 = vst [vmem:[%s4153_s27 + $0x68] sm:$0xff] %v178_v13  ;;  %v182_v15 = vld [vmem:[%s4148_s26 + $0x1e0] sm:$0xff]  ;;  %v184_v16 = vld [vmem:[%s4148_s26 + $0x1e8] sm:$0xff] }
  0x1d   : > { %181 = vst [vmem:[%s4153_s27 + $0x70] sm:$0xff] %v180_v14  ;;  %v186_v17 = vld [vmem:[%s4148_s26 + $0x1f0] sm:$0xff]  ;;  %183 = vst [vmem:[%s4153_s27 + $0x78] sm:$0xff] %v182_v15  ;;  %v188_v18 = vld [vmem:[%s4148_s26 + $0x240] sm:$0xff] }
  0x1e   : > { %185 = vst [vmem:[%s4153_s27 + $0x80] sm:$0xff] %v184_v16  ;;  %187 = vst [vmem:[%s4153_s27 + $0x88] sm:$0xff] %v186_v17  ;;  %v190_v19 = vld [vmem:[%s4148_s26 + $0x248] sm:$0xff]  ;;  %v192_v20 = vld [vmem:[%s4148_s26 + $0x250] sm:$0xff] }
  0x1f   : > { %189 = vst [vmem:[%s4153_s27 + $0x90] sm:$0xff] %v188_v18  ;;  %191 = vst [vmem:[%s4153_s27 + $0x98] sm:$0xff] %v190_v19  ;;  %v194_v21 = vld [vmem:[%s4148_s26 + $0x2a0] sm:$0xff]  ;;  %v196_v22 = vld [vmem:[%s4148_s26 + $0x2a8] sm:$0xff] }
  0x20   : > { %193 = vst [vmem:[%s4153_s27 + $0xa0] sm:$0xff] %v192_v20  ;;  %v198_v23 = vld [vmem:[%s4148_s26 + $0x2b0] sm:$0xff]  ;;  %195 = vst [vmem:[%s4153_s27 + $0xa8] sm:$0xff] %v194_v21  ;;  %v200_v24 = vld [vmem:[%s4148_s26 + $0x300] sm:$0xff] }
  0x21   : > { %197 = vst [vmem:[%s4153_s27 + $0xb0] sm:$0xff] %v196_v22  ;;  %199 = vst [vmem:[%s4153_s27 + $0xb8] sm:$0xff] %v198_v23  ;;  %v202_v25 = vld [vmem:[%s4148_s26 + $0x308] sm:$0xff]  ;;  %v204_v26 = vld [vmem:[%s4148_s26 + $0x310] sm:$0xff] }
  0x22   : > { %201 = vst [vmem:[%s4153_s27 + $0xc0] sm:$0xff] %v200_v24  ;;  %203 = vst [vmem:[%s4153_s27 + $0xc8] sm:$0xff] %v202_v25  ;;  %v206_v27 = vld [vmem:[%s4148_s26 + $0x360] sm:$0xff]  ;;  %v208_v28 = vld [vmem:[%s4148_s26 + $0x368] sm:$0xff] }
  0x23   : > { %205 = vst [vmem:[%s4153_s27 + $0xd0] sm:$0xff] %v204_v26  ;;  %v210_v29 = vld [vmem:[%s4148_s26 + $0x370] sm:$0xff]  ;;  %207 = vst [vmem:[%s4153_s27 + $0xd8] sm:$0xff] %v206_v27  ;;  %v212_v30 = vld [vmem:[%s4148_s26 + $0x3c0] sm:$0xff] }
  0x24   : > { %209 = vst [vmem:[%s4153_s27 + $0xe0] sm:$0xff] %v208_v28  ;;  %211 = vst [vmem:[%s4153_s27 + $0xe8] sm:$0xff] %v210_v29  ;;  %v214_v31 = vld [vmem:[%s4148_s26 + $0x3c8] sm:$0xff]  ;;  %v216_v32 = vld [vmem:[%s4148_s26 + $0x3d0] sm:$0xff] }
  0x25   : > { %213 = vst [vmem:[%s4153_s27 + $0xf0] sm:$0xff] %v212_v30  ;;  %215 = vst [vmem:[%s4153_s27 + $0xf8] sm:$0xff] %v214_v31  ;;  %v218_v33 = vld [vmem:[%s4148_s26 + $0x420] sm:$0xff]  ;;  %v220_v34 = vld [vmem:[%s4148_s26 + $0x428] sm:$0xff] }
  0x26   : > { %217 = vst [vmem:[%s4153_s27 + $0x100] sm:$0xff] %v216_v32  ;;  %v222_v35 = vld [vmem:[%s4148_s26 + $0x430] sm:$0xff]  ;;  %219 = vst [vmem:[%s4153_s27 + $0x108] sm:$0xff] %v218_v33  ;;  %v224_v36 = vld [vmem:[%s4148_s26 + $0x480] sm:$0xff] }
  0x27   : > { %221 = vst [vmem:[%s4153_s27 + $0x110] sm:$0xff] %v220_v34  ;;  %223 = vst [vmem:[%s4153_s27 + $0x118] sm:$0xff] %v222_v35  ;;  %v226_v37 = vld [vmem:[%s4148_s26 + $0x488] sm:$0xff]  ;;  %v228_v38 = vld [vmem:[%s4148_s26 + $0x490] sm:$0xff] }
  0x28   : > { %225 = vst [vmem:[%s4153_s27 + $0x120] sm:$0xff] %v224_v36  ;;  %227 = vst [vmem:[%s4153_s27 + $0x128] sm:$0xff] %v226_v37  ;;  %v230_v39 = vld [vmem:[%s4148_s26 + $0x4e0] sm:$0xff]  ;;  %v232_v40 = vld [vmem:[%s4148_s26 + $0x4e8] sm:$0xff] }
  0x29   : > { %229 = vst [vmem:[%s4153_s27 + $0x130] sm:$0xff] %v228_v38  ;;  %v234_v41 = vld [vmem:[%s4148_s26 + $0x4f0] sm:$0xff]  ;;  %231 = vst [vmem:[%s4153_s27 + $0x138] sm:$0xff] %v230_v39  ;;  %v236_v42 = vld [vmem:[%s4148_s26 + $0x540] sm:$0xff] }
  0x2a   : > { %233 = vst [vmem:[%s4153_s27 + $0x140] sm:$0xff] %v232_v40  ;;  %235 = vst [vmem:[%s4153_s27 + $0x148] sm:$0xff] %v234_v41  ;;  %v238_v43 = vld [vmem:[%s4148_s26 + $0x548] sm:$0xff]  ;;  %v240_v44 = vld [vmem:[%s4148_s26 + $0x550] sm:$0xff] }
  0x2b   : > { %237 = vst [vmem:[%s4153_s27 + $0x150] sm:$0xff] %v236_v42  ;;  %239 = vst [vmem:[%s4153_s27 + $0x158] sm:$0xff] %v238_v43  ;;  %v242_v45 = vld [vmem:[%s4148_s26 + $0x5a0] sm:$0xff]  ;;  %v244_v46 = vld [vmem:[%s4148_s26 + $0x5a8] sm:$0xff] }
  0x2c   : > { %241 = vst [vmem:[%s4153_s27 + $0x160] sm:$0xff] %v240_v44  ;;  %v246_v47 = vld [vmem:[%s4148_s26 + $0x5b0] sm:$0xff]  ;;  %243 = vst [vmem:[%s4153_s27 + $0x168] sm:$0xff] %v242_v45  ;;  %v248_v48 = vld [vmem:[%s4148_s26 + $0x600] sm:$0xff] }
  0x2d   : > { %245 = vst [vmem:[%s4153_s27 + $0x170] sm:$0xff] %v244_v46  ;;  %247 = vst [vmem:[%s4153_s27 + $0x178] sm:$0xff] %v246_v47  ;;  %v250_v49 = vld [vmem:[%s4148_s26 + $0x608] sm:$0xff]  ;;  %v252_v50 = vld [vmem:[%s4148_s26 + $0x610] sm:$0xff] }
  0x2e   : > { %249 = vst [vmem:[%s4153_s27 + $0x180] sm:$0xff] %v248_v48  ;;  %251 = vst [vmem:[%s4153_s27 + $0x188] sm:$0xff] %v250_v49  ;;  %v254_v51 = vld [vmem:[%s4148_s26 + $0x660] sm:$0xff]  ;;  %v256_v52 = vld [vmem:[%s4148_s26 + $0x668] sm:$0xff] }
  0x2f   : > { %253 = vst [vmem:[%s4153_s27 + $0x190] sm:$0xff] %v252_v50  ;;  %v258_v53 = vld [vmem:[%s4148_s26 + $0x670] sm:$0xff]  ;;  %255 = vst [vmem:[%s4153_s27 + $0x198] sm:$0xff] %v254_v51  ;;  %v260_v54 = vld [vmem:[%s4148_s26 + $0x6c0] sm:$0xff] }
  0x30   : > { %257 = vst [vmem:[%s4153_s27 + $0x1a0] sm:$0xff] %v256_v52  ;;  %259 = vst [vmem:[%s4153_s27 + $0x1a8] sm:$0xff] %v258_v53  ;;  %v262_v55 = vld [vmem:[%s4148_s26 + $0x6c8] sm:$0xff]  ;;  %v264_v56 = vld [vmem:[%s4148_s26 + $0x6d0] sm:$0xff] }
  0x31   : > { %261 = vst [vmem:[%s4153_s27 + $0x1b0] sm:$0xff] %v260_v54  ;;  %263 = vst [vmem:[%s4153_s27 + $0x1b8] sm:$0xff] %v262_v55  ;;  %v266_v57 = vld [vmem:[%s4148_s26 + $0x720] sm:$0xff]  ;;  %v268_v58 = vld [vmem:[%s4148_s26 + $0x728] sm:$0xff] }
  0x32   : > { %265 = vst [vmem:[%s4153_s27 + $0x1c0] sm:$0xff] %v264_v56  ;;  %v270_v59 = vld [vmem:[%s4148_s26 + $0x730] sm:$0xff]  ;;  %267 = vst [vmem:[%s4153_s27 + $0x1c8] sm:$0xff] %v266_v57  ;;  %v272_v60 = vld [vmem:[%s4148_s26 + $0x780] sm:$0xff] }
  0x33   : > { %269 = vst [vmem:[%s4153_s27 + $0x1d0] sm:$0xff] %v268_v58  ;;  %271 = vst [vmem:[%s4153_s27 + $0x1d8] sm:$0xff] %v270_v59  ;;  %v274_v61 = vld [vmem:[%s4148_s26 + $0x788] sm:$0xff]  ;;  %v276_v62 = vld [vmem:[%s4148_s26 + $0x790] sm:$0xff] }
  0x34   : > { %273 = vst [vmem:[%s4153_s27 + $0x1e0] sm:$0xff] %v272_v60  ;;  %275 = vst [vmem:[%s4153_s27 + $0x1e8] sm:$0xff] %v274_v61  ;;  %v278_v63 = vld [vmem:[%s4148_s26 + $0x7e0] sm:$0xff]  ;;  %v280_v0 = vld [vmem:[%s4148_s26 + $0x7e8] sm:$0xff] }
  0x35   : > { %277 = vst [vmem:[%s4153_s27 + $0x1f0] sm:$0xff] %v276_v62  ;;  %v282_v1 = vld [vmem:[%s4148_s26 + $0x7f0] sm:$0xff]  ;;  %279 = vst [vmem:[%s4153_s27 + $0x1f8] sm:$0xff] %v278_v63  ;;  %v284_v2 = vld [vmem:[%s4148_s26 + $0x840] sm:$0xff] }
  0x36   : > { %281 = vst [vmem:[%s4153_s27 + $0x200] sm:$0xff] %v280_v0  ;;  %283 = vst [vmem:[%s4153_s27 + $0x208] sm:$0xff] %v282_v1  ;;  %v286_v3 = vld [vmem:[%s4148_s26 + $0x848] sm:$0xff]  ;;  %v288_v4 = vld [vmem:[%s4148_s26 + $0x850] sm:$0xff] }
  0x37   : > { %285 = vst [vmem:[%s4153_s27 + $0x210] sm:$0xff] %v284_v2  ;;  %287 = vst [vmem:[%s4153_s27 + $0x218] sm:$0xff] %v286_v3  ;;  %v290_v5 = vld [vmem:[%s4148_s26 + $0x8a0] sm:$0xff]  ;;  %v292_v6 = vld [vmem:[%s4148_s26 + $0x8a8] sm:$0xff] }
  0x38   : > { %289 = vst [vmem:[%s4153_s27 + $0x220] sm:$0xff] %v288_v4  ;;  %v294_v7 = vld [vmem:[%s4148_s26 + $0x8b0] sm:$0xff]  ;;  %291 = vst [vmem:[%s4153_s27 + $0x228] sm:$0xff] %v290_v5  ;;  %v296_v8 = vld [vmem:[%s4148_s26 + $0x900] sm:$0xff] }
  0x39   : > { %293 = vst [vmem:[%s4153_s27 + $0x230] sm:$0xff] %v292_v6  ;;  %295 = vst [vmem:[%s4153_s27 + $0x238] sm:$0xff] %v294_v7  ;;  %v298_v9 = vld [vmem:[%s4148_s26 + $0x908] sm:$0xff]  ;;  %v300_v10 = vld [vmem:[%s4148_s26 + $0x910] sm:$0xff] }
  0x3a   : > { %297 = vst [vmem:[%s4153_s27 + $0x240] sm:$0xff] %v296_v8  ;;  %299 = vst [vmem:[%s4153_s27 + $0x248] sm:$0xff] %v298_v9  ;;  %v302_v11 = vld [vmem:[%s4148_s26 + $0x960] sm:$0xff]  ;;  %v304_v12 = vld [vmem:[%s4148_s26 + $0x968] sm:$0xff] }
  0x3b   : > { %301 = vst [vmem:[%s4153_s27 + $0x250] sm:$0xff] %v300_v10  ;;  %v306_v13 = vld [vmem:[%s4148_s26 + $0x970] sm:$0xff]  ;;  %303 = vst [vmem:[%s4153_s27 + $0x258] sm:$0xff] %v302_v11  ;;  %v308_v14 = vld [vmem:[%s4148_s26 + $0x9c0] sm:$0xff] }
  0x3c   : > { %305 = vst [vmem:[%s4153_s27 + $0x260] sm:$0xff] %v304_v12  ;;  %307 = vst [vmem:[%s4153_s27 + $0x268] sm:$0xff] %v306_v13  ;;  %v310_v15 = vld [vmem:[%s4148_s26 + $0x9c8] sm:$0xff]  ;;  %v312_v16 = vld [vmem:[%s4148_s26 + $0x9d0] sm:$0xff] }
  0x3d   : > { %309 = vst [vmem:[%s4153_s27 + $0x270] sm:$0xff] %v308_v14  ;;  %311 = vst [vmem:[%s4153_s27 + $0x278] sm:$0xff] %v310_v15  ;;  %v314_v17 = vld [vmem:[%s4148_s26 + $0xa20] sm:$0xff]  ;;  %v316_v18 = vld [vmem:[%s4148_s26 + $0xa28] sm:$0xff] }
  0x3e   : > { %313 = vst [vmem:[%s4153_s27 + $0x280] sm:$0xff] %v312_v16  ;;  %v318_v19 = vld [vmem:[%s4148_s26 + $0xa30] sm:$0xff]  ;;  %315 = vst [vmem:[%s4153_s27 + $0x288] sm:$0xff] %v314_v17  ;;  %v320_v20 = vld [vmem:[%s4148_s26 + $0xa80] sm:$0xff] }
  0x3f   : > { %317 = vst [vmem:[%s4153_s27 + $0x290] sm:$0xff] %v316_v18  ;;  %319 = vst [vmem:[%s4153_s27 + $0x298] sm:$0xff] %v318_v19  ;;  %v322_v21 = vld [vmem:[%s4148_s26 + $0xa88] sm:$0xff]  ;;  %v324_v22 = vld [vmem:[%s4148_s26 + $0xa90] sm:$0xff] }
  0x40   : > { %321 = vst [vmem:[%s4153_s27 + $0x2a0] sm:$0xff] %v320_v20  ;;  %323 = vst [vmem:[%s4153_s27 + $0x2a8] sm:$0xff] %v322_v21  ;;  %v326_v23 = vld [vmem:[%s4148_s26 + $0xae0] sm:$0xff]  ;;  %v328_v24 = vld [vmem:[%s4148_s26 + $0xae8] sm:$0xff] }
  0x41   : > { %325 = vst [vmem:[%s4153_s27 + $0x2b0] sm:$0xff] %v324_v22  ;;  %v330_v25 = vld [vmem:[%s4148_s26 + $0xaf0] sm:$0xff]  ;;  %327 = vst [vmem:[%s4153_s27 + $0x2b8] sm:$0xff] %v326_v23  ;;  %v332_v26 = vld [vmem:[%s4148_s26 + $0xb40] sm:$0xff] }
  0x42   : > { %329 = vst [vmem:[%s4153_s27 + $0x2c0] sm:$0xff] %v328_v24  ;;  %331 = vst [vmem:[%s4153_s27 + $0x2c8] sm:$0xff] %v330_v25  ;;  %v334_v27 = vld [vmem:[%s4148_s26 + $0xb48] sm:$0xff]  ;;  %v336_v28 = vld [vmem:[%s4148_s26 + $0xb50] sm:$0xff] }
  0x43   : > { %333 = vst [vmem:[%s4153_s27 + $0x2d0] sm:$0xff] %v332_v26  ;;  %335 = vst [vmem:[%s4153_s27 + $0x2d8] sm:$0xff] %v334_v27  ;;  %v338_v29 = vld [vmem:[%s4148_s26 + $0xba0] sm:$0xff]  ;;  %v340_v30 = vld [vmem:[%s4148_s26 + $0xba8] sm:$0xff] }
  0x44   : > { %337 = vst [vmem:[%s4153_s27 + $0x2e0] sm:$0xff] %v336_v28  ;;  %v342_v31 = vld [vmem:[%s4148_s26 + $0xbb0] sm:$0xff]  ;;  %339 = vst [vmem:[%s4153_s27 + $0x2e8] sm:$0xff] %v338_v29  ;;  %v344_v32 = vld [vmem:[%s4148_s26 + $0xc00] sm:$0xff] }
  0x45   : > { %341 = vst [vmem:[%s4153_s27 + $0x2f0] sm:$0xff] %v340_v30  ;;  %343 = vst [vmem:[%s4153_s27 + $0x2f8] sm:$0xff] %v342_v31  ;;  %v346_v33 = vld [vmem:[%s4148_s26 + $0xc08] sm:$0xff]  ;;  %v348_v34 = vld [vmem:[%s4148_s26 + $0xc10] sm:$0xff] }
  0x46   : > { %345 = vst [vmem:[%s4153_s27 + $0x300] sm:$0xff] %v344_v32  ;;  %347 = vst [vmem:[%s4153_s27 + $0x308] sm:$0xff] %v346_v33  ;;  %v350_v35 = vld [vmem:[%s4148_s26 + $0xc60] sm:$0xff]  ;;  %v352_v36 = vld [vmem:[%s4148_s26 + $0xc68] sm:$0xff] }
  0x47   : > { %349 = vst [vmem:[%s4153_s27 + $0x310] sm:$0xff] %v348_v34  ;;  %v354_v37 = vld [vmem:[%s4148_s26 + $0xc70] sm:$0xff]  ;;  %351 = vst [vmem:[%s4153_s27 + $0x318] sm:$0xff] %v350_v35  ;;  %v356_v38 = vld [vmem:[%s4148_s26 + $0xcc0] sm:$0xff] }
  0x48   : > { %353 = vst [vmem:[%s4153_s27 + $0x320] sm:$0xff] %v352_v36  ;;  %355 = vst [vmem:[%s4153_s27 + $0x328] sm:$0xff] %v354_v37  ;;  %v358_v39 = vld [vmem:[%s4148_s26 + $0xcc8] sm:$0xff]  ;;  %v360_v40 = vld [vmem:[%s4148_s26 + $0xcd0] sm:$0xff] }
  0x49   : > { %357 = vst [vmem:[%s4153_s27 + $0x330] sm:$0xff] %v356_v38  ;;  %359 = vst [vmem:[%s4153_s27 + $0x338] sm:$0xff] %v358_v39  ;;  %v362_v41 = vld [vmem:[%s4148_s26 + $0xd20] sm:$0xff]  ;;  %v364_v42 = vld [vmem:[%s4148_s26 + $0xd28] sm:$0xff] }
  0x4a   : > { %361 = vst [vmem:[%s4153_s27 + $0x340] sm:$0xff] %v360_v40  ;;  %v366_v43 = vld [vmem:[%s4148_s26 + $0xd30] sm:$0xff]  ;;  %363 = vst [vmem:[%s4153_s27 + $0x348] sm:$0xff] %v362_v41  ;;  %v368_v44 = vld [vmem:[%s4148_s26 + $0xd80] sm:$0xff] }
  0x4b   : > { %365 = vst [vmem:[%s4153_s27 + $0x350] sm:$0xff] %v364_v42  ;;  %367 = vst [vmem:[%s4153_s27 + $0x358] sm:$0xff] %v366_v43  ;;  %v370_v45 = vld [vmem:[%s4148_s26 + $0xd88] sm:$0xff]  ;;  %v372_v46 = vld [vmem:[%s4148_s26 + $0xd90] sm:$0xff] }
  0x4c   : > { %369 = vst [vmem:[%s4153_s27 + $0x360] sm:$0xff] %v368_v44  ;;  %371 = vst [vmem:[%s4153_s27 + $0x368] sm:$0xff] %v370_v45  ;;  %v374_v47 = vld [vmem:[%s4148_s26 + $0xde0] sm:$0xff]  ;;  %v376_v48 = vld [vmem:[%s4148_s26 + $0xde8] sm:$0xff] }
  0x4d   : > { %373 = vst [vmem:[%s4153_s27 + $0x370] sm:$0xff] %v372_v46  ;;  %v378_v49 = vld [vmem:[%s4148_s26 + $0xdf0] sm:$0xff]  ;;  %375 = vst [vmem:[%s4153_s27 + $0x378] sm:$0xff] %v374_v47  ;;  %v380_v50 = vld [vmem:[%s4148_s26 + $0xe40] sm:$0xff] }
  0x4e   : > { %377 = vst [vmem:[%s4153_s27 + $0x380] sm:$0xff] %v376_v48  ;;  %379 = vst [vmem:[%s4153_s27 + $0x388] sm:$0xff] %v378_v49  ;;  %v382_v51 = vld [vmem:[%s4148_s26 + $0xe48] sm:$0xff]  ;;  %v384_v52 = vld [vmem:[%s4148_s26 + $0xe50] sm:$0xff] }
  0x4f   : > { %381 = vst [vmem:[%s4153_s27 + $0x390] sm:$0xff] %v380_v50  ;;  %383 = vst [vmem:[%s4153_s27 + $0x398] sm:$0xff] %v382_v51  ;;  %v386_v53 = vld [vmem:[%s4148_s26 + $0xea0] sm:$0xff]  ;;  %v388_v54 = vld [vmem:[%s4148_s26 + $0xea8] sm:$0xff] }
  0x50   : > { %385 = vst [vmem:[%s4153_s27 + $0x3a0] sm:$0xff] %v384_v52  ;;  %v390_v55 = vld [vmem:[%s4148_s26 + $0xeb0] sm:$0xff]  ;;  %387 = vst [vmem:[%s4153_s27 + $0x3a8] sm:$0xff] %v386_v53  ;;  %v392_v56 = vld [vmem:[%s4148_s26 + $0xf00] sm:$0xff] }
  0x51   : > { %389 = vst [vmem:[%s4153_s27 + $0x3b0] sm:$0xff] %v388_v54  ;;  %391 = vst [vmem:[%s4153_s27 + $0x3b8] sm:$0xff] %v390_v55  ;;  %v394_v57 = vld [vmem:[%s4148_s26 + $0xf08] sm:$0xff]  ;;  %v396_v58 = vld [vmem:[%s4148_s26 + $0xf10] sm:$0xff] }
  0x52   : > { %393 = vst [vmem:[%s4153_s27 + $0x3c0] sm:$0xff] %v392_v56  ;;  %395 = vst [vmem:[%s4153_s27 + $0x3c8] sm:$0xff] %v394_v57  ;;  %v398_v59 = vld [vmem:[%s4148_s26 + $0xf60] sm:$0xff]  ;;  %v400_v60 = vld [vmem:[%s4148_s26 + $0xf68] sm:$0xff] }
  0x53   : > { %397 = vst [vmem:[%s4153_s27 + $0x3d0] sm:$0xff] %v396_v58  ;;  %v402_v61 = vld [vmem:[%s4148_s26 + $0xf70] sm:$0xff]  ;;  %399 = vst [vmem:[%s4153_s27 + $0x3d8] sm:$0xff] %v398_v59  ;;  %v404_v62 = vld [vmem:[%s4148_s26 + $0xfc0] sm:$0xff] }
  0x54   : > { %401 = vst [vmem:[%s4153_s27 + $0x3e0] sm:$0xff] %v400_v60  ;;  %403 = vst [vmem:[%s4153_s27 + $0x3e8] sm:$0xff] %v402_v61  ;;  %v406_v63 = vld [vmem:[%s4148_s26 + $0xfc8] sm:$0xff]  ;;  %v408_v0 = vld [vmem:[%s4148_s26 + $0xfd0] sm:$0xff] }
  0x55   : > { %405 = vst [vmem:[%s4153_s27 + $0x3f0] sm:$0xff] %v404_v62  ;;  %407 = vst [vmem:[%s4153_s27 + $0x3f8] sm:$0xff] %v406_v63  ;;  %v410_v1 = vld [vmem:[%s4148_s26 + $0x1020] sm:$0xff]  ;;  %v412_v2 = vld [vmem:[%s4148_s26 + $0x1028] sm:$0xff] }
  0x56   : > { %409 = vst [vmem:[%s4153_s27 + $0x400] sm:$0xff] %v408_v0  ;;  %v414_v3 = vld [vmem:[%s4148_s26 + $0x1030] sm:$0xff]  ;;  %411 = vst [vmem:[%s4153_s27 + $0x408] sm:$0xff] %v410_v1  ;;  %v416_v4 = vld [vmem:[%s4148_s26 + $0x1080] sm:$0xff] }
  0x57   : > { %413 = vst [vmem:[%s4153_s27 + $0x410] sm:$0xff] %v412_v2  ;;  %415 = vst [vmem:[%s4153_s27 + $0x418] sm:$0xff] %v414_v3  ;;  %v418_v5 = vld [vmem:[%s4148_s26 + $0x1088] sm:$0xff]  ;;  %v420_v6 = vld [vmem:[%s4148_s26 + $0x1090] sm:$0xff] }
  0x58   : > { %417 = vst [vmem:[%s4153_s27 + $0x420] sm:$0xff] %v416_v4  ;;  %419 = vst [vmem:[%s4153_s27 + $0x428] sm:$0xff] %v418_v5  ;;  %v422_v7 = vld [vmem:[%s4148_s26 + $0x10e0] sm:$0xff]  ;;  %v424_v8 = vld [vmem:[%s4148_s26 + $0x10e8] sm:$0xff] }
  0x59   : > { %421 = vst [vmem:[%s4153_s27 + $0x430] sm:$0xff] %v420_v6  ;;  %v426_v9 = vld [vmem:[%s4148_s26 + $0x10f0] sm:$0xff]  ;;  %423 = vst [vmem:[%s4153_s27 + $0x438] sm:$0xff] %v422_v7  ;;  %v428_v10 = vld [vmem:[%s4148_s26 + $0x1140] sm:$0xff] }
  0x5a   : > { %425 = vst [vmem:[%s4153_s27 + $0x440] sm:$0xff] %v424_v8  ;;  %427 = vst [vmem:[%s4153_s27 + $0x448] sm:$0xff] %v426_v9  ;;  %v430_v11 = vld [vmem:[%s4148_s26 + $0x1148] sm:$0xff]  ;;  %v432_v12 = vld [vmem:[%s4148_s26 + $0x1150] sm:$0xff] }
  0x5b   : > { %429 = vst [vmem:[%s4153_s27 + $0x450] sm:$0xff] %v428_v10  ;;  %431 = vst [vmem:[%s4153_s27 + $0x458] sm:$0xff] %v430_v11  ;;  %v434_v13 = vld [vmem:[%s4148_s26 + $0x11a0] sm:$0xff]  ;;  %v436_v14 = vld [vmem:[%s4148_s26 + $0x11a8] sm:$0xff] }
  0x5c   : > { %433 = vst [vmem:[%s4153_s27 + $0x460] sm:$0xff] %v432_v12  ;;  %v438_v15 = vld [vmem:[%s4148_s26 + $0x11b0] sm:$0xff]  ;;  %435 = vst [vmem:[%s4153_s27 + $0x468] sm:$0xff] %v434_v13  ;;  %v440_v16 = vld [vmem:[%s4148_s26 + $0x1200] sm:$0xff] }
  0x5d   : > { %437 = vst [vmem:[%s4153_s27 + $0x470] sm:$0xff] %v436_v14  ;;  %439 = vst [vmem:[%s4153_s27 + $0x478] sm:$0xff] %v438_v15  ;;  %v442_v17 = vld [vmem:[%s4148_s26 + $0x1208] sm:$0xff]  ;;  %v444_v18 = vld [vmem:[%s4148_s26 + $0x1210] sm:$0xff] }
  0x5e   : > { %441 = vst [vmem:[%s4153_s27 + $0x480] sm:$0xff] %v440_v16  ;;  %443 = vst [vmem:[%s4153_s27 + $0x488] sm:$0xff] %v442_v17  ;;  %v446_v19 = vld [vmem:[%s4148_s26 + $0x1260] sm:$0xff]  ;;  %v448_v20 = vld [vmem:[%s4148_s26 + $0x1268] sm:$0xff] }
  0x5f   : > { %445 = vst [vmem:[%s4153_s27 + $0x490] sm:$0xff] %v444_v18  ;;  %v450_v21 = vld [vmem:[%s4148_s26 + $0x1270] sm:$0xff]  ;;  %447 = vst [vmem:[%s4153_s27 + $0x498] sm:$0xff] %v446_v19  ;;  %v452_v22 = vld [vmem:[%s4148_s26 + $0x12c0] sm:$0xff] }
  0x60   : > { %449 = vst [vmem:[%s4153_s27 + $0x4a0] sm:$0xff] %v448_v20  ;;  %451 = vst [vmem:[%s4153_s27 + $0x4a8] sm:$0xff] %v450_v21  ;;  %v454_v23 = vld [vmem:[%s4148_s26 + $0x12c8] sm:$0xff]  ;;  %v456_v24 = vld [vmem:[%s4148_s26 + $0x12d0] sm:$0xff] }
  0x61   : > { %453 = vst [vmem:[%s4153_s27 + $0x4b0] sm:$0xff] %v452_v22  ;;  %455 = vst [vmem:[%s4153_s27 + $0x4b8] sm:$0xff] %v454_v23  ;;  %v458_v25 = vld [vmem:[%s4148_s26 + $0x1320] sm:$0xff]  ;;  %v460_v26 = vld [vmem:[%s4148_s26 + $0x1328] sm:$0xff] }
  0x62   : > { %457 = vst [vmem:[%s4153_s27 + $0x4c0] sm:$0xff] %v456_v24  ;;  %v462_v27 = vld [vmem:[%s4148_s26 + $0x1330] sm:$0xff]  ;;  %459 = vst [vmem:[%s4153_s27 + $0x4c8] sm:$0xff] %v458_v25  ;;  %v464_v28 = vld [vmem:[%s4148_s26 + $0x1380] sm:$0xff] }
  0x63   : > { %461 = vst [vmem:[%s4153_s27 + $0x4d0] sm:$0xff] %v460_v26  ;;  %463 = vst [vmem:[%s4153_s27 + $0x4d8] sm:$0xff] %v462_v27  ;;  %v466_v29 = vld [vmem:[%s4148_s26 + $0x1388] sm:$0xff]  ;;  %v468_v30 = vld [vmem:[%s4148_s26 + $0x1390] sm:$0xff] }
  0x64   : > { %465 = vst [vmem:[%s4153_s27 + $0x4e0] sm:$0xff] %v464_v28  ;;  %467 = vst [vmem:[%s4153_s27 + $0x4e8] sm:$0xff] %v466_v29  ;;  %v470_v31 = vld [vmem:[%s4148_s26 + $0x13e0] sm:$0xff]  ;;  %v472_v32 = vld [vmem:[%s4148_s26 + $0x13e8] sm:$0xff] }
  0x65   : > { %469 = vst [vmem:[%s4153_s27 + $0x4f0] sm:$0xff] %v468_v30  ;;  %v474_v33 = vld [vmem:[%s4148_s26 + $0x13f0] sm:$0xff]  ;;  %471 = vst [vmem:[%s4153_s27 + $0x4f8] sm:$0xff] %v470_v31  ;;  %v476_v34 = vld [vmem:[%s4148_s26 + $0x1440] sm:$0xff] }
  0x66   : > { %473 = vst [vmem:[%s4153_s27 + $0x500] sm:$0xff] %v472_v32  ;;  %475 = vst [vmem:[%s4153_s27 + $0x508] sm:$0xff] %v474_v33  ;;  %v478_v35 = vld [vmem:[%s4148_s26 + $0x1448] sm:$0xff]  ;;  %v480_v36 = vld [vmem:[%s4148_s26 + $0x1450] sm:$0xff] }
  0x67   : > { %477 = vst [vmem:[%s4153_s27 + $0x510] sm:$0xff] %v476_v34  ;;  %479 = vst [vmem:[%s4153_s27 + $0x518] sm:$0xff] %v478_v35  ;;  %v482_v37 = vld [vmem:[%s4148_s26 + $0x14a0] sm:$0xff]  ;;  %v484_v38 = vld [vmem:[%s4148_s26 + $0x14a8] sm:$0xff] }
  0x68   : > { %481 = vst [vmem:[%s4153_s27 + $0x520] sm:$0xff] %v480_v36  ;;  %v486_v39 = vld [vmem:[%s4148_s26 + $0x14b0] sm:$0xff]  ;;  %483 = vst [vmem:[%s4153_s27 + $0x528] sm:$0xff] %v482_v37  ;;  %v488_v40 = vld [vmem:[%s4148_s26 + $0x1500] sm:$0xff] }
  0x69   : > { %485 = vst [vmem:[%s4153_s27 + $0x530] sm:$0xff] %v484_v38  ;;  %487 = vst [vmem:[%s4153_s27 + $0x538] sm:$0xff] %v486_v39  ;;  %v490_v41 = vld [vmem:[%s4148_s26 + $0x1508] sm:$0xff]  ;;  %v492_v42 = vld [vmem:[%s4148_s26 + $0x1510] sm:$0xff] }
  0x6a   : > { %489 = vst [vmem:[%s4153_s27 + $0x540] sm:$0xff] %v488_v40  ;;  %491 = vst [vmem:[%s4153_s27 + $0x548] sm:$0xff] %v490_v41  ;;  %v494_v43 = vld [vmem:[%s4148_s26 + $0x1560] sm:$0xff]  ;;  %v496_v44 = vld [vmem:[%s4148_s26 + $0x1568] sm:$0xff] }
  0x6b   : > { %493 = vst [vmem:[%s4153_s27 + $0x550] sm:$0xff] %v492_v42  ;;  %v498_v45 = vld [vmem:[%s4148_s26 + $0x1570] sm:$0xff]  ;;  %495 = vst [vmem:[%s4153_s27 + $0x558] sm:$0xff] %v494_v43  ;;  %v500_v46 = vld [vmem:[%s4148_s26 + $0x15c0] sm:$0xff] }
  0x6c   : > { %497 = vst [vmem:[%s4153_s27 + $0x560] sm:$0xff] %v496_v44  ;;  %499 = vst [vmem:[%s4153_s27 + $0x568] sm:$0xff] %v498_v45  ;;  %v502_v47 = vld [vmem:[%s4148_s26 + $0x15c8] sm:$0xff]  ;;  %v504_v48 = vld [vmem:[%s4148_s26 + $0x15d0] sm:$0xff] }
  0x6d   : > { %501 = vst [vmem:[%s4153_s27 + $0x570] sm:$0xff] %v500_v46  ;;  %503 = vst [vmem:[%s4153_s27 + $0x578] sm:$0xff] %v502_v47  ;;  %v506_v49 = vld [vmem:[%s4148_s26 + $0x1620] sm:$0xff]  ;;  %v508_v50 = vld [vmem:[%s4148_s26 + $0x1628] sm:$0xff] }
  0x6e   : > { %505 = vst [vmem:[%s4153_s27 + $0x580] sm:$0xff] %v504_v48  ;;  %v510_v51 = vld [vmem:[%s4148_s26 + $0x1630] sm:$0xff]  ;;  %507 = vst [vmem:[%s4153_s27 + $0x588] sm:$0xff] %v506_v49  ;;  %v512_v52 = vld [vmem:[%s4148_s26 + $0x1680] sm:$0xff] }
  0x6f   : > { %509 = vst [vmem:[%s4153_s27 + $0x590] sm:$0xff] %v508_v50  ;;  %511 = vst [vmem:[%s4153_s27 + $0x598] sm:$0xff] %v510_v51  ;;  %v514_v53 = vld [vmem:[%s4148_s26 + $0x1688] sm:$0xff]  ;;  %v516_v54 = vld [vmem:[%s4148_s26 + $0x1690] sm:$0xff] }
  0x70   : > { %513 = vst [vmem:[%s4153_s27 + $0x5a0] sm:$0xff] %v512_v52  ;;  %515 = vst [vmem:[%s4153_s27 + $0x5a8] sm:$0xff] %v514_v53  ;;  %v518_v55 = vld [vmem:[%s4148_s26 + $0x16e0] sm:$0xff]  ;;  %v520_v56 = vld [vmem:[%s4148_s26 + $0x16e8] sm:$0xff] }
  0x71   : > { %517 = vst [vmem:[%s4153_s27 + $0x5b0] sm:$0xff] %v516_v54  ;;  %v522_v57 = vld [vmem:[%s4148_s26 + $0x16f0] sm:$0xff]  ;;  %519 = vst [vmem:[%s4153_s27 + $0x5b8] sm:$0xff] %v518_v55  ;;  %v524_v58 = vld [vmem:[%s4148_s26 + $0x1740] sm:$0xff] }
  0x72   : > { %521 = vst [vmem:[%s4153_s27 + $0x5c0] sm:$0xff] %v520_v56  ;;  %523 = vst [vmem:[%s4153_s27 + $0x5c8] sm:$0xff] %v522_v57  ;;  %v526_v59 = vld [vmem:[%s4148_s26 + $0x1748] sm:$0xff]  ;;  %v528_v60 = vld [vmem:[%s4148_s26 + $0x1750] sm:$0xff] }
  0x73   : > { %525 = vst [vmem:[%s4153_s27 + $0x5d0] sm:$0xff] %v524_v58  ;;  %527 = vst [vmem:[%s4153_s27 + $0x5d8] sm:$0xff] %v526_v59  ;;  %v530_v61 = vld [vmem:[%s4148_s26 + $0x17a0] sm:$0xff]  ;;  %v532_v62 = vld [vmem:[%s4148_s26 + $0x17a8] sm:$0xff] }
  0x74   : > { %529 = vst [vmem:[%s4153_s27 + $0x5e0] sm:$0xff] %v528_v60  ;;  %v534_v63 = vld [vmem:[%s4148_s26 + $0x17b0] sm:$0xff]  ;;  %531 = vst [vmem:[%s4153_s27 + $0x5e8] sm:$0xff] %v530_v61  ;;  %v536_v0 = vld [vmem:[%s4148_s26 + $0x1800] sm:$0xff] }
  0x75   : > { %533 = vst [vmem:[%s4153_s27 + $0x5f0] sm:$0xff] %v532_v62  ;;  %535 = vst [vmem:[%s4153_s27 + $0x5f8] sm:$0xff] %v534_v63  ;;  %v538_v1 = vld [vmem:[%s4148_s26 + $0x1808] sm:$0xff]  ;;  %v540_v2 = vld [vmem:[%s4148_s26 + $0x1810] sm:$0xff] }
  0x76   : > { %537 = vst [vmem:[%s4153_s27 + $0x600] sm:$0xff] %v536_v0  ;;  %539 = vst [vmem:[%s4153_s27 + $0x608] sm:$0xff] %v538_v1  ;;  %v542_v3 = vld [vmem:[%s4148_s26 + $0x1860] sm:$0xff]  ;;  %v544_v4 = vld [vmem:[%s4148_s26 + $0x1868] sm:$0xff] }
  0x77   : > { %541 = vst [vmem:[%s4153_s27 + $0x610] sm:$0xff] %v540_v2  ;;  %v546_v5 = vld [vmem:[%s4148_s26 + $0x1870] sm:$0xff]  ;;  %543 = vst [vmem:[%s4153_s27 + $0x618] sm:$0xff] %v542_v3  ;;  %v548_v6 = vld [vmem:[%s4148_s26 + $0x18c0] sm:$0xff] }
  0x78   : > { %545 = vst [vmem:[%s4153_s27 + $0x620] sm:$0xff] %v544_v4  ;;  %547 = vst [vmem:[%s4153_s27 + $0x628] sm:$0xff] %v546_v5  ;;  %v550_v7 = vld [vmem:[%s4148_s26 + $0x18c8] sm:$0xff]  ;;  %v552_v8 = vld [vmem:[%s4148_s26 + $0x18d0] sm:$0xff] }
  0x79   : > { %549 = vst [vmem:[%s4153_s27 + $0x630] sm:$0xff] %v548_v6  ;;  %551 = vst [vmem:[%s4153_s27 + $0x638] sm:$0xff] %v550_v7  ;;  %v554_v9 = vld [vmem:[%s4148_s26 + $0x1920] sm:$0xff]  ;;  %v556_v10 = vld [vmem:[%s4148_s26 + $0x1928] sm:$0xff] }
  0x7a   : > { %553 = vst [vmem:[%s4153_s27 + $0x640] sm:$0xff] %v552_v8  ;;  %v558_v11 = vld [vmem:[%s4148_s26 + $0x1930] sm:$0xff]  ;;  %555 = vst [vmem:[%s4153_s27 + $0x648] sm:$0xff] %v554_v9  ;;  %v560_v12 = vld [vmem:[%s4148_s26 + $0x1980] sm:$0xff] }
  0x7b   : > { %557 = vst [vmem:[%s4153_s27 + $0x650] sm:$0xff] %v556_v10  ;;  %559 = vst [vmem:[%s4153_s27 + $0x658] sm:$0xff] %v558_v11  ;;  %v562_v13 = vld [vmem:[%s4148_s26 + $0x1988] sm:$0xff]  ;;  %v564_v14 = vld [vmem:[%s4148_s26 + $0x1990] sm:$0xff] }
  0x7c   : > { %561 = vst [vmem:[%s4153_s27 + $0x660] sm:$0xff] %v560_v12  ;;  %563 = vst [vmem:[%s4153_s27 + $0x668] sm:$0xff] %v562_v13  ;;  %v566_v15 = vld [vmem:[%s4148_s26 + $0x19e0] sm:$0xff]  ;;  %v568_v16 = vld [vmem:[%s4148_s26 + $0x19e8] sm:$0xff] }
  0x7d   : > { %565 = vst [vmem:[%s4153_s27 + $0x670] sm:$0xff] %v564_v14  ;;  %v570_v17 = vld [vmem:[%s4148_s26 + $0x19f0] sm:$0xff]  ;;  %567 = vst [vmem:[%s4153_s27 + $0x678] sm:$0xff] %v566_v15  ;;  %v572_v18 = vld [vmem:[%s4148_s26 + $0x1a40] sm:$0xff] }
  0x7e   : > { %569 = vst [vmem:[%s4153_s27 + $0x680] sm:$0xff] %v568_v16  ;;  %571 = vst [vmem:[%s4153_s27 + $0x688] sm:$0xff] %v570_v17  ;;  %v574_v19 = vld [vmem:[%s4148_s26 + $0x1a48] sm:$0xff]  ;;  %v576_v20 = vld [vmem:[%s4148_s26 + $0x1a50] sm:$0xff] }
  0x7f   : > { %573 = vst [vmem:[%s4153_s27 + $0x690] sm:$0xff] %v572_v18  ;;  %575 = vst [vmem:[%s4153_s27 + $0x698] sm:$0xff] %v574_v19  ;;  %v578_v21 = vld [vmem:[%s4148_s26 + $0x1aa0] sm:$0xff]  ;;  %v580_v22 = vld [vmem:[%s4148_s26 + $0x1aa8] sm:$0xff] }
  0x80   : > { %577 = vst [vmem:[%s4153_s27 + $0x6a0] sm:$0xff] %v576_v20  ;;  %v582_v23 = vld [vmem:[%s4148_s26 + $0x1ab0] sm:$0xff]  ;;  %579 = vst [vmem:[%s4153_s27 + $0x6a8] sm:$0xff] %v578_v21  ;;  %v584_v24 = vld [vmem:[%s4148_s26 + $0x1b00] sm:$0xff] }
  0x81   : > { %581 = vst [vmem:[%s4153_s27 + $0x6b0] sm:$0xff] %v580_v22  ;;  %583 = vst [vmem:[%s4153_s27 + $0x6b8] sm:$0xff] %v582_v23  ;;  %v586_v25 = vld [vmem:[%s4148_s26 + $0x1b08] sm:$0xff]  ;;  %v588_v26 = vld [vmem:[%s4148_s26 + $0x1b10] sm:$0xff] }
  0x82   : > { %585 = vst [vmem:[%s4153_s27 + $0x6c0] sm:$0xff] %v584_v24  ;;  %587 = vst [vmem:[%s4153_s27 + $0x6c8] sm:$0xff] %v586_v25  ;;  %v590_v27 = vld [vmem:[%s4148_s26 + $0x1b60] sm:$0xff]  ;;  %v592_v28 = vld [vmem:[%s4148_s26 + $0x1b68] sm:$0xff] }
  0x83   : > { %589 = vst [vmem:[%s4153_s27 + $0x6d0] sm:$0xff] %v588_v26  ;;  %v594_v29 = vld [vmem:[%s4148_s26 + $0x1b70] sm:$0xff]  ;;  %591 = vst [vmem:[%s4153_s27 + $0x6d8] sm:$0xff] %v590_v27  ;;  %v596_v30 = vld [vmem:[%s4148_s26 + $0x1bc0] sm:$0xff] }
  0x84   : > { %593 = vst [vmem:[%s4153_s27 + $0x6e0] sm:$0xff] %v592_v28  ;;  %595 = vst [vmem:[%s4153_s27 + $0x6e8] sm:$0xff] %v594_v29  ;;  %v598_v31 = vld [vmem:[%s4148_s26 + $0x1bc8] sm:$0xff]  ;;  %v600_v32 = vld [vmem:[%s4148_s26 + $0x1bd0] sm:$0xff] }
  0x85   : > { %597 = vst [vmem:[%s4153_s27 + $0x6f0] sm:$0xff] %v596_v30  ;;  %599 = vst [vmem:[%s4153_s27 + $0x6f8] sm:$0xff] %v598_v31  ;;  %v602_v33 = vld [vmem:[%s4148_s26 + $0x1c20] sm:$0xff]  ;;  %v604_v34 = vld [vmem:[%s4148_s26 + $0x1c28] sm:$0xff] }
  0x86   : > { %601 = vst [vmem:[%s4153_s27 + $0x700] sm:$0xff] %v600_v32  ;;  %v606_v35 = vld [vmem:[%s4148_s26 + $0x1c30] sm:$0xff]  ;;  %603 = vst [vmem:[%s4153_s27 + $0x708] sm:$0xff] %v602_v33  ;;  %v608_v36 = vld [vmem:[%s4148_s26 + $0x1c80] sm:$0xff] }
  0x87   : > { %605 = vst [vmem:[%s4153_s27 + $0x710] sm:$0xff] %v604_v34  ;;  %607 = vst [vmem:[%s4153_s27 + $0x718] sm:$0xff] %v606_v35  ;;  %v610_v37 = vld [vmem:[%s4148_s26 + $0x1c88] sm:$0xff]  ;;  %v612_v38 = vld [vmem:[%s4148_s26 + $0x1c90] sm:$0xff] }
  0x88   : > { %609 = vst [vmem:[%s4153_s27 + $0x720] sm:$0xff] %v608_v36  ;;  %611 = vst [vmem:[%s4153_s27 + $0x728] sm:$0xff] %v610_v37  ;;  %v614_v39 = vld [vmem:[%s4148_s26 + $0x1ce0] sm:$0xff]  ;;  %v616_v40 = vld [vmem:[%s4148_s26 + $0x1ce8] sm:$0xff] }
  0x89   : > { %613 = vst [vmem:[%s4153_s27 + $0x730] sm:$0xff] %v612_v38  ;;  %v618_v41 = vld [vmem:[%s4148_s26 + $0x1cf0] sm:$0xff]  ;;  %615 = vst [vmem:[%s4153_s27 + $0x738] sm:$0xff] %v614_v39  ;;  %v620_v42 = vld [vmem:[%s4148_s26 + $0x1d40] sm:$0xff] }
  0x8a   : > { %617 = vst [vmem:[%s4153_s27 + $0x740] sm:$0xff] %v616_v40  ;;  %619 = vst [vmem:[%s4153_s27 + $0x748] sm:$0xff] %v618_v41  ;;  %v622_v43 = vld [vmem:[%s4148_s26 + $0x1d48] sm:$0xff]  ;;  %v624_v44 = vld [vmem:[%s4148_s26 + $0x1d50] sm:$0xff] }
  0x8b   : > { %621 = vst [vmem:[%s4153_s27 + $0x750] sm:$0xff] %v620_v42  ;;  %623 = vst [vmem:[%s4153_s27 + $0x758] sm:$0xff] %v622_v43  ;;  %v626_v45 = vld [vmem:[%s4148_s26 + $0x1da0] sm:$0xff]  ;;  %v628_v46 = vld [vmem:[%s4148_s26 + $0x1da8] sm:$0xff] }
  0x8c   : > { %625 = vst [vmem:[%s4153_s27 + $0x760] sm:$0xff] %v624_v44  ;;  %v630_v47 = vld [vmem:[%s4148_s26 + $0x1db0] sm:$0xff]  ;;  %627 = vst [vmem:[%s4153_s27 + $0x768] sm:$0xff] %v626_v45  ;;  %v632_v48 = vld [vmem:[%s4148_s26 + $0x1e00] sm:$0xff] }
  0x8d   : > { %629 = vst [vmem:[%s4153_s27 + $0x770] sm:$0xff] %v628_v46  ;;  %631 = vst [vmem:[%s4153_s27 + $0x778] sm:$0xff] %v630_v47  ;;  %v634_v49 = vld [vmem:[%s4148_s26 + $0x1e08] sm:$0xff]  ;;  %v636_v50 = vld [vmem:[%s4148_s26 + $0x1e10] sm:$0xff] }
  0x8e   : > { %633 = vst [vmem:[%s4153_s27 + $0x780] sm:$0xff] %v632_v48  ;;  %635 = vst [vmem:[%s4153_s27 + $0x788] sm:$0xff] %v634_v49  ;;  %v638_v51 = vld [vmem:[%s4148_s26 + $0x1e60] sm:$0xff]  ;;  %v640_v52 = vld [vmem:[%s4148_s26 + $0x1e68] sm:$0xff] }
  0x8f   : > { %637 = vst [vmem:[%s4153_s27 + $0x790] sm:$0xff] %v636_v50  ;;  %v642_v53 = vld [vmem:[%s4148_s26 + $0x1e70] sm:$0xff]  ;;  %639 = vst [vmem:[%s4153_s27 + $0x798] sm:$0xff] %v638_v51  ;;  %v644_v54 = vld [vmem:[%s4148_s26 + $0x1ec0] sm:$0xff] }
  0x90   : > { %641 = vst [vmem:[%s4153_s27 + $0x7a0] sm:$0xff] %v640_v52  ;;  %643 = vst [vmem:[%s4153_s27 + $0x7a8] sm:$0xff] %v642_v53  ;;  %v646_v55 = vld [vmem:[%s4148_s26 + $0x1ec8] sm:$0xff]  ;;  %v648_v56 = vld [vmem:[%s4148_s26 + $0x1ed0] sm:$0xff] }
  0x91   : > { %645 = vst [vmem:[%s4153_s27 + $0x7b0] sm:$0xff] %v644_v54  ;;  %647 = vst [vmem:[%s4153_s27 + $0x7b8] sm:$0xff] %v646_v55  ;;  %v650_v57 = vld [vmem:[%s4148_s26 + $0x1f20] sm:$0xff]  ;;  %v652_v58 = vld [vmem:[%s4148_s26 + $0x1f28] sm:$0xff] }
  0x92   : > { %649 = vst [vmem:[%s4153_s27 + $0x7c0] sm:$0xff] %v648_v56  ;;  %v654_v59 = vld [vmem:[%s4148_s26 + $0x1f30] sm:$0xff]  ;;  %651 = vst [vmem:[%s4153_s27 + $0x7c8] sm:$0xff] %v650_v57  ;;  %v656_v60 = vld [vmem:[%s4148_s26 + $0x1f80] sm:$0xff] }
  0x93   : > { %653 = vst [vmem:[%s4153_s27 + $0x7d0] sm:$0xff] %v652_v58  ;;  %655 = vst [vmem:[%s4153_s27 + $0x7d8] sm:$0xff] %v654_v59  ;;  %v658_v61 = vld [vmem:[%s4148_s26 + $0x1f88] sm:$0xff]  ;;  %v660_v62 = vld [vmem:[%s4148_s26 + $0x1f90] sm:$0xff] }
  0x94   : > { %657 = vst [vmem:[%s4153_s27 + $0x7e0] sm:$0xff] %v656_v60  ;;  %659 = vst [vmem:[%s4153_s27 + $0x7e8] sm:$0xff] %v658_v61  ;;  %v662_v63 = vld [vmem:[%s4148_s26 + $0x1fe0] sm:$0xff]  ;;  %v664_v0 = vld [vmem:[%s4148_s26 + $0x1fe8] sm:$0xff] }
  0x95   : > { %661 = vst [vmem:[%s4153_s27 + $0x7f0] sm:$0xff] %v660_v62  ;;  %v666_v1 = vld [vmem:[%s4148_s26 + $0x1ff0] sm:$0xff]  ;;  %663 = vst [vmem:[%s4153_s27 + $0x7f8] sm:$0xff] %v662_v63  ;;  %v668_v2 = vld [vmem:[%s4148_s26 + $0x2040] sm:$0xff] }
  0x96   : > { %665 = vst [vmem:[%s4153_s27 + $0x800] sm:$0xff] %v664_v0  ;;  %667 = vst [vmem:[%s4153_s27 + $0x808] sm:$0xff] %v666_v1  ;;  %v670_v3 = vld [vmem:[%s4148_s26 + $0x2048] sm:$0xff]  ;;  %v672_v4 = vld [vmem:[%s4148_s26 + $0x2050] sm:$0xff] }
  0x97   : > { %669 = vst [vmem:[%s4153_s27 + $0x810] sm:$0xff] %v668_v2  ;;  %671 = vst [vmem:[%s4153_s27 + $0x818] sm:$0xff] %v670_v3  ;;  %v674_v5 = vld [vmem:[%s4148_s26 + $0x20a0] sm:$0xff]  ;;  %v676_v6 = vld [vmem:[%s4148_s26 + $0x20a8] sm:$0xff] }
  0x98   : > { %673 = vst [vmem:[%s4153_s27 + $0x820] sm:$0xff] %v672_v4  ;;  %v678_v7 = vld [vmem:[%s4148_s26 + $0x20b0] sm:$0xff]  ;;  %675 = vst [vmem:[%s4153_s27 + $0x828] sm:$0xff] %v674_v5  ;;  %v680_v8 = vld [vmem:[%s4148_s26 + $0x2100] sm:$0xff] }
  0x99   : > { %677 = vst [vmem:[%s4153_s27 + $0x830] sm:$0xff] %v676_v6  ;;  %679 = vst [vmem:[%s4153_s27 + $0x838] sm:$0xff] %v678_v7  ;;  %v682_v9 = vld [vmem:[%s4148_s26 + $0x2108] sm:$0xff]  ;;  %v684_v10 = vld [vmem:[%s4148_s26 + $0x2110] sm:$0xff] }
  0x9a   : > { %681 = vst [vmem:[%s4153_s27 + $0x840] sm:$0xff] %v680_v8  ;;  %683 = vst [vmem:[%s4153_s27 + $0x848] sm:$0xff] %v682_v9  ;;  %v686_v11 = vld [vmem:[%s4148_s26 + $0x2160] sm:$0xff]  ;;  %v688_v12 = vld [vmem:[%s4148_s26 + $0x2168] sm:$0xff] }
  0x9b   : > { %685 = vst [vmem:[%s4153_s27 + $0x850] sm:$0xff] %v684_v10  ;;  %v690_v13 = vld [vmem:[%s4148_s26 + $0x2170] sm:$0xff]  ;;  %687 = vst [vmem:[%s4153_s27 + $0x858] sm:$0xff] %v686_v11  ;;  %v692_v14 = vld [vmem:[%s4148_s26 + $0x21c0] sm:$0xff] }
  0x9c   : > { %689 = vst [vmem:[%s4153_s27 + $0x860] sm:$0xff] %v688_v12  ;;  %691 = vst [vmem:[%s4153_s27 + $0x868] sm:$0xff] %v690_v13  ;;  %v694_v15 = vld [vmem:[%s4148_s26 + $0x21c8] sm:$0xff]  ;;  %v696_v16 = vld [vmem:[%s4148_s26 + $0x21d0] sm:$0xff] }
  0x9d   : > { %693 = vst [vmem:[%s4153_s27 + $0x870] sm:$0xff] %v692_v14  ;;  %695 = vst [vmem:[%s4153_s27 + $0x878] sm:$0xff] %v694_v15  ;;  %v698_v17 = vld [vmem:[%s4148_s26 + $0x2220] sm:$0xff]  ;;  %v700_v18 = vld [vmem:[%s4148_s26 + $0x2228] sm:$0xff] }
  0x9e   : > { %697 = vst [vmem:[%s4153_s27 + $0x880] sm:$0xff] %v696_v16  ;;  %v702_v19 = vld [vmem:[%s4148_s26 + $0x2230] sm:$0xff]  ;;  %699 = vst [vmem:[%s4153_s27 + $0x888] sm:$0xff] %v698_v17  ;;  %v704_v20 = vld [vmem:[%s4148_s26 + $0x2280] sm:$0xff] }
  0x9f   : > { %701 = vst [vmem:[%s4153_s27 + $0x890] sm:$0xff] %v700_v18  ;;  %703 = vst [vmem:[%s4153_s27 + $0x898] sm:$0xff] %v702_v19  ;;  %v706_v21 = vld [vmem:[%s4148_s26 + $0x2288] sm:$0xff]  ;;  %v708_v22 = vld [vmem:[%s4148_s26 + $0x2290] sm:$0xff] }
  0xa0   : > { %705 = vst [vmem:[%s4153_s27 + $0x8a0] sm:$0xff] %v704_v20  ;;  %707 = vst [vmem:[%s4153_s27 + $0x8a8] sm:$0xff] %v706_v21  ;;  %v710_v23 = vld [vmem:[%s4148_s26 + $0x22e0] sm:$0xff]  ;;  %v712_v24 = vld [vmem:[%s4148_s26 + $0x22e8] sm:$0xff] }
  0xa1   : > { %709 = vst [vmem:[%s4153_s27 + $0x8b0] sm:$0xff] %v708_v22  ;;  %v714_v25 = vld [vmem:[%s4148_s26 + $0x22f0] sm:$0xff]  ;;  %711 = vst [vmem:[%s4153_s27 + $0x8b8] sm:$0xff] %v710_v23  ;;  %v716_v26 = vld [vmem:[%s4148_s26 + $0x2340] sm:$0xff] }
  0xa2   : > { %713 = vst [vmem:[%s4153_s27 + $0x8c0] sm:$0xff] %v712_v24  ;;  %715 = vst [vmem:[%s4153_s27 + $0x8c8] sm:$0xff] %v714_v25  ;;  %v718_v27 = vld [vmem:[%s4148_s26 + $0x2348] sm:$0xff]  ;;  %v720_v28 = vld [vmem:[%s4148_s26 + $0x2350] sm:$0xff] }
  0xa3   : > { %717 = vst [vmem:[%s4153_s27 + $0x8d0] sm:$0xff] %v716_v26  ;;  %719 = vst [vmem:[%s4153_s27 + $0x8d8] sm:$0xff] %v718_v27  ;;  %v722_v29 = vld [vmem:[%s4148_s26 + $0x23a0] sm:$0xff]  ;;  %v724_v30 = vld [vmem:[%s4148_s26 + $0x23a8] sm:$0xff] }
  0xa4   : > { %721 = vst [vmem:[%s4153_s27 + $0x8e0] sm:$0xff] %v720_v28  ;;  %v726_v31 = vld [vmem:[%s4148_s26 + $0x23b0] sm:$0xff]  ;;  %723 = vst [vmem:[%s4153_s27 + $0x8e8] sm:$0xff] %v722_v29 }
  0xa5   : > { %725 = vst [vmem:[%s4153_s27 + $0x8f0] sm:$0xff] %v724_v30  ;;  %727 = vst [vmem:[%s4153_s27 + $0x8f8] sm:$0xff] %v726_v31 }
  0xa6 PF: > { %p3220_p7 = scmp.ge.s32.totalorder %s4085_s14, 1  ;;  %p740_p8 = scmp.lt.s32.totalorder %s4085_s14, 5 }
  0xa8   : > { %p741_p9 = pnand %p3220_p7, %p740_p8 }
  0xa9   : > { %s747_s28 = sand.u32 (!%p741_p9), 1, %s4077_s12   ;;  %v4734_v32 = vld [vmem:[%s5129_s0 + $0x4] ss:$24 sps:$4 sm:$0xff] (!%p741_p9)   ;;  %s774_s29 = smul.u32 (!%p741_p9), 6, %s4123_s15 }
  0xaa   : > { %744 = sbr.rel (%p741_p9) target bundleno = 749 (0x2ed), region = 51  ;;  %v4741_v33 = vld [vmem:[%s5129_s0 + $0xc] ss:$24 sps:$4 sm:$0xff] (!%p741_p9)   ;;  %2608 = vmatprep.mubr.bf16.mxu1 (!%p741_p9), %v4734_v32 }
  0xab   : > { %s3569_s4 = smul.u32 (!%p741_p9), 2304, %s747_s28  ;;  %2651 = vmatprep.mubr.bf16.mxu0 (!%p741_p9), %v4741_v33  ;;  %p775_p10 = scmp.lt.s32.totalorder (!%p741_p9), %s774_s29, 23 }
  0xac   : > { %s3570_s6 = smul.u32 (!%p741_p9), 48, %s747_s28 }
  0xad   : > { %s4745_s7 = scalar_lea.vmem (!%p741_p9), [#allocation2], %s3569_s4 }
  0xae   : > { %v3595_v34 = vld [vmem:[%s4745_s7 + $0x4] ss:$24 sps:$4 sm:$0xff] (!%p741_p9)   ;;  %v3599_v36 = vld [vmem:[%s4745_s7] ss:$24 sps:$4 sm:$0xff] (!%p741_p9)   ;;  %v3601_v38 = vld [vmem:[%s4745_s7 + $0x34] ss:$24 sps:$4 sm:$0xff] (!%p741_p9)  }
  0xaf   : > { %v3597_v35 = vld [vmem:[%s4745_s7 + $0x304] ss:$24 sps:$4 sm:$0xff] (!%p741_p9)   ;;  %2576 = vmatprep.subr.bf16.mxu1 (!%p741_p9), %v3595_v34  ;;  %v3600_v37 = vld [vmem:[%s4745_s7 + $0x300] ss:$24 sps:$4 sm:$0xff] (!%p741_p9)   ;;  %v3603_v39 = vld [vmem:[%s4745_s7 + $0x334] ss:$24 sps:$4 sm:$0xff] (!%p741_p9)  }
  0xb0   : > { %2619 = vmatprep.subr.bf16.mxu0 (!%p741_p9), %v3597_v35  ;;  %2577 = vmatpush1.bf16.msra.mxu1 (!%p741_p9), %v3599_v36  ;;  %v3605_v40 = vld [vmem:[%s4745_s7 + $0x30] ss:$24 sps:$4 sm:$0xff] (!%p741_p9)   ;;  %v3607_v42 = vld [vmem:[%s4745_s7 + $0x64] ss:$24 sps:$4 sm:$0xff] (!%p741_p9)   ;;  %v3611_v44 = vld [vmem:[%s4745_s7 + $0x60] ss:$24 sps:$4 sm:$0xff] (!%p741_p9)  }
  0xb1   : > { %2620 = vmatpush1.bf16.msra.mxu0 %v3600_v37  ;;  %2578 = vmatprep.subr.bf16.mxu1 %v3601_v38  ;;  %v3606_v41 = vld [vmem:[%s4745_s7 + $0x330] ss:$24 sps:$4 sm:$0xff]   ;;  %v3609_v43 = vld [vmem:[%s4745_s7 + $0x364] ss:$24 sps:$4 sm:$0xff]   ;;  %v3612_v45 = vld [vmem:[%s4745_s7 + $0x360] ss:$24 sps:$4 sm:$0xff]  }
  0xb2   : > { %2621 = vmatprep.subr.bf16.mxu0 %v3603_v39  ;;  %v3613_v46 = vld [vmem:[%s4745_s7 + $0x94] ss:$24 sps:$4 sm:$0xff]   ;;  %v3617_v48 = vld [vmem:[%s4745_s7 + $0x90] ss:$24 sps:$4 sm:$0xff]   ;;  %v3619_v50 = vld [vmem:[%s4745_s7 + $0xc4] ss:$24 sps:$4 sm:$0xff]  }
  0xb3   : > { %v3615_v47 = vld [vmem:[%s4745_s7 + $0x394] ss:$24 sps:$4 sm:$0xff]   ;;  %v3618_v49 = vld [vmem:[%s4745_s7 + $0x390] ss:$24 sps:$4 sm:$0xff]   ;;  %v3621_v51 = vld [vmem:[%s4745_s7 + $0x3c4] ss:$24 sps:$4 sm:$0xff]  }
  0xb4   : > { %2579 = vmatpush1.bf16.msra.mxu1 %v3605_v40  ;;  %v3623_v52 = vld [vmem:[%s4745_s7 + $0xc0] ss:$24 sps:$4 sm:$0xff]   ;;  %v3625_v54 = vld [vmem:[%s4745_s7 + $0xf4] ss:$24 sps:$4 sm:$0xff]   ;;  %v3629_v56 = vld [vmem:[%s4745_s7 + $0xf0] ss:$24 sps:$4 sm:$0xff]  }
  0xb5   : > { %2622 = vmatpush1.bf16.msra.mxu0 %v3606_v41  ;;  %2580 = vmatprep.subr.bf16.mxu1 %v3607_v42  ;;  %v3624_v53 = vld [vmem:[%s4745_s7 + $0x3c0] ss:$24 sps:$4 sm:$0xff]   ;;  %v3627_v55 = vld [vmem:[%s4745_s7 + $0x3f4] ss:$24 sps:$4 sm:$0xff]   ;;  %v3630_v57 = vld [vmem:[%s4745_s7 + $0x3f0] ss:$24 sps:$4 sm:$0xff]  }
  0xb6   : > { %2623 = vmatprep.subr.bf16.mxu0 %v3609_v43  ;;  %v3631_v58 = vld [vmem:[%s4745_s7 + $0x124] ss:$24 sps:$4 sm:$0xff]   ;;  %v3635_v60 = vld [vmem:[%s4745_s7 + $0x120] ss:$24 sps:$4 sm:$0xff]   ;;  %v3637_v62 = vld [vmem:[%s4745_s7 + $0x154] ss:$24 sps:$4 sm:$0xff]  }
  0xb7   : > { %v3633_v59 = vld [vmem:[%s4745_s7 + $0x424] ss:$24 sps:$4 sm:$0xff]   ;;  %v3636_v61 = vld [vmem:[%s4745_s7 + $0x420] ss:$24 sps:$4 sm:$0xff]   ;;  %v3639_v63 = vld [vmem:[%s4745_s7 + $0x454] ss:$24 sps:$4 sm:$0xff]  }
  0xb8   : > { %2581 = vmatpush1.bf16.msra.mxu1 %v3611_v44  ;;  %v3641_v0 = vld [vmem:[%s4745_s7 + $0x150] ss:$24 sps:$4 sm:$0xff]   ;;  %v3643_v2 = vld [vmem:[%s4745_s7 + $0x184] ss:$24 sps:$4 sm:$0xff]   ;;  %v3647_v4 = vld [vmem:[%s4745_s7 + $0x180] ss:$24 sps:$4 sm:$0xff]  }
  0xb9   : > { %2624 = vmatpush1.bf16.msra.mxu0 %v3612_v45  ;;  %2582 = vmatprep.subr.bf16.mxu1 %v3613_v46  ;;  %v3642_v1 = vld [vmem:[%s4745_s7 + $0x450] ss:$24 sps:$4 sm:$0xff]   ;;  %v3645_v3 = vld [vmem:[%s4745_s7 + $0x484] ss:$24 sps:$4 sm:$0xff]   ;;  %v3648_v5 = vld [vmem:[%s4745_s7 + $0x480] ss:$24 sps:$4 sm:$0xff]  }
  0xba   : > { %2625 = vmatprep.subr.bf16.mxu0 %v3615_v47  ;;  %v3649_v6 = vld [vmem:[%s4745_s7 + $0x1b4] ss:$24 sps:$4 sm:$0xff]   ;;  %v3653_v8 = vld [vmem:[%s4745_s7 + $0x1b0] ss:$24 sps:$4 sm:$0xff]   ;;  %v3655_v10 = vld [vmem:[%s4745_s7 + $0x1e4] ss:$24 sps:$4 sm:$0xff]  }
  0xbb   : > { %v3651_v7 = vld [vmem:[%s4745_s7 + $0x4b4] ss:$24 sps:$4 sm:$0xff]   ;;  %v3654_v9 = vld [vmem:[%s4745_s7 + $0x4b0] ss:$24 sps:$4 sm:$0xff]   ;;  %v3657_v11 = vld [vmem:[%s4745_s7 + $0x4e4] ss:$24 sps:$4 sm:$0xff]  }
  0xbc   : > { %2583 = vmatpush1.bf16.msra.mxu1 %v3617_v48  ;;  %v3659_v12 = vld [vmem:[%s4745_s7 + $0x1e0] ss:$24 sps:$4 sm:$0xff]   ;;  %v3661_v14 = vld [vmem:[%s4745_s7 + $0x214] ss:$24 sps:$4 sm:$0xff]   ;;  %v3665_v16 = vld [vmem:[%s4745_s7 + $0x210] ss:$24 sps:$4 sm:$0xff]  }
  0xbd   : > { %2626 = vmatpush1.bf16.msra.mxu0 %v3618_v49  ;;  %2584 = vmatprep.subr.bf16.mxu1 %v3619_v50  ;;  %v3660_v13 = vld [vmem:[%s4745_s7 + $0x4e0] ss:$24 sps:$4 sm:$0xff]   ;;  %v3663_v15 = vld [vmem:[%s4745_s7 + $0x514] ss:$24 sps:$4 sm:$0xff]   ;;  %v3666_v17 = vld [vmem:[%s4745_s7 + $0x510] ss:$24 sps:$4 sm:$0xff]  }
  0xbe   : > { %2627 = vmatprep.subr.bf16.mxu0 %v3621_v51  ;;  %v3667_v18 = vld [vmem:[%s4745_s7 + $0x244] ss:$24 sps:$4 sm:$0xff]   ;;  %v3671_v20 = vld [vmem:[%s4745_s7 + $0x240] ss:$24 sps:$4 sm:$0xff]   ;;  %v3673_v22 = vld [vmem:[%s4745_s7 + $0x274] ss:$24 sps:$4 sm:$0xff]  }
  0xbf   : > { %v3669_v19 = vld [vmem:[%s4745_s7 + $0x544] ss:$24 sps:$4 sm:$0xff]   ;;  %v3672_v21 = vld [vmem:[%s4745_s7 + $0x540] ss:$24 sps:$4 sm:$0xff]   ;;  %v3675_v23 = vld [vmem:[%s4745_s7 + $0x574] ss:$24 sps:$4 sm:$0xff]  }
  0xc0   : > { %2585 = vmatpush1.bf16.msra.mxu1 %v3623_v52  ;;  %v3677_v24 = vld [vmem:[%s4745_s7 + $0x270] ss:$24 sps:$4 sm:$0xff]   ;;  %v3679_v26 = vld [vmem:[%s4745_s7 + $0x2a4] ss:$24 sps:$4 sm:$0xff]   ;;  %v3683_v28 = vld [vmem:[%s4745_s7 + $0x2a0] ss:$24 sps:$4 sm:$0xff]  }
  0xc1   : > { %2628 = vmatpush1.bf16.msra.mxu0 %v3624_v53  ;;  %2586 = vmatprep.subr.bf16.mxu1 %v3625_v54  ;;  %v3678_v25 = vld [vmem:[%s4745_s7 + $0x570] ss:$24 sps:$4 sm:$0xff]   ;;  %v3681_v27 = vld [vmem:[%s4745_s7 + $0x5a4] ss:$24 sps:$4 sm:$0xff]   ;;  %v3684_v29 = vld [vmem:[%s4745_s7 + $0x5a0] ss:$24 sps:$4 sm:$0xff]  }
  0xc2   : > { %2629 = vmatprep.subr.bf16.mxu0 %v3627_v55  ;;  %v3685_v30 = vld [vmem:[%s4745_s7 + $0x2d4] ss:$24 sps:$4 sm:$0xff]   ;;  %v3689_v34 = vld [vmem:[%s4745_s7 + $0x2d0] ss:$24 sps:$4 sm:$0xff]   ;;  %v3697_v36 = vld [vmem:[%s4745_s7 + $0x604] ss:$24 sps:$4 sm:$0xff]  }
  0xc3   : > { %v3687_v31 = vld [vmem:[%s4745_s7 + $0x5d4] ss:$24 sps:$4 sm:$0xff]   ;;  %v3690_v35 = vld [vmem:[%s4745_s7 + $0x5d0] ss:$24 sps:$4 sm:$0xff]   ;;  %v4816_v38 = vld [vmem:[%s5129_s0] ss:$24 sps:$4 sm:$0xff]  }
  0xc4   : > { %2587 = vmatpush1.bf16.msra.mxu1 %v3629_v56  ;;  %v3700_v37 = vld [vmem:[%s4745_s7 + $0xc] ss:$24 sps:$4 sm:$0xff]   ;;  %v4821_v39 = vld [vmem:[%s5129_s0 + $0x8] ss:$24 sps:$4 sm:$0xff]   ;;  %v3708_v43 = vld [vmem:[%s4745_s7 + $0x3c] ss:$24 sps:$4 sm:$0xff]  }
  0xc5   : > { %2630 = vmatpush1.bf16.msra.mxu0 %v3630_v57  ;;  %2588 = vmatprep.subr.bf16.mxu1 %v3631_v58  ;;  %v3695_v40 = vld [vmem:[%s4745_s7 + $0x600] ss:$24 sps:$4 sm:$0xff]   ;;  %v3705_v42 = vld [vmem:[%s4745_s7 + $0x634] ss:$24 sps:$4 sm:$0xff]   ;;  %v3703_v44 = vld [vmem:[%s4745_s7 + $0x630] ss:$24 sps:$4 sm:$0xff]  }
  0xc6   : > { %2631 = vmatprep.subr.bf16.mxu0 %v3633_v59  ;;  %v3698_v41 = vld [vmem:[%s4745_s7 + $0x8] ss:$24 sps:$4 sm:$0xff]   ;;  %v3706_v45 = vld [vmem:[%s4745_s7 + $0x38] ss:$24 sps:$4 sm:$0xff]   ;;  %v3711_v46 = vld [vmem:[%s4745_s7 + $0x664] ss:$24 sps:$4 sm:$0xff]  }
  0xc7   : > { %v3714_v47 = vld [vmem:[%s4745_s7 + $0x6c] ss:$24 sps:$4 sm:$0xff]   ;;  %v3709_v48 = vld [vmem:[%s4745_s7 + $0x660] ss:$24 sps:$4 sm:$0xff]   ;;  %v3720_v51 = vld [vmem:[%s4745_s7 + $0x9c] ss:$24 sps:$4 sm:$0xff]  }
  0xc8   : > { %2589 = vmatpush1.bf16.msra.mxu1 %v3635_v60  ;;  %v3712_v49 = vld [vmem:[%s4745_s7 + $0x68] ss:$24 sps:$4 sm:$0xff]   ;;  %v3717_v50 = vld [vmem:[%s4745_s7 + $0x694] ss:$24 sps:$4 sm:$0xff]   ;;  %v3718_v53 = vld [vmem:[%s4745_s7 + $0x98] ss:$24 sps:$4 sm:$0xff]  }
  0xc9   : > { %2632 = vmatpush1.bf16.msra.mxu0 %v3636_v61  ;;  %2590 = vmatprep.subr.bf16.mxu1 %v3637_v62  ;;  %v3715_v52 = vld [vmem:[%s4745_s7 + $0x690] ss:$24 sps:$4 sm:$0xff]   ;;  %v3723_v54 = vld [vmem:[%s4745_s7 + $0x6c4] ss:$24 sps:$4 sm:$0xff]   ;;  %v3721_v56 = vld [vmem:[%s4745_s7 + $0x6c0] ss:$24 sps:$4 sm:$0xff]  }
  0xca   : > { %2633 = vmatprep.subr.bf16.mxu0 %v3639_v63  ;;  %v3726_v55 = vld [vmem:[%s4745_s7 + $0xcc] ss:$24 sps:$4 sm:$0xff]   ;;  %v3724_v57 = vld [vmem:[%s4745_s7 + $0xc8] ss:$24 sps:$4 sm:$0xff]   ;;  %v3732_v59 = vld [vmem:[%s4745_s7 + $0xfc] ss:$24 sps:$4 sm:$0xff]  }
  0xcb   : > { %v3729_v58 = vld [vmem:[%s4745_s7 + $0x6f4] ss:$24 sps:$4 sm:$0xff]   ;;  %v3727_v60 = vld [vmem:[%s4745_s7 + $0x6f0] ss:$24 sps:$4 sm:$0xff]   ;;  %v3735_v62 = vld [vmem:[%s4745_s7 + $0x724] ss:$24 sps:$4 sm:$0xff]  }
  0xcc   : > { %2591 = vmatpush1.bf16.msra.mxu1 %v3641_v0  ;;  %v3730_v61 = vld [vmem:[%s4745_s7 + $0xf8] ss:$24 sps:$4 sm:$0xff]   ;;  %v3738_v63 = vld [vmem:[%s4745_s7 + $0x12c] ss:$24 sps:$4 sm:$0xff]   ;;  %s5138_s29 = smov (!%p775_p10, %s774_s29), 23  ;;  %s3531_s12 = smul.u32 (%p4138_p5), 24, %s4123_s15 }
  0xcd   : > { %2634 = vmatpush1.bf16.msra.mxu0 %v3642_v1  ;;  %2592 = vmatprep.subr.bf16.mxu1 %v3643_v2  ;;  %v4853_v0 = vld [vmem:[%s5129_s0 + $0x14] ss:$24 sps:$4 sm:$0xff]   ;;  %v3733_v1 = vld [vmem:[%s4745_s7 + $0x720] ss:$24 sps:$4 sm:$0xff]   ;;  %s777_s5 = scalar_lea.vmem %s5131_s2, %s5138_s29 }
  0xce   : > { %2635 = vmatprep.subr.bf16.mxu0 %v3645_v3  ;;  %v3736_v2 = vld [vmem:[%s4745_s7 + $0x128] ss:$24 sps:$4 sm:$0xff]   ;;  %v3741_v3 = vld [vmem:[%s4745_s7 + $0x754] ss:$24 sps:$4 sm:$0xff]   ;;  %s3122_s9 = scalar_lea.vmem (%p4138_p5), %s5132_s3, %s3531_s12 }
  0xd0   : > { %2593 = vmatpush1.bf16.msra.mxu1 %v3647_v4  ;;  %v3744_v4 = vld [vmem:[%s4745_s7 + $0x15c] ss:$24 sps:$4 sm:$0xff]  }
  0xd1   : > { %2636 = vmatpush1.bf16.msra.mxu0 %v3648_v5  ;;  %2594 = vmatprep.subr.bf16.mxu1 %v3649_v6  ;;  %v3739_v5 = vld [vmem:[%s4745_s7 + $0x750] ss:$24 sps:$4 sm:$0xff]  }
  0xd2   : > { %2637 = vmatprep.subr.bf16.mxu0 %v3651_v7  ;;  %v3742_v6 = vld [vmem:[%s4745_s7 + $0x158] ss:$24 sps:$4 sm:$0xff]   ;;  %v3747_v7 = vld [vmem:[%s4745_s7 + $0x784] ss:$24 sps:$4 sm:$0xff]  }
  0xd4   : > { %2595 = vmatpush1.bf16.msra.mxu1 %v3653_v8  ;;  %v3750_v8 = vld [vmem:[%s4745_s7 + $0x18c] ss:$24 sps:$4 sm:$0xff]  }
  0xd5   : > { %2638 = vmatpush1.bf16.msra.mxu0 %v3654_v9  ;;  %2596 = vmatprep.subr.bf16.mxu1 %v3655_v10  ;;  %v3745_v9 = vld [vmem:[%s4745_s7 + $0x780] ss:$24 sps:$4 sm:$0xff]  }
  0xd6   : > { %2639 = vmatprep.subr.bf16.mxu0 %v3657_v11  ;;  %v3748_v10 = vld [vmem:[%s4745_s7 + $0x188] ss:$24 sps:$4 sm:$0xff]   ;;  %v3753_v11 = vld [vmem:[%s4745_s7 + $0x7b4] ss:$24 sps:$4 sm:$0xff]  }
  0xd8   : > { %2597 = vmatpush1.bf16.msra.mxu1 %v3659_v12  ;;  %v3756_v12 = vld [vmem:[%s4745_s7 + $0x1bc] ss:$24 sps:$4 sm:$0xff]  }
  0xd9   : > { %2640 = vmatpush1.bf16.msra.mxu0 %v3660_v13  ;;  %2598 = vmatprep.subr.bf16.mxu1 %v3661_v14  ;;  %v3751_v13 = vld [vmem:[%s4745_s7 + $0x7b0] ss:$24 sps:$4 sm:$0xff]  }
  0xda   : > { %2641 = vmatprep.subr.bf16.mxu0 %v3663_v15  ;;  %v3754_v14 = vld [vmem:[%s4745_s7 + $0x1b8] ss:$24 sps:$4 sm:$0xff]   ;;  %v3759_v15 = vld [vmem:[%s4745_s7 + $0x7e4] ss:$24 sps:$4 sm:$0xff]  }
  0xdc   : > { %2599 = vmatpush1.bf16.msra.mxu1 %v3665_v16  ;;  %v3762_v16 = vld [vmem:[%s4745_s7 + $0x1ec] ss:$24 sps:$4 sm:$0xff]  }
  0xdd   : > { %2642 = vmatpush1.bf16.msra.mxu0 %v3666_v17  ;;  %2600 = vmatprep.subr.bf16.mxu1 %v3667_v18  ;;  %v3757_v17 = vld [vmem:[%s4745_s7 + $0x7e0] ss:$24 sps:$4 sm:$0xff]  }
  0xde   : > { %2643 = vmatprep.subr.bf16.mxu0 %v3669_v19  ;;  %v3760_v18 = vld [vmem:[%s4745_s7 + $0x1e8] ss:$24 sps:$4 sm:$0xff]   ;;  %v3765_v19 = vld [vmem:[%s4745_s7 + $0x814] ss:$24 sps:$4 sm:$0xff]  }
  0xe0   : > { %2601 = vmatpush1.bf16.msra.mxu1 %v3671_v20  ;;  %v3768_v20 = vld [vmem:[%s4745_s7 + $0x21c] ss:$24 sps:$4 sm:$0xff]  }
  0xe1   : > { %2644 = vmatpush1.bf16.msra.mxu0 %v3672_v21  ;;  %2602 = vmatprep.subr.bf16.mxu1 %v3673_v22  ;;  %v3763_v21 = vld [vmem:[%s4745_s7 + $0x810] ss:$24 sps:$4 sm:$0xff]  }
  0xe2   : > { %2645 = vmatprep.subr.bf16.mxu0 %v3675_v23  ;;  %v3766_v22 = vld [vmem:[%s4745_s7 + $0x218] ss:$24 sps:$4 sm:$0xff]   ;;  %v3771_v23 = vld [vmem:[%s4745_s7 + $0x844] ss:$24 sps:$4 sm:$0xff]  }
  0xe4   : > { %2603 = vmatpush1.bf16.msra.mxu1 %v3677_v24  ;;  %v3774_v24 = vld [vmem:[%s4745_s7 + $0x24c] ss:$24 sps:$4 sm:$0xff]  }
  0xe5   : > { %2646 = vmatpush1.bf16.msra.mxu0 %v3678_v25  ;;  %2604 = vmatprep.subr.bf16.mxu1 %v3679_v26  ;;  %v3769_v25 = vld [vmem:[%s4745_s7 + $0x840] ss:$24 sps:$4 sm:$0xff]  }
  0xe6   : > { %2647 = vmatprep.subr.bf16.mxu0 %v3681_v27  ;;  %v3772_v26 = vld [vmem:[%s4745_s7 + $0x248] ss:$24 sps:$4 sm:$0xff]   ;;  %v3777_v27 = vld [vmem:[%s4745_s7 + $0x874] ss:$24 sps:$4 sm:$0xff]  }
  0xe8   : > { %2605 = vmatpush1.bf16.msra.mxu1 %v3683_v28  ;;  %v3780_v28 = vld [vmem:[%s4745_s7 + $0x27c] ss:$24 sps:$4 sm:$0xff]  }
  0xe9   : > { %2648 = vmatpush1.bf16.msra.mxu0 %v3684_v29  ;;  %2606 = vmatprep.subr.bf16.mxu1 %v3685_v30  ;;  %v3775_v29 = vld [vmem:[%s4745_s7 + $0x870] ss:$24 sps:$4 sm:$0xff]  }
  0xea   : > { %2649 = vmatprep.subr.bf16.mxu0 %v3687_v31  ;;  %v3778_v30 = vld [vmem:[%s4745_s7 + $0x278] ss:$24 sps:$4 sm:$0xff]   ;;  %v3783_v31 = vld [vmem:[%s4745_s7 + $0x8a4] ss:$24 sps:$4 sm:$0xff]  }
  0xec   : > { %2607 = vmatpush1.bf16.msra.mxu1 %v3689_v34  ;;  %v3786_v34 = vld [vmem:[%s4745_s7 + $0x2ac] ss:$24 sps:$4 sm:$0xff]  }
  0xed   : > { %2650 = vmatpush1.bf16.msra.mxu0 %v3690_v35  ;;  %2705 = vmatprep.subr.bf16.mxu1 %v3700_v37  ;;  %v3781_v35 = vld [vmem:[%s4745_s7 + $0x8a0] ss:$24 sps:$4 sm:$0xff]   ;;  %v3789_v37 = vld [vmem:[%s4745_s7 + $0x8d4] ss:$24 sps:$4 sm:$0xff]  }
  0xee   : > { %2662 = vmatprep.subr.bf16.mxu0 %v3697_v36  ;;  %v3784_v36 = vld [vmem:[%s4745_s7 + $0x2a8] ss:$24 sps:$4 sm:$0xff]  }
  0xef   : > { %2609 = vmatmul.mubr.bf16.vlgmr.msra.gmra.mrb[0].mxu1 %v4816_v38 }
  0xf0   : > { %2652 = vmatmul.mubr.bf16.vlgmr.msra.gmra.mrb[0].mxu0 %v4821_v39  ;;  %2706 = vmatpush1.bf16.msra.mxu1 %v3698_v41  ;;  %v3787_v41 = vld [vmem:[%s4745_s7 + $0x8d0] ss:$24 sps:$4 sm:$0xff]  }
  0xf1   : > { %2663 = vmatpush1.bf16.msra.mxu0 %v3695_v40  ;;  %2707 = vmatprep.subr.bf16.mxu1 %v3708_v43  ;;  %v3792_v40 = vld [vmem:[%s4745_s7 + $0x2dc] ss:$24 sps:$4 sm:$0xff]   ;;  %v3798_v43 = vld [vmem:[%s4745_s7 + $0x30c] ss:$24 sps:$4 sm:$0xff]  }
  0xf2   : > { %2664 = vmatprep.subr.bf16.mxu0 %v3705_v42  ;;  %2737 = vmatprep.mubr.bf16.mxu1 %v4734_v32  ;;  %v3790_v42 = vld [vmem:[%s4745_s7 + $0x2d8] ss:$24 sps:$4 sm:$0xff]  }
  0xf3   : > { %2694 = vmatprep.mubr.bf16.mxu0 %v4853_v0 }
  0xf4   : > { %2708 = vmatpush1.bf16.msra.mxu1 %v3706_v45  ;;  %v4899_v45 = vld [vmem:[%s5129_s0 + $0x10] ss:$24 sps:$4 sm:$0xff]  }
  0xf5   : > { %2665 = vmatpush1.bf16.msra.mxu0 %v3703_v44  ;;  %2709 = vmatprep.subr.bf16.mxu1 %v3714_v47  ;;  %v3801_v44 = vld [vmem:[%s4745_s7 + $0x14] ss:$24 sps:$4 sm:$0xff]   ;;  %v3799_v47 = vld [vmem:[%s4745_s7 + $0x10] ss:$24 sps:$4 sm:$0xff]  }
  0xf6   : > { %2666 = vmatprep.subr.bf16.mxu0 %v3711_v46  ;;  %v3796_v46 = vld [vmem:[%s4745_s7 + $0x308] ss:$24 sps:$4 sm:$0xff]  }
  0xf8   : > { %2710 = vmatpush1.bf16.msra.mxu1 %v3712_v49  ;;  %v3807_v49 = vld [vmem:[%s4745_s7 + $0x44] ss:$24 sps:$4 sm:$0xff]  }
  0xf9   : > { %2667 = vmatpush1.bf16.msra.mxu0 %v3709_v48  ;;  %2711 = vmatprep.subr.bf16.mxu1 %v3720_v51  ;;  %v3804_v48 = vld [vmem:[%s4745_s7 + $0x33c] ss:$24 sps:$4 sm:$0xff]   ;;  %v3805_v51 = vld [vmem:[%s4745_s7 + $0x40] ss:$24 sps:$4 sm:$0xff]  }
  0xfa   : > { %2668 = vmatprep.subr.bf16.mxu0 %v3717_v50  ;;  %v3802_v50 = vld [vmem:[%s4745_s7 + $0x338] ss:$24 sps:$4 sm:$0xff]  }
  0xfc   : > { %2712 = vmatpush1.bf16.msra.mxu1 %v3718_v53  ;;  %v3813_v53 = vld [vmem:[%s4745_s7 + $0x74] ss:$24 sps:$4 sm:$0xff]  }
  0xfd   : > { %2669 = vmatpush1.bf16.msra.mxu0 %v3715_v52  ;;  %2713 = vmatprep.subr.bf16.mxu1 %v3726_v55  ;;  %v3810_v52 = vld [vmem:[%s4745_s7 + $0x36c] ss:$24 sps:$4 sm:$0xff]   ;;  %v3811_v55 = vld [vmem:[%s4745_s7 + $0x70] ss:$24 sps:$4 sm:$0xff]  }
  0xfe   : > { %2670 = vmatprep.subr.bf16.mxu0 %v3723_v54  ;;  %v3808_v54 = vld [vmem:[%s4745_s7 + $0x368] ss:$24 sps:$4 sm:$0xff]  }
 0x100   : > { %2714 = vmatpush1.bf16.msra.mxu1 %v3724_v57  ;;  %v3819_v57 = vld [vmem:[%s4745_s7 + $0xa4] ss:$24 sps:$4 sm:$0xff]  }
 0x101   : > { %2671 = vmatpush1.bf16.msra.mxu0 %v3721_v56  ;;  %2715 = vmatprep.subr.bf16.mxu1 %v3732_v59  ;;  %v3816_v56 = vld [vmem:[%s4745_s7 + $0x39c] ss:$24 sps:$4 sm:$0xff]  }
 0x102   : > { %2672 = vmatprep.subr.bf16.mxu0 %v3729_v58  ;;  %v3814_v58 = vld [vmem:[%s4745_s7 + $0x398] ss:$24 sps:$4 sm:$0xff]   ;;  %v3825_v59 = vld [vmem:[%s4745_s7 + $0xd4] ss:$24 sps:$4 sm:$0xff]  }
 0x104   : > { %2716 = vmatpush1.bf16.msra.mxu1 %v3730_v61  ;;  %v3823_v61 = vld [vmem:[%s4745_s7 + $0xd0] ss:$24 sps:$4 sm:$0xff]  }
 0x105   : > { %2673 = vmatpush1.bf16.msra.mxu0 %v3727_v60  ;;  %2717 = vmatprep.subr.bf16.mxu1 %v3738_v63  ;;  %v3820_v60 = vld [vmem:[%s4745_s7 + $0x3c8] ss:$24 sps:$4 sm:$0xff]   ;;  %v3831_v63 = vld [vmem:[%s4745_s7 + $0x104] ss:$24 sps:$4 sm:$0xff]  }
 0x106   : > { %2674 = vmatprep.subr.bf16.mxu0 %v3735_v62  ;;  %v3828_v62 = vld [vmem:[%s4745_s7 + $0x3fc] ss:$24 sps:$4 sm:$0xff]  }
 0x108   : > { %2718 = vmatpush1.bf16.msra.mxu1 %v3736_v2  ;;  %v3829_v2 = vld [vmem:[%s4745_s7 + $0x100] ss:$24 sps:$4 sm:$0xff]  }
 0x109   : > { %2675 = vmatpush1.bf16.msra.mxu0 %v3733_v1  ;;  %2719 = vmatprep.subr.bf16.mxu1 %v3744_v4  ;;  %v3826_v1 = vld [vmem:[%s4745_s7 + $0x3f8] ss:$24 sps:$4 sm:$0xff]   ;;  %v3837_v4 = vld [vmem:[%s4745_s7 + $0x134] ss:$24 sps:$4 sm:$0xff]  }
 0x10a   : > { %2676 = vmatprep.subr.bf16.mxu0 %v3741_v3  ;;  %v3834_v3 = vld [vmem:[%s4745_s7 + $0x42c] ss:$24 sps:$4 sm:$0xff]  }
 0x10c   : > { %2720 = vmatpush1.bf16.msra.mxu1 %v3742_v6  ;;  %v3835_v6 = vld [vmem:[%s4745_s7 + $0x130] ss:$24 sps:$4 sm:$0xff]  }
 0x10d   : > { %2677 = vmatpush1.bf16.msra.mxu0 %v3739_v5  ;;  %2721 = vmatprep.subr.bf16.mxu1 %v3750_v8  ;;  %v3832_v5 = vld [vmem:[%s4745_s7 + $0x428] ss:$24 sps:$4 sm:$0xff]   ;;  %v3843_v8 = vld [vmem:[%s4745_s7 + $0x164] ss:$24 sps:$4 sm:$0xff]  }
 0x10e   : > { %2678 = vmatprep.subr.bf16.mxu0 %v3747_v7  ;;  %v3840_v7 = vld [vmem:[%s4745_s7 + $0x45c] ss:$24 sps:$4 sm:$0xff]  }
 0x110   : > { %2722 = vmatpush1.bf16.msra.mxu1 %v3748_v10  ;;  %v3841_v10 = vld [vmem:[%s4745_s7 + $0x160] ss:$24 sps:$4 sm:$0xff]  }
 0x111   : > { %2679 = vmatpush1.bf16.msra.mxu0 %v3745_v9  ;;  %2723 = vmatprep.subr.bf16.mxu1 %v3756_v12  ;;  %v3838_v9 = vld [vmem:[%s4745_s7 + $0x458] ss:$24 sps:$4 sm:$0xff]   ;;  %v3849_v12 = vld [vmem:[%s4745_s7 + $0x194] ss:$24 sps:$4 sm:$0xff]  }
 0x112   : > { %2680 = vmatprep.subr.bf16.mxu0 %v3753_v11  ;;  %v3846_v11 = vld [vmem:[%s4745_s7 + $0x48c] ss:$24 sps:$4 sm:$0xff]  }
 0x114   : > { %2724 = vmatpush1.bf16.msra.mxu1 %v3754_v14  ;;  %v3847_v14 = vld [vmem:[%s4745_s7 + $0x190] ss:$24 sps:$4 sm:$0xff]  }
 0x115   : > { %2681 = vmatpush1.bf16.msra.mxu0 %v3751_v13  ;;  %2725 = vmatprep.subr.bf16.mxu1 %v3762_v16  ;;  %v3844_v13 = vld [vmem:[%s4745_s7 + $0x488] ss:$24 sps:$4 sm:$0xff]   ;;  %v3855_v16 = vld [vmem:[%s4745_s7 + $0x1c4] ss:$24 sps:$4 sm:$0xff]  }
 0x116   : > { %2682 = vmatprep.subr.bf16.mxu0 %v3759_v15  ;;  %v3852_v15 = vld [vmem:[%s4745_s7 + $0x4bc] ss:$24 sps:$4 sm:$0xff]  }
 0x118   : > { %2726 = vmatpush1.bf16.msra.mxu1 %v3760_v18  ;;  %v3853_v18 = vld [vmem:[%s4745_s7 + $0x1c0] ss:$24 sps:$4 sm:$0xff]  }
 0x119   : > { %2683 = vmatpush1.bf16.msra.mxu0 %v3757_v17  ;;  %2727 = vmatprep.subr.bf16.mxu1 %v3768_v20  ;;  %v3850_v17 = vld [vmem:[%s4745_s7 + $0x4b8] ss:$24 sps:$4 sm:$0xff]   ;;  %v3861_v20 = vld [vmem:[%s4745_s7 + $0x1f4] ss:$24 sps:$4 sm:$0xff]  }
 0x11a   : > { %2684 = vmatprep.subr.bf16.mxu0 %v3765_v19  ;;  %v3858_v19 = vld [vmem:[%s4745_s7 + $0x4ec] ss:$24 sps:$4 sm:$0xff]  }
 0x11c   : > { %2728 = vmatpush1.bf16.msra.mxu1 %v3766_v22  ;;  %v3859_v22 = vld [vmem:[%s4745_s7 + $0x1f0] ss:$24 sps:$4 sm:$0xff]  }
 0x11d   : > { %2685 = vmatpush1.bf16.msra.mxu0 %v3763_v21  ;;  %2729 = vmatprep.subr.bf16.mxu1 %v3774_v24  ;;  %v3856_v21 = vld [vmem:[%s4745_s7 + $0x4e8] ss:$24 sps:$4 sm:$0xff]   ;;  %v3867_v24 = vld [vmem:[%s4745_s7 + $0x224] ss:$24 sps:$4 sm:$0xff]  }
 0x11e   : > { %2686 = vmatprep.subr.bf16.mxu0 %v3771_v23  ;;  %v3864_v23 = vld [vmem:[%s4745_s7 + $0x51c] ss:$24 sps:$4 sm:$0xff]  }
 0x120   : > { %2730 = vmatpush1.bf16.msra.mxu1 %v3772_v26  ;;  %v3865_v26 = vld [vmem:[%s4745_s7 + $0x220] ss:$24 sps:$4 sm:$0xff]  }
 0x121   : > { %2687 = vmatpush1.bf16.msra.mxu0 %v3769_v25  ;;  %2731 = vmatprep.subr.bf16.mxu1 %v3780_v28  ;;  %v3862_v25 = vld [vmem:[%s4745_s7 + $0x518] ss:$24 sps:$4 sm:$0xff]   ;;  %v3873_v28 = vld [vmem:[%s4745_s7 + $0x254] ss:$24 sps:$4 sm:$0xff]  }
 0x122   : > { %2688 = vmatprep.subr.bf16.mxu0 %v3777_v27  ;;  %v3870_v27 = vld [vmem:[%s4745_s7 + $0x54c] ss:$24 sps:$4 sm:$0xff]  }
 0x124   : > { %2732 = vmatpush1.bf16.msra.mxu1 %v3778_v30  ;;  %v3871_v30 = vld [vmem:[%s4745_s7 + $0x250] ss:$24 sps:$4 sm:$0xff]  }
 0x125   : > { %2689 = vmatpush1.bf16.msra.mxu0 %v3775_v29  ;;  %2733 = vmatprep.subr.bf16.mxu1 %v3786_v34  ;;  %v3868_v29 = vld [vmem:[%s4745_s7 + $0x548] ss:$24 sps:$4 sm:$0xff]   ;;  %v3879_v34 = vld [vmem:[%s4745_s7 + $0x284] ss:$24 sps:$4 sm:$0xff]  }
 0x126   : > { %2690 = vmatprep.subr.bf16.mxu0 %v3783_v31  ;;  %v3876_v31 = vld [vmem:[%s4745_s7 + $0x57c] ss:$24 sps:$4 sm:$0xff]  }
 0x128   : > { %2734 = vmatpush1.bf16.msra.mxu1 %v3784_v36  ;;  %v3877_v36 = vld [vmem:[%s4745_s7 + $0x280] ss:$24 sps:$4 sm:$0xff]  }
 0x129   : > { %2691 = vmatpush1.bf16.msra.mxu0 %v3781_v35  ;;  %2735 = vmatprep.subr.bf16.mxu1 %v3792_v40  ;;  %v3874_v35 = vld [vmem:[%s4745_s7 + $0x578] ss:$24 sps:$4 sm:$0xff]   ;;  %v3885_v40 = vld [vmem:[%s4745_s7 + $0x2b4] ss:$24 sps:$4 sm:$0xff]  }
 0x12a   : > { %2692 = vmatprep.subr.bf16.mxu0 %v3789_v37  ;;  %v3882_v37 = vld [vmem:[%s4745_s7 + $0x5ac] ss:$24 sps:$4 sm:$0xff]  }
 0x12c   : > { %2736 = vmatpush1.bf16.msra.mxu1 %v3790_v42  ;;  %v3883_v42 = vld [vmem:[%s4745_s7 + $0x2b0] ss:$24 sps:$4 sm:$0xff]  }
 0x12d   : > { %2693 = vmatpush1.bf16.msra.mxu0 %v3787_v41  ;;  %2748 = vmatprep.subr.bf16.mxu1 %v3798_v43  ;;  %v3880_v41 = vld [vmem:[%s4745_s7 + $0x5a8] ss:$24 sps:$4 sm:$0xff]   ;;  %v3888_v43 = vld [vmem:[%s4745_s7 + $0x5dc] ss:$24 sps:$4 sm:$0xff]  }
 0x12e   : > { %2834 = vmatprep.subr.bf16.mxu0 %v3801_v44  ;;  %v3891_v44 = vld [vmem:[%s4745_s7 + $0x2e4] ss:$24 sps:$4 sm:$0xff]  }
 0x12f   : > { %2738 = vmatmul.mubr.bf16.vlgmr.msra.gmra.mrb[4].mxu1 %v4816_v38 }
 0x130   : > { %2695 = vmatmul.mubr.bf16.vlgmr.msra.gmra.mrb[0].mxu0 %v4899_v45  ;;  %2749 = vmatpush1.bf16.msra.mxu1 %v3796_v46  ;;  %v3886_v46 = vld [vmem:[%s4745_s7 + $0x5d8] ss:$24 sps:$4 sm:$0xff]  }
 0x131   : > { %2835 = vmatpush1.bf16.msra.mxu0 %v3799_v47  ;;  %2750 = vmatprep.subr.bf16.mxu1 %v3804_v48  ;;  %v3889_v47 = vld [vmem:[%s4745_s7 + $0x2e0] ss:$24 sps:$4 sm:$0xff]   ;;  %v3894_v48 = vld [vmem:[%s4745_s7 + $0x60c] ss:$24 sps:$4 sm:$0xff]  }
 0x132   : > { %2836 = vmatprep.subr.bf16.mxu0 %v3807_v49  ;;  %2780 = vmatprep.mubr.bf16.mxu1 %v4741_v33  ;;  %v3817_v33 = vld [vmem:[%s4745_s7 + $0xa0] ss:$24 sps:$4 sm:$0xff]   ;;  %v3897_v49 = vld [vmem:[%s4745_s7 + $0x314] ss:$24 sps:$4 sm:$0xff]  }
 0x133   : > { %2866 = vmatprep.mubr.bf16.mxu0 %v4734_v32  ;;  %v3822_v32 = vld [vmem:[%s4745_s7 + $0x3cc] ss:$24 sps:$4 sm:$0xff]  }
 0x134   : > { %2751 = vmatpush1.bf16.msra.mxu1 %v3802_v50  ;;  %v3892_v50 = vld [vmem:[%s4745_s7 + $0x608] ss:$24 sps:$4 sm:$0xff]  }
 0x135   : > { %2837 = vmatpush1.bf16.msra.mxu0 %v3805_v51  ;;  %2752 = vmatprep.subr.bf16.mxu1 %v3810_v52  ;;  %v3895_v51 = vld [vmem:[%s4745_s7 + $0x310] ss:$24 sps:$4 sm:$0xff]   ;;  %v3900_v52 = vld [vmem:[%s4745_s7 + $0x63c] ss:$24 sps:$4 sm:$0xff]  }
 0x136   : > { %2838 = vmatprep.subr.bf16.mxu0 %v3813_v53  ;;  %v3903_v53 = vld [vmem:[%s4745_s7 + $0x344] ss:$24 sps:$4 sm:$0xff]  }
 0x138   : > { %2753 = vmatpush1.bf16.msra.mxu1 %v3808_v54  ;;  %v3898_v54 = vld [vmem:[%s4745_s7 + $0x638] ss:$24 sps:$4 sm:$0xff]  }
 0x139   : > { %2839 = vmatpush1.bf16.msra.mxu0 %v3811_v55  ;;  %2754 = vmatprep.subr.bf16.mxu1 %v3816_v56  ;;  %v3901_v55 = vld [vmem:[%s4745_s7 + $0x340] ss:$24 sps:$4 sm:$0xff]   ;;  %v3906_v56 = vld [vmem:[%s4745_s7 + $0x66c] ss:$24 sps:$4 sm:$0xff]  }
 0x13a   : > { %2840 = vmatprep.subr.bf16.mxu0 %v3819_v57  ;;  %v3909_v57 = vld [vmem:[%s4745_s7 + $0x374] ss:$24 sps:$4 sm:$0xff]  }
 0x13c   : > { %2755 = vmatpush1.bf16.msra.mxu1 %v3814_v58  ;;  %v3907_v58 = vld [vmem:[%s4745_s7 + $0x370] ss:$24 sps:$4 sm:$0xff]  }
 0x13d   : > { %2841 = vmatpush1.bf16.msra.mxu0 %v3817_v33  ;;  %2756 = vmatprep.subr.bf16.mxu1 %v3822_v32  ;;  %v3912_v33 = vld [vmem:[%s4745_s7 + $0x69c] ss:$24 sps:$4 sm:$0xff]  }
 0x13e   : > { %2842 = vmatprep.subr.bf16.mxu0 %v3825_v59  ;;  %v3915_v32 = vld [vmem:[%s4745_s7 + $0x3a4] ss:$24 sps:$4 sm:$0xff]   ;;  %v3913_v59 = vld [vmem:[%s4745_s7 + $0x3a0] ss:$24 sps:$4 sm:$0xff]  }
 0x140   : > { %2757 = vmatpush1.bf16.msra.mxu1 %v3820_v60  ;;  %v3918_v60 = vld [vmem:[%s4745_s7 + $0x6cc] ss:$24 sps:$4 sm:$0xff]  }
 0x141   : > { %2843 = vmatpush1.bf16.msra.mxu0 %v3823_v61  ;;  %2758 = vmatprep.subr.bf16.mxu1 %v3828_v62  ;;  %v3921_v61 = vld [vmem:[%s4745_s7 + $0x3d4] ss:$24 sps:$4 sm:$0xff]   ;;  %v3916_v62 = vld [vmem:[%s4745_s7 + $0x6c8] ss:$24 sps:$4 sm:$0xff]  }
 0x142   : > { %2844 = vmatprep.subr.bf16.mxu0 %v3831_v63  ;;  %v3919_v63 = vld [vmem:[%s4745_s7 + $0x3d0] ss:$24 sps:$4 sm:$0xff]  }
 0x144   : > { %2759 = vmatpush1.bf16.msra.mxu1 %v3826_v1  ;;  %v3924_v1 = vld [vmem:[%s4745_s7 + $0x6fc] ss:$24 sps:$4 sm:$0xff]  }
 0x145   : > { %2845 = vmatpush1.bf16.msra.mxu0 %v3829_v2  ;;  %2760 = vmatprep.subr.bf16.mxu1 %v3834_v3  ;;  %v3927_v2 = vld [vmem:[%s4745_s7 + $0x404] ss:$24 sps:$4 sm:$0xff]   ;;  %v3922_v3 = vld [vmem:[%s4745_s7 + $0x6f8] ss:$24 sps:$4 sm:$0xff]  }
 0x146   : > { %2846 = vmatprep.subr.bf16.mxu0 %v3837_v4  ;;  %v3925_v4 = vld [vmem:[%s4745_s7 + $0x400] ss:$24 sps:$4 sm:$0xff]  }
 0x148   : > { %2761 = vmatpush1.bf16.msra.mxu1 %v3832_v5  ;;  %v3930_v5 = vld [vmem:[%s4745_s7 + $0x72c] ss:$24 sps:$4 sm:$0xff]  }
 0x149   : > { %2847 = vmatpush1.bf16.msra.mxu0 %v3835_v6  ;;  %2762 = vmatprep.subr.bf16.mxu1 %v3840_v7  ;;  %v3933_v6 = vld [vmem:[%s4745_s7 + $0x434] ss:$24 sps:$4 sm:$0xff]   ;;  %v3928_v7 = vld [vmem:[%s4745_s7 + $0x728] ss:$24 sps:$4 sm:$0xff]  }
 0x14a   : > { %2848 = vmatprep.subr.bf16.mxu0 %v3843_v8  ;;  %v3931_v8 = vld [vmem:[%s4745_s7 + $0x430] ss:$24 sps:$4 sm:$0xff]  }
 0x14c   : > { %2763 = vmatpush1.bf16.msra.mxu1 %v3838_v9  ;;  %v3936_v9 = vld [vmem:[%s4745_s7 + $0x75c] ss:$24 sps:$4 sm:$0xff]  }
 0x14d   : > { %2849 = vmatpush1.bf16.msra.mxu0 %v3841_v10  ;;  %2764 = vmatprep.subr.bf16.mxu1 %v3846_v11  ;;  %v3939_v10 = vld [vmem:[%s4745_s7 + $0x464] ss:$24 sps:$4 sm:$0xff]   ;;  %v3934_v11 = vld [vmem:[%s4745_s7 + $0x758] ss:$24 sps:$4 sm:$0xff]  }
 0x14e   : > { %2850 = vmatprep.subr.bf16.mxu0 %v3849_v12  ;;  %v3937_v12 = vld [vmem:[%s4745_s7 + $0x460] ss:$24 sps:$4 sm:$0xff]  }
 0x150   : > { %2765 = vmatpush1.bf16.msra.mxu1 %v3844_v13  ;;  %v3942_v13 = vld [vmem:[%s4745_s7 + $0x78c] ss:$24 sps:$4 sm:$0xff]  }
 0x151   : > { %2851 = vmatpush1.bf16.msra.mxu0 %v3847_v14  ;;  %2766 = vmatprep.subr.bf16.mxu1 %v3852_v15  ;;  %v3945_v14 = vld [vmem:[%s4745_s7 + $0x494] ss:$24 sps:$4 sm:$0xff]   ;;  %v3940_v15 = vld [vmem:[%s4745_s7 + $0x788] ss:$24 sps:$4 sm:$0xff]  }
 0x152   : > { %2852 = vmatprep.subr.bf16.mxu0 %v3855_v16  ;;  %v3943_v16 = vld [vmem:[%s4745_s7 + $0x490] ss:$24 sps:$4 sm:$0xff]  }
 0x154   : > { %2767 = vmatpush1.bf16.msra.mxu1 %v3850_v17  ;;  %v3948_v17 = vld [vmem:[%s4745_s7 + $0x7bc] ss:$24 sps:$4 sm:$0xff]  }
 0x155   : > { %2853 = vmatpush1.bf16.msra.mxu0 %v3853_v18  ;;  %2768 = vmatprep.subr.bf16.mxu1 %v3858_v19  ;;  %v3951_v18 = vld [vmem:[%s4745_s7 + $0x4c4] ss:$24 sps:$4 sm:$0xff]   ;;  %v3946_v19 = vld [vmem:[%s4745_s7 + $0x7b8] ss:$24 sps:$4 sm:$0xff]  }
 0x156   : > { %2854 = vmatprep.subr.bf16.mxu0 %v3861_v20  ;;  %v3949_v20 = vld [vmem:[%s4745_s7 + $0x4c0] ss:$24 sps:$4 sm:$0xff]  }
 0x158   : > { %2769 = vmatpush1.bf16.msra.mxu1 %v3856_v21  ;;  %v3954_v21 = vld [vmem:[%s4745_s7 + $0x7ec] ss:$24 sps:$4 sm:$0xff]  }
 0x159   : > { %2855 = vmatpush1.bf16.msra.mxu0 %v3859_v22  ;;  %2770 = vmatprep.subr.bf16.mxu1 %v3864_v23  ;;  %v3957_v22 = vld [vmem:[%s4745_s7 + $0x4f4] ss:$24 sps:$4 sm:$0xff]   ;;  %v3952_v23 = vld [vmem:[%s4745_s7 + $0x7e8] ss:$24 sps:$4 sm:$0xff]  }
 0x15a   : > { %2856 = vmatprep.subr.bf16.mxu0 %v3867_v24  ;;  %v3955_v24 = vld [vmem:[%s4745_s7 + $0x4f0] ss:$24 sps:$4 sm:$0xff]  }
 0x15c   : > { %2771 = vmatpush1.bf16.msra.mxu1 %v3862_v25  ;;  %v3960_v25 = vld [vmem:[%s4745_s7 + $0x81c] ss:$24 sps:$4 sm:$0xff]  }
 0x15d   : > { %2857 = vmatpush1.bf16.msra.mxu0 %v3865_v26  ;;  %2772 = vmatprep.subr.bf16.mxu1 %v3870_v27  ;;  %v3963_v26 = vld [vmem:[%s4745_s7 + $0x524] ss:$24 sps:$4 sm:$0xff]   ;;  %v3958_v27 = vld [vmem:[%s4745_s7 + $0x818] ss:$24 sps:$4 sm:$0xff]  }
 0x15e   : > { %2858 = vmatprep.subr.bf16.mxu0 %v3873_v28  ;;  %v3961_v28 = vld [vmem:[%s4745_s7 + $0x520] ss:$24 sps:$4 sm:$0xff]  }
 0x160   : > { %2773 = vmatpush1.bf16.msra.mxu1 %v3868_v29  ;;  %v3966_v29 = vld [vmem:[%s4745_s7 + $0x84c] ss:$24 sps:$4 sm:$0xff]  }
 0x161   : > { %2859 = vmatpush1.bf16.msra.mxu0 %v3871_v30  ;;  %2774 = vmatprep.subr.bf16.mxu1 %v3876_v31  ;;  %v3969_v30 = vld [vmem:[%s4745_s7 + $0x554] ss:$24 sps:$4 sm:$0xff]   ;;  %v3964_v31 = vld [vmem:[%s4745_s7 + $0x848] ss:$24 sps:$4 sm:$0xff]  }
 0x162   : > { %2860 = vmatprep.subr.bf16.mxu0 %v3879_v34  ;;  %v3967_v34 = vld [vmem:[%s4745_s7 + $0x550] ss:$24 sps:$4 sm:$0xff]  }
 0x164   : > { %2775 = vmatpush1.bf16.msra.mxu1 %v3874_v35  ;;  %v3972_v35 = vld [vmem:[%s4745_s7 + $0x87c] ss:$24 sps:$4 sm:$0xff]  }
 0x165   : > { %2861 = vmatpush1.bf16.msra.mxu0 %v3877_v36  ;;  %2776 = vmatprep.subr.bf16.mxu1 %v3882_v37  ;;  %v3975_v36 = vld [vmem:[%s4745_s7 + $0x584] ss:$24 sps:$4 sm:$0xff]   ;;  %v3970_v37 = vld [vmem:[%s4745_s7 + $0x878] ss:$24 sps:$4 sm:$0xff]  }
 0x166   : > { %2862 = vmatprep.subr.bf16.mxu0 %v3885_v40  ;;  %v3973_v40 = vld [vmem:[%s4745_s7 + $0x580] ss:$24 sps:$4 sm:$0xff]  }
 0x168   : > { %2777 = vmatpush1.bf16.msra.mxu1 %v3880_v41  ;;  %v3978_v41 = vld [vmem:[%s4745_s7 + $0x8ac] ss:$24 sps:$4 sm:$0xff]  }
 0x169   : > { %2863 = vmatpush1.bf16.msra.mxu0 %v3883_v42  ;;  %2778 = vmatprep.subr.bf16.mxu1 %v3888_v43  ;;  %v3981_v42 = vld [vmem:[%s4745_s7 + $0x5b4] ss:$24 sps:$4 sm:$0xff]   ;;  %v3976_v43 = vld [vmem:[%s4745_s7 + $0x8a8] ss:$24 sps:$4 sm:$0xff]  }
 0x16a   : > { %2864 = vmatprep.subr.bf16.mxu0 %v3891_v44  ;;  %v3979_v44 = vld [vmem:[%s4745_s7 + $0x5b0] ss:$24 sps:$4 sm:$0xff]  }
 0x16c   : > { %2779 = vmatpush1.bf16.msra.mxu1 %v3886_v46  ;;  %v3984_v46 = vld [vmem:[%s4745_s7 + $0x8dc] ss:$24 sps:$4 sm:$0xff]  }
 0x16d   : > { %2865 = vmatpush1.bf16.msra.mxu0 %v3889_v47  ;;  %2791 = vmatprep.subr.bf16.mxu1 %v3894_v48  ;;  %v3987_v47 = vld [vmem:[%s4745_s7 + $0x5e4] ss:$24 sps:$4 sm:$0xff]   ;;  %v3982_v48 = vld [vmem:[%s4745_s7 + $0x8d8] ss:$24 sps:$4 sm:$0xff]  }
 0x16e   : > { %2877 = vmatprep.subr.bf16.mxu0 %v3897_v49  ;;  %v3985_v49 = vld [vmem:[%s4745_s7 + $0x5e0] ss:$24 sps:$4 sm:$0xff]  }
 0x16f   : > { %2781 = vmatmul.mubr.bf16.vlgmr.msra.gmra.mrb[4].mxu1 %v4821_v39  ;;  %v4060_v39 = vld [vmem:[%s5129_s0 + $0xc] ss:$24 sps:$4 sm:$0xff]  }
 0x170   : > { %2867 = vmatmul.mubr.bf16.vlgmr.msra.gmra.mrb[4].mxu0 %v4816_v38  ;;  %2792 = vmatpush1.bf16.msra.mxu1 %v3892_v50  ;;  %v3904_v38 = vld [vmem:[%s4745_s7 + $0x668] ss:$24 sps:$4 sm:$0xff]   ;;  %v3990_v50 = vld [vmem:[%s4745_s7 + $0x614] ss:$24 sps:$4 sm:$0xff]  }
 0x171   : > { %2878 = vmatpush1.bf16.msra.mxu0 %v3895_v51  ;;  %2793 = vmatprep.subr.bf16.mxu1 %v3900_v52  ;;  %v3988_v51 = vld [vmem:[%s4745_s7 + $0x610] ss:$24 sps:$4 sm:$0xff]   ;;  %v3993_v52 = vld [vmem:[%s4745_s7 + $0x644] ss:$24 sps:$4 sm:$0xff]  }
 0x172   : > { %2879 = vmatprep.subr.bf16.mxu0 %v3903_v53  ;;  %2823 = vmatprep.mubr.bf16.mxu1 %v4853_v0  ;;  %v3910_v0 = vld [vmem:[%s4745_s7 + $0x698] ss:$24 sps:$4 sm:$0xff]   ;;  %v4061_v53 = vld [vmem:[%s5129_s0 + $0x8] ss:$24 sps:$4 sm:$0xff]  }
 0x173   : > { %2909 = vmatprep.mubr.bf16.mxu0 %v4060_v39  ;;  %v3999_v39 = vld [vmem:[%s4745_s7 + $0x6a4] ss:$24 sps:$4 sm:$0xff]  }
 0x174   : > { %2794 = vmatpush1.bf16.msra.mxu1 %v3898_v54  ;;  %v3991_v54 = vld [vmem:[%s4745_s7 + $0x640] ss:$24 sps:$4 sm:$0xff]  }
 0x175   : > { %2880 = vmatpush1.bf16.msra.mxu0 %v3901_v55  ;;  %2795 = vmatprep.subr.bf16.mxu1 %v3906_v56  ;;  %v4062_v55 = vld [vmem:[%s5129_s0 + $0x14] ss:$24 sps:$4 sm:$0xff]  }
 0x176   : > { %2881 = vmatprep.subr.bf16.mxu0 %v3909_v57  ;;  %v3996_v56 = vld [vmem:[%s4745_s7 + $0x674] ss:$24 sps:$4 sm:$0xff]   ;;  %v3994_v57 = vld [vmem:[%s4745_s7 + $0x670] ss:$24 sps:$4 sm:$0xff]  }
 0x178   : > { %2796 = vmatpush1.bf16.msra.mxu1 %v3904_v38  ;;  %v3997_v38 = vld [vmem:[%s4745_s7 + $0x6a0] ss:$24 sps:$4 sm:$0xff]  }
 0x179   : > { %2882 = vmatpush1.bf16.msra.mxu0 %v3907_v58  ;;  %2797 = vmatprep.subr.bf16.mxu1 %v3912_v33  ;;  %v4002_v58 = vld [vmem:[%s4745_s7 + $0x6d4] ss:$24 sps:$4 sm:$0xff]   ;;  %v4000_v33 = vld [vmem:[%s4745_s7 + $0x6d0] ss:$24 sps:$4 sm:$0xff]  }
 0x17a   : > { %2883 = vmatprep.subr.bf16.mxu0 %v3915_v32  ;;  %v4005_v32 = vld [vmem:[%s4745_s7 + $0x704] ss:$24 sps:$4 sm:$0xff]  }
 0x17c   : > { %2798 = vmatpush1.bf16.msra.mxu1 %v3910_v0  ;;  %v4003_v0 = vld [vmem:[%s4745_s7 + $0x700] ss:$24 sps:$4 sm:$0xff]  }
 0x17d   : > { %2884 = vmatpush1.bf16.msra.mxu0 %v3913_v59  ;;  %2799 = vmatprep.subr.bf16.mxu1 %v3918_v60  ;;  %v4008_v59 = vld [vmem:[%s4745_s7 + $0x734] ss:$24 sps:$4 sm:$0xff]  }
 0x17e   : > { %2885 = vmatprep.subr.bf16.mxu0 %v3921_v61 }
 0x180   : > { %2800 = vmatpush1.bf16.msra.mxu1 %v3916_v62  ;;  %v4006_v62 = vld [vmem:[%s4745_s7 + $0x730] ss:$24 sps:$4 sm:$0xff]  }
 0x181   : > { %2886 = vmatpush1.bf16.msra.mxu0 %v3919_v63  ;;  %2801 = vmatprep.subr.bf16.mxu1 %v3924_v1  ;;  %v4011_v1 = vld [vmem:[%s4745_s7 + $0x764] ss:$24 sps:$4 sm:$0xff]  }
 0x182   : > { %2887 = vmatprep.subr.bf16.mxu0 %v3927_v2 }
 0x184   : > { %2802 = vmatpush1.bf16.msra.mxu1 %v3922_v3  ;;  %v4009_v3 = vld [vmem:[%s4745_s7 + $0x760] ss:$24 sps:$4 sm:$0xff]  }
 0x185   : > { %2888 = vmatpush1.bf16.msra.mxu0 %v3925_v4  ;;  %2803 = vmatprep.subr.bf16.mxu1 %v3930_v5  ;;  %v4014_v4 = vld [vmem:[%s4745_s7 + $0x794] ss:$24 sps:$4 sm:$0xff]   ;;  %v4012_v5 = vld [vmem:[%s4745_s7 + $0x790] ss:$24 sps:$4 sm:$0xff]  }
 0x186   : > { %2889 = vmatprep.subr.bf16.mxu0 %v3933_v6  ;;  %v4017_v6 = vld [vmem:[%s4745_s7 + $0x7c4] ss:$24 sps:$4 sm:$0xff]  }
 0x188   : > { %2804 = vmatpush1.bf16.msra.mxu1 %v3928_v7  ;;  %v4015_v7 = vld [vmem:[%s4745_s7 + $0x7c0] ss:$24 sps:$4 sm:$0xff]  }
 0x189   : > { %2890 = vmatpush1.bf16.msra.mxu0 %v3931_v8  ;;  %2805 = vmatprep.subr.bf16.mxu1 %v3936_v9  ;;  %v4020_v8 = vld [vmem:[%s4745_s7 + $0x7f4] ss:$24 sps:$4 sm:$0xff]   ;;  %v4018_v9 = vld [vmem:[%s4745_s7 + $0x7f0] ss:$24 sps:$4 sm:$0xff]  }
 0x18a   : > { %2891 = vmatprep.subr.bf16.mxu0 %v3939_v10  ;;  %v4023_v10 = vld [vmem:[%s4745_s7 + $0x824] ss:$24 sps:$4 sm:$0xff]  }
 0x18c   : > { %2806 = vmatpush1.bf16.msra.mxu1 %v3934_v11  ;;  %v4021_v11 = vld [vmem:[%s4745_s7 + $0x820] ss:$24 sps:$4 sm:$0xff]  }
 0x18d   : > { %2892 = vmatpush1.bf16.msra.mxu0 %v3937_v12  ;;  %2807 = vmatprep.subr.bf16.mxu1 %v3942_v13  ;;  %v4026_v12 = vld [vmem:[%s4745_s7 + $0x854] ss:$24 sps:$4 sm:$0xff]   ;;  %v4024_v13 = vld [vmem:[%s4745_s7 + $0x850] ss:$24 sps:$4 sm:$0xff]  }
 0x18e   : > { %2893 = vmatprep.subr.bf16.mxu0 %v3945_v14  ;;  %v4029_v14 = vld [vmem:[%s4745_s7 + $0x884] ss:$24 sps:$4 sm:$0xff]  }
 0x190   : > { %2808 = vmatpush1.bf16.msra.mxu1 %v3940_v15  ;;  %v4027_v15 = vld [vmem:[%s4745_s7 + $0x880] ss:$24 sps:$4 sm:$0xff]  }
 0x191   : > { %2894 = vmatpush1.bf16.msra.mxu0 %v3943_v16  ;;  %2809 = vmatprep.subr.bf16.mxu1 %v3948_v17  ;;  %v4032_v16 = vld [vmem:[%s4745_s7 + $0x8b4] ss:$24 sps:$4 sm:$0xff]   ;;  %v4030_v17 = vld [vmem:[%s4745_s7 + $0x8b0] ss:$24 sps:$4 sm:$0xff]  }
 0x192   : > { %2895 = vmatprep.subr.bf16.mxu0 %v3951_v18  ;;  %v4035_v18 = vld [vmem:[%s4745_s7 + $0x8e4] ss:$24 sps:$4 sm:$0xff]  }
 0x194   : > { %2810 = vmatpush1.bf16.msra.mxu1 %v3946_v19  ;;  %v4033_v19 = vld [vmem:[%s4745_s7 + $0x8e0] ss:$24 sps:$4 sm:$0xff]   ;;  %s5091_s7 = scalar_lea.vmem [#allocation3], %s3570_s6 }
 0x195   : > { %2896 = vmatpush1.bf16.msra.mxu0 %v3949_v20  ;;  %2811 = vmatprep.subr.bf16.mxu1 %v3954_v21  ;;  %v1076_v20 = vlaneseq }
 0x196   : > { %2897 = vmatprep.subr.bf16.mxu0 %v3957_v22 }
 0x197   : > { %v5078_v21 = vshrl.u32 %v1076_v20, 7 }
 0x198   : > { %2812 = vmatpush1.bf16.msra.mxu1 %v3952_v23  ;;  %v5084_v23 = vld [vmem:[%s777_s5] sm:$0x3f] }
 0x199   : > { %2898 = vmatpush1.bf16.msra.mxu0 %v3955_v24  ;;  %2813 = vmatprep.subr.bf16.mxu1 %v3960_v25  ;;  %v1078_v22 = vsub.s32 0, %v5078_v21  ;;  %v1082_v24 = vsub.s32 1, %v5078_v21 }
 0x19a   : > { %2899 = vmatprep.subr.bf16.mxu0 %v3963_v26 }
 0x19b   : > { %v1079_v25 = vrot.slane %v5084_v23, %v1078_v22  ;;  %v1083_v26 = vrot.slane %v5084_v23, %v1082_v24 }
 0x19c   : > { %2814 = vmatpush1.bf16.msra.mxu1 %v3958_v27 }
 0x19d   : > { %2900 = vmatpush1.bf16.msra.mxu0 %v3961_v28  ;;  %2815 = vmatprep.subr.bf16.mxu1 %v3966_v29 }
 0x19e   : > { %2901 = vmatprep.subr.bf16.mxu0 %v3969_v30 }
 0x1a0   : > { %2816 = vmatpush1.bf16.msra.mxu1 %v3964_v31 }
 0x1a1   : > { %2902 = vmatpush1.bf16.msra.mxu0 %v3967_v34  ;;  %2817 = vmatprep.subr.bf16.mxu1 %v3972_v35 }
 0x1a2   : > { %2903 = vmatprep.subr.bf16.mxu0 %v3975_v36 }
 0x1a4   : > { %2818 = vmatpush1.bf16.msra.mxu1 %v3970_v37 }
 0x1a5   : > { %2904 = vmatpush1.bf16.msra.mxu0 %v3973_v40  ;;  %2819 = vmatprep.subr.bf16.mxu1 %v3978_v41 }
 0x1a6   : > { %2905 = vmatprep.subr.bf16.mxu0 %v3981_v42 }
 0x1a8   : > { %2820 = vmatpush1.bf16.msra.mxu1 %v3976_v43 }
 0x1a9   : > { %2906 = vmatpush1.bf16.msra.mxu0 %v3979_v44  ;;  %2821 = vmatprep.subr.bf16.mxu1 %v3984_v46 }
 0x1aa   : > { %2907 = vmatprep.subr.bf16.mxu0 %v3987_v47 }
 0x1ac   : > { %2822 = vmatpush1.bf16.msra.mxu1 %v3982_v48 }
 0x1ad   : > { %2908 = vmatpush1.bf16.msra.mxu0 %v3985_v49 }
 0x1ae   : > { %2920 = vmatprep.subr.bf16.mxu0 %v3990_v50 }
 0x1af   : > { %2824 = vmatmul.mubr.bf16.vlgmr.msra.gmra.mrb[4].mxu1 %v4899_v45 }
 0x1b0   : > { %2910 = vmatmul.mubr.bf16.vlgmr.msra.gmra.mrb[4].mxu0 %v4061_v53 }
 0x1b1   : > { %2921 = vmatpush1.bf16.msra.mxu0 %v3988_v51  ;;  %2952 = vmatprep.mubr.bf16.mxu0 %v4062_v55 }
 0x1b2   : > { %2922 = vmatprep.subr.bf16.mxu0 %v3993_v52 }
 0x1b5   : > { %2923 = vmatpush1.bf16.msra.mxu0 %v3991_v54 }
 0x1b6   : > { %2924 = vmatprep.subr.bf16.mxu0 %v3996_v56 }
 0x1b9   : > { %2925 = vmatpush1.bf16.msra.mxu0 %v3994_v57 }
 0x1ba   : > { %2926 = vmatprep.subr.bf16.mxu0 %v3999_v39 }
 0x1bd   : > { %2927 = vmatpush1.bf16.msra.mxu0 %v3997_v38 }
 0x1be   : > { %2928 = vmatprep.subr.bf16.mxu0 %v4002_v58 }
 0x1c1   : > { %2929 = vmatpush1.bf16.msra.mxu0 %v4000_v33 }
 0x1c2   : > { %2930 = vmatprep.subr.bf16.mxu0 %v4005_v32  ;;  %v2610_v60 = vpop.f32.mrb[0].mxu1 }
 0x1c3   : > { %v2612_v61 = vpop.f32.mrb[1].mxu1  ;;  %v2611_v27 = vadd.f32 %v2610_v60, %v1079_v25 }
 0x1c4   : > { %v2614_v63 = vpop.f32.mrb[2].mxu1 }
 0x1c5   : > { %2931 = vmatpush1.bf16.msra.mxu0 %v4003_v0  ;;  %v2616_v2 = vpop.f32.mrb[3].mxu1  ;;  %v2615_v28 = vadd.f32 %v2614_v63, %v1079_v25 }
 0x1c6   : > { %2932 = vmatprep.subr.bf16.mxu0 %v4008_v59  ;;  %v2617_v30 = vadd.f32 %v2616_v2, %v1083_v26 }
 0x1c9   : > { %2933 = vmatpush1.bf16.msra.mxu0 %v4006_v62 }
 0x1ca   : > { %2934 = vmatprep.subr.bf16.mxu0 %v4011_v1 }
 0x1cd   : > { %2935 = vmatpush1.bf16.msra.mxu0 %v4009_v3 }
 0x1ce   : > { %2936 = vmatprep.subr.bf16.mxu0 %v4014_v4 }
 0x1d1   : > { %2937 = vmatpush1.bf16.msra.mxu0 %v4012_v5 }
 0x1d2   : > { %2938 = vmatprep.subr.bf16.mxu0 %v4017_v6 }
 0x1d5   : > { %2939 = vmatpush1.bf16.msra.mxu0 %v4015_v7 }
 0x1d6   : > { %2940 = vmatprep.subr.bf16.mxu0 %v4020_v8 }
 0x1d9   : > { %2941 = vmatpush1.bf16.msra.mxu0 %v4018_v9 }
 0x1da   : > { %2942 = vmatprep.subr.bf16.mxu0 %v4023_v10 }
 0x1dd   : > { %2943 = vmatpush1.bf16.msra.mxu0 %v4021_v11 }
 0x1de   : > { %2944 = vmatprep.subr.bf16.mxu0 %v4026_v12 }
 0x1e1   : > { %2945 = vmatpush1.bf16.msra.mxu0 %v4024_v13  ;;  %v1086_v13 = vsub.s32 2, %v5078_v21 }
 0x1e2   : > { %2946 = vmatprep.subr.bf16.mxu0 %v4029_v14  ;;  %v1090_v14 = vsub.s32 3, %v5078_v21 }
 0x1e5   : > { %2947 = vmatpush1.bf16.msra.mxu0 %v4027_v15  ;;  %v1087_v15 = vrot.slane %v5084_v23, %v1086_v13 }
 0x1e6   : > { %2948 = vmatprep.subr.bf16.mxu0 %v4032_v16  ;;  %v1091_v16 = vrot.slane %v5084_v23, %v1090_v14 }
 0x1e9   : > { %2949 = vmatpush1.bf16.msra.mxu0 %v4030_v17 }
 0x1ea   : > { %2950 = vmatprep.subr.bf16.mxu0 %v4035_v18 }
 0x1ed   : > { %2951 = vmatpush1.bf16.msra.mxu0 %v4033_v19 }
 0x1f0   : > { %2953 = vmatmul.mubr.bf16.vlgmr.msra.gmra.mrb[4].mxu0 %v4899_v45  ;;  %v2613_v45 = vadd.f32 %v2612_v61, %v1083_v26 }
 0x203   : > { %v2696_v29 = vpop.f32.mrb[0].mxu0 }
 0x204   : > { %v3533_v31 = vadd.f32 %v2696_v29, %v2611_v27  ;;  %v2698_v34 = vpop.f32.mrb[1].mxu0 }
 0x205   : > { %v3535_v35 = vadd.f32 %v2698_v34, %v2613_v45  ;;  %v2700_v36 = vpop.f32.mrb[2].mxu0 }
 0x206   : > { %v2975_v37 = vmul.f32 0.044715, %v3533_v31  ;;  %v3537_v40 = vadd.f32 %v2700_v36, %v2615_v28  ;;  %v2702_v41 = vpop.f32.mrb[3].mxu0  ;;  %v2963_v60 = vmul.f32 0.5, %v3533_v31 }
 0x207   : > { %v2976_v42 = vmul.f32 0.044715, %v3535_v35  ;;  %v3539_v43 = vadd.f32 %v2702_v41, %v2617_v30  ;;  %v2964_v63 = vmul.f32 0.5, %v3535_v35 }
 0x208   : > { %v2987_v44 = vmul.f32 %v3533_v31, %v2975_v37  ;;  %v2981_v46 = vmul.f32 0.044715, %v3537_v40  ;;  %v2969_v4 = vmul.f32 0.5, %v3537_v40 }
 0x209   : > { %v2988_v47 = vmul.f32 %v3535_v35, %v2976_v42  ;;  %v2982_v48 = vmul.f32 0.044715, %v3539_v43  ;;  %v2970_v7 = vmul.f32 0.5, %v3539_v43 }
 0x20a   : > { %v2999_v49 = vmul.f32 %v3533_v31, %v2987_v44  ;;  %v2993_v50 = vmul.f32 %v3537_v40, %v2981_v46 }
 0x20b   : > { %v3000_v51 = vmul.f32 %v3535_v35, %v2988_v47  ;;  %v2994_v52 = vmul.f32 %v3539_v43, %v2982_v48 }
 0x20c   : > { %v3011_v53 = vadd.f32 %v3533_v31, %v2999_v49  ;;  %v3005_v54 = vmul.f32 %v3537_v40, %v2993_v50 }
 0x20d   : > { %v3012_v55 = vadd.f32 %v3535_v35, %v3000_v51  ;;  %v3006_v56 = vmul.f32 %v3539_v43, %v2994_v52 }
 0x20e   : > { %v3023_v57 = vmul.f32 0.7978846, %v3011_v53  ;;  %v3017_v39 = vadd.f32 %v3537_v40, %v3005_v54 }
 0x20f   : > { %v3024_v38 = vmul.f32 0.7978846, %v3012_v55  ;;  %v3018_v58 = vadd.f32 %v3539_v43, %v3006_v56 }
 0x210   : > { %4036 = vtanh.f32 %v3023_v57  ;;  %v3029_v33 = vmul.f32 0.7978846, %v3017_v39 }
 0x211   : > { %4038 = vtanh.f32 %v3024_v38  ;;  %v3030_v32 = vmul.f32 0.7978846, %v3018_v58 }
 0x212   : > { %4040 = vtanh.f32 %v3029_v33 }
 0x213   : > { %4042 = vtanh.f32 %v3030_v32 }
 0x21a   : > { %v4037_v0 = vpop.eup %4036 }
 0x21b   : > { %v4039_v59 = vpop.eup %4038  ;;  %v3047_v61 = vadd.f32 1.0, %v4037_v0 }
 0x21c   : > { %v4041_v62 = vpop.eup %4040  ;;  %v3048_v1 = vadd.f32 1.0, %v4039_v59 }
 0x21d   : > { %v4043_v2 = vpop.eup %4042  ;;  %v3059_v3 = vmul.f32 %v3047_v61, %v2963_v60  ;;  %v3053_v5 = vadd.f32 1.0, %v4041_v62 }
 0x21e   : > { %v3060_v6 = vmul.f32 %v3048_v1, %v2964_v63  ;;  %v3054_v8 = vadd.f32 1.0, %v4043_v2  ;;  %v1094_v1 = vsub.s32 4, %v5078_v21  ;;  %v1098_v2 = vsub.s32 5, %v5078_v21 }
 0x21f   : > { %v3065_v9 = vmul.f32 %v3053_v5, %v2969_v4 }
 0x220   : > { %v3525_v10 = vpack.c.bf16 %v3060_v6, %v3059_v3  ;;  %v3066_v11 = vmul.f32 %v3054_v8, %v2970_v7  ;;  %v1095_v3 = vrot.slane %v5084_v23, %v1094_v1  ;;  %v1099_v4 = vrot.slane %v5084_v23, %v1098_v2 }
 0x222   : > { %3107 = vst [vmem:[%s5091_s7] sm:$0xff] %v3525_v10  ;;  %v3528_v12 = vpack.c.bf16 %v3066_v11, %v3065_v9 }
 0x224   : > { %3110 = vst [vmem:[%s5091_s7 + $0x18] sm:$0xff] %v3528_v12 }
 0x282   : > { %v2825_v17 = vpop.f32.mrb[4].mxu1 }
 0x283   : > { %v3540_v18 = vadd.f32 %v2825_v17, %v1087_v15  ;;  %v2827_v19 = vpop.f32.mrb[5].mxu1 }
 0x284   : > { %v3541_v20 = vadd.f32 %v2827_v19, %v1091_v16  ;;  %v2829_v22 = vpop.f32.mrb[6].mxu1 }
 0x285   : > { %v2977_v24 = vmul.f32 0.044715, %v3540_v18  ;;  %v3542_v25 = vadd.f32 %v2829_v22, %v1087_v15  ;;  %v2831_v26 = vpop.f32.mrb[7].mxu1  ;;  %v2965_v53 = vmul.f32 0.5, %v3540_v18 }
 0x286   : > { %v2978_v27 = vmul.f32 0.044715, %v3541_v20  ;;  %v3543_v45 = vadd.f32 %v2831_v26, %v1091_v16  ;;  %v2966_v56 = vmul.f32 0.5, %v3541_v20 }
 0x287   : > { %v2989_v28 = vmul.f32 %v3540_v18, %v2977_v24  ;;  %v2983_v29 = vmul.f32 0.044715, %v3542_v25  ;;  %v2971_v58 = vmul.f32 0.5, %v3542_v25 }
 0x288   : > { %v2990_v30 = vmul.f32 %v3541_v20, %v2978_v27  ;;  %v2984_v31 = vmul.f32 0.044715, %v3543_v45  ;;  %v2972_v0 = vmul.f32 0.5, %v3543_v45 }
 0x289   : > { %v3001_v34 = vmul.f32 %v3540_v18, %v2989_v28  ;;  %v2995_v35 = vmul.f32 %v3542_v25, %v2983_v29 }
 0x28a   : > { %v3002_v36 = vmul.f32 %v3541_v20, %v2990_v30  ;;  %v2996_v37 = vmul.f32 %v3543_v45, %v2984_v31 }
 0x28b   : > { %v3013_v40 = vadd.f32 %v3540_v18, %v3001_v34  ;;  %v3007_v41 = vmul.f32 %v3542_v25, %v2995_v35 }
 0x28c   : > { %v3014_v42 = vadd.f32 %v3541_v20, %v3002_v36  ;;  %v3008_v43 = vmul.f32 %v3543_v45, %v2996_v37 }
 0x28d   : > { %v3025_v44 = vmul.f32 0.7978846, %v3013_v40  ;;  %v3019_v46 = vadd.f32 %v3542_v25, %v3007_v41 }
 0x28e   : > { %v3026_v47 = vmul.f32 0.7978846, %v3014_v42  ;;  %v3020_v48 = vadd.f32 %v3543_v45, %v3008_v43 }
 0x28f   : > { %4044 = vtanh.f32 %v3025_v44  ;;  %v3031_v49 = vmul.f32 0.7978846, %v3019_v46 }
 0x290   : > { %4046 = vtanh.f32 %v3026_v47  ;;  %v3032_v50 = vmul.f32 0.7978846, %v3020_v48 }
 0x291   : > { %4048 = vtanh.f32 %v3031_v49 }
 0x292   : > { %4050 = vtanh.f32 %v3032_v50 }
 0x299   : > { %v4045_v51 = vpop.eup %4044 }
 0x29a   : > { %v4047_v52 = vpop.eup %4046  ;;  %v3049_v54 = vadd.f32 1.0, %v4045_v51 }
 0x29b   : > { %v4049_v55 = vpop.eup %4048  ;;  %v3050_v57 = vadd.f32 1.0, %v4047_v52 }
 0x29c   : > { %v4051_v39 = vpop.eup %4050  ;;  %v3061_v38 = vmul.f32 %v3049_v54, %v2965_v53  ;;  %v3055_v33 = vadd.f32 1.0, %v4049_v55  ;;  %v3135_v55 = vld [vmem:[%s5091_s7] sm:$0xff] (%p4138_p5) }
 0x29d   : > { %v3062_v32 = vmul.f32 %v3050_v57, %v2966_v56  ;;  %v3056_v59 = vadd.f32 1.0, %v4051_v39  ;;  %v3141_v39 = vld [vmem:[%s5091_s7 + $0x18] sm:$0xff] (%p4138_p5)  ;;  %3136 = vst [vmem:[%s3122_s9] sm:$0xff] (%p4138_p5), %v3135_v55 }
 0x29e   : > { %v3067_v60 = vmul.f32 %v3055_v33, %v2971_v58  ;;  %3142 = vst [vmem:[%s3122_s9 + $0x60] sm:$0xff] (%p4138_p5), %v3141_v39 }
 0x29f   : > { %v3526_v61 = vpack.c.bf16 %v3062_v32, %v3061_v38  ;;  %v3068_v62 = vmul.f32 %v3056_v59, %v2972_v0 }
 0x2a1   : > { %3108 = vst [vmem:[%s5091_s7 + $0x8] sm:$0xff] %v3526_v61  ;;  %v3529_v63 = vpack.c.bf16 %v3068_v62, %v3067_v60 }
 0x2a3   : > { %3111 = vst [vmem:[%s5091_s7 + $0x20] sm:$0xff] %v3529_v63 }
 0x2a8   : > { %v3137_v56 = vld [vmem:[%s5091_s7 + $0x8] sm:$0xff] (%p4138_p5) }
 0x2a9   : > { %3138 = vst [vmem:[%s3122_s9 + $0x8] sm:$0xff] (%p4138_p5), %v3137_v56 }
 0x2aa   : > { %v3143_v38 = vld [vmem:[%s5091_s7 + $0x20] sm:$0xff] (%p4138_p5) }
 0x2ab   : > { %3144 = vst [vmem:[%s3122_s9 + $0x68] sm:$0xff] (%p4138_p5), %v3143_v38 }
 0x2c3   : > { %v2954_v5 = vpop.f32.mrb[4].mxu0 }
 0x2c4   : > { %v3544_v6 = vadd.f32 %v2954_v5, %v1095_v3  ;;  %v2956_v7 = vpop.f32.mrb[5].mxu0 }
 0x2c5   : > { %v3545_v8 = vadd.f32 %v2956_v7, %v1099_v4  ;;  %v2958_v9 = vpop.f32.mrb[6].mxu0 }
 0x2c6   : > { %v2979_v10 = vmul.f32 0.044715, %v3544_v6  ;;  %v3546_v11 = vadd.f32 %v2958_v9, %v1095_v3  ;;  %v2960_v12 = vpop.f32.mrb[7].mxu0  ;;  %v2967_v36 = vmul.f32 0.5, %v3544_v6 }
 0x2c7   : > { %v2980_v13 = vmul.f32 0.044715, %v3545_v8  ;;  %v3547_v14 = vadd.f32 %v2960_v12, %v1099_v4  ;;  %v2968_v41 = vmul.f32 0.5, %v3545_v8 }
 0x2c8   : > { %v2991_v15 = vmul.f32 %v3544_v6, %v2979_v10  ;;  %v2985_v16 = vmul.f32 0.044715, %v3546_v11  ;;  %v2973_v46 = vmul.f32 0.5, %v3546_v11 }
 0x2c9   : > { %v2992_v17 = vmul.f32 %v3545_v8, %v2980_v13  ;;  %v2986_v18 = vmul.f32 0.044715, %v3547_v14  ;;  %v2974_v49 = vmul.f32 0.5, %v3547_v14 }
 0x2ca   : > { %v3003_v19 = vmul.f32 %v3544_v6, %v2991_v15  ;;  %v2997_v21 = vmul.f32 %v3546_v11, %v2985_v16 }
 0x2cb   : > { %v3004_v20 = vmul.f32 %v3545_v8, %v2992_v17  ;;  %v2998_v22 = vmul.f32 %v3547_v14, %v2986_v18 }
 0x2cc   : > { %v3015_v24 = vadd.f32 %v3544_v6, %v3003_v19  ;;  %v3009_v23 = vmul.f32 %v3546_v11, %v2997_v21 }
 0x2cd   : > { %v3016_v25 = vadd.f32 %v3545_v8, %v3004_v20  ;;  %v3010_v26 = vmul.f32 %v3547_v14, %v2998_v22 }
 0x2ce   : > { %v3027_v27 = vmul.f32 0.7978846, %v3015_v24  ;;  %v3021_v45 = vadd.f32 %v3546_v11, %v3009_v23 }
 0x2cf   : > { %v3028_v28 = vmul.f32 0.7978846, %v3016_v25  ;;  %v3022_v29 = vadd.f32 %v3547_v14, %v3010_v26 }
 0x2d0   : > { %4052 = vtanh.f32 %v3027_v27  ;;  %v3033_v30 = vmul.f32 0.7978846, %v3021_v45 }
 0x2d1   : > { %4054 = vtanh.f32 %v3028_v28  ;;  %v3034_v31 = vmul.f32 0.7978846, %v3022_v29 }
 0x2d2   : > { %4056 = vtanh.f32 %v3033_v30 }
 0x2d3   : > { %4058 = vtanh.f32 %v3034_v31 }
 0x2da   : > { %v4053_v34 = vpop.eup %4052 }
 0x2db   : > { %v4055_v35 = vpop.eup %4054  ;;  %v3051_v37 = vadd.f32 1.0, %v4053_v34 }
 0x2dc   : > { %v4057_v40 = vpop.eup %4056  ;;  %v3052_v42 = vadd.f32 1.0, %v4055_v35 }
 0x2dd   : > { %v4059_v43 = vpop.eup %4058  ;;  %v3063_v44 = vmul.f32 %v3051_v37, %v2967_v36  ;;  %v3057_v47 = vadd.f32 1.0, %v4057_v40 }
 0x2de   : > { %v3064_v48 = vmul.f32 %v3052_v42, %v2968_v41  ;;  %v3058_v50 = vadd.f32 1.0, %v4059_v43  ;;  %3119 = sbr.rel (!%p4138_p5) target bundleno = 749 (0x2ed), region = 59 }
 0x2df   : > { %v3069_v51 = vmul.f32 %v3057_v47, %v2973_v46 }
 0x2e0   : > { %v3527_v52 = vpack.c.bf16 %v3064_v48, %v3063_v44  ;;  %v3070_v53 = vmul.f32 %v3058_v50, %v2974_v49 }
 0x2e2   : > { %3109 = vst [vmem:[%s5091_s7 + $0x10] sm:$0xff] %v3527_v52  ;;  %v3530_v54 = vpack.c.bf16 %v3070_v53, %v3069_v51 }
 0x2e4   : > { %3112 = vst [vmem:[%s5091_s7 + $0x28] sm:$0xff] %v3530_v54 }
 0x2e9   : > { %v3139_v57 = vld [vmem:[%s5091_s7 + $0x10] sm:$0xff] }
 0x2ea   : > { %3140 = vst [vmem:[%s3122_s9 + $0x10] sm:$0xff] %v3139_v57 }
 0x2eb   : > { %v3145_v58 = vld [vmem:[%s5091_s7 + $0x28] sm:$0xff] }
 0x2ec   : > { %3146 = vst [vmem:[%s3122_s9 + $0x70] sm:$0xff] %v3145_v58 }
 0x2ed PF: > { %p10_p11 = scmp.ge.s32.totalorder %s4126_s16, 6   ;;  %s5134_s12 = smov %s4081_s13 }
 0x2ee   : > { %s5135_s13 = smov %s4136_s19  ;;  %s5136_s14 = smov %s4126_s16 }
 0x2ef   :  { %12 = sbr.rel (!%p10_p11) target bundleno = 2 (0x2), region = 116 }

// kernel: bert_class_forward.17
= control target key start
LH: loop header
LB: loop body
LE: loop exit
PB: predicated region body
PF: predicated region fallthrough
CT: control target
= control target key end

     0   :  { %s2336_s21 = smov 0   ;;  %s2338_s22 = smov 0   ;;  %s2655_s0 = inlined_call_operand.vmem [shape: bf16[16,3072], index: 0, kind: input, shape index: {}]   ;;  %s2656_s1 = inlined_call_operand.vmem [shape: bf16[3072,768], index: 1, kind: input, shape index: {}]   ;;  %s2657_s2 = inlined_call_operand.vmem [shape: f32[1,768], index: 2, kind: input, shape index: {}]   ;;  %s2658_s3 = inlined_call_operand.vmem [shape: bf16[16,768], index: 3, kind: input, shape index: {}]   ;;  %s2659_s4 = inlined_call_operand.vmem [shape: f32[1,768], index: 4, kind: input, shape index: {}]   ;;  %s2660_s5 = inlined_call_operand.vmem [shape: f32[1,768], index: 5, kind: input, shape index: {}]   ;;  %s2661_s6 = inlined_call_operand.vmem [shape: bf16[16,768], index: 6, kind: output, shape index: {}]  }
   0x1   :  { %s2340_s23 = smov 0  }
   0x2 LB: > { %s2352_s24 = sadd.s32 4294967295, %s2297_s23   ;;  %s2355_s25 = sadd.s32 1, %s2297_s23   ;;  %s2297_s23 = sphi %s2340_s23, %s2664_s23   ;;  %s2293_s22 = sphi %s2338_s22, %s2663_s22   ;;  %s2289_s21 = sphi %s2336_s21, %s2662_s21  }
   0x3   : > { %s20_s26 = ssub.s32 %s2297_s23, %s2355_s25  ;;  %s23_s27 = sadd.s32 1, %s2293_s22 }
   0x4   : > { %p21_p0 = scmp.eq.s32.totalorder %s20_s26, 0  ;;  %p30_p1 = scmp.ne.s32.totalorder %s2293_s22, %s2289_s21 }
   0x5   : > { %p31_p2 = scmp.eq.s32.totalorder %s2297_s23, 0  ;;  %p1838_p4 = scmp.ge.s32.totalorder %s2297_s23, 8 }
   0x6   : > { %s2364_s28 = scalar_select %p21_p0, %s2293_s22, %s23_s27  }
   0x7   : > { %p32_p3 = por %p31_p2, %p30_p1  ;;  %199 = sbr.rel (%p1838_p4) target bundleno = 21 (0x15), region = 32 }
   0xe   : > { %202 = sbr.rel (!%p32_p3) target bundleno = 21 (0x15), region = 36  ;;  %s204_s29 = sand.u32 (%p32_p3), 1, %s2293_s22  }
   0xf   : > { %s2003_s30 = smul.u32 (%p32_p3), 12, %s2297_s23 }
  0x10   : > { %s2022_s7 = smul.u32 (%p32_p3), 24, %s204_s29 }
  0x11   : > { %s209_s10 = scalar_lea.vmem (%p32_p3), %s2655_s0, %s2003_s30 }
  0x12   : > { %v224_v0 = vld [vmem:[%s209_s10] sm:$0xff] (%p32_p3)  ;;  %v1840_v2 = vld [vmem:[%s209_s10 + $0x8] sm:$0xf] (%p32_p3)  ;;  %s206_s11 = scalar_lea.vmem (%p32_p3), [#allocation3], %s2022_s7 }
  0x13   : > { %v226_v1 = vld [vmem:[%s209_s10 + $0x60] sm:$0xff] (%p32_p3)  ;;  %225 = vst [vmem:[%s206_s11] sm:$0xff] (%p32_p3), %v224_v0  ;;  %1841 = vst [vmem:[%s206_s11 + $0x8] sm:$0xf] (%p32_p3), %v1840_v2  ;;  %v1842_v3 = vld [vmem:[%s209_s10 + $0x68] sm:$0xf] (%p32_p3) }
  0x14   : > { %227 = vst [vmem:[%s206_s11 + $0xc] sm:$0xff] (%p32_p3), %v226_v1  ;;  %1843 = vst [vmem:[%s206_s11 + $0x14] sm:$0xf] (%p32_p3), %v1842_v3 }
  0x15 PF: > { %p1844_p5 = scmp.ge.s32.totalorder %s2297_s23, 1  ;;  %p253_p6 = scmp.lt.s32.totalorder %s2297_s23, 9 }
  0x17   : > { %p254_p7 = pnand %p1844_p5, %p253_p6 }
  0x18   : > { %s260_s12 = sand.u32 (!%p254_p7), 1, %s2289_s21   ;;  %s291_s13 = smul.u32 (!%p254_p7), 48, %s2352_s24 }
  0x19   : > { %257 = sbr.rel (%p254_p7) target bundleno = 766 (0x2fe), region = 66  ;;  %p1846_p9 = scmp.ne.s32.totalorder (!%p254_p7), %s2352_s24, 0 }
  0x1a   : > { %s2023_s14 = smul.u32 (!%p254_p7), 24, %s260_s12  ;;  %p292_p8 = scmp.lt.s32.totalorder (!%p254_p7), %s291_s13, 383 }
  0x1c   : > { %s2381_s19 = scalar_lea.vmem (!%p254_p7), [#allocation3], %s2023_s14 }
  0x20   : > { %s2666_s13 = smov (!%p292_p8, %s291_s13), 383  ;;  %302 = sbr.rel (%p1846_p9) target bundleno = 40 (0x28), region = 74 }
  0x21   : > { %s2024_s15 = smul.u32 24, %s2666_s13  ;;  %v2299_v4 = vmov (!%p1846_p9), 0.0  }
  0x22   : > { %303 = vst [vmem:[#allocation2] sm:$0xff] (!%p1846_p9), %v2299_v4  ;;  %304 = vst [vmem:[#allocation2 + $0x8] sm:$0xff] (!%p1846_p9), %v2299_v4 }
  0x23   : > { %s2379_s18 = scalar_lea.vmem %s2656_s1, %s2024_s15  ;;  %305 = vst [vmem:[#allocation2 + $0x10] sm:$0xff] (!%p1846_p9), %v2299_v4  ;;  %306 = vst [vmem:[#allocation2 + $0x18] sm:$0xff] (!%p1846_p9), %v2299_v4 }
  0x24   : > { %307 = vst [vmem:[#allocation2 + $0x20] sm:$0xff] (!%p1846_p9), %v2299_v4  ;;  %308 = vst [vmem:[#allocation2 + $0x28] sm:$0xff] (!%p1846_p9), %v2299_v4 }
  0x25   : > { %309 = vst [vmem:[#allocation2 + $0x30] sm:$0xff] (!%p1846_p9), %v2299_v4  ;;  %310 = vst [vmem:[#allocation2 + $0x38] sm:$0xff] (!%p1846_p9), %v2299_v4 }
  0x26   : > { %311 = vst [vmem:[#allocation2 + $0x40] sm:$0xff] (!%p1846_p9), %v2299_v4  ;;  %312 = vst [vmem:[#allocation2 + $0x48] sm:$0xff] (!%p1846_p9), %v2299_v4 }
  0x27   : > { %313 = vst [vmem:[#allocation2 + $0x50] sm:$0xff] %v2299_v4  ;;  %314 = vst [vmem:[#allocation2 + $0x58] sm:$0xff] %v2299_v4 }
  0x28 PF: > { %v2051_v5 = vld [vmem:[%s2379_s18 + $0x4] ss:$24 sps:$4 sm:$0xff]   ;;  %v2300_v7 = vmov 0   ;;  %v2055_v8 = vld [vmem:[%s2379_s18] ss:$24 sps:$4 sm:$0xff]   ;;  %p1994_p10 = scmp.ne.s32.totalorder %s2352_s24, 7 }
  0x29   : > { %v2053_v6 = vld [vmem:[%s2379_s18 + $0x304] ss:$24 sps:$4 sm:$0xff]   ;;  %1286 = vmatprep.mubr.bf16.mxu0 %v2300_v7  ;;  %1211 = vmatprep.subr.bf16.mxu1 %v2051_v5  ;;  %v2056_v9 = vld [vmem:[%s2379_s18 + $0x300] ss:$24 sps:$4 sm:$0xff]   ;;  %v2057_v10 = vld [vmem:[%s2379_s18 + $0x34] ss:$24 sps:$4 sm:$0xff]  }
  0x2a   : > { %1254 = vmatprep.subr.bf16.mxu0 %v2053_v6  ;;  %1212 = vmatpush1.bf16.msra.mxu1 %v2055_v8  ;;  %v2059_v11 = vld [vmem:[%s2379_s18 + $0x334] ss:$24 sps:$4 sm:$0xff]   ;;  %v2061_v12 = vld [vmem:[%s2379_s18 + $0x30] ss:$24 sps:$4 sm:$0xff]   ;;  %v2063_v14 = vld [vmem:[%s2379_s18 + $0x64] ss:$24 sps:$4 sm:$0xff]  }
  0x2b   : > { %1255 = vmatpush1.bf16.msra.mxu0 %v2056_v9  ;;  %1213 = vmatprep.subr.bf16.mxu1 %v2057_v10  ;;  %v2062_v13 = vld [vmem:[%s2379_s18 + $0x330] ss:$24 sps:$4 sm:$0xff]   ;;  %v2065_v15 = vld [vmem:[%s2379_s18 + $0x364] ss:$24 sps:$4 sm:$0xff]   ;;  %v2067_v16 = vld [vmem:[%s2379_s18 + $0x60] ss:$24 sps:$4 sm:$0xff]  }
  0x2c   : > { %1256 = vmatprep.subr.bf16.mxu0 %v2059_v11  ;;  %v2068_v17 = vld [vmem:[%s2379_s18 + $0x360] ss:$24 sps:$4 sm:$0xff]   ;;  %v2069_v18 = vld [vmem:[%s2379_s18 + $0x94] ss:$24 sps:$4 sm:$0xff]   ;;  %v2073_v20 = vld [vmem:[%s2379_s18 + $0x90] ss:$24 sps:$4 sm:$0xff]  }
  0x2d   : > { %v2071_v19 = vld [vmem:[%s2379_s18 + $0x394] ss:$24 sps:$4 sm:$0xff]   ;;  %v2074_v21 = vld [vmem:[%s2379_s18 + $0x390] ss:$24 sps:$4 sm:$0xff]   ;;  %v2075_v22 = vld [vmem:[%s2379_s18 + $0xc4] ss:$24 sps:$4 sm:$0xff]  }
  0x2e   : > { %1214 = vmatpush1.bf16.msra.mxu1 %v2061_v12  ;;  %v2077_v23 = vld [vmem:[%s2379_s18 + $0x3c4] ss:$24 sps:$4 sm:$0xff]   ;;  %v2079_v24 = vld [vmem:[%s2379_s18 + $0xc0] ss:$24 sps:$4 sm:$0xff]   ;;  %v2081_v26 = vld [vmem:[%s2379_s18 + $0xf4] ss:$24 sps:$4 sm:$0xff]  }
  0x2f   : > { %1257 = vmatpush1.bf16.msra.mxu0 %v2062_v13  ;;  %1215 = vmatprep.subr.bf16.mxu1 %v2063_v14  ;;  %v2080_v25 = vld [vmem:[%s2379_s18 + $0x3c0] ss:$24 sps:$4 sm:$0xff]   ;;  %v2083_v27 = vld [vmem:[%s2379_s18 + $0x3f4] ss:$24 sps:$4 sm:$0xff]   ;;  %v2085_v28 = vld [vmem:[%s2379_s18 + $0xf0] ss:$24 sps:$4 sm:$0xff]  }
  0x30   : > { %1258 = vmatprep.subr.bf16.mxu0 %v2065_v15  ;;  %v2086_v29 = vld [vmem:[%s2379_s18 + $0x3f0] ss:$24 sps:$4 sm:$0xff]   ;;  %v2087_v30 = vld [vmem:[%s2379_s18 + $0x124] ss:$24 sps:$4 sm:$0xff]   ;;  %v2091_v32 = vld [vmem:[%s2379_s18 + $0x120] ss:$24 sps:$4 sm:$0xff]  }
  0x31   : > { %v2089_v31 = vld [vmem:[%s2379_s18 + $0x424] ss:$24 sps:$4 sm:$0xff]   ;;  %v2092_v33 = vld [vmem:[%s2379_s18 + $0x420] ss:$24 sps:$4 sm:$0xff]   ;;  %v2093_v34 = vld [vmem:[%s2379_s18 + $0x154] ss:$24 sps:$4 sm:$0xff]  }
  0x32   : > { %1216 = vmatpush1.bf16.msra.mxu1 %v2067_v16  ;;  %v2095_v35 = vld [vmem:[%s2379_s18 + $0x454] ss:$24 sps:$4 sm:$0xff]   ;;  %v2097_v36 = vld [vmem:[%s2379_s18 + $0x150] ss:$24 sps:$4 sm:$0xff]   ;;  %v2099_v38 = vld [vmem:[%s2379_s18 + $0x184] ss:$24 sps:$4 sm:$0xff]  }
  0x33   : > { %1259 = vmatpush1.bf16.msra.mxu0 %v2068_v17  ;;  %1217 = vmatprep.subr.bf16.mxu1 %v2069_v18  ;;  %v2098_v37 = vld [vmem:[%s2379_s18 + $0x450] ss:$24 sps:$4 sm:$0xff]   ;;  %v2103_v39 = vld [vmem:[%s2379_s18 + $0x14] ss:$24 sps:$4 sm:$0xff]   ;;  %v2104_v42 = vld [vmem:[%s2379_s18 + $0x180] ss:$24 sps:$4 sm:$0xff]  }
  0x34   : > { %1260 = vmatprep.subr.bf16.mxu0 %v2071_v19  ;;  %v2420_v40 = vld [vmem:[%s2381_s19 + $0x8] ss:$12 sps:$4 sm:$0xff]   ;;  %v2110_v44 = vld [vmem:[%s2379_s18 + $0x44] ss:$24 sps:$4 sm:$0xff]   ;;  %v2157_v16 = vld [vmem:[%s2379_s18 + $0x38] ss:$24 sps:$4 sm:$0xff]  }
  0x35   : > { %v2101_v41 = vld [vmem:[%s2379_s18 + $0x10] ss:$24 sps:$4 sm:$0xff]   ;;  %v2106_v43 = vld [vmem:[%s2379_s18 + $0x1b4] ss:$24 sps:$4 sm:$0xff]   ;;  %v2108_v45 = vld [vmem:[%s2379_s18 + $0x40] ss:$24 sps:$4 sm:$0xff]  }
  0x36   : > { %1218 = vmatpush1.bf16.msra.mxu1 %v2073_v20  ;;  %v2111_v46 = vld [vmem:[%s2379_s18 + $0x1b0] ss:$24 sps:$4 sm:$0xff]   ;;  %v2112_v47 = vld [vmem:[%s2379_s18 + $0x1e4] ss:$24 sps:$4 sm:$0xff]   ;;  %v2116_v48 = vld [vmem:[%s2379_s18 + $0x74] ss:$24 sps:$4 sm:$0xff]  }
  0x37   : > { %1261 = vmatpush1.bf16.msra.mxu0 %v2074_v21  ;;  %1219 = vmatprep.subr.bf16.mxu1 %v2075_v22  ;;  %v2114_v49 = vld [vmem:[%s2379_s18 + $0x70] ss:$24 sps:$4 sm:$0xff]   ;;  %v2117_v50 = vld [vmem:[%s2379_s18 + $0x1e0] ss:$24 sps:$4 sm:$0xff]   ;;  %v2118_v51 = vld [vmem:[%s2379_s18 + $0x214] ss:$24 sps:$4 sm:$0xff]  }
  0x38   : > { %1262 = vmatprep.subr.bf16.mxu0 %v2077_v23  ;;  %v2122_v52 = vld [vmem:[%s2379_s18 + $0xa4] ss:$24 sps:$4 sm:$0xff]   ;;  %v2120_v53 = vld [vmem:[%s2379_s18 + $0xa0] ss:$24 sps:$4 sm:$0xff]   ;;  %v2123_v54 = vld [vmem:[%s2379_s18 + $0x210] ss:$24 sps:$4 sm:$0xff]  }
  0x39   : > { %v2124_v55 = vld [vmem:[%s2379_s18 + $0x244] ss:$24 sps:$4 sm:$0xff]   ;;  %v2128_v57 = vld [vmem:[%s2379_s18 + $0xd4] ss:$24 sps:$4 sm:$0xff]   ;;  %v2126_v58 = vld [vmem:[%s2379_s18 + $0xd0] ss:$24 sps:$4 sm:$0xff]  }
  0x3a   : > { %1220 = vmatpush1.bf16.msra.mxu1 %v2079_v24  ;;  %v2148_v56 = vld [vmem:[%s2381_s19 + $0x4] ss:$12 sps:$4 sm:$0xff]   ;;  %v2129_v59 = vld [vmem:[%s2379_s18 + $0x240] ss:$24 sps:$4 sm:$0xff]   ;;  %v2130_v60 = vld [vmem:[%s2379_s18 + $0x274] ss:$24 sps:$4 sm:$0xff]  }
  0x3b   : > { %1263 = vmatpush1.bf16.msra.mxu0 %v2080_v25  ;;  %1221 = vmatprep.subr.bf16.mxu1 %v2081_v26  ;;  %v2134_v61 = vld [vmem:[%s2379_s18 + $0x104] ss:$24 sps:$4 sm:$0xff]   ;;  %v2132_v62 = vld [vmem:[%s2379_s18 + $0x100] ss:$24 sps:$4 sm:$0xff]   ;;  %v2135_v63 = vld [vmem:[%s2379_s18 + $0x270] ss:$24 sps:$4 sm:$0xff]  }
  0x3c   : > { %1264 = vmatprep.subr.bf16.mxu0 %v2083_v27  ;;  %1243 = vmatprep.mubr.bf16.mxu1 %v2148_v56  ;;  %v2136_v0 = vld [vmem:[%s2379_s18 + $0x2a4] ss:$24 sps:$4 sm:$0xff]   ;;  %v2140_v1 = vld [vmem:[%s2379_s18 + $0x134] ss:$24 sps:$4 sm:$0xff]   ;;  %v2138_v2 = vld [vmem:[%s2379_s18 + $0x130] ss:$24 sps:$4 sm:$0xff]  }
  0x3d   : > { %v2141_v3 = vld [vmem:[%s2379_s18 + $0x2a0] ss:$24 sps:$4 sm:$0xff]   ;;  %v2142_v4 = vld [vmem:[%s2379_s18 + $0x2d4] ss:$24 sps:$4 sm:$0xff]   ;;  %v2146_v5 = vld [vmem:[%s2379_s18 + $0x164] ss:$24 sps:$4 sm:$0xff]  }
  0x3e   : > { %1222 = vmatpush1.bf16.msra.mxu1 %v2085_v28  ;;  %v2144_v6 = vld [vmem:[%s2379_s18 + $0x160] ss:$24 sps:$4 sm:$0xff]   ;;  %v2147_v8 = vld [vmem:[%s2379_s18 + $0x2d0] ss:$24 sps:$4 sm:$0xff]   ;;  %v2153_v9 = vld [vmem:[%s2379_s18 + $0xc] ss:$24 sps:$4 sm:$0xff]  }
  0x3f   : > { %1265 = vmatpush1.bf16.msra.mxu0 %v2086_v29  ;;  %1223 = vmatprep.subr.bf16.mxu1 %v2087_v30  ;;  %v2156_v10 = vld [vmem:[%s2379_s18 + $0x194] ss:$24 sps:$4 sm:$0xff]   ;;  %v2151_v12 = vld [vmem:[%s2379_s18 + $0x8] ss:$24 sps:$4 sm:$0xff]   ;;  %v2162_v15 = vld [vmem:[%s2379_s18 + $0x1c4] ss:$24 sps:$4 sm:$0xff]  }
  0x40   : > { %1266 = vmatprep.subr.bf16.mxu0 %v2089_v31  ;;  %v2457_v11 = vld [vmem:[%s2381_s19] ss:$12 sps:$4 sm:$0xff]   ;;  %v2154_v13 = vld [vmem:[%s2379_s18 + $0x190] ss:$24 sps:$4 sm:$0xff]   ;;  %v2159_v14 = vld [vmem:[%s2379_s18 + $0x3c] ss:$24 sps:$4 sm:$0xff]  }
  0x41   : > { %v2160_v17 = vld [vmem:[%s2379_s18 + $0x1c0] ss:$24 sps:$4 sm:$0xff]   ;;  %v2165_v18 = vld [vmem:[%s2379_s18 + $0x6c] ss:$24 sps:$4 sm:$0xff]   ;;  %v2166_v21 = vld [vmem:[%s2379_s18 + $0x1f0] ss:$24 sps:$4 sm:$0xff]  }
  0x42   : > { %1224 = vmatpush1.bf16.msra.mxu1 %v2091_v32  ;;  %v2168_v19 = vld [vmem:[%s2379_s18 + $0x1f4] ss:$24 sps:$4 sm:$0xff]   ;;  %v2163_v20 = vld [vmem:[%s2379_s18 + $0x68] ss:$24 sps:$4 sm:$0xff]   ;;  %v2174_v23 = vld [vmem:[%s2379_s18 + $0x224] ss:$24 sps:$4 sm:$0xff]  }
  0x43   : > { %1267 = vmatpush1.bf16.msra.mxu0 %v2092_v33  ;;  %1225 = vmatprep.subr.bf16.mxu1 %v2093_v34  ;;  %v2171_v22 = vld [vmem:[%s2379_s18 + $0x9c] ss:$24 sps:$4 sm:$0xff]   ;;  %v2169_v24 = vld [vmem:[%s2379_s18 + $0x98] ss:$24 sps:$4 sm:$0xff]   ;;  %v2177_v26 = vld [vmem:[%s2379_s18 + $0xcc] ss:$24 sps:$4 sm:$0xff]  }
  0x44   : > { %1268 = vmatprep.subr.bf16.mxu0 %v2095_v35  ;;  %v2172_v25 = vld [vmem:[%s2379_s18 + $0x220] ss:$24 sps:$4 sm:$0xff]   ;;  %v2180_v27 = vld [vmem:[%s2379_s18 + $0x254] ss:$24 sps:$4 sm:$0xff]   ;;  %v2178_v29 = vld [vmem:[%s2379_s18 + $0x250] ss:$24 sps:$4 sm:$0xff]  }
  0x45   : > { %v2175_v28 = vld [vmem:[%s2379_s18 + $0xc8] ss:$24 sps:$4 sm:$0xff]   ;;  %v2183_v30 = vld [vmem:[%s2379_s18 + $0xfc] ss:$24 sps:$4 sm:$0xff]   ;;  %v2181_v32 = vld [vmem:[%s2379_s18 + $0xf8] ss:$24 sps:$4 sm:$0xff]  }
  0x46   : > { %1226 = vmatpush1.bf16.msra.mxu1 %v2097_v36  ;;  %v2186_v31 = vld [vmem:[%s2379_s18 + $0x284] ss:$24 sps:$4 sm:$0xff]   ;;  %v2184_v33 = vld [vmem:[%s2379_s18 + $0x280] ss:$24 sps:$4 sm:$0xff]   ;;  %v2192_v35 = vld [vmem:[%s2379_s18 + $0x2b4] ss:$24 sps:$4 sm:$0xff]  }
  0x47   : > { %1269 = vmatpush1.bf16.msra.mxu0 %v2098_v37  ;;  %1227 = vmatprep.subr.bf16.mxu1 %v2099_v38  ;;  %v2189_v34 = vld [vmem:[%s2379_s18 + $0x12c] ss:$24 sps:$4 sm:$0xff]   ;;  %v2187_v36 = vld [vmem:[%s2379_s18 + $0x128] ss:$24 sps:$4 sm:$0xff]   ;;  %v2195_v38 = vld [vmem:[%s2379_s18 + $0x15c] ss:$24 sps:$4 sm:$0xff]  }
  0x48   : > { %1383 = vmatprep.subr.bf16.mxu0 %v2103_v39  ;;  %v2190_v37 = vld [vmem:[%s2379_s18 + $0x2b0] ss:$24 sps:$4 sm:$0xff]   ;;  %v2198_v39 = vld [vmem:[%s2379_s18 + $0x2e4] ss:$24 sps:$4 sm:$0xff]  }
  0x4a   : > { %1287 = vmatmul.mubr.bf16.vlgmr.msra.gmra.mrb[0].mxu0 %v2420_v40  ;;  %1228 = vmatpush1.bf16.msra.mxu1 %v2104_v42  ;;  %v2196_v42 = vld [vmem:[%s2379_s18 + $0x2e0] ss:$24 sps:$4 sm:$0xff]  }
  0x4b   : > { %1384 = vmatpush1.bf16.msra.mxu0 %v2101_v41  ;;  %1229 = vmatprep.subr.bf16.mxu1 %v2106_v43  ;;  %v2193_v41 = vld [vmem:[%s2379_s18 + $0x158] ss:$24 sps:$4 sm:$0xff]   ;;  %v2201_v43 = vld [vmem:[%s2379_s18 + $0x18c] ss:$24 sps:$4 sm:$0xff]  }
  0x4c   : > { %1385 = vmatprep.subr.bf16.mxu0 %v2110_v44  ;;  %1415 = vmatprep.mubr.bf16.mxu0 %v2148_v56  ;;  %v2204_v44 = vld [vmem:[%s2379_s18 + $0x314] ss:$24 sps:$4 sm:$0xff]  }
  0x4e   : > { %1230 = vmatpush1.bf16.msra.mxu1 %v2111_v46  ;;  %v2202_v46 = vld [vmem:[%s2379_s18 + $0x310] ss:$24 sps:$4 sm:$0xff]  }
  0x4f   : > { %1386 = vmatpush1.bf16.msra.mxu0 %v2108_v45  ;;  %1231 = vmatprep.subr.bf16.mxu1 %v2112_v47  ;;  %v2199_v45 = vld [vmem:[%s2379_s18 + $0x188] ss:$24 sps:$4 sm:$0xff]   ;;  %v2207_v47 = vld [vmem:[%s2379_s18 + $0x1bc] ss:$24 sps:$4 sm:$0xff]  }
  0x50   : > { %1387 = vmatprep.subr.bf16.mxu0 %v2116_v48  ;;  %v2210_v48 = vld [vmem:[%s2379_s18 + $0x344] ss:$24 sps:$4 sm:$0xff]  }
  0x52   : > { %1232 = vmatpush1.bf16.msra.mxu1 %v2117_v50  ;;  %v2208_v50 = vld [vmem:[%s2379_s18 + $0x340] ss:$24 sps:$4 sm:$0xff]  }
  0x53   : > { %1388 = vmatpush1.bf16.msra.mxu0 %v2114_v49  ;;  %1233 = vmatprep.subr.bf16.mxu1 %v2118_v51  ;;  %v2205_v49 = vld [vmem:[%s2379_s18 + $0x1b8] ss:$24 sps:$4 sm:$0xff]   ;;  %v2213_v51 = vld [vmem:[%s2379_s18 + $0x1ec] ss:$24 sps:$4 sm:$0xff]  }
  0x54   : > { %1389 = vmatprep.subr.bf16.mxu0 %v2122_v52  ;;  %v2216_v52 = vld [vmem:[%s2379_s18 + $0x374] ss:$24 sps:$4 sm:$0xff]  }
  0x56   : > { %1234 = vmatpush1.bf16.msra.mxu1 %v2123_v54  ;;  %v2214_v54 = vld [vmem:[%s2379_s18 + $0x370] ss:$24 sps:$4 sm:$0xff]  }
  0x57   : > { %1390 = vmatpush1.bf16.msra.mxu0 %v2120_v53  ;;  %1235 = vmatprep.subr.bf16.mxu1 %v2124_v55  ;;  %v2211_v53 = vld [vmem:[%s2379_s18 + $0x1e8] ss:$24 sps:$4 sm:$0xff]   ;;  %v2219_v55 = vld [vmem:[%s2379_s18 + $0x21c] ss:$24 sps:$4 sm:$0xff]  }
  0x58   : > { %1391 = vmatprep.subr.bf16.mxu0 %v2128_v57  ;;  %v2217_v57 = vld [vmem:[%s2379_s18 + $0x218] ss:$24 sps:$4 sm:$0xff]  }
  0x5a   : > { %1236 = vmatpush1.bf16.msra.mxu1 %v2129_v59  ;;  %v2225_v59 = vld [vmem:[%s2379_s18 + $0x24c] ss:$24 sps:$4 sm:$0xff]  }
  0x5b   : > { %1392 = vmatpush1.bf16.msra.mxu0 %v2126_v58  ;;  %1237 = vmatprep.subr.bf16.mxu1 %v2130_v60  ;;  %v2220_v58 = vld [vmem:[%s2379_s18 + $0x3a0] ss:$24 sps:$4 sm:$0xff]   ;;  %v2228_v60 = vld [vmem:[%s2379_s18 + $0x3d4] ss:$24 sps:$4 sm:$0xff]  }
  0x5c   : > { %1393 = vmatprep.subr.bf16.mxu0 %v2134_v61  ;;  %v2223_v61 = vld [vmem:[%s2379_s18 + $0x248] ss:$24 sps:$4 sm:$0xff]  }
  0x5e   : > { %1238 = vmatpush1.bf16.msra.mxu1 %v2135_v63  ;;  %v2231_v63 = vld [vmem:[%s2379_s18 + $0x27c] ss:$24 sps:$4 sm:$0xff]  }
  0x5f   : > { %1394 = vmatpush1.bf16.msra.mxu0 %v2132_v62  ;;  %1239 = vmatprep.subr.bf16.mxu1 %v2136_v0  ;;  %v2226_v62 = vld [vmem:[%s2379_s18 + $0x3d0] ss:$24 sps:$4 sm:$0xff]   ;;  %v2234_v0 = vld [vmem:[%s2379_s18 + $0x404] ss:$24 sps:$4 sm:$0xff]  }
  0x60   : > { %1395 = vmatprep.subr.bf16.mxu0 %v2140_v1  ;;  %v2229_v1 = vld [vmem:[%s2379_s18 + $0x278] ss:$24 sps:$4 sm:$0xff]  }
  0x62   : > { %1240 = vmatpush1.bf16.msra.mxu1 %v2141_v3  ;;  %v2237_v3 = vld [vmem:[%s2379_s18 + $0x2ac] ss:$24 sps:$4 sm:$0xff]  }
  0x63   : > { %1396 = vmatpush1.bf16.msra.mxu0 %v2138_v2  ;;  %1241 = vmatprep.subr.bf16.mxu1 %v2142_v4  ;;  %v2232_v2 = vld [vmem:[%s2379_s18 + $0x400] ss:$24 sps:$4 sm:$0xff]   ;;  %v2240_v4 = vld [vmem:[%s2379_s18 + $0x434] ss:$24 sps:$4 sm:$0xff]  }
  0x64   : > { %1397 = vmatprep.subr.bf16.mxu0 %v2146_v5  ;;  %v2235_v5 = vld [vmem:[%s2379_s18 + $0x2a8] ss:$24 sps:$4 sm:$0xff]  }
  0x66   : > { %1242 = vmatpush1.bf16.msra.mxu1 %v2147_v8  ;;  %v2243_v8 = vld [vmem:[%s2379_s18 + $0x2dc] ss:$24 sps:$4 sm:$0xff]  }
  0x67   : > { %1398 = vmatpush1.bf16.msra.mxu0 %v2144_v6  ;;  %1297 = vmatprep.subr.bf16.mxu1 %v2153_v9  ;;  %v2238_v6 = vld [vmem:[%s2379_s18 + $0x430] ss:$24 sps:$4 sm:$0xff]   ;;  %v2246_v9 = vld [vmem:[%s2379_s18 + $0x464] ss:$24 sps:$4 sm:$0xff]  }
  0x68   : > { %1399 = vmatprep.subr.bf16.mxu0 %v2156_v10  ;;  %v2241_v10 = vld [vmem:[%s2379_s18 + $0x2d8] ss:$24 sps:$4 sm:$0xff]  }
  0x69   : > { %1244 = vmatmul.mubr.bf16.vlgmr.msra.gmra.mrb[0].mxu1 %v2457_v11 }
  0x6a   : > { %1298 = vmatpush1.bf16.msra.mxu1 %v2151_v12  ;;  %1329 = vmatprep.mubr.bf16.mxu1 %v2148_v56  ;;  %v2222_v56 = vld [vmem:[%s2379_s18 + $0x3a4] ss:$24 sps:$4 sm:$0xff]   ;;  %v2244_v12 = vld [vmem:[%s2379_s18 + $0x460] ss:$24 sps:$4 sm:$0xff]  }
  0x6b   : > { %1400 = vmatpush1.bf16.msra.mxu0 %v2154_v13  ;;  %1299 = vmatprep.subr.bf16.mxu1 %v2159_v14  ;;  %v2249_v13 = vld [vmem:[%s2379_s18 + $0x30c] ss:$24 sps:$4 sm:$0xff]   ;;  %v2247_v14 = vld [vmem:[%s2379_s18 + $0x308] ss:$24 sps:$4 sm:$0xff]  }
  0x6c   : > { %1401 = vmatprep.subr.bf16.mxu0 %v2162_v15  ;;  %v2252_v15 = vld [vmem:[%s2379_s18 + $0x33c] ss:$24 sps:$4 sm:$0xff]  }
  0x6e   : > { %1300 = vmatpush1.bf16.msra.mxu1 %v2157_v16  ;;  %v2250_v16 = vld [vmem:[%s2379_s18 + $0x338] ss:$24 sps:$4 sm:$0xff]  }
  0x6f   : > { %1402 = vmatpush1.bf16.msra.mxu0 %v2160_v17  ;;  %1301 = vmatprep.subr.bf16.mxu1 %v2165_v18  ;;  %v2255_v17 = vld [vmem:[%s2379_s18 + $0x36c] ss:$24 sps:$4 sm:$0xff]   ;;  %v2253_v18 = vld [vmem:[%s2379_s18 + $0x368] ss:$24 sps:$4 sm:$0xff]  }
  0x70   : > { %1403 = vmatprep.subr.bf16.mxu0 %v2168_v19  ;;  %v2258_v19 = vld [vmem:[%s2379_s18 + $0x39c] ss:$24 sps:$4 sm:$0xff]  }
  0x72   : > { %1302 = vmatpush1.bf16.msra.mxu1 %v2163_v20  ;;  %v2256_v20 = vld [vmem:[%s2379_s18 + $0x398] ss:$24 sps:$4 sm:$0xff]  }
  0x73   : > { %1404 = vmatpush1.bf16.msra.mxu0 %v2166_v21  ;;  %1303 = vmatprep.subr.bf16.mxu1 %v2171_v22  ;;  %v2259_v21 = vld [vmem:[%s2379_s18 + $0x3c8] ss:$24 sps:$4 sm:$0xff]   ;;  %v2264_v22 = vld [vmem:[%s2379_s18 + $0x3fc] ss:$24 sps:$4 sm:$0xff]  }
  0x74   : > { %1405 = vmatprep.subr.bf16.mxu0 %v2174_v23  ;;  %v2267_v23 = vld [vmem:[%s2379_s18 + $0x42c] ss:$24 sps:$4 sm:$0xff]  }
  0x76   : > { %1304 = vmatpush1.bf16.msra.mxu1 %v2169_v24  ;;  %v2265_v24 = vld [vmem:[%s2379_s18 + $0x428] ss:$24 sps:$4 sm:$0xff]  }
  0x77   : > { %1406 = vmatpush1.bf16.msra.mxu0 %v2172_v25  ;;  %1305 = vmatprep.subr.bf16.mxu1 %v2177_v26  ;;  %v2270_v25 = vld [vmem:[%s2379_s18 + $0x45c] ss:$24 sps:$4 sm:$0xff]   ;;  %v2268_v26 = vld [vmem:[%s2379_s18 + $0x458] ss:$24 sps:$4 sm:$0xff]  }
  0x78   : > { %1407 = vmatprep.subr.bf16.mxu0 %v2180_v27 }
  0x7a   : > { %1306 = vmatpush1.bf16.msra.mxu1 %v2175_v28 }
  0x7b   : > { %1408 = vmatpush1.bf16.msra.mxu0 %v2178_v29  ;;  %1307 = vmatprep.subr.bf16.mxu1 %v2183_v30 }
  0x7c   : > { %1409 = vmatprep.subr.bf16.mxu0 %v2186_v31  ;;  %v315_v31 = vld [vmem:[#allocation2] sm:$0xff] }
  0x7e   : > { %1308 = vmatpush1.bf16.msra.mxu1 %v2181_v32 }
  0x7f   : > { %1410 = vmatpush1.bf16.msra.mxu0 %v2184_v33  ;;  %1309 = vmatprep.subr.bf16.mxu1 %v2189_v34  ;;  %v316_v34 = vld [vmem:[#allocation2 + $0x8] sm:$0xff] }
  0x80   : > { %1411 = vmatprep.subr.bf16.mxu0 %v2192_v35 }
  0x82   : > { %1310 = vmatpush1.bf16.msra.mxu1 %v2187_v36 }
  0x83   : > { %1412 = vmatpush1.bf16.msra.mxu0 %v2190_v37  ;;  %1311 = vmatprep.subr.bf16.mxu1 %v2195_v38  ;;  %v321_v37 = vld [vmem:[#allocation2 + $0x30] sm:$0xff] }
  0x84   : > { %1413 = vmatprep.subr.bf16.mxu0 %v2198_v39 }
  0x86   : > { %1312 = vmatpush1.bf16.msra.mxu1 %v2193_v41 }
  0x87   : > { %1414 = vmatpush1.bf16.msra.mxu0 %v2196_v42  ;;  %1313 = vmatprep.subr.bf16.mxu1 %v2201_v43  ;;  %v322_v42 = vld [vmem:[#allocation2 + $0x38] sm:$0xff] }
  0x88   : > { %1426 = vmatprep.subr.bf16.mxu0 %v2204_v44 }
  0x8a   : > { %1416 = vmatmul.mubr.bf16.vlgmr.msra.gmra.mrb[4].mxu0 %v2457_v11  ;;  %1314 = vmatpush1.bf16.msra.mxu1 %v2199_v45 }
  0x8b   : > { %1427 = vmatpush1.bf16.msra.mxu0 %v2202_v46  ;;  %1315 = vmatprep.subr.bf16.mxu1 %v2207_v47  ;;  %v319_v47 = vld [vmem:[#allocation2 + $0x20] sm:$0xff] }
  0x8c   : > { %1428 = vmatprep.subr.bf16.mxu0 %v2210_v48  ;;  %1458 = vmatprep.mubr.bf16.mxu0 %v2300_v7  ;;  %v320_v48 = vld [vmem:[#allocation2 + $0x28] sm:$0xff] }
  0x8e   : > { %1316 = vmatpush1.bf16.msra.mxu1 %v2205_v49 }
  0x8f   : > { %1429 = vmatpush1.bf16.msra.mxu0 %v2208_v50  ;;  %1317 = vmatprep.subr.bf16.mxu1 %v2213_v51  ;;  %v325_v50 = vld [vmem:[#allocation2 + $0x50] sm:$0xff] }
  0x90   : > { %1430 = vmatprep.subr.bf16.mxu0 %v2216_v52 }
  0x92   : > { %1318 = vmatpush1.bf16.msra.mxu1 %v2211_v53  ;;  %v326_v53 = vld [vmem:[#allocation2 + $0x58] sm:$0xff] }
  0x93   : > { %1431 = vmatpush1.bf16.msra.mxu0 %v2214_v54  ;;  %1319 = vmatprep.subr.bf16.mxu1 %v2219_v55 }
  0x94   : > { %1432 = vmatprep.subr.bf16.mxu0 %v2222_v56 }
  0x96   : > { %1320 = vmatpush1.bf16.msra.mxu1 %v2217_v57 }
  0x97   : > { %1433 = vmatpush1.bf16.msra.mxu0 %v2220_v58  ;;  %1321 = vmatprep.subr.bf16.mxu1 %v2225_v59  ;;  %v317_v59 = vld [vmem:[#allocation2 + $0x10] sm:$0xff] }
  0x98   : > { %1434 = vmatprep.subr.bf16.mxu0 %v2228_v60  ;;  %v318_v60 = vld [vmem:[#allocation2 + $0x18] sm:$0xff] }
  0x9a   : > { %1322 = vmatpush1.bf16.msra.mxu1 %v2223_v61 }
  0x9b   : > { %1435 = vmatpush1.bf16.msra.mxu0 %v2226_v62  ;;  %1323 = vmatprep.subr.bf16.mxu1 %v2231_v63  ;;  %v323_v62 = vld [vmem:[#allocation2 + $0x40] sm:$0xff] }
  0x9c   : > { %1436 = vmatprep.subr.bf16.mxu0 %v2234_v0 }
  0x9e   : > { %1324 = vmatpush1.bf16.msra.mxu1 %v2229_v1  ;;  %v324_v1 = vld [vmem:[#allocation2 + $0x48] sm:$0xff] }
  0x9f   : > { %1437 = vmatpush1.bf16.msra.mxu0 %v2232_v2  ;;  %1325 = vmatprep.subr.bf16.mxu1 %v2237_v3 }
  0xa0   : > { %1438 = vmatprep.subr.bf16.mxu0 %v2240_v4 }
  0xa2   : > { %1326 = vmatpush1.bf16.msra.mxu1 %v2235_v5 }
  0xa3   : > { %1439 = vmatpush1.bf16.msra.mxu0 %v2238_v6  ;;  %1327 = vmatprep.subr.bf16.mxu1 %v2243_v8  ;;  %v1511_v8 = vlaneseq (!%p1994_p10) }
  0xa4   : > { %1440 = vmatprep.subr.bf16.mxu0 %v2246_v9 }
  0xa5   : > { %v1512_v9 = vshrl.u32 (!%p1994_p10), %v1511_v8, 7 }
  0xa6   : > { %1328 = vmatpush1.bf16.msra.mxu1 %v2241_v10  ;;  %v1553_v10 = vld [vmem:[%s2658_s3] sm:$0xff] (!%p1994_p10) }
  0xa7   : > { %1441 = vmatpush1.bf16.msra.mxu0 %v2244_v12  ;;  %1340 = vmatprep.subr.bf16.mxu1 %v2249_v13  ;;  %v1554_v12 = vld [vmem:[%s2658_s3 + $0x8] sm:$0xff] (!%p1994_p10)  ;;  %v1509_v13 = vld [vmem:[%s2657_s2] sm:$0x3f] (!%p1994_p10) }
  0xa9   : > { %1330 = vmatmul.mubr.bf16.vlgmr.msra.gmra.mrb[4].mxu1 %v2457_v11  ;;  %v2261_v11 = vld [vmem:[%s2379_s18 + $0x3cc] ss:$24 sps:$4 sm:$0xff]  }
  0xaa   : > { %1459 = vmatmul.mubr.bf16.vlgmr.msra.gmra.mrb[4].mxu0 %v2420_v40  ;;  %1341 = vmatpush1.bf16.msra.mxu1 %v2247_v14  ;;  %v1559_v14 = vunpack.c.l.bf16 (!%p1994_p10), %v1553_v10 }
  0xab   : > { %1372 = vmatprep.mubr.bf16.mxu1 %v2300_v7  ;;  %1342 = vmatprep.subr.bf16.mxu1 %v2252_v15  ;;  %v2262_v7 = vld [vmem:[%s2379_s18 + $0x3f8] ss:$24 sps:$4 sm:$0xff]  }
  0xae   : > { %1343 = vmatpush1.bf16.msra.mxu1 %v2250_v16  ;;  %v2554_v16 = vsub.s32 (!%p1994_p10), 0, %v1512_v9 }
  0xaf   : > { %1344 = vmatprep.subr.bf16.mxu1 %v2255_v17  ;;  %v2556_v17 = vsub.s32 (!%p1994_p10), 1, %v1512_v9 }
  0xb2   : > { %1345 = vmatpush1.bf16.msra.mxu1 %v2253_v18  ;;  %v2558_v18 = vsub.s32 (!%p1994_p10), 2, %v1512_v9 }
  0xb3   : > { %1346 = vmatprep.subr.bf16.mxu1 %v2258_v19  ;;  %v2560_v19 = vsub.s32 (!%p1994_p10), 3, %v1512_v9 }
  0xb6   : > { %1347 = vmatpush1.bf16.msra.mxu1 %v2256_v20 }
  0xb7   : > { %1348 = vmatprep.subr.bf16.mxu1 %v2261_v11 }
  0xba   : > { %1349 = vmatpush1.bf16.msra.mxu1 %v2259_v21 }
  0xbb   : > { %1350 = vmatprep.subr.bf16.mxu1 %v2264_v22  ;;  %v2562_v22 = vsub.s32 (!%p1994_p10), 4, %v1512_v9 }
  0xbe   : > { %1351 = vmatpush1.bf16.msra.mxu1 %v2262_v7  ;;  %v2564_v7 = vsub.s32 (!%p1994_p10), 5, %v1512_v9 }
  0xbf   : > { %1352 = vmatprep.subr.bf16.mxu1 %v2267_v23  ;;  %v1560_v23 = vunpack.c.h.bf16 (!%p1994_p10), %v1553_v10 }
  0xc2   : > { %1353 = vmatpush1.bf16.msra.mxu1 %v2265_v24  ;;  %v1561_v24 = vunpack.c.l.bf16 (!%p1994_p10), %v1554_v12 }
  0xc3   : > { %1354 = vmatprep.subr.bf16.mxu1 %v2270_v25  ;;  %v1514_v25 = vrot.slane (!%p1994_p10), %v1509_v13, %v2554_v16 }
  0xc6   : > { %1355 = vmatpush1.bf16.msra.mxu1 %v2268_v26  ;;  %v1518_v26 = vrot.slane (!%p1994_p10), %v1509_v13, %v2556_v17 }
  0xc9   : > { %1373 = vmatmul.mubr.bf16.vlgmr.msra.gmra.mrb[4].mxu1 %v2420_v40 }
 0x11d   : > { %v1288_v27 = vpop.f32.mrb[0].mxu0 }
 0x11e   : > { %v1290_v28 = vpop.f32.mrb[1].mxu0 }
 0x11f   : > { %v1292_v29 = vpop.f32.mrb[2].mxu0 }
 0x120   : > { %v1294_v30 = vpop.f32.mrb[3].mxu0 }
 0x13c   : > { %v1245_v32 = vpop.f32.mrb[0].mxu1 }
 0x13d   : > { %v1289_v33 = vadd.f32 %v1288_v27, %v1245_v32  ;;  %v1247_v35 = vpop.f32.mrb[1].mxu1  ;;  %v1522_v27 = vrot.slane (!%p1994_p10), %v1509_v13, %v2558_v18  ;;  %v1534_v32 = vrot.slane (!%p1994_p10), %v1509_v13, %v2564_v7 }
 0x13e   : > { %v1291_v36 = vadd.f32 %v1290_v28, %v1247_v35  ;;  %v1249_v38 = vpop.f32.mrb[2].mxu1  ;;  %v1526_v28 = vrot.slane (!%p1994_p10), %v1509_v13, %v2560_v19 }
 0x13f   : > { %v1469_v39 = vadd.f32 %v1289_v33, %v315_v31  ;;  %v1293_v41 = vadd.f32 %v1292_v29, %v1249_v38  ;;  %v1251_v43 = vpop.f32.mrb[3].mxu1  ;;  %v1555_v29 = vld [vmem:[%s2658_s3 + $0x10] sm:$0xff] (!%p1994_p10)  ;;  %v1530_v31 = vrot.slane (!%p1994_p10), %v1509_v13, %v2562_v22  ;;  %v1562_v33 = vunpack.c.h.bf16 (!%p1994_p10), %v1554_v12 }
 0x140   : > { %v1470_v44 = vadd.f32 %v1291_v36, %v316_v34  ;;  %v1295_v45 = vadd.f32 %v1294_v30, %v1251_v43 }
 0x141   : > { %1481 = vst [vmem:[#allocation2] sm:$0xff] %v1469_v39  ;;  %v1475_v40 = vadd.f32 %v1293_v41, %v321_v37  ;;  %v1563_v39 = vunpack.c.l.bf16 (!%p1994_p10), %v1555_v29 }
 0x142   : > { %1482 = vst [vmem:[#allocation2 + $0x8] sm:$0xff] %v1470_v44  ;;  %v1476_v46 = vadd.f32 %v1295_v45, %v322_v42 }
 0x143   : > { %1487 = vst [vmem:[#allocation2 + $0x30] sm:$0xff] %v1475_v40 }
 0x144   : > { %1488 = vst [vmem:[#allocation2 + $0x38] sm:$0xff] %v1476_v46 }
 0x148   : > { %v1497_v15 = vld [vmem:[#allocation2] sm:$0xff] (!%p1994_p10) }
 0x149   : > { %v1498_v20 = vld [vmem:[#allocation2 + $0x8] sm:$0xff] (!%p1994_p10)  ;;  %v1541_v34 = vadd.f32 (!%p1994_p10), %v1514_v25, %v1497_v15 }
 0x14a   : > { %v1542_v35 = vadd.f32 (!%p1994_p10), %v1518_v26, %v1498_v20  ;;  %v1503_v45 = vld [vmem:[#allocation2 + $0x30] sm:$0xff] (!%p1994_p10) }
 0x14b   : > { %v1571_v42 = vadd.f32 (!%p1994_p10), %v1559_v14, %v1541_v34  ;;  %v1504_v40 = vld [vmem:[#allocation2 + $0x38] sm:$0xff] (!%p1994_p10) }
 0x14c   : > { %v1572_v43 = vadd.f32 (!%p1994_p10), %v1560_v23, %v1542_v35 }
 0x17d   : > { %v1460_v49 = vpop.f32.mrb[4].mxu0 }
 0x17e   : > { %v1473_v51 = vadd.f32 %v1460_v49, %v319_v47  ;;  %v1462_v52 = vpop.f32.mrb[5].mxu0 }
 0x17f   : > { %v1474_v54 = vadd.f32 %v1462_v52, %v320_v48  ;;  %v1464_v55 = vpop.f32.mrb[6].mxu0  ;;  %v1564_v48 = vunpack.c.h.bf16 (!%p1994_p10), %v1555_v29  ;;  %v1556_v52 = vld [vmem:[%s2658_s3 + $0x18] sm:$0xff] (!%p1994_p10) }
 0x180   : > { %1485 = vst [vmem:[#allocation2 + $0x20] sm:$0xff] %v1473_v51  ;;  %v1479_v56 = vadd.f32 %v1464_v55, %v325_v50  ;;  %v1466_v57 = vpop.f32.mrb[7].mxu0  ;;  %v1583_v50 = vadd.f32 (!%p1994_p10), %v1572_v43, %v1571_v42 }
 0x181   : > { %1486 = vst [vmem:[#allocation2 + $0x28] sm:$0xff] %v1474_v54  ;;  %v1480_v58 = vadd.f32 %v1466_v57, %v326_v53  ;;  %v1547_v53 = vadd.f32 (!%p1994_p10), %v1514_v25, %v1503_v45  ;;  %v1557_v54 = vld [vmem:[%s2658_s3 + $0x20] sm:$0xff] (!%p1994_p10) }
 0x182   : > { %1491 = vst [vmem:[#allocation2 + $0x50] sm:$0xff] %v1479_v56 }
 0x183   : > { %1492 = vst [vmem:[#allocation2 + $0x58] sm:$0xff] %v1480_v58  ;;  %v1548_v58 = vadd.f32 (!%p1994_p10), %v1518_v26, %v1504_v40 }
 0x187   : > { %v1501_v30 = vld [vmem:[#allocation2 + $0x20] sm:$0xff] (!%p1994_p10) }
 0x188   : > { %v1502_v38 = vld [vmem:[#allocation2 + $0x28] sm:$0xff] (!%p1994_p10)  ;;  %v1545_v41 = vadd.f32 (!%p1994_p10), %v1530_v31, %v1501_v30 }
 0x189   : > { %v1546_v47 = vadd.f32 (!%p1994_p10), %v1534_v32, %v1502_v38  ;;  %v1507_v57 = vld [vmem:[#allocation2 + $0x50] sm:$0xff] (!%p1994_p10) }
 0x18a   : > { %v1575_v55 = vadd.f32 (!%p1994_p10), %v1563_v39, %v1545_v41 }
 0x19c   : > { %v1374_v61 = vpop.f32.mrb[4].mxu1  ;;  %1496 = sbr.rel (%p1994_p10) target bundleno = 766 (0x2fe), region = 78 }
 0x19d   : > { %v1471_v63 = vadd.f32 %v1374_v61, %v317_v59  ;;  %v1376_v0 = vpop.f32.mrb[5].mxu1 }
 0x19e   : > { %v1472_v2 = vadd.f32 %v1376_v0, %v318_v60  ;;  %v1378_v3 = vpop.f32.mrb[6].mxu1  ;;  %v1558_v60 = vld [vmem:[%s2658_s3 + $0x28] sm:$0xff] (!%p1994_p10)  ;;  %v1576_v0 = vadd.f32 (!%p1994_p10), %v1564_v48, %v1546_v47 }
 0x19f   : > { %1483 = vst [vmem:[#allocation2 + $0x10] sm:$0xff] %v1471_v63  ;;  %v1477_v4 = vadd.f32 %v1378_v3, %v323_v62  ;;  %v1380_v5 = vpop.f32.mrb[7].mxu1  ;;  %v1565_v62 = vunpack.c.l.bf16 (!%p1994_p10), %v1556_v52  ;;  %v1566_v63 = vunpack.c.h.bf16 (!%p1994_p10), %v1556_v52  ;;  %v1567_v3 = vunpack.c.l.bf16 (!%p1994_p10), %v1557_v54 }
 0x1a0   : > { %1484 = vst [vmem:[#allocation2 + $0x18] sm:$0xff] %v1472_v2  ;;  %v1478_v6 = vadd.f32 %v1380_v5, %v324_v1  ;;  %v1508_v2 = vld [vmem:[#allocation2 + $0x58] sm:$0xff] (!%p1994_p10)  ;;  %v1551_v5 = vadd.f32 (!%p1994_p10), %v1530_v31, %v1507_v57  ;;  %v1570_v14 = vunpack.c.h.bf16 (!%p1994_p10), %v1558_v60 }
 0x1a1   : > { %1489 = vst [vmem:[#allocation2 + $0x40] sm:$0xff] %v1477_v4  ;;  %v1568_v4 = vunpack.c.h.bf16 (!%p1994_p10), %v1557_v54  ;;  %v1577_v8 = vadd.f32 (!%p1994_p10), %v1565_v62, %v1547_v53  ;;  %v1578_v9 = vadd.f32 (!%p1994_p10), %v1566_v63, %v1548_v58  ;;  %v1552_v13 = vadd.f32 (!%p1994_p10), %v1534_v32, %v1508_v2 }
 0x1a2   : > { %1490 = vst [vmem:[#allocation2 + $0x48] sm:$0xff] %v1478_v6  ;;  %v1569_v6 = vunpack.c.l.bf16 (!%p1994_p10), %v1558_v60 }
 0x1a3   : > { %v1590_v20 = vadd.f32 %v1578_v9, %v1577_v8 }
 0x1a6   : > { %v1499_v11 = vld [vmem:[#allocation2 + $0x10] sm:$0xff] }
 0x1a7   : > { %v1500_v21 = vld [vmem:[#allocation2 + $0x18] sm:$0xff]  ;;  %v1543_v36 = vadd.f32 %v1522_v27, %v1499_v11 }
 0x1a8   : > { %v1544_v37 = vadd.f32 %v1526_v28, %v1500_v21  ;;  %v1505_v46 = vld [vmem:[#allocation2 + $0x40] sm:$0xff]  ;;  %v1581_v21 = vadd.f32 %v1569_v6, %v1551_v5 }
 0x1a9   : > { %v1573_v44 = vadd.f32 %v1561_v24, %v1543_v36  ;;  %v1506_v51 = vld [vmem:[#allocation2 + $0x48] sm:$0xff]  ;;  %v1549_v59 = vadd.f32 %v1522_v27, %v1505_v46  ;;  %v1582_v24 = vadd.f32 %v1570_v14, %v1552_v13 }
 0x1aa   : > { %v1574_v49 = vadd.f32 %v1562_v33, %v1544_v37  ;;  %v1550_v61 = vadd.f32 %v1526_v28, %v1506_v51 }
 0x1ab   : > { %v1584_v56 = vadd.f32 %v1583_v50, %v1573_v44  ;;  %v1579_v12 = vadd.f32 %v1567_v3, %v1549_v59 }
 0x1ac   : > { %v1580_v15 = vadd.f32 %v1568_v4, %v1550_v61 }
 0x1ad   : > { %v1585_v1 = vadd.f32 %v1584_v56, %v1574_v49  ;;  %v1591_v23 = vadd.f32 %v1590_v20, %v1579_v12 }
 0x1af   : > { %v1586_v10 = vadd.f32 %v1585_v1, %v1575_v55  ;;  %v1592_v25 = vadd.f32 %v1591_v23, %v1580_v15 }
 0x1b1   : > { %v1587_v11 = vadd.f32 %v1586_v10, %v1576_v0  ;;  %v1593_v26 = vadd.f32 %v1592_v25, %v1581_v21  ;;  %v1700_v10 = vld [vmem:[%s2660_s5] sm:$0x3f] }
 0x1b2   : > { %v1705_v23 = vrot.slane %v1700_v10, %v2554_v16  ;;  %v1713_v25 = vrot.slane %v1700_v10, %v2558_v18 }
 0x1b3   : > { %1588 = vadd.xlane.f32.xlu0 %v1587_v11  ;;  %v1594_v27 = vadd.f32 %v1593_v26, %v1582_v24  ;;  %v1717_v26 = vrot.slane %v1700_v10, %v2560_v19 }
 0x1b7   : > { %1595 = vadd.xlane.f32.xlu0 %v1594_v27 }
 0x240   : > { %v1589_v28 = vpop.xlane.xlu0 %1588 }
 0x241   : > { %v1598_v29 = vmul.f32 0.0013020834, %v1589_v28 }
 0x243   : > { %v1600_v30 = vsub.f32 %v1571_v42, %v1598_v29  ;;  %v1601_v31 = vsub.f32 %v1572_v43, %v1598_v29  ;;  %v1602_v33 = vsub.f32 %v1573_v44, %v1598_v29  ;;  %v1603_v34 = vsub.f32 %v1574_v49, %v1598_v29 }
 0x244   : > { %v1596_v36 = vpop.xlane.xlu0 %1595  ;;  %v1604_v37 = vsub.f32 %v1575_v55, %v1598_v29  ;;  %v1605_v45 = vsub.f32 %v1576_v0, %v1598_v29 }
 0x245   : > { %v1612_v35 = vmul.f32 %v1600_v30, %v1600_v30  ;;  %v1613_v32 = vmul.f32 %v1601_v31, %v1601_v31  ;;  %v1614_v38 = vmul.f32 %v1602_v33, %v1602_v33  ;;  %v1599_v41 = vmul.f32 0.0013020834, %v1596_v36 }
 0x246   : > { %v1615_v40 = vmul.f32 %v1603_v34, %v1603_v34  ;;  %v1616_v42 = vmul.f32 %v1604_v37, %v1604_v37  ;;  %v1617_v52 = vmul.f32 %v1605_v45, %v1605_v45  ;;  %v1725_v36 = vrot.slane %v1700_v10, %v2564_v7 }
 0x247   : > { %v1624_v39 = vadd.f32 %v1613_v32, %v1612_v35  ;;  %v2584_v47 = vsub.f32 %v1577_v8, %v1599_v41  ;;  %v2586_v48 = vsub.f32 %v1578_v9, %v1599_v41  ;;  %v2588_v50 = vsub.f32 %v1579_v12, %v1599_v41  ;;  %v1656_v8 = vld [vmem:[%s2659_s4] sm:$0x3f] }
 0x248   : > { %v2590_v44 = vsub.f32 %v1580_v15, %v1599_v41  ;;  %v2596_v54 = vsub.f32 %v1581_v21, %v1599_v41  ;;  %v1611_v58 = vsub.f32 %v1582_v24, %v1599_v41  ;;  %v1661_v12 = vrot.slane %v1656_v8, %v2554_v16 }
 0x249   : > { %v1625_v46 = vadd.f32 %v1624_v39, %v1614_v38  ;;  %v1618_v49 = vmul.f32 %v2584_v47, %v2584_v47  ;;  %v1619_v51 = vmul.f32 %v2586_v48, %v2586_v48  ;;  %v1620_v55 = vmul.f32 %v2588_v50, %v2588_v50 }
 0x24a   : > { %v1621_v59 = vmul.f32 %v2590_v44, %v2590_v44  ;;  %v1622_v61 = vmul.f32 %v2596_v54, %v2596_v54  ;;  %v1623_v63 = vmul.f32 %v1611_v58, %v1611_v58  ;;  %v1665_v13 = vrot.slane %v1656_v8, %v2556_v17 }
 0x24b   : > { %v1626_v43 = vadd.f32 %v1625_v46, %v1615_v40  ;;  %v1631_v56 = vadd.f32 %v1619_v51, %v1618_v49  ;;  %v1669_v14 = vrot.slane %v1656_v8, %v2558_v18  ;;  %v1673_v15 = vrot.slane %v1656_v8, %v2560_v19 }
 0x24c   : > { %v1677_v20 = vrot.slane %v1656_v8, %v2562_v22  ;;  %v1681_v11 = vrot.slane %v1656_v8, %v2564_v7  ;;  %v1709_v24 = vrot.slane %v1700_v10, %v2556_v17  ;;  %v1721_v32 = vrot.slane %v1700_v10, %v2562_v22 }
 0x24d   : > { %v1627_v53 = vadd.f32 %v1626_v43, %v1616_v42  ;;  %v1632_v60 = vadd.f32 %v1631_v56, %v1620_v55 }
 0x24f   : > { %v1628_v57 = vadd.f32 %v1627_v53, %v1617_v52  ;;  %v1633_v62 = vadd.f32 %v1632_v60, %v1621_v59 }
 0x251   : > { %1629 = vadd.xlane.f32.xlu1 %v1628_v57  ;;  %v1634_v0 = vadd.f32 %v1633_v62, %v1622_v61 }
 0x253   : > { %v1635_v1 = vadd.f32 %v1634_v0, %v1623_v63 }
 0x255   : > { %1636 = vadd.xlane.f32.xlu1 %v1635_v1 }
 0x2de   : > { %v1630_v2 = vpop.xlane.xlu1 %1629 }
 0x2df   : > { %v1638_v3 = vmul.f32 0.0013020834, %v1630_v2 }
 0x2e1   : > { %v1640_v4 = vadd.f32 1e-12, %v1638_v3 }
 0x2e2   : > { %v1637_v5 = vpop.xlane.xlu1 %1636 }
 0x2e3   : > { %2271 = vrsqrt.f32 %v1640_v4  ;;  %v1639_v6 = vmul.f32 0.0013020834, %v1637_v5 }
 0x2e5   : > { %v1641_v9 = vadd.f32 1e-12, %v1639_v6 }
 0x2e7   : > { %2273 = vrsqrt.f32 %v1641_v9 }
 0x2ed   : > { %v2272_v21 = vpop.eup %2271 }
 0x2ee   : > { %v1644_v27 = vmul.f32 %v2272_v21, %v1600_v30  ;;  %v1645_v28 = vmul.f32 %v2272_v21, %v1601_v31  ;;  %v1646_v29 = vmul.f32 %v2272_v21, %v1602_v33  ;;  %v1647_v35 = vmul.f32 %v2272_v21, %v1603_v34 }
 0x2ef   : > { %v1648_v38 = vmul.f32 %v2272_v21, %v1604_v37  ;;  %v1649_v39 = vmul.f32 %v2272_v21, %v1605_v45 }
 0x2f0   : > { %v1688_v41 = vmul.f32 %v1661_v12, %v1644_v27  ;;  %v1689_v40 = vmul.f32 %v1665_v13, %v1645_v28  ;;  %v1690_v46 = vmul.f32 %v1669_v14, %v1646_v29  ;;  %v1691_v16 = vmul.f32 %v1673_v15, %v1647_v35 }
 0x2f1   : > { %v1692_v42 = vmul.f32 %v1677_v20, %v1648_v38  ;;  %v1693_v17 = vmul.f32 %v1681_v11, %v1649_v39  ;;  %v2274_v33 = vpop.eup %2273 }
 0x2f2   : > { %v1732_v43 = vadd.f32 %v1705_v23, %v1688_v41  ;;  %v1733_v18 = vadd.f32 %v1709_v24, %v1689_v40  ;;  %v1734_v49 = vadd.f32 %v1713_v25, %v1690_v46  ;;  %v1735_v19 = vadd.f32 %v1717_v26, %v1691_v16 }
 0x2f3   : > { %v1736_v30 = vadd.f32 %v1721_v32, %v1692_v42  ;;  %v1737_v31 = vadd.f32 %v1725_v36, %v1693_v17  ;;  %v1650_v7 = vmul.f32 %v2274_v33, %v2584_v47  ;;  %v1651_v37 = vmul.f32 %v2274_v33, %v2586_v48 }
 0x2f4   : > { %v2004_v34 = vpack.c.bf16 %v1733_v18, %v1732_v43  ;;  %v2005_v51 = vpack.c.bf16 %v1735_v19, %v1734_v49  ;;  %v1652_v45 = vmul.f32 %v2274_v33, %v2588_v50  ;;  %v1653_v52 = vmul.f32 %v2274_v33, %v2590_v44 }
 0x2f5   : > { %v2006_v22 = vpack.c.bf16 %v1737_v31, %v1736_v30  ;;  %v1654_v53 = vmul.f32 %v2274_v33, %v2596_v54  ;;  %v1655_v55 = vmul.f32 %v2274_v33, %v1611_v58  ;;  %v1694_v47 = vmul.f32 %v1661_v12, %v1650_v7 }
 0x2f6   : > { %1780 = vst [vmem:[%s2661_s6] sm:$0xff] %v2004_v34  ;;  %1781 = vst [vmem:[%s2661_s6 + $0x8] sm:$0xff] %v2005_v51  ;;  %v1695_v48 = vmul.f32 %v1665_v13, %v1651_v37  ;;  %v1696_v50 = vmul.f32 %v1669_v14, %v1652_v45  ;;  %v1697_v56 = vmul.f32 %v1673_v15, %v1653_v52 }
 0x2f7   : > { %1782 = vst [vmem:[%s2661_s6 + $0x10] sm:$0xff] %v2006_v22  ;;  %v1698_v57 = vmul.f32 %v1677_v20, %v1654_v53  ;;  %v1699_v59 = vmul.f32 %v1681_v11, %v1655_v55  ;;  %v1738_v60 = vadd.f32 %v1705_v23, %v1694_v47 }
 0x2f8   : > { %v1739_v61 = vadd.f32 %v1709_v24, %v1695_v48  ;;  %v1740_v62 = vadd.f32 %v1713_v25, %v1696_v50  ;;  %v1741_v63 = vadd.f32 %v1717_v26, %v1697_v56 }
 0x2f9   : > { %v1742_v0 = vadd.f32 %v1721_v32, %v1698_v57  ;;  %v1743_v1 = vadd.f32 %v1725_v36, %v1699_v59 }
 0x2fa   : > { %v2007_v44 = vpack.c.bf16 %v1739_v61, %v1738_v60  ;;  %v2008_v2 = vpack.c.bf16 %v1741_v63, %v1740_v62 }
 0x2fb   : > { %v2009_v54 = vpack.c.bf16 %v1743_v1, %v1742_v0 }
 0x2fc   : > { %1783 = vst [vmem:[%s2661_s6 + $0x18] sm:$0xff] %v2007_v44  ;;  %1784 = vst [vmem:[%s2661_s6 + $0x20] sm:$0xff] %v2008_v2 }
 0x2fd   : > { %1785 = vst [vmem:[%s2661_s6 + $0x28] sm:$0xff] %v2009_v54 }
 0x2fe PF: > { %p13_p11 = scmp.ge.s32.totalorder %s2355_s25, 10   ;;  %s2662_s21 = smov %s2293_s22 }
 0x2ff   : > { %s2663_s22 = smov %s2364_s28  ;;  %s2664_s23 = smov %s2355_s25 }
 0x300   :  { %15 = sbr.rel (!%p13_p11) target bundleno = 2 (0x2), region = 118 }

// kernel: bert_class_forward.23
= control target key start
LH: loop header
LB: loop body
LE: loop exit
PB: predicated region body
PF: predicated region fallthrough
CT: control target
= control target key end

     0   :  { %v747_v48 = vmov 1983009808   ;;  %v133_v50 = vlaneseq  ;;  %s1117_s0 = inlined_call_operand.vmem [shape: bf16[2,768], index: 0, kind: input, shape index: {}]   ;;  %s1118_s1 = inlined_call_operand.vmem [shape: f32[768,50], index: 1, kind: input, shape index: {}]   ;;  %s1119_s2 = inlined_call_operand.vmem [shape: f32[1,50], index: 2, kind: input, shape index: {}]   ;;  %s1120_s3 = inlined_call_operand.vmem [shape: f32[50,3], index: 3, kind: input, shape index: {}]   ;;  %s1121_s4 = inlined_call_operand.vmem [shape: f32[1,3], index: 4, kind: input, shape index: {}]   ;;  %s1122_s5 = inlined_call_operand.hbm [shape: f32[2,3], index: 5, kind: output, shape index: {}]  }
   0x1   :  { %v40_v0 = vld [vmem:[%s1118_s1 + $0x80] sm:$0xff]  ;;  %v41_v1 = vld [vmem:[%s1118_s1 + $0x88] sm:$0xff]  ;;  %v42_v11 = vld [vmem:[%s1118_s1 + $0x90] sm:$0xff]  ;;  %v131_v49 = vunpack.c.l.s4 %v747_v48 }
   0x2   :  { %v24_v2 = vld [vmem:[%s1118_s1] sm:$0xff]  ;;  %v613_v3 = vpack.c.bf16 %v41_v1, %v40_v0  ;;  %v25_v4 = vld [vmem:[%s1118_s1 + $0x8] sm:$0xff]  ;;  %v43_v13 = vld [vmem:[%s1118_s1 + $0x98] sm:$0xff] }
   0x3   :  { %v72_v5 = vld [vmem:[%s1118_s1 + $0x180] sm:$0xff]  ;;  %v73_v6 = vld [vmem:[%s1118_s1 + $0x188] sm:$0xff]  ;;  %v615_v7 = vpack.c.bf16 %v25_v4, %v24_v2  ;;  %v26_v14 = vld [vmem:[%s1118_s1 + $0x10] sm:$0xff]  ;;  %v617_v16 = vpack.c.bf16 %v43_v13, %v42_v11  ;;  %v132_v1 = vunpack.c.0.s8 %v131_v49  ;;  %v134_v2 = vshrl.u32 %v133_v50, 7 }
   0x4   :  { %v645_v8 = vpack.c.bf16 %v73_v6, %v72_v5  ;;  %v56_v9 = vld [vmem:[%s1118_s1 + $0x100] sm:$0xff]  ;;  %v57_v10 = vld [vmem:[%s1118_s1 + $0x108] sm:$0xff]  ;;  %614 = vmatprep.subr.bf16.mxu0 %v613_v3  ;;  %v27_v15 = vld [vmem:[%s1118_s1 + $0x18] sm:$0xff] }
   0x5   :  { %v647_v12 = vpack.c.bf16 %v57_v10, %v56_v9  ;;  %616 = vmatpush3.bf16.msra.mxu0 %v615_v7  ;;  %v619_v17 = vpack.c.bf16 %v27_v15, %v26_v14  ;;  %v74_v18 = vld [vmem:[%s1118_s1 + $0x190] sm:$0xff]  ;;  %v75_v19 = vld [vmem:[%s1118_s1 + $0x198] sm:$0xff]  ;;  %v44_v23 = vld [vmem:[%s1118_s1 + $0xa0] sm:$0xff]  ;;  %v135_v15 = vsub.s32 %v132_v1, %v134_v2 }
   0x6   :  { %646 = vmatprep.subr.bf16.mxu1 %v645_v8  ;;  %v58_v20 = vld [vmem:[%s1118_s1 + $0x110] sm:$0xff]  ;;  %v649_v21 = vpack.c.bf16 %v75_v19, %v74_v18  ;;  %v59_v22 = vld [vmem:[%s1118_s1 + $0x118] sm:$0xff]  ;;  %v45_v24 = vld [vmem:[%s1118_s1 + $0xa8] sm:$0xff]  ;;  %618 = vmatprep.subr.bf16.mxu0 %v617_v16 }
   0x7   :  { %648 = vmatpush3.bf16.msra.mxu1 %v647_v12  ;;  %v651_v25 = vpack.c.bf16 %v59_v22, %v58_v20  ;;  %v621_v26 = vpack.c.bf16 %v45_v24, %v44_v23  ;;  %v28_v27 = vld [vmem:[%s1118_s1 + $0x20] sm:$0xff]  ;;  %v29_v28 = vld [vmem:[%s1118_s1 + $0x28] sm:$0xff]  ;;  %v46_v35 = vld [vmem:[%s1118_s1 + $0xb0] sm:$0xff] }
   0x8   :  { %v76_v29 = vld [vmem:[%s1118_s1 + $0x1a0] sm:$0xff]  ;;  %650 = vmatprep.subr.bf16.mxu1 %v649_v21  ;;  %v77_v30 = vld [vmem:[%s1118_s1 + $0x1a8] sm:$0xff]  ;;  %v623_v33 = vpack.c.bf16 %v29_v28, %v28_v27  ;;  %v47_v36 = vld [vmem:[%s1118_s1 + $0xb8] sm:$0xff] }
   0x9   :  { %v60_v31 = vld [vmem:[%s1118_s1 + $0x120] sm:$0xff]  ;;  %v61_v32 = vld [vmem:[%s1118_s1 + $0x128] sm:$0xff]  ;;  %620 = vmatpush3.bf16.msra.mxu0 %v619_v17  ;;  %v653_v34 = vpack.c.bf16 %v77_v30, %v76_v29  ;;  %v30_v37 = vld [vmem:[%s1118_s1 + $0x30] sm:$0xff]  ;;  %v625_v39 = vpack.c.bf16 %v47_v36, %v46_v35 }
   0xa   :  { %622 = vmatprep.subr.bf16.mxu0 %v621_v26  ;;  %v655_v38 = vpack.c.bf16 %v61_v32, %v60_v31  ;;  %v31_v40 = vld [vmem:[%s1118_s1 + $0x38] sm:$0xff]  ;;  %v78_v41 = vld [vmem:[%s1118_s1 + $0x1b0] sm:$0xff]  ;;  %v48_v46 = vld [vmem:[%s1118_s1 + $0xc0] sm:$0xff] }
   0xb   :  { %652 = vmatpush3.bf16.msra.mxu1 %v651_v25  ;;  %v79_v42 = vld [vmem:[%s1118_s1 + $0x1b8] sm:$0xff]  ;;  %v62_v44 = vld [vmem:[%s1118_s1 + $0x130] sm:$0xff]  ;;  %v49_v47 = vld [vmem:[%s1118_s1 + $0xc8] sm:$0xff]  ;;  %v627_v51 = vpack.c.bf16 %v31_v40, %v30_v37 }
   0xc   :  { %654 = vmatprep.subr.bf16.mxu1 %v653_v34  ;;  %v657_v43 = vpack.c.bf16 %v79_v42, %v78_v41  ;;  %v63_v45 = vld [vmem:[%s1118_s1 + $0x138] sm:$0xff]  ;;  %v80_v52 = vld [vmem:[%s1118_s1 + $0x1c0] sm:$0xff]  ;;  %v81_v53 = vld [vmem:[%s1118_s1 + $0x1c8] sm:$0xff]  ;;  %v629_v55 = vpack.c.bf16 %v49_v47, %v48_v46 }
   0xd   :  { %624 = vmatpush3.bf16.msra.mxu0 %v623_v33  ;;  %v659_v54 = vpack.c.bf16 %v63_v45, %v62_v44  ;;  %v32_v56 = vld [vmem:[%s1118_s1 + $0x40] sm:$0xff]  ;;  %v33_v57 = vld [vmem:[%s1118_s1 + $0x48] sm:$0xff]  ;;  %v661_v59 = vpack.c.bf16 %v81_v53, %v80_v52  ;;  %v50_v61 = vld [vmem:[%s1118_s1 + $0xd0] sm:$0xff] }
   0xe   :  { %626 = vmatprep.subr.bf16.mxu0 %v625_v39  ;;  %v64_v58 = vld [vmem:[%s1118_s1 + $0x140] sm:$0xff]  ;;  %v65_v60 = vld [vmem:[%s1118_s1 + $0x148] sm:$0xff]  ;;  %v51_v62 = vld [vmem:[%s1118_s1 + $0xd8] sm:$0xff]  ;;  %v631_v3 = vpack.c.bf16 %v33_v57, %v32_v56 }
   0xf   :  { %656 = vmatpush3.bf16.msra.mxu1 %v655_v38  ;;  %v82_v63 = vld [vmem:[%s1118_s1 + $0x1d0] sm:$0xff]  ;;  %v83_v0 = vld [vmem:[%s1118_s1 + $0x1d8] sm:$0xff]  ;;  %v663_v4 = vpack.c.bf16 %v65_v60, %v64_v58  ;;  %v633_v5 = vpack.c.bf16 %v51_v62, %v50_v61  ;;  %v52_v11 = vld [vmem:[%s1118_s1 + $0xe0] sm:$0xff] }
  0x10   :  { %658 = vmatprep.subr.bf16.mxu1 %v657_v43  ;;  %v34_v6 = vld [vmem:[%s1118_s1 + $0x50] sm:$0xff]  ;;  %v35_v7 = vld [vmem:[%s1118_s1 + $0x58] sm:$0xff]  ;;  %v665_v9 = vpack.c.bf16 %v83_v0, %v82_v63  ;;  %v53_v12 = vld [vmem:[%s1118_s1 + $0xe8] sm:$0xff] }
  0x11   :  { %628 = vmatpush3.bf16.msra.mxu0 %v627_v51  ;;  %v66_v8 = vld [vmem:[%s1118_s1 + $0x150] sm:$0xff]  ;;  %v67_v10 = vld [vmem:[%s1118_s1 + $0x158] sm:$0xff]  ;;  %v84_v13 = vld [vmem:[%s1118_s1 + $0x1e0] sm:$0xff]  ;;  %v635_v16 = vpack.c.bf16 %v35_v7, %v34_v6  ;;  %v637_v20 = vpack.c.bf16 %v53_v12, %v52_v11 }
  0x12   :  { %630 = vmatprep.subr.bf16.mxu0 %v629_v55  ;;  %v85_v14 = vld [vmem:[%s1118_s1 + $0x1e8] sm:$0xff]  ;;  %v36_v17 = vld [vmem:[%s1118_s1 + $0x60] sm:$0xff]  ;;  %v667_v19 = vpack.c.bf16 %v67_v10, %v66_v8  ;;  %v54_v26 = vld [vmem:[%s1118_s1 + $0xf0] sm:$0xff] }
  0x13   :  { %660 = vmatpush3.bf16.msra.mxu1 %v659_v54  ;;  %v21_v18 = vld [vmem:[%s1117_s0] sm:$0x3f]  ;;  %v37_v21 = vld [vmem:[%s1118_s1 + $0x68] sm:$0xff]  ;;  %v669_v25 = vpack.c.bf16 %v85_v14, %v84_v13  ;;  %v55_v27 = vld [vmem:[%s1118_s1 + $0xf8] sm:$0xff] }
  0x14   :  { %662 = vmatprep.subr.bf16.mxu1 %v661_v59  ;;  %v68_v22 = vld [vmem:[%s1118_s1 + $0x160] sm:$0xff]  ;;  %v69_v23 = vld [vmem:[%s1118_s1 + $0x168] sm:$0xff]  ;;  %v22_v24 = vunpack.c.l.bf16 %v21_v18  ;;  %v86_v28 = vld [vmem:[%s1118_s1 + $0x1f0] sm:$0xff]  ;;  %v639_v32 = vpack.c.bf16 %v37_v21, %v36_v17  ;;  %v641_v34 = vpack.c.bf16 %v55_v27, %v54_v26  ;;  %v23_v37 = vunpack.c.h.bf16 %v21_v18 }
  0x15   :  { %632 = vmatpush3.bf16.msra.mxu0 %v631_v3  ;;  %v87_v29 = vld [vmem:[%s1118_s1 + $0x1f8] sm:$0xff]  ;;  %v671_v33 = vpack.c.bf16 %v69_v23, %v68_v22  ;;  %v38_v35 = vld [vmem:[%s1118_s1 + $0x70] sm:$0xff]  ;;  %v104_v43 = vld [vmem:[%s1118_s1 + $0x280] sm:$0xff] }
  0x16   :  { %634 = vmatprep.subr.bf16.mxu0 %v633_v5  ;;  %v136_v30 = vrot.slane %v22_v24, %v135_v15  ;;  %v129_v31 = vcombine.high %v22_v24, %v22_v24  ;;  %v39_v36 = vld [vmem:[%s1118_s1 + $0x78] sm:$0xff]  ;;  %v70_v39 = vld [vmem:[%s1118_s1 + $0x170] sm:$0xff]  ;;  %v673_v41 = vpack.c.bf16 %v87_v29, %v86_v28  ;;  %v105_v44 = vld [vmem:[%s1118_s1 + $0x288] sm:$0xff]  ;;  %v989_v51 = vrot.slane %v23_v37, %v135_v15 }
  0x17   :  { %664 = vmatpush3.bf16.msra.mxu1 %v663_v4  ;;  %v71_v42 = vld [vmem:[%s1118_s1 + $0x178] sm:$0xff]  ;;  %v643_v46 = vpack.c.bf16 %v39_v36, %v38_v35  ;;  %v677_v48 = vpack.c.bf16 %v105_v44, %v104_v43  ;;  %v88_v49 = vld [vmem:[%s1118_s1 + $0x200] sm:$0xff]  ;;  %v89_v50 = vld [vmem:[%s1118_s1 + $0x208] sm:$0xff] }
  0x18   :  { %666 = vmatprep.subr.bf16.mxu1 %v665_v9  ;;  %v144_v38 = vcombine.high %v136_v30, %v136_v30  ;;  %v143_v40 = vrot.slane %v129_v31, %v135_v15  ;;  %v675_v47 = vpack.c.bf16 %v71_v42, %v70_v39  ;;  %v106_v52 = vld [vmem:[%s1118_s1 + $0x290] sm:$0xff]  ;;  %v107_v53 = vld [vmem:[%s1118_s1 + $0x298] sm:$0xff]  ;;  %v679_v54 = vpack.c.bf16 %v89_v50, %v88_v49 }
  0x19   :  { %636 = vmatpush3.bf16.msra.mxu0 %v635_v16 }
  0x1a   :  { %638 = vmatprep.subr.bf16.mxu0 %v637_v20  ;;  %224 = vmatprep.mubr.f32.mxu0 %v144_v38  ;;  %v145_v45 = vcombine.high %v143_v40, %v143_v40 }
  0x1b   :  { %668 = vmatpush3.bf16.msra.mxu1 %v667_v19 }
  0x1c   :  { %670 = vmatprep.subr.bf16.mxu1 %v669_v25  ;;  %294 = vmatprep.mubr.f32.mxu1 %v145_v45 }
  0x1d   :  { %640 = vmatpush3.bf16.msra.mxu0 %v639_v32 }
  0x1e   :  { %642 = vmatprep.subr.bf16.mxu0 %v641_v34 }
  0x1f   :  { %672 = vmatpush3.bf16.msra.mxu1 %v671_v33 }
  0x20   :  { %674 = vmatprep.subr.bf16.mxu1 %v673_v41 }
  0x21   :  { %644 = vmatpush3.bf16.msra.mxu0 %v643_v46 }
  0x22   :  { %10 = vsyncpa [#allocation3], 0  ;;  %678 = vmatprep.subr.bf16.mxu0 %v677_v48  ;;  %v681_v55 = vpack.c.bf16 %v107_v53, %v106_v52  ;;  %v90_v56 = vld [vmem:[%s1118_s1 + $0x210] sm:$0xff]  ;;  %v91_v57 = vld [vmem:[%s1118_s1 + $0x218] sm:$0xff]  ;;  %v153_v58 = vcombine.high %v989_v51, %v989_v51  ;;  %v748_v35 = vmov 0.0|0.0   ;;  %v749_v42 = vmov 0.0  }
  0x23   :  { %676 = vmatpush3.bf16.msra.mxu1 %v675_v47  ;;  %v108_v59 = vld [vmem:[%s1118_s1 + $0x2a0] sm:$0xff]  ;;  %v109_v60 = vld [vmem:[%s1118_s1 + $0x2a8] sm:$0xff]  ;;  %v683_v61 = vpack.c.bf16 %v91_v57, %v90_v56  ;;  %v110_v1 = vld [vmem:[%s1118_s1 + $0x2b0] sm:$0xff]  ;;  %vm389_vm0 = vcmask 1041408   ;;  %vm750_vm1 = vmmov 0   ;;  %vm385_vm2 = vcmask 408576  }
  0x24   :  { %225 = vmatmul.mubr.f32.vlgmr.msra.gmra.mrb[0].mxu0 %v136_v30  ;;  %v685_v62 = vpack.c.bf16 %v109_v60, %v108_v59  ;;  %v92_v63 = vld [vmem:[%s1118_s1 + $0x220] sm:$0xff]  ;;  %v93_v0 = vld [vmem:[%s1118_s1 + $0x228] sm:$0xff]  ;;  %v111_v2 = vld [vmem:[%s1118_s1 + $0x2b8] sm:$0xff]  ;;  %709 = vmatprep.subr.bf16.mxu1 %v748_v35  ;;  %s751_s24 = smov [#allocation2]   ;;  %vm463_vm3 = vcmask 17408  }
  0x25   :  { %680 = vmatpush3.bf16.msra.mxu0 %v679_v54  ;;  %364 = vmatprep.mubr.f32.mxu0 %v153_v58  ;;  %v687_v3 = vpack.c.bf16 %v93_v0, %v92_v63  ;;  %v689_v4 = vpack.c.bf16 %v111_v2, %v110_v1  ;;  %v94_v5 = vld [vmem:[%s1118_s1 + $0x230] sm:$0xff]  ;;  %v95_v6 = vld [vmem:[%s1118_s1 + $0x238] sm:$0xff]  ;;  %v112_v7 = vld [vmem:[%s1118_s1 + $0x2c0] sm:$0xff] }
  0x26   :  { %295 = vmatmul.mubr.f32.vlgmr.msra.gmra.mrb[0].mxu1 %v143_v40  ;;  %682 = vmatprep.subr.bf16.mxu0 %v681_v55  ;;  %v113_v8 = vld [vmem:[%s1118_s1 + $0x2c8] sm:$0xff]  ;;  %v691_v9 = vpack.c.bf16 %v95_v6, %v94_v5  ;;  %v96_v11 = vld [vmem:[%s1118_s1 + $0x240] sm:$0xff]  ;;  %v114_v13 = vld [vmem:[%s1118_s1 + $0x2d0] sm:$0xff] }
  0x27   :  { %v693_v10 = vpack.c.bf16 %v113_v8, %v112_v7  ;;  %v97_v12 = vld [vmem:[%s1118_s1 + $0x248] sm:$0xff]  ;;  %v115_v14 = vld [vmem:[%s1118_s1 + $0x2d8] sm:$0xff]  ;;  %v98_v17 = vld [vmem:[%s1118_s1 + $0x250] sm:$0xff]  ;;  %610 = vmatprep.mubr.msk.f32.mxu1 %vm750_vm1, %v749_v42 }
  0x28   :  { %v695_v15 = vpack.c.bf16 %v97_v12, %v96_v11  ;;  %v697_v16 = vpack.c.bf16 %v115_v14, %v114_v13  ;;  %v99_v18 = vld [vmem:[%s1118_s1 + $0x258] sm:$0xff]  ;;  %v116_v19 = vld [vmem:[%s1118_s1 + $0x2e0] sm:$0xff]  ;;  %v117_v20 = vld [vmem:[%s1118_s1 + $0x2e8] sm:$0xff] }
  0x29   :  { %684 = vmatpush3.bf16.msra.mxu0 %v683_v61  ;;  %v699_v21 = vpack.c.bf16 %v99_v18, %v98_v17  ;;  %v701_v22 = vpack.c.bf16 %v117_v20, %v116_v19  ;;  %v100_v23 = vld [vmem:[%s1118_s1 + $0x260] sm:$0xff]  ;;  %v101_v24 = vld [vmem:[%s1118_s1 + $0x268] sm:$0xff]  ;;  %v118_v25 = vld [vmem:[%s1118_s1 + $0x2f0] sm:$0xff] }
  0x2a   :  { %686 = vmatprep.subr.bf16.mxu0 %v685_v62  ;;  %v119_v26 = vld [vmem:[%s1118_s1 + $0x2f8] sm:$0xff]  ;;  %v703_v27 = vpack.c.bf16 %v101_v24, %v100_v23  ;;  %v102_v29 = vld [vmem:[%s1118_s1 + $0x270] sm:$0xff]  ;;  %v371_v32 = vld [vmem:[%s1120_s3] sm:$0xff] }
  0x2b   :  { %v705_v28 = vpack.c.bf16 %v119_v26, %v118_v25  ;;  %v103_v30 = vld [vmem:[%s1118_s1 + $0x278] sm:$0xff]  ;;  %v372_v33 = vld [vmem:[%s1120_s3 + $0x8] sm:$0xff]  ;;  %v373_v34 = vld [vmem:[%s1120_s3 + $0x10] sm:$0xff] }
  0x2c   :  { %v707_v31 = vpack.c.bf16 %v103_v30, %v102_v29  ;;  %v710_v36 = vpack.c.bf16 %v372_v33, %v371_v32  ;;  %v374_v37 = vld [vmem:[%s1120_s3 + $0x18] sm:$0xff]  ;;  %v375_v39 = vld [vmem:[%s1120_s3 + $0x20] sm:$0xff]  ;;  %v376_v40 = vld [vmem:[%s1120_s3 + $0x28] sm:$0xff] }
  0x2d   :  { %688 = vmatpush3.bf16.msra.mxu0 %v687_v3  ;;  %v713_v38 = vpack.c.bf16 %v374_v37, %v373_v34  ;;  %v716_v41 = vpack.c.bf16 %v376_v40, %v375_v39  ;;  %v377_v43 = vld [vmem:[%s1120_s3 + $0x30] sm:$0x3]  ;;  %v479_v45 = vld [vmem:[%s1119_s2] ss:$0 sm:$0xff]  ;;  %s471_s2 = sshll.u32 %s751_s24, 4  ;;  %s472_s2 = int_to_ptr.vmem [resolvable:$true] %s471_s2 }
  0x2e   :  { %690 = vmatprep.subr.bf16.mxu0 %v689_v4  ;;  %711 = vmatpush3.bf16.msra.mxu1 %v710_v36  ;;  %v480_v58 = vld [vmem:[%s1121_s4] ss:$0 sm:$0xff]  ;;  %s723_s25 = scalar_lea.vmem %s472_s2, 32  ;;  %p728_p1 = scmp.lt.s32.totalorder %s472_s2, %s472_s2 }
  0x2f   :  { %712 = vmatprep.subr.bf16.mxu1 %v748_v35  ;;  %p724_p0 = scmp.ne.s32.totalorder %s472_s2, %s723_s25  ;;  %p729_p2 = scmp.lt.s32.totalorder %s723_s25, %s723_s25 }
  0x31   :  { %692 = vmatpush3.bf16.msra.mxu0 %v691_v9  ;;  %p730_p3 = por %p729_p2, %p728_p1 }
  0x32   :  { %694 = vmatprep.subr.bf16.mxu0 %v693_v10  ;;  %714 = vmatpush3.bf16.msra.mxu1 %v713_v38 }
  0x33   :  { %715 = vmatprep.subr.bf16.mxu1 %v748_v35  ;;  %p731_p4 = pnand %p730_p3, %p724_p0 }
  0x35   :  { %696 = vmatpush3.bf16.msra.mxu0 %v695_v15 }
  0x36   :  { %698 = vmatprep.subr.bf16.mxu0 %v697_v16  ;;  %717 = vmatpush3.bf16.msra.mxu1 %v716_v41 }
  0x37   :  { %608 = vmatprep.subr.mxu1 %v749_v42 }
  0x39   :  { %700 = vmatpush3.bf16.msra.mxu0 %v699_v21 }
  0x3a   :  { %702 = vmatprep.subr.bf16.mxu0 %v701_v22  ;;  %609 = vmatpush3.msk.msra.mxu1 %vm389_vm0, %v377_v43 }
  0x3d   :  { %704 = vmatpush3.bf16.msra.mxu0 %v703_v27 }
  0x3e   :  { %706 = vmatprep.subr.bf16.mxu0 %v705_v28 }
  0x41   :  { %708 = vmatpush3.bf16.msra.mxu0 %v707_v31 }
  0x44   :  { %365 = vmatmul.mubr.f32.vlgmr.msra.gmra.mrb[2].mxu0 %v989_v51 }
  0xf7   :  { %v515_v44 = vpop.f32.mrb[0].mxu0 }
  0xf8   :  { %v516_v46 = vpop.f32.mrb[1].mxu0 }
  0xf9   :  { %v550_v47 = vpop.f32.mrb[0].mxu1  ;;  %v517_v48 = vadd.f32 %v516_v46, %v515_v44 }
  0xfa   :  { %v551_v49 = vpop.f32.mrb[1].mxu1 }
  0xfb   :  { %v552_v50 = vadd.f32 %v551_v49, %v550_v47  ;;  %v227_v51 = vadd.f32 %v517_v48, %v479_v45 }
  0xfd   :  { %v297_v52 = vadd.f32 %v552_v50, %v227_v51 }
 0x117   :  { %v585_v53 = vpop.f32.mrb[2].mxu0 }
 0x118   :  { %v586_v54 = vpop.f32.mrb[3].mxu0 }
 0x119   :  { %v587_v55 = vadd.f32 %v586_v54, %v585_v53 }
 0x11b   :  { %v367_v56 = vadd.f32 %v587_v55, %v297_v52 }
 0x11d   :  { %v370_v57 = vmax.f32 %v367_v56, 0.0 }
 0x11f   :  { %611 = vmatmul.mubr.msk.f32.vlgmr.msra.gmra.mrb[2].mxu1 %vm385_vm2, %v370_v57 }
 0x1f2   :  { %v459_v59 = vpop.f32.mrb[2].mxu1 }
 0x1f3   :  { %v460_v60 = vadd.f32 %v480_v58, %v459_v59  ;;  %v612_v61 = vpop.f32.mrb[3].mxu1 }
 0x1f5   :  { %464 = vst.msk [vmem:[#allocation2] sm:$0x3] %vm463_vm3, %v460_v60 }
 0x1f6   :  { %734 = shalt.err (!%p731_p4)
}
 0x1f7   :  { %s735_s28 = scalar_lea.hbm %s1122_s5, 32 }
 0x1f8   :  { %p736_p5 = scmp.ne.s32.totalorder %s1122_s5, %s735_s28  ;;  %p739_p6 = scmp.lt.u32.totalorder %s735_s28, %s1122_s5 }
 0x1fa   :  { %p741_p7 = pnand %p739_p6, %p736_p5 }
 0x1fc   :  { %744 = shalt.err (!%p741_p7)
}
 0x1fd   :  { %474 = dma.vmem_to_hbm [thread:$0]  %s472_s2, 32, %s1122_s5, [#allocation3]  }
 0x1fe   :  { %745 = dma.done.wait [#allocation3], 32  }
 0x1ff   :  { %746 = vsyncadd [#allocation3], 4294967264 }
 0x200   :  { %478 = vsyncpa [#allocation3], 1 }

// kernel: bert_class_forward.18
= control target key start
LH: loop header
LB: loop body
LE: loop exit
PB: predicated region body
PF: predicated region fallthrough
CT: control target
= control target key end

     0   :  { %s3975_s12 = smov 0   ;;  %s3977_s13 = smov 0   ;;  %s4981_s0 = inlined_call_operand.vmem [shape: bf16[16,768], index: 0, kind: input, shape index: {}]   ;;  %s4982_s1 = inlined_call_operand.vmem [shape: bf16[768,2304], index: 1, kind: input, shape index: {}]   ;;  %s4983_s2 = inlined_call_operand.vmem [shape: f32[1,2304], index: 2, kind: input, shape index: {}]   ;;  %s4984_s3 = inlined_call_operand.vmem [shape: bf16[16,2304], index: 3, kind: output, shape index: {}]  }
   0x1   :  { %s3979_s14 = smov 0  }
   0x2 LB: > { %s3991_s15 = sadd.s32 4294967295, %s3953_s14   ;;  %s3994_s16 = sadd.s32 1, %s3953_s14   ;;  %s3953_s14 = sphi %s3979_s14, %s4988_s14   ;;  %s3949_s13 = sphi %s3977_s13, %s4987_s13   ;;  %s3945_s12 = sphi %s3975_s12, %s4986_s12  }
   0x3   : > { %s38_s17 = ssub.s32 %s3953_s14, %s3994_s16  ;;  %s41_s18 = sadd.s32 1, %s3949_s13 }
   0x4   : > { %p39_p0 = scmp.eq.s32.totalorder %s38_s17, 0  ;;  %p48_p1 = scmp.ne.s32.totalorder %s3949_s13, %s3945_s12 }
   0x5   : > { %p49_p2 = scmp.eq.s32.totalorder %s3953_s14, 0  ;;  %p104_p3 = scmp.eq.s32.totalorder %s3991_s15, 2 }
   0x6   : > { %s4004_s19 = scalar_select %p39_p0, %s3949_s13, %s41_s18  }
   0x7   : > { %p50_p4 = por %p49_p2, %p48_p1  ;;  %p4006_p5 = por %p104_p3, %p48_p1 }
   0x8   : > { %p3110_p6 = scmp.ge.s32.totalorder %s3953_s14, 3 }
   0xa   : > { %129 = sbr.rel (%p3110_p6) target bundleno = 166 (0xa6), region = 20 }
  0x11   : > { %132 = sbr.rel (!%p50_p4) target bundleno = 166 (0xa6), region = 24  ;;  %s134_s21 = sand.u32 (%p50_p4), 1, %s3949_s13  }
  0x12   : > { %s3416_s22 = smul.u32 (%p50_p4), 24, %s3953_s14 }
  0x13   : > { %s3460_s23 = smul.u32 (%p50_p4), 2304, %s134_s21 }
  0x14   : > { %s4016_s26 = scalar_lea.vmem (%p50_p4), %s4982_s1, %s3416_s22 }
  0x15   : > { %v152_v0 = vld [vmem:[%s4016_s26] sm:$0xff] (%p50_p4)  ;;  %v154_v1 = vld [vmem:[%s4016_s26 + $0x8] sm:$0xff] (%p50_p4)  ;;  %v156_v2 = vld [vmem:[%s4016_s26 + $0x10] sm:$0xff] (%p50_p4)  ;;  %s4021_s27 = scalar_lea.vmem (%p50_p4), [#allocation2], %s3460_s23 }
  0x16   : > { %153 = vst [vmem:[%s4021_s27] sm:$0xff] (%p50_p4), %v152_v0  ;;  %155 = vst [vmem:[%s4021_s27 + $0x8] sm:$0xff] (%p50_p4), %v154_v1  ;;  %v158_v3 = vld [vmem:[%s4016_s26 + $0x48] sm:$0xff] (%p50_p4)  ;;  %v160_v4 = vld [vmem:[%s4016_s26 + $0x50] sm:$0xff] (%p50_p4) }
  0x17   : > { %157 = vst [vmem:[%s4021_s27 + $0x10] sm:$0xff] (%p50_p4), %v156_v2  ;;  %v162_v5 = vld [vmem:[%s4016_s26 + $0x58] sm:$0xff] (%p50_p4)  ;;  %159 = vst [vmem:[%s4021_s27 + $0x18] sm:$0xff] (%p50_p4), %v158_v3  ;;  %v164_v6 = vld [vmem:[%s4016_s26 + $0x90] sm:$0xff] (%p50_p4) }
  0x18   : > { %161 = vst [vmem:[%s4021_s27 + $0x20] sm:$0xff] %v160_v4  ;;  %163 = vst [vmem:[%s4021_s27 + $0x28] sm:$0xff] %v162_v5  ;;  %v166_v7 = vld [vmem:[%s4016_s26 + $0x98] sm:$0xff]  ;;  %v168_v8 = vld [vmem:[%s4016_s26 + $0xa0] sm:$0xff] }
  0x19   : > { %165 = vst [vmem:[%s4021_s27 + $0x30] sm:$0xff] %v164_v6  ;;  %167 = vst [vmem:[%s4021_s27 + $0x38] sm:$0xff] %v166_v7  ;;  %v170_v9 = vld [vmem:[%s4016_s26 + $0xd8] sm:$0xff]  ;;  %v172_v10 = vld [vmem:[%s4016_s26 + $0xe0] sm:$0xff] }
  0x1a   : > { %169 = vst [vmem:[%s4021_s27 + $0x40] sm:$0xff] %v168_v8  ;;  %v174_v11 = vld [vmem:[%s4016_s26 + $0xe8] sm:$0xff]  ;;  %171 = vst [vmem:[%s4021_s27 + $0x48] sm:$0xff] %v170_v9  ;;  %v176_v12 = vld [vmem:[%s4016_s26 + $0x120] sm:$0xff] }
  0x1b   : > { %173 = vst [vmem:[%s4021_s27 + $0x50] sm:$0xff] %v172_v10  ;;  %175 = vst [vmem:[%s4021_s27 + $0x58] sm:$0xff] %v174_v11  ;;  %v178_v13 = vld [vmem:[%s4016_s26 + $0x128] sm:$0xff]  ;;  %v180_v14 = vld [vmem:[%s4016_s26 + $0x130] sm:$0xff] }
  0x1c   : > { %177 = vst [vmem:[%s4021_s27 + $0x60] sm:$0xff] %v176_v12  ;;  %179 = vst [vmem:[%s4021_s27 + $0x68] sm:$0xff] %v178_v13  ;;  %v182_v15 = vld [vmem:[%s4016_s26 + $0x168] sm:$0xff]  ;;  %v184_v16 = vld [vmem:[%s4016_s26 + $0x170] sm:$0xff] }
  0x1d   : > { %181 = vst [vmem:[%s4021_s27 + $0x70] sm:$0xff] %v180_v14  ;;  %v186_v17 = vld [vmem:[%s4016_s26 + $0x178] sm:$0xff]  ;;  %183 = vst [vmem:[%s4021_s27 + $0x78] sm:$0xff] %v182_v15  ;;  %v188_v18 = vld [vmem:[%s4016_s26 + $0x1b0] sm:$0xff] }
  0x1e   : > { %185 = vst [vmem:[%s4021_s27 + $0x80] sm:$0xff] %v184_v16  ;;  %187 = vst [vmem:[%s4021_s27 + $0x88] sm:$0xff] %v186_v17  ;;  %v190_v19 = vld [vmem:[%s4016_s26 + $0x1b8] sm:$0xff]  ;;  %v192_v20 = vld [vmem:[%s4016_s26 + $0x1c0] sm:$0xff] }
  0x1f   : > { %189 = vst [vmem:[%s4021_s27 + $0x90] sm:$0xff] %v188_v18  ;;  %191 = vst [vmem:[%s4021_s27 + $0x98] sm:$0xff] %v190_v19  ;;  %v194_v21 = vld [vmem:[%s4016_s26 + $0x1f8] sm:$0xff]  ;;  %v196_v22 = vld [vmem:[%s4016_s26 + $0x200] sm:$0xff] }
  0x20   : > { %193 = vst [vmem:[%s4021_s27 + $0xa0] sm:$0xff] %v192_v20  ;;  %v198_v23 = vld [vmem:[%s4016_s26 + $0x208] sm:$0xff]  ;;  %195 = vst [vmem:[%s4021_s27 + $0xa8] sm:$0xff] %v194_v21  ;;  %v200_v24 = vld [vmem:[%s4016_s26 + $0x240] sm:$0xff] }
  0x21   : > { %197 = vst [vmem:[%s4021_s27 + $0xb0] sm:$0xff] %v196_v22  ;;  %199 = vst [vmem:[%s4021_s27 + $0xb8] sm:$0xff] %v198_v23  ;;  %v202_v25 = vld [vmem:[%s4016_s26 + $0x248] sm:$0xff]  ;;  %v204_v26 = vld [vmem:[%s4016_s26 + $0x250] sm:$0xff] }
  0x22   : > { %201 = vst [vmem:[%s4021_s27 + $0xc0] sm:$0xff] %v200_v24  ;;  %203 = vst [vmem:[%s4021_s27 + $0xc8] sm:$0xff] %v202_v25  ;;  %v206_v27 = vld [vmem:[%s4016_s26 + $0x288] sm:$0xff]  ;;  %v208_v28 = vld [vmem:[%s4016_s26 + $0x290] sm:$0xff] }
  0x23   : > { %205 = vst [vmem:[%s4021_s27 + $0xd0] sm:$0xff] %v204_v26  ;;  %v210_v29 = vld [vmem:[%s4016_s26 + $0x298] sm:$0xff]  ;;  %207 = vst [vmem:[%s4021_s27 + $0xd8] sm:$0xff] %v206_v27  ;;  %v212_v30 = vld [vmem:[%s4016_s26 + $0x2d0] sm:$0xff] }
  0x24   : > { %209 = vst [vmem:[%s4021_s27 + $0xe0] sm:$0xff] %v208_v28  ;;  %211 = vst [vmem:[%s4021_s27 + $0xe8] sm:$0xff] %v210_v29  ;;  %v214_v31 = vld [vmem:[%s4016_s26 + $0x2d8] sm:$0xff]  ;;  %v216_v32 = vld [vmem:[%s4016_s26 + $0x2e0] sm:$0xff] }
  0x25   : > { %213 = vst [vmem:[%s4021_s27 + $0xf0] sm:$0xff] %v212_v30  ;;  %215 = vst [vmem:[%s4021_s27 + $0xf8] sm:$0xff] %v214_v31  ;;  %v218_v33 = vld [vmem:[%s4016_s26 + $0x318] sm:$0xff]  ;;  %v220_v34 = vld [vmem:[%s4016_s26 + $0x320] sm:$0xff] }
  0x26   : > { %217 = vst [vmem:[%s4021_s27 + $0x100] sm:$0xff] %v216_v32  ;;  %v222_v35 = vld [vmem:[%s4016_s26 + $0x328] sm:$0xff]  ;;  %219 = vst [vmem:[%s4021_s27 + $0x108] sm:$0xff] %v218_v33  ;;  %v224_v36 = vld [vmem:[%s4016_s26 + $0x360] sm:$0xff] }
  0x27   : > { %221 = vst [vmem:[%s4021_s27 + $0x110] sm:$0xff] %v220_v34  ;;  %223 = vst [vmem:[%s4021_s27 + $0x118] sm:$0xff] %v222_v35  ;;  %v226_v37 = vld [vmem:[%s4016_s26 + $0x368] sm:$0xff]  ;;  %v228_v38 = vld [vmem:[%s4016_s26 + $0x370] sm:$0xff] }
  0x28   : > { %225 = vst [vmem:[%s4021_s27 + $0x120] sm:$0xff] %v224_v36  ;;  %227 = vst [vmem:[%s4021_s27 + $0x128] sm:$0xff] %v226_v37  ;;  %v230_v39 = vld [vmem:[%s4016_s26 + $0x3a8] sm:$0xff]  ;;  %v232_v40 = vld [vmem:[%s4016_s26 + $0x3b0] sm:$0xff] }
  0x29   : > { %229 = vst [vmem:[%s4021_s27 + $0x130] sm:$0xff] %v228_v38  ;;  %v234_v41 = vld [vmem:[%s4016_s26 + $0x3b8] sm:$0xff]  ;;  %231 = vst [vmem:[%s4021_s27 + $0x138] sm:$0xff] %v230_v39  ;;  %v236_v42 = vld [vmem:[%s4016_s26 + $0x3f0] sm:$0xff] }
  0x2a   : > { %233 = vst [vmem:[%s4021_s27 + $0x140] sm:$0xff] %v232_v40  ;;  %235 = vst [vmem:[%s4021_s27 + $0x148] sm:$0xff] %v234_v41  ;;  %v238_v43 = vld [vmem:[%s4016_s26 + $0x3f8] sm:$0xff]  ;;  %v240_v44 = vld [vmem:[%s4016_s26 + $0x400] sm:$0xff] }
  0x2b   : > { %237 = vst [vmem:[%s4021_s27 + $0x150] sm:$0xff] %v236_v42  ;;  %239 = vst [vmem:[%s4021_s27 + $0x158] sm:$0xff] %v238_v43  ;;  %v242_v45 = vld [vmem:[%s4016_s26 + $0x438] sm:$0xff]  ;;  %v244_v46 = vld [vmem:[%s4016_s26 + $0x440] sm:$0xff] }
  0x2c   : > { %241 = vst [vmem:[%s4021_s27 + $0x160] sm:$0xff] %v240_v44  ;;  %v246_v47 = vld [vmem:[%s4016_s26 + $0x448] sm:$0xff]  ;;  %243 = vst [vmem:[%s4021_s27 + $0x168] sm:$0xff] %v242_v45  ;;  %v248_v48 = vld [vmem:[%s4016_s26 + $0x480] sm:$0xff] }
  0x2d   : > { %245 = vst [vmem:[%s4021_s27 + $0x170] sm:$0xff] %v244_v46  ;;  %247 = vst [vmem:[%s4021_s27 + $0x178] sm:$0xff] %v246_v47  ;;  %v250_v49 = vld [vmem:[%s4016_s26 + $0x488] sm:$0xff]  ;;  %v252_v50 = vld [vmem:[%s4016_s26 + $0x490] sm:$0xff] }
  0x2e   : > { %249 = vst [vmem:[%s4021_s27 + $0x180] sm:$0xff] %v248_v48  ;;  %251 = vst [vmem:[%s4021_s27 + $0x188] sm:$0xff] %v250_v49  ;;  %v254_v51 = vld [vmem:[%s4016_s26 + $0x4c8] sm:$0xff]  ;;  %v256_v52 = vld [vmem:[%s4016_s26 + $0x4d0] sm:$0xff] }
  0x2f   : > { %253 = vst [vmem:[%s4021_s27 + $0x190] sm:$0xff] %v252_v50  ;;  %v258_v53 = vld [vmem:[%s4016_s26 + $0x4d8] sm:$0xff]  ;;  %255 = vst [vmem:[%s4021_s27 + $0x198] sm:$0xff] %v254_v51  ;;  %v260_v54 = vld [vmem:[%s4016_s26 + $0x510] sm:$0xff] }
  0x30   : > { %257 = vst [vmem:[%s4021_s27 + $0x1a0] sm:$0xff] %v256_v52  ;;  %259 = vst [vmem:[%s4021_s27 + $0x1a8] sm:$0xff] %v258_v53  ;;  %v262_v55 = vld [vmem:[%s4016_s26 + $0x518] sm:$0xff]  ;;  %v264_v56 = vld [vmem:[%s4016_s26 + $0x520] sm:$0xff] }
  0x31   : > { %261 = vst [vmem:[%s4021_s27 + $0x1b0] sm:$0xff] %v260_v54  ;;  %263 = vst [vmem:[%s4021_s27 + $0x1b8] sm:$0xff] %v262_v55  ;;  %v266_v57 = vld [vmem:[%s4016_s26 + $0x558] sm:$0xff]  ;;  %v268_v58 = vld [vmem:[%s4016_s26 + $0x560] sm:$0xff] }
  0x32   : > { %265 = vst [vmem:[%s4021_s27 + $0x1c0] sm:$0xff] %v264_v56  ;;  %v270_v59 = vld [vmem:[%s4016_s26 + $0x568] sm:$0xff]  ;;  %267 = vst [vmem:[%s4021_s27 + $0x1c8] sm:$0xff] %v266_v57  ;;  %v272_v60 = vld [vmem:[%s4016_s26 + $0x5a0] sm:$0xff] }
  0x33   : > { %269 = vst [vmem:[%s4021_s27 + $0x1d0] sm:$0xff] %v268_v58  ;;  %271 = vst [vmem:[%s4021_s27 + $0x1d8] sm:$0xff] %v270_v59  ;;  %v274_v61 = vld [vmem:[%s4016_s26 + $0x5a8] sm:$0xff]  ;;  %v276_v62 = vld [vmem:[%s4016_s26 + $0x5b0] sm:$0xff] }
  0x34   : > { %273 = vst [vmem:[%s4021_s27 + $0x1e0] sm:$0xff] %v272_v60  ;;  %275 = vst [vmem:[%s4021_s27 + $0x1e8] sm:$0xff] %v274_v61  ;;  %v278_v63 = vld [vmem:[%s4016_s26 + $0x5e8] sm:$0xff]  ;;  %v280_v0 = vld [vmem:[%s4016_s26 + $0x5f0] sm:$0xff] }
  0x35   : > { %277 = vst [vmem:[%s4021_s27 + $0x1f0] sm:$0xff] %v276_v62  ;;  %v282_v1 = vld [vmem:[%s4016_s26 + $0x5f8] sm:$0xff]  ;;  %279 = vst [vmem:[%s4021_s27 + $0x1f8] sm:$0xff] %v278_v63  ;;  %v284_v2 = vld [vmem:[%s4016_s26 + $0x630] sm:$0xff] }
  0x36   : > { %281 = vst [vmem:[%s4021_s27 + $0x200] sm:$0xff] %v280_v0  ;;  %283 = vst [vmem:[%s4021_s27 + $0x208] sm:$0xff] %v282_v1  ;;  %v286_v3 = vld [vmem:[%s4016_s26 + $0x638] sm:$0xff]  ;;  %v288_v4 = vld [vmem:[%s4016_s26 + $0x640] sm:$0xff] }
  0x37   : > { %285 = vst [vmem:[%s4021_s27 + $0x210] sm:$0xff] %v284_v2  ;;  %287 = vst [vmem:[%s4021_s27 + $0x218] sm:$0xff] %v286_v3  ;;  %v290_v5 = vld [vmem:[%s4016_s26 + $0x678] sm:$0xff]  ;;  %v292_v6 = vld [vmem:[%s4016_s26 + $0x680] sm:$0xff] }
  0x38   : > { %289 = vst [vmem:[%s4021_s27 + $0x220] sm:$0xff] %v288_v4  ;;  %v294_v7 = vld [vmem:[%s4016_s26 + $0x688] sm:$0xff]  ;;  %291 = vst [vmem:[%s4021_s27 + $0x228] sm:$0xff] %v290_v5  ;;  %v296_v8 = vld [vmem:[%s4016_s26 + $0x6c0] sm:$0xff] }
  0x39   : > { %293 = vst [vmem:[%s4021_s27 + $0x230] sm:$0xff] %v292_v6  ;;  %295 = vst [vmem:[%s4021_s27 + $0x238] sm:$0xff] %v294_v7  ;;  %v298_v9 = vld [vmem:[%s4016_s26 + $0x6c8] sm:$0xff]  ;;  %v300_v10 = vld [vmem:[%s4016_s26 + $0x6d0] sm:$0xff] }
  0x3a   : > { %297 = vst [vmem:[%s4021_s27 + $0x240] sm:$0xff] %v296_v8  ;;  %299 = vst [vmem:[%s4021_s27 + $0x248] sm:$0xff] %v298_v9  ;;  %v302_v11 = vld [vmem:[%s4016_s26 + $0x708] sm:$0xff]  ;;  %v304_v12 = vld [vmem:[%s4016_s26 + $0x710] sm:$0xff] }
  0x3b   : > { %301 = vst [vmem:[%s4021_s27 + $0x250] sm:$0xff] %v300_v10  ;;  %v306_v13 = vld [vmem:[%s4016_s26 + $0x718] sm:$0xff]  ;;  %303 = vst [vmem:[%s4021_s27 + $0x258] sm:$0xff] %v302_v11  ;;  %v308_v14 = vld [vmem:[%s4016_s26 + $0x750] sm:$0xff] }
  0x3c   : > { %305 = vst [vmem:[%s4021_s27 + $0x260] sm:$0xff] %v304_v12  ;;  %307 = vst [vmem:[%s4021_s27 + $0x268] sm:$0xff] %v306_v13  ;;  %v310_v15 = vld [vmem:[%s4016_s26 + $0x758] sm:$0xff]  ;;  %v312_v16 = vld [vmem:[%s4016_s26 + $0x760] sm:$0xff] }
  0x3d   : > { %309 = vst [vmem:[%s4021_s27 + $0x270] sm:$0xff] %v308_v14  ;;  %311 = vst [vmem:[%s4021_s27 + $0x278] sm:$0xff] %v310_v15  ;;  %v314_v17 = vld [vmem:[%s4016_s26 + $0x798] sm:$0xff]  ;;  %v316_v18 = vld [vmem:[%s4016_s26 + $0x7a0] sm:$0xff] }
  0x3e   : > { %313 = vst [vmem:[%s4021_s27 + $0x280] sm:$0xff] %v312_v16  ;;  %v318_v19 = vld [vmem:[%s4016_s26 + $0x7a8] sm:$0xff]  ;;  %315 = vst [vmem:[%s4021_s27 + $0x288] sm:$0xff] %v314_v17  ;;  %v320_v20 = vld [vmem:[%s4016_s26 + $0x7e0] sm:$0xff] }
  0x3f   : > { %317 = vst [vmem:[%s4021_s27 + $0x290] sm:$0xff] %v316_v18  ;;  %319 = vst [vmem:[%s4021_s27 + $0x298] sm:$0xff] %v318_v19  ;;  %v322_v21 = vld [vmem:[%s4016_s26 + $0x7e8] sm:$0xff]  ;;  %v324_v22 = vld [vmem:[%s4016_s26 + $0x7f0] sm:$0xff] }
  0x40   : > { %321 = vst [vmem:[%s4021_s27 + $0x2a0] sm:$0xff] %v320_v20  ;;  %323 = vst [vmem:[%s4021_s27 + $0x2a8] sm:$0xff] %v322_v21  ;;  %v326_v23 = vld [vmem:[%s4016_s26 + $0x828] sm:$0xff]  ;;  %v328_v24 = vld [vmem:[%s4016_s26 + $0x830] sm:$0xff] }
  0x41   : > { %325 = vst [vmem:[%s4021_s27 + $0x2b0] sm:$0xff] %v324_v22  ;;  %v330_v25 = vld [vmem:[%s4016_s26 + $0x838] sm:$0xff]  ;;  %327 = vst [vmem:[%s4021_s27 + $0x2b8] sm:$0xff] %v326_v23  ;;  %v332_v26 = vld [vmem:[%s4016_s26 + $0x870] sm:$0xff] }
  0x42   : > { %329 = vst [vmem:[%s4021_s27 + $0x2c0] sm:$0xff] %v328_v24  ;;  %331 = vst [vmem:[%s4021_s27 + $0x2c8] sm:$0xff] %v330_v25  ;;  %v334_v27 = vld [vmem:[%s4016_s26 + $0x878] sm:$0xff]  ;;  %v336_v28 = vld [vmem:[%s4016_s26 + $0x880] sm:$0xff] }
  0x43   : > { %333 = vst [vmem:[%s4021_s27 + $0x2d0] sm:$0xff] %v332_v26  ;;  %335 = vst [vmem:[%s4021_s27 + $0x2d8] sm:$0xff] %v334_v27  ;;  %v338_v29 = vld [vmem:[%s4016_s26 + $0x8b8] sm:$0xff]  ;;  %v340_v30 = vld [vmem:[%s4016_s26 + $0x8c0] sm:$0xff] }
  0x44   : > { %337 = vst [vmem:[%s4021_s27 + $0x2e0] sm:$0xff] %v336_v28  ;;  %v342_v31 = vld [vmem:[%s4016_s26 + $0x8c8] sm:$0xff]  ;;  %339 = vst [vmem:[%s4021_s27 + $0x2e8] sm:$0xff] %v338_v29  ;;  %v344_v32 = vld [vmem:[%s4016_s26 + $0x900] sm:$0xff] }
  0x45   : > { %341 = vst [vmem:[%s4021_s27 + $0x2f0] sm:$0xff] %v340_v30  ;;  %343 = vst [vmem:[%s4021_s27 + $0x2f8] sm:$0xff] %v342_v31  ;;  %v346_v33 = vld [vmem:[%s4016_s26 + $0x908] sm:$0xff]  ;;  %v348_v34 = vld [vmem:[%s4016_s26 + $0x910] sm:$0xff] }
  0x46   : > { %345 = vst [vmem:[%s4021_s27 + $0x300] sm:$0xff] %v344_v32  ;;  %347 = vst [vmem:[%s4021_s27 + $0x308] sm:$0xff] %v346_v33  ;;  %v350_v35 = vld [vmem:[%s4016_s26 + $0x948] sm:$0xff]  ;;  %v352_v36 = vld [vmem:[%s4016_s26 + $0x950] sm:$0xff] }
  0x47   : > { %349 = vst [vmem:[%s4021_s27 + $0x310] sm:$0xff] %v348_v34  ;;  %v354_v37 = vld [vmem:[%s4016_s26 + $0x958] sm:$0xff]  ;;  %351 = vst [vmem:[%s4021_s27 + $0x318] sm:$0xff] %v350_v35  ;;  %v356_v38 = vld [vmem:[%s4016_s26 + $0x990] sm:$0xff] }
  0x48   : > { %353 = vst [vmem:[%s4021_s27 + $0x320] sm:$0xff] %v352_v36  ;;  %355 = vst [vmem:[%s4021_s27 + $0x328] sm:$0xff] %v354_v37  ;;  %v358_v39 = vld [vmem:[%s4016_s26 + $0x998] sm:$0xff]  ;;  %v360_v40 = vld [vmem:[%s4016_s26 + $0x9a0] sm:$0xff] }
  0x49   : > { %357 = vst [vmem:[%s4021_s27 + $0x330] sm:$0xff] %v356_v38  ;;  %359 = vst [vmem:[%s4021_s27 + $0x338] sm:$0xff] %v358_v39  ;;  %v362_v41 = vld [vmem:[%s4016_s26 + $0x9d8] sm:$0xff]  ;;  %v364_v42 = vld [vmem:[%s4016_s26 + $0x9e0] sm:$0xff] }
  0x4a   : > { %361 = vst [vmem:[%s4021_s27 + $0x340] sm:$0xff] %v360_v40  ;;  %v366_v43 = vld [vmem:[%s4016_s26 + $0x9e8] sm:$0xff]  ;;  %363 = vst [vmem:[%s4021_s27 + $0x348] sm:$0xff] %v362_v41  ;;  %v368_v44 = vld [vmem:[%s4016_s26 + $0xa20] sm:$0xff] }
  0x4b   : > { %365 = vst [vmem:[%s4021_s27 + $0x350] sm:$0xff] %v364_v42  ;;  %367 = vst [vmem:[%s4021_s27 + $0x358] sm:$0xff] %v366_v43  ;;  %v370_v45 = vld [vmem:[%s4016_s26 + $0xa28] sm:$0xff]  ;;  %v372_v46 = vld [vmem:[%s4016_s26 + $0xa30] sm:$0xff] }
  0x4c   : > { %369 = vst [vmem:[%s4021_s27 + $0x360] sm:$0xff] %v368_v44  ;;  %371 = vst [vmem:[%s4021_s27 + $0x368] sm:$0xff] %v370_v45  ;;  %v374_v47 = vld [vmem:[%s4016_s26 + $0xa68] sm:$0xff]  ;;  %v376_v48 = vld [vmem:[%s4016_s26 + $0xa70] sm:$0xff] }
  0x4d   : > { %373 = vst [vmem:[%s4021_s27 + $0x370] sm:$0xff] %v372_v46  ;;  %v378_v49 = vld [vmem:[%s4016_s26 + $0xa78] sm:$0xff]  ;;  %375 = vst [vmem:[%s4021_s27 + $0x378] sm:$0xff] %v374_v47  ;;  %v380_v50 = vld [vmem:[%s4016_s26 + $0xab0] sm:$0xff] }
  0x4e   : > { %377 = vst [vmem:[%s4021_s27 + $0x380] sm:$0xff] %v376_v48  ;;  %379 = vst [vmem:[%s4021_s27 + $0x388] sm:$0xff] %v378_v49  ;;  %v382_v51 = vld [vmem:[%s4016_s26 + $0xab8] sm:$0xff]  ;;  %v384_v52 = vld [vmem:[%s4016_s26 + $0xac0] sm:$0xff] }
  0x4f   : > { %381 = vst [vmem:[%s4021_s27 + $0x390] sm:$0xff] %v380_v50  ;;  %383 = vst [vmem:[%s4021_s27 + $0x398] sm:$0xff] %v382_v51  ;;  %v386_v53 = vld [vmem:[%s4016_s26 + $0xaf8] sm:$0xff]  ;;  %v388_v54 = vld [vmem:[%s4016_s26 + $0xb00] sm:$0xff] }
  0x50   : > { %385 = vst [vmem:[%s4021_s27 + $0x3a0] sm:$0xff] %v384_v52  ;;  %v390_v55 = vld [vmem:[%s4016_s26 + $0xb08] sm:$0xff]  ;;  %387 = vst [vmem:[%s4021_s27 + $0x3a8] sm:$0xff] %v386_v53  ;;  %v392_v56 = vld [vmem:[%s4016_s26 + $0xb40] sm:$0xff] }
  0x51   : > { %389 = vst [vmem:[%s4021_s27 + $0x3b0] sm:$0xff] %v388_v54  ;;  %391 = vst [vmem:[%s4021_s27 + $0x3b8] sm:$0xff] %v390_v55  ;;  %v394_v57 = vld [vmem:[%s4016_s26 + $0xb48] sm:$0xff]  ;;  %v396_v58 = vld [vmem:[%s4016_s26 + $0xb50] sm:$0xff] }
  0x52   : > { %393 = vst [vmem:[%s4021_s27 + $0x3c0] sm:$0xff] %v392_v56  ;;  %395 = vst [vmem:[%s4021_s27 + $0x3c8] sm:$0xff] %v394_v57  ;;  %v398_v59 = vld [vmem:[%s4016_s26 + $0xb88] sm:$0xff]  ;;  %v400_v60 = vld [vmem:[%s4016_s26 + $0xb90] sm:$0xff] }
  0x53   : > { %397 = vst [vmem:[%s4021_s27 + $0x3d0] sm:$0xff] %v396_v58  ;;  %v402_v61 = vld [vmem:[%s4016_s26 + $0xb98] sm:$0xff]  ;;  %399 = vst [vmem:[%s4021_s27 + $0x3d8] sm:$0xff] %v398_v59  ;;  %v404_v62 = vld [vmem:[%s4016_s26 + $0xbd0] sm:$0xff] }
  0x54   : > { %401 = vst [vmem:[%s4021_s27 + $0x3e0] sm:$0xff] %v400_v60  ;;  %403 = vst [vmem:[%s4021_s27 + $0x3e8] sm:$0xff] %v402_v61  ;;  %v406_v63 = vld [vmem:[%s4016_s26 + $0xbd8] sm:$0xff]  ;;  %v408_v0 = vld [vmem:[%s4016_s26 + $0xbe0] sm:$0xff] }
  0x55   : > { %405 = vst [vmem:[%s4021_s27 + $0x3f0] sm:$0xff] %v404_v62  ;;  %407 = vst [vmem:[%s4021_s27 + $0x3f8] sm:$0xff] %v406_v63  ;;  %v410_v1 = vld [vmem:[%s4016_s26 + $0xc18] sm:$0xff]  ;;  %v412_v2 = vld [vmem:[%s4016_s26 + $0xc20] sm:$0xff] }
  0x56   : > { %409 = vst [vmem:[%s4021_s27 + $0x400] sm:$0xff] %v408_v0  ;;  %v414_v3 = vld [vmem:[%s4016_s26 + $0xc28] sm:$0xff]  ;;  %411 = vst [vmem:[%s4021_s27 + $0x408] sm:$0xff] %v410_v1  ;;  %v416_v4 = vld [vmem:[%s4016_s26 + $0xc60] sm:$0xff] }
  0x57   : > { %413 = vst [vmem:[%s4021_s27 + $0x410] sm:$0xff] %v412_v2  ;;  %415 = vst [vmem:[%s4021_s27 + $0x418] sm:$0xff] %v414_v3  ;;  %v418_v5 = vld [vmem:[%s4016_s26 + $0xc68] sm:$0xff]  ;;  %v420_v6 = vld [vmem:[%s4016_s26 + $0xc70] sm:$0xff] }
  0x58   : > { %417 = vst [vmem:[%s4021_s27 + $0x420] sm:$0xff] %v416_v4  ;;  %419 = vst [vmem:[%s4021_s27 + $0x428] sm:$0xff] %v418_v5  ;;  %v422_v7 = vld [vmem:[%s4016_s26 + $0xca8] sm:$0xff]  ;;  %v424_v8 = vld [vmem:[%s4016_s26 + $0xcb0] sm:$0xff] }
  0x59   : > { %421 = vst [vmem:[%s4021_s27 + $0x430] sm:$0xff] %v420_v6  ;;  %v426_v9 = vld [vmem:[%s4016_s26 + $0xcb8] sm:$0xff]  ;;  %423 = vst [vmem:[%s4021_s27 + $0x438] sm:$0xff] %v422_v7  ;;  %v428_v10 = vld [vmem:[%s4016_s26 + $0xcf0] sm:$0xff] }
  0x5a   : > { %425 = vst [vmem:[%s4021_s27 + $0x440] sm:$0xff] %v424_v8  ;;  %427 = vst [vmem:[%s4021_s27 + $0x448] sm:$0xff] %v426_v9  ;;  %v430_v11 = vld [vmem:[%s4016_s26 + $0xcf8] sm:$0xff]  ;;  %v432_v12 = vld [vmem:[%s4016_s26 + $0xd00] sm:$0xff] }
  0x5b   : > { %429 = vst [vmem:[%s4021_s27 + $0x450] sm:$0xff] %v428_v10  ;;  %431 = vst [vmem:[%s4021_s27 + $0x458] sm:$0xff] %v430_v11  ;;  %v434_v13 = vld [vmem:[%s4016_s26 + $0xd38] sm:$0xff]  ;;  %v436_v14 = vld [vmem:[%s4016_s26 + $0xd40] sm:$0xff] }
  0x5c   : > { %433 = vst [vmem:[%s4021_s27 + $0x460] sm:$0xff] %v432_v12  ;;  %v438_v15 = vld [vmem:[%s4016_s26 + $0xd48] sm:$0xff]  ;;  %435 = vst [vmem:[%s4021_s27 + $0x468] sm:$0xff] %v434_v13  ;;  %v440_v16 = vld [vmem:[%s4016_s26 + $0xd80] sm:$0xff] }
  0x5d   : > { %437 = vst [vmem:[%s4021_s27 + $0x470] sm:$0xff] %v436_v14  ;;  %439 = vst [vmem:[%s4021_s27 + $0x478] sm:$0xff] %v438_v15  ;;  %v442_v17 = vld [vmem:[%s4016_s26 + $0xd88] sm:$0xff]  ;;  %v444_v18 = vld [vmem:[%s4016_s26 + $0xd90] sm:$0xff] }
  0x5e   : > { %441 = vst [vmem:[%s4021_s27 + $0x480] sm:$0xff] %v440_v16  ;;  %443 = vst [vmem:[%s4021_s27 + $0x488] sm:$0xff] %v442_v17  ;;  %v446_v19 = vld [vmem:[%s4016_s26 + $0xdc8] sm:$0xff]  ;;  %v448_v20 = vld [vmem:[%s4016_s26 + $0xdd0] sm:$0xff] }
  0x5f   : > { %445 = vst [vmem:[%s4021_s27 + $0x490] sm:$0xff] %v444_v18  ;;  %v450_v21 = vld [vmem:[%s4016_s26 + $0xdd8] sm:$0xff]  ;;  %447 = vst [vmem:[%s4021_s27 + $0x498] sm:$0xff] %v446_v19  ;;  %v452_v22 = vld [vmem:[%s4016_s26 + $0xe10] sm:$0xff] }
  0x60   : > { %449 = vst [vmem:[%s4021_s27 + $0x4a0] sm:$0xff] %v448_v20  ;;  %451 = vst [vmem:[%s4021_s27 + $0x4a8] sm:$0xff] %v450_v21  ;;  %v454_v23 = vld [vmem:[%s4016_s26 + $0xe18] sm:$0xff]  ;;  %v456_v24 = vld [vmem:[%s4016_s26 + $0xe20] sm:$0xff] }
  0x61   : > { %453 = vst [vmem:[%s4021_s27 + $0x4b0] sm:$0xff] %v452_v22  ;;  %455 = vst [vmem:[%s4021_s27 + $0x4b8] sm:$0xff] %v454_v23  ;;  %v458_v25 = vld [vmem:[%s4016_s26 + $0xe58] sm:$0xff]  ;;  %v460_v26 = vld [vmem:[%s4016_s26 + $0xe60] sm:$0xff] }
  0x62   : > { %457 = vst [vmem:[%s4021_s27 + $0x4c0] sm:$0xff] %v456_v24  ;;  %v462_v27 = vld [vmem:[%s4016_s26 + $0xe68] sm:$0xff]  ;;  %459 = vst [vmem:[%s4021_s27 + $0x4c8] sm:$0xff] %v458_v25  ;;  %v464_v28 = vld [vmem:[%s4016_s26 + $0xea0] sm:$0xff] }
  0x63   : > { %461 = vst [vmem:[%s4021_s27 + $0x4d0] sm:$0xff] %v460_v26  ;;  %463 = vst [vmem:[%s4021_s27 + $0x4d8] sm:$0xff] %v462_v27  ;;  %v466_v29 = vld [vmem:[%s4016_s26 + $0xea8] sm:$0xff]  ;;  %v468_v30 = vld [vmem:[%s4016_s26 + $0xeb0] sm:$0xff] }
  0x64   : > { %465 = vst [vmem:[%s4021_s27 + $0x4e0] sm:$0xff] %v464_v28  ;;  %467 = vst [vmem:[%s4021_s27 + $0x4e8] sm:$0xff] %v466_v29  ;;  %v470_v31 = vld [vmem:[%s4016_s26 + $0xee8] sm:$0xff]  ;;  %v472_v32 = vld [vmem:[%s4016_s26 + $0xef0] sm:$0xff] }
  0x65   : > { %469 = vst [vmem:[%s4021_s27 + $0x4f0] sm:$0xff] %v468_v30  ;;  %v474_v33 = vld [vmem:[%s4016_s26 + $0xef8] sm:$0xff]  ;;  %471 = vst [vmem:[%s4021_s27 + $0x4f8] sm:$0xff] %v470_v31  ;;  %v476_v34 = vld [vmem:[%s4016_s26 + $0xf30] sm:$0xff] }
  0x66   : > { %473 = vst [vmem:[%s4021_s27 + $0x500] sm:$0xff] %v472_v32  ;;  %475 = vst [vmem:[%s4021_s27 + $0x508] sm:$0xff] %v474_v33  ;;  %v478_v35 = vld [vmem:[%s4016_s26 + $0xf38] sm:$0xff]  ;;  %v480_v36 = vld [vmem:[%s4016_s26 + $0xf40] sm:$0xff] }
  0x67   : > { %477 = vst [vmem:[%s4021_s27 + $0x510] sm:$0xff] %v476_v34  ;;  %479 = vst [vmem:[%s4021_s27 + $0x518] sm:$0xff] %v478_v35  ;;  %v482_v37 = vld [vmem:[%s4016_s26 + $0xf78] sm:$0xff]  ;;  %v484_v38 = vld [vmem:[%s4016_s26 + $0xf80] sm:$0xff] }
  0x68   : > { %481 = vst [vmem:[%s4021_s27 + $0x520] sm:$0xff] %v480_v36  ;;  %v486_v39 = vld [vmem:[%s4016_s26 + $0xf88] sm:$0xff]  ;;  %483 = vst [vmem:[%s4021_s27 + $0x528] sm:$0xff] %v482_v37  ;;  %v488_v40 = vld [vmem:[%s4016_s26 + $0xfc0] sm:$0xff] }
  0x69   : > { %485 = vst [vmem:[%s4021_s27 + $0x530] sm:$0xff] %v484_v38  ;;  %487 = vst [vmem:[%s4021_s27 + $0x538] sm:$0xff] %v486_v39  ;;  %v490_v41 = vld [vmem:[%s4016_s26 + $0xfc8] sm:$0xff]  ;;  %v492_v42 = vld [vmem:[%s4016_s26 + $0xfd0] sm:$0xff] }
  0x6a   : > { %489 = vst [vmem:[%s4021_s27 + $0x540] sm:$0xff] %v488_v40  ;;  %491 = vst [vmem:[%s4021_s27 + $0x548] sm:$0xff] %v490_v41  ;;  %v494_v43 = vld [vmem:[%s4016_s26 + $0x1008] sm:$0xff]  ;;  %v496_v44 = vld [vmem:[%s4016_s26 + $0x1010] sm:$0xff] }
  0x6b   : > { %493 = vst [vmem:[%s4021_s27 + $0x550] sm:$0xff] %v492_v42  ;;  %v498_v45 = vld [vmem:[%s4016_s26 + $0x1018] sm:$0xff]  ;;  %495 = vst [vmem:[%s4021_s27 + $0x558] sm:$0xff] %v494_v43  ;;  %v500_v46 = vld [vmem:[%s4016_s26 + $0x1050] sm:$0xff] }
  0x6c   : > { %497 = vst [vmem:[%s4021_s27 + $0x560] sm:$0xff] %v496_v44  ;;  %499 = vst [vmem:[%s4021_s27 + $0x568] sm:$0xff] %v498_v45  ;;  %v502_v47 = vld [vmem:[%s4016_s26 + $0x1058] sm:$0xff]  ;;  %v504_v48 = vld [vmem:[%s4016_s26 + $0x1060] sm:$0xff] }
  0x6d   : > { %501 = vst [vmem:[%s4021_s27 + $0x570] sm:$0xff] %v500_v46  ;;  %503 = vst [vmem:[%s4021_s27 + $0x578] sm:$0xff] %v502_v47  ;;  %v506_v49 = vld [vmem:[%s4016_s26 + $0x1098] sm:$0xff]  ;;  %v508_v50 = vld [vmem:[%s4016_s26 + $0x10a0] sm:$0xff] }
  0x6e   : > { %505 = vst [vmem:[%s4021_s27 + $0x580] sm:$0xff] %v504_v48  ;;  %v510_v51 = vld [vmem:[%s4016_s26 + $0x10a8] sm:$0xff]  ;;  %507 = vst [vmem:[%s4021_s27 + $0x588] sm:$0xff] %v506_v49  ;;  %v512_v52 = vld [vmem:[%s4016_s26 + $0x10e0] sm:$0xff] }
  0x6f   : > { %509 = vst [vmem:[%s4021_s27 + $0x590] sm:$0xff] %v508_v50  ;;  %511 = vst [vmem:[%s4021_s27 + $0x598] sm:$0xff] %v510_v51  ;;  %v514_v53 = vld [vmem:[%s4016_s26 + $0x10e8] sm:$0xff]  ;;  %v516_v54 = vld [vmem:[%s4016_s26 + $0x10f0] sm:$0xff] }
  0x70   : > { %513 = vst [vmem:[%s4021_s27 + $0x5a0] sm:$0xff] %v512_v52  ;;  %515 = vst [vmem:[%s4021_s27 + $0x5a8] sm:$0xff] %v514_v53  ;;  %v518_v55 = vld [vmem:[%s4016_s26 + $0x1128] sm:$0xff]  ;;  %v520_v56 = vld [vmem:[%s4016_s26 + $0x1130] sm:$0xff] }
  0x71   : > { %517 = vst [vmem:[%s4021_s27 + $0x5b0] sm:$0xff] %v516_v54  ;;  %v522_v57 = vld [vmem:[%s4016_s26 + $0x1138] sm:$0xff]  ;;  %519 = vst [vmem:[%s4021_s27 + $0x5b8] sm:$0xff] %v518_v55  ;;  %v524_v58 = vld [vmem:[%s4016_s26 + $0x1170] sm:$0xff] }
  0x72   : > { %521 = vst [vmem:[%s4021_s27 + $0x5c0] sm:$0xff] %v520_v56  ;;  %523 = vst [vmem:[%s4021_s27 + $0x5c8] sm:$0xff] %v522_v57  ;;  %v526_v59 = vld [vmem:[%s4016_s26 + $0x1178] sm:$0xff]  ;;  %v528_v60 = vld [vmem:[%s4016_s26 + $0x1180] sm:$0xff] }
  0x73   : > { %525 = vst [vmem:[%s4021_s27 + $0x5d0] sm:$0xff] %v524_v58  ;;  %527 = vst [vmem:[%s4021_s27 + $0x5d8] sm:$0xff] %v526_v59  ;;  %v530_v61 = vld [vmem:[%s4016_s26 + $0x11b8] sm:$0xff]  ;;  %v532_v62 = vld [vmem:[%s4016_s26 + $0x11c0] sm:$0xff] }
  0x74   : > { %529 = vst [vmem:[%s4021_s27 + $0x5e0] sm:$0xff] %v528_v60  ;;  %v534_v63 = vld [vmem:[%s4016_s26 + $0x11c8] sm:$0xff]  ;;  %531 = vst [vmem:[%s4021_s27 + $0x5e8] sm:$0xff] %v530_v61  ;;  %v536_v0 = vld [vmem:[%s4016_s26 + $0x1200] sm:$0xff] }
  0x75   : > { %533 = vst [vmem:[%s4021_s27 + $0x5f0] sm:$0xff] %v532_v62  ;;  %535 = vst [vmem:[%s4021_s27 + $0x5f8] sm:$0xff] %v534_v63  ;;  %v538_v1 = vld [vmem:[%s4016_s26 + $0x1208] sm:$0xff]  ;;  %v540_v2 = vld [vmem:[%s4016_s26 + $0x1210] sm:$0xff] }
  0x76   : > { %537 = vst [vmem:[%s4021_s27 + $0x600] sm:$0xff] %v536_v0  ;;  %539 = vst [vmem:[%s4021_s27 + $0x608] sm:$0xff] %v538_v1  ;;  %v542_v3 = vld [vmem:[%s4016_s26 + $0x1248] sm:$0xff]  ;;  %v544_v4 = vld [vmem:[%s4016_s26 + $0x1250] sm:$0xff] }
  0x77   : > { %541 = vst [vmem:[%s4021_s27 + $0x610] sm:$0xff] %v540_v2  ;;  %v546_v5 = vld [vmem:[%s4016_s26 + $0x1258] sm:$0xff]  ;;  %543 = vst [vmem:[%s4021_s27 + $0x618] sm:$0xff] %v542_v3  ;;  %v548_v6 = vld [vmem:[%s4016_s26 + $0x1290] sm:$0xff] }
  0x78   : > { %545 = vst [vmem:[%s4021_s27 + $0x620] sm:$0xff] %v544_v4  ;;  %547 = vst [vmem:[%s4021_s27 + $0x628] sm:$0xff] %v546_v5  ;;  %v550_v7 = vld [vmem:[%s4016_s26 + $0x1298] sm:$0xff]  ;;  %v552_v8 = vld [vmem:[%s4016_s26 + $0x12a0] sm:$0xff] }
  0x79   : > { %549 = vst [vmem:[%s4021_s27 + $0x630] sm:$0xff] %v548_v6  ;;  %551 = vst [vmem:[%s4021_s27 + $0x638] sm:$0xff] %v550_v7  ;;  %v554_v9 = vld [vmem:[%s4016_s26 + $0x12d8] sm:$0xff]  ;;  %v556_v10 = vld [vmem:[%s4016_s26 + $0x12e0] sm:$0xff] }
  0x7a   : > { %553 = vst [vmem:[%s4021_s27 + $0x640] sm:$0xff] %v552_v8  ;;  %v558_v11 = vld [vmem:[%s4016_s26 + $0x12e8] sm:$0xff]  ;;  %555 = vst [vmem:[%s4021_s27 + $0x648] sm:$0xff] %v554_v9  ;;  %v560_v12 = vld [vmem:[%s4016_s26 + $0x1320] sm:$0xff] }
  0x7b   : > { %557 = vst [vmem:[%s4021_s27 + $0x650] sm:$0xff] %v556_v10  ;;  %559 = vst [vmem:[%s4021_s27 + $0x658] sm:$0xff] %v558_v11  ;;  %v562_v13 = vld [vmem:[%s4016_s26 + $0x1328] sm:$0xff]  ;;  %v564_v14 = vld [vmem:[%s4016_s26 + $0x1330] sm:$0xff] }
  0x7c   : > { %561 = vst [vmem:[%s4021_s27 + $0x660] sm:$0xff] %v560_v12  ;;  %563 = vst [vmem:[%s4021_s27 + $0x668] sm:$0xff] %v562_v13  ;;  %v566_v15 = vld [vmem:[%s4016_s26 + $0x1368] sm:$0xff]  ;;  %v568_v16 = vld [vmem:[%s4016_s26 + $0x1370] sm:$0xff] }
  0x7d   : > { %565 = vst [vmem:[%s4021_s27 + $0x670] sm:$0xff] %v564_v14  ;;  %v570_v17 = vld [vmem:[%s4016_s26 + $0x1378] sm:$0xff]  ;;  %567 = vst [vmem:[%s4021_s27 + $0x678] sm:$0xff] %v566_v15  ;;  %v572_v18 = vld [vmem:[%s4016_s26 + $0x13b0] sm:$0xff] }
  0x7e   : > { %569 = vst [vmem:[%s4021_s27 + $0x680] sm:$0xff] %v568_v16  ;;  %571 = vst [vmem:[%s4021_s27 + $0x688] sm:$0xff] %v570_v17  ;;  %v574_v19 = vld [vmem:[%s4016_s26 + $0x13b8] sm:$0xff]  ;;  %v576_v20 = vld [vmem:[%s4016_s26 + $0x13c0] sm:$0xff] }
  0x7f   : > { %573 = vst [vmem:[%s4021_s27 + $0x690] sm:$0xff] %v572_v18  ;;  %575 = vst [vmem:[%s4021_s27 + $0x698] sm:$0xff] %v574_v19  ;;  %v578_v21 = vld [vmem:[%s4016_s26 + $0x13f8] sm:$0xff]  ;;  %v580_v22 = vld [vmem:[%s4016_s26 + $0x1400] sm:$0xff] }
  0x80   : > { %577 = vst [vmem:[%s4021_s27 + $0x6a0] sm:$0xff] %v576_v20  ;;  %v582_v23 = vld [vmem:[%s4016_s26 + $0x1408] sm:$0xff]  ;;  %579 = vst [vmem:[%s4021_s27 + $0x6a8] sm:$0xff] %v578_v21  ;;  %v584_v24 = vld [vmem:[%s4016_s26 + $0x1440] sm:$0xff] }
  0x81   : > { %581 = vst [vmem:[%s4021_s27 + $0x6b0] sm:$0xff] %v580_v22  ;;  %583 = vst [vmem:[%s4021_s27 + $0x6b8] sm:$0xff] %v582_v23  ;;  %v586_v25 = vld [vmem:[%s4016_s26 + $0x1448] sm:$0xff]  ;;  %v588_v26 = vld [vmem:[%s4016_s26 + $0x1450] sm:$0xff] }
  0x82   : > { %585 = vst [vmem:[%s4021_s27 + $0x6c0] sm:$0xff] %v584_v24  ;;  %587 = vst [vmem:[%s4021_s27 + $0x6c8] sm:$0xff] %v586_v25  ;;  %v590_v27 = vld [vmem:[%s4016_s26 + $0x1488] sm:$0xff]  ;;  %v592_v28 = vld [vmem:[%s4016_s26 + $0x1490] sm:$0xff] }
  0x83   : > { %589 = vst [vmem:[%s4021_s27 + $0x6d0] sm:$0xff] %v588_v26  ;;  %v594_v29 = vld [vmem:[%s4016_s26 + $0x1498] sm:$0xff]  ;;  %591 = vst [vmem:[%s4021_s27 + $0x6d8] sm:$0xff] %v590_v27  ;;  %v596_v30 = vld [vmem:[%s4016_s26 + $0x14d0] sm:$0xff] }
  0x84   : > { %593 = vst [vmem:[%s4021_s27 + $0x6e0] sm:$0xff] %v592_v28  ;;  %595 = vst [vmem:[%s4021_s27 + $0x6e8] sm:$0xff] %v594_v29  ;;  %v598_v31 = vld [vmem:[%s4016_s26 + $0x14d8] sm:$0xff]  ;;  %v600_v32 = vld [vmem:[%s4016_s26 + $0x14e0] sm:$0xff] }
  0x85   : > { %597 = vst [vmem:[%s4021_s27 + $0x6f0] sm:$0xff] %v596_v30  ;;  %599 = vst [vmem:[%s4021_s27 + $0x6f8] sm:$0xff] %v598_v31  ;;  %v602_v33 = vld [vmem:[%s4016_s26 + $0x1518] sm:$0xff]  ;;  %v604_v34 = vld [vmem:[%s4016_s26 + $0x1520] sm:$0xff] }
  0x86   : > { %601 = vst [vmem:[%s4021_s27 + $0x700] sm:$0xff] %v600_v32  ;;  %v606_v35 = vld [vmem:[%s4016_s26 + $0x1528] sm:$0xff]  ;;  %603 = vst [vmem:[%s4021_s27 + $0x708] sm:$0xff] %v602_v33  ;;  %v608_v36 = vld [vmem:[%s4016_s26 + $0x1560] sm:$0xff] }
  0x87   : > { %605 = vst [vmem:[%s4021_s27 + $0x710] sm:$0xff] %v604_v34  ;;  %607 = vst [vmem:[%s4021_s27 + $0x718] sm:$0xff] %v606_v35  ;;  %v610_v37 = vld [vmem:[%s4016_s26 + $0x1568] sm:$0xff]  ;;  %v612_v38 = vld [vmem:[%s4016_s26 + $0x1570] sm:$0xff] }
  0x88   : > { %609 = vst [vmem:[%s4021_s27 + $0x720] sm:$0xff] %v608_v36  ;;  %611 = vst [vmem:[%s4021_s27 + $0x728] sm:$0xff] %v610_v37  ;;  %v614_v39 = vld [vmem:[%s4016_s26 + $0x15a8] sm:$0xff]  ;;  %v616_v40 = vld [vmem:[%s4016_s26 + $0x15b0] sm:$0xff] }
  0x89   : > { %613 = vst [vmem:[%s4021_s27 + $0x730] sm:$0xff] %v612_v38  ;;  %v618_v41 = vld [vmem:[%s4016_s26 + $0x15b8] sm:$0xff]  ;;  %615 = vst [vmem:[%s4021_s27 + $0x738] sm:$0xff] %v614_v39  ;;  %v620_v42 = vld [vmem:[%s4016_s26 + $0x15f0] sm:$0xff] }
  0x8a   : > { %617 = vst [vmem:[%s4021_s27 + $0x740] sm:$0xff] %v616_v40  ;;  %619 = vst [vmem:[%s4021_s27 + $0x748] sm:$0xff] %v618_v41  ;;  %v622_v43 = vld [vmem:[%s4016_s26 + $0x15f8] sm:$0xff]  ;;  %v624_v44 = vld [vmem:[%s4016_s26 + $0x1600] sm:$0xff] }
  0x8b   : > { %621 = vst [vmem:[%s4021_s27 + $0x750] sm:$0xff] %v620_v42  ;;  %623 = vst [vmem:[%s4021_s27 + $0x758] sm:$0xff] %v622_v43  ;;  %v626_v45 = vld [vmem:[%s4016_s26 + $0x1638] sm:$0xff]  ;;  %v628_v46 = vld [vmem:[%s4016_s26 + $0x1640] sm:$0xff] }
  0x8c   : > { %625 = vst [vmem:[%s4021_s27 + $0x760] sm:$0xff] %v624_v44  ;;  %v630_v47 = vld [vmem:[%s4016_s26 + $0x1648] sm:$0xff]  ;;  %627 = vst [vmem:[%s4021_s27 + $0x768] sm:$0xff] %v626_v45  ;;  %v632_v48 = vld [vmem:[%s4016_s26 + $0x1680] sm:$0xff] }
  0x8d   : > { %629 = vst [vmem:[%s4021_s27 + $0x770] sm:$0xff] %v628_v46  ;;  %631 = vst [vmem:[%s4021_s27 + $0x778] sm:$0xff] %v630_v47  ;;  %v634_v49 = vld [vmem:[%s4016_s26 + $0x1688] sm:$0xff]  ;;  %v636_v50 = vld [vmem:[%s4016_s26 + $0x1690] sm:$0xff] }
  0x8e   : > { %633 = vst [vmem:[%s4021_s27 + $0x780] sm:$0xff] %v632_v48  ;;  %635 = vst [vmem:[%s4021_s27 + $0x788] sm:$0xff] %v634_v49  ;;  %v638_v51 = vld [vmem:[%s4016_s26 + $0x16c8] sm:$0xff]  ;;  %v640_v52 = vld [vmem:[%s4016_s26 + $0x16d0] sm:$0xff] }
  0x8f   : > { %637 = vst [vmem:[%s4021_s27 + $0x790] sm:$0xff] %v636_v50  ;;  %v642_v53 = vld [vmem:[%s4016_s26 + $0x16d8] sm:$0xff]  ;;  %639 = vst [vmem:[%s4021_s27 + $0x798] sm:$0xff] %v638_v51  ;;  %v644_v54 = vld [vmem:[%s4016_s26 + $0x1710] sm:$0xff] }
  0x90   : > { %641 = vst [vmem:[%s4021_s27 + $0x7a0] sm:$0xff] %v640_v52  ;;  %643 = vst [vmem:[%s4021_s27 + $0x7a8] sm:$0xff] %v642_v53  ;;  %v646_v55 = vld [vmem:[%s4016_s26 + $0x1718] sm:$0xff]  ;;  %v648_v56 = vld [vmem:[%s4016_s26 + $0x1720] sm:$0xff] }
  0x91   : > { %645 = vst [vmem:[%s4021_s27 + $0x7b0] sm:$0xff] %v644_v54  ;;  %647 = vst [vmem:[%s4021_s27 + $0x7b8] sm:$0xff] %v646_v55  ;;  %v650_v57 = vld [vmem:[%s4016_s26 + $0x1758] sm:$0xff]  ;;  %v652_v58 = vld [vmem:[%s4016_s26 + $0x1760] sm:$0xff] }
  0x92   : > { %649 = vst [vmem:[%s4021_s27 + $0x7c0] sm:$0xff] %v648_v56  ;;  %v654_v59 = vld [vmem:[%s4016_s26 + $0x1768] sm:$0xff]  ;;  %651 = vst [vmem:[%s4021_s27 + $0x7c8] sm:$0xff] %v650_v57  ;;  %v656_v60 = vld [vmem:[%s4016_s26 + $0x17a0] sm:$0xff] }
  0x93   : > { %653 = vst [vmem:[%s4021_s27 + $0x7d0] sm:$0xff] %v652_v58  ;;  %655 = vst [vmem:[%s4021_s27 + $0x7d8] sm:$0xff] %v654_v59  ;;  %v658_v61 = vld [vmem:[%s4016_s26 + $0x17a8] sm:$0xff]  ;;  %v660_v62 = vld [vmem:[%s4016_s26 + $0x17b0] sm:$0xff] }
  0x94   : > { %657 = vst [vmem:[%s4021_s27 + $0x7e0] sm:$0xff] %v656_v60  ;;  %659 = vst [vmem:[%s4021_s27 + $0x7e8] sm:$0xff] %v658_v61  ;;  %v662_v63 = vld [vmem:[%s4016_s26 + $0x17e8] sm:$0xff]  ;;  %v664_v0 = vld [vmem:[%s4016_s26 + $0x17f0] sm:$0xff] }
  0x95   : > { %661 = vst [vmem:[%s4021_s27 + $0x7f0] sm:$0xff] %v660_v62  ;;  %v666_v1 = vld [vmem:[%s4016_s26 + $0x17f8] sm:$0xff]  ;;  %663 = vst [vmem:[%s4021_s27 + $0x7f8] sm:$0xff] %v662_v63  ;;  %v668_v2 = vld [vmem:[%s4016_s26 + $0x1830] sm:$0xff] }
  0x96   : > { %665 = vst [vmem:[%s4021_s27 + $0x800] sm:$0xff] %v664_v0  ;;  %667 = vst [vmem:[%s4021_s27 + $0x808] sm:$0xff] %v666_v1  ;;  %v670_v3 = vld [vmem:[%s4016_s26 + $0x1838] sm:$0xff]  ;;  %v672_v4 = vld [vmem:[%s4016_s26 + $0x1840] sm:$0xff] }
  0x97   : > { %669 = vst [vmem:[%s4021_s27 + $0x810] sm:$0xff] %v668_v2  ;;  %671 = vst [vmem:[%s4021_s27 + $0x818] sm:$0xff] %v670_v3  ;;  %v674_v5 = vld [vmem:[%s4016_s26 + $0x1878] sm:$0xff]  ;;  %v676_v6 = vld [vmem:[%s4016_s26 + $0x1880] sm:$0xff] }
  0x98   : > { %673 = vst [vmem:[%s4021_s27 + $0x820] sm:$0xff] %v672_v4  ;;  %v678_v7 = vld [vmem:[%s4016_s26 + $0x1888] sm:$0xff]  ;;  %675 = vst [vmem:[%s4021_s27 + $0x828] sm:$0xff] %v674_v5  ;;  %v680_v8 = vld [vmem:[%s4016_s26 + $0x18c0] sm:$0xff] }
  0x99   : > { %677 = vst [vmem:[%s4021_s27 + $0x830] sm:$0xff] %v676_v6  ;;  %679 = vst [vmem:[%s4021_s27 + $0x838] sm:$0xff] %v678_v7  ;;  %v682_v9 = vld [vmem:[%s4016_s26 + $0x18c8] sm:$0xff]  ;;  %v684_v10 = vld [vmem:[%s4016_s26 + $0x18d0] sm:$0xff] }
  0x9a   : > { %681 = vst [vmem:[%s4021_s27 + $0x840] sm:$0xff] %v680_v8  ;;  %683 = vst [vmem:[%s4021_s27 + $0x848] sm:$0xff] %v682_v9  ;;  %v686_v11 = vld [vmem:[%s4016_s26 + $0x1908] sm:$0xff]  ;;  %v688_v12 = vld [vmem:[%s4016_s26 + $0x1910] sm:$0xff] }
  0x9b   : > { %685 = vst [vmem:[%s4021_s27 + $0x850] sm:$0xff] %v684_v10  ;;  %v690_v13 = vld [vmem:[%s4016_s26 + $0x1918] sm:$0xff]  ;;  %687 = vst [vmem:[%s4021_s27 + $0x858] sm:$0xff] %v686_v11  ;;  %v692_v14 = vld [vmem:[%s4016_s26 + $0x1950] sm:$0xff] }
  0x9c   : > { %689 = vst [vmem:[%s4021_s27 + $0x860] sm:$0xff] %v688_v12  ;;  %691 = vst [vmem:[%s4021_s27 + $0x868] sm:$0xff] %v690_v13  ;;  %v694_v15 = vld [vmem:[%s4016_s26 + $0x1958] sm:$0xff]  ;;  %v696_v16 = vld [vmem:[%s4016_s26 + $0x1960] sm:$0xff] }
  0x9d   : > { %693 = vst [vmem:[%s4021_s27 + $0x870] sm:$0xff] %v692_v14  ;;  %695 = vst [vmem:[%s4021_s27 + $0x878] sm:$0xff] %v694_v15  ;;  %v698_v17 = vld [vmem:[%s4016_s26 + $0x1998] sm:$0xff]  ;;  %v700_v18 = vld [vmem:[%s4016_s26 + $0x19a0] sm:$0xff] }
  0x9e   : > { %697 = vst [vmem:[%s4021_s27 + $0x880] sm:$0xff] %v696_v16  ;;  %v702_v19 = vld [vmem:[%s4016_s26 + $0x19a8] sm:$0xff]  ;;  %699 = vst [vmem:[%s4021_s27 + $0x888] sm:$0xff] %v698_v17  ;;  %v704_v20 = vld [vmem:[%s4016_s26 + $0x19e0] sm:$0xff] }
  0x9f   : > { %701 = vst [vmem:[%s4021_s27 + $0x890] sm:$0xff] %v700_v18  ;;  %703 = vst [vmem:[%s4021_s27 + $0x898] sm:$0xff] %v702_v19  ;;  %v706_v21 = vld [vmem:[%s4016_s26 + $0x19e8] sm:$0xff]  ;;  %v708_v22 = vld [vmem:[%s4016_s26 + $0x19f0] sm:$0xff] }
  0xa0   : > { %705 = vst [vmem:[%s4021_s27 + $0x8a0] sm:$0xff] %v704_v20  ;;  %707 = vst [vmem:[%s4021_s27 + $0x8a8] sm:$0xff] %v706_v21  ;;  %v710_v23 = vld [vmem:[%s4016_s26 + $0x1a28] sm:$0xff]  ;;  %v712_v24 = vld [vmem:[%s4016_s26 + $0x1a30] sm:$0xff] }
  0xa1   : > { %709 = vst [vmem:[%s4021_s27 + $0x8b0] sm:$0xff] %v708_v22  ;;  %v714_v25 = vld [vmem:[%s4016_s26 + $0x1a38] sm:$0xff]  ;;  %711 = vst [vmem:[%s4021_s27 + $0x8b8] sm:$0xff] %v710_v23  ;;  %v716_v26 = vld [vmem:[%s4016_s26 + $0x1a70] sm:$0xff] }
  0xa2   : > { %713 = vst [vmem:[%s4021_s27 + $0x8c0] sm:$0xff] %v712_v24  ;;  %715 = vst [vmem:[%s4021_s27 + $0x8c8] sm:$0xff] %v714_v25  ;;  %v718_v27 = vld [vmem:[%s4016_s26 + $0x1a78] sm:$0xff]  ;;  %v720_v28 = vld [vmem:[%s4016_s26 + $0x1a80] sm:$0xff] }
  0xa3   : > { %717 = vst [vmem:[%s4021_s27 + $0x8d0] sm:$0xff] %v716_v26  ;;  %719 = vst [vmem:[%s4021_s27 + $0x8d8] sm:$0xff] %v718_v27  ;;  %v722_v29 = vld [vmem:[%s4016_s26 + $0x1ab8] sm:$0xff]  ;;  %v724_v30 = vld [vmem:[%s4016_s26 + $0x1ac0] sm:$0xff] }
  0xa4   : > { %721 = vst [vmem:[%s4021_s27 + $0x8e0] sm:$0xff] %v720_v28  ;;  %v726_v31 = vld [vmem:[%s4016_s26 + $0x1ac8] sm:$0xff]  ;;  %723 = vst [vmem:[%s4021_s27 + $0x8e8] sm:$0xff] %v722_v29 }
  0xa5   : > { %725 = vst [vmem:[%s4021_s27 + $0x8f0] sm:$0xff] %v724_v30  ;;  %727 = vst [vmem:[%s4021_s27 + $0x8f8] sm:$0xff] %v726_v31 }
  0xa6 PF: > { %p3112_p7 = scmp.ge.s32.totalorder %s3953_s14, 1  ;;  %p740_p8 = scmp.lt.s32.totalorder %s3953_s14, 4 }
  0xa8   : > { %p741_p9 = pnand %p3112_p7, %p740_p8 }
  0xa9   : > { %s747_s28 = sand.u32 (!%p741_p9), 1, %s3945_s12   ;;  %v4602_v32 = vld [vmem:[%s4981_s0 + $0x4] ss:$24 sps:$4 sm:$0xff] (!%p741_p9)   ;;  %s774_s29 = smul.u32 (!%p741_p9), 6, %s3991_s15 }
  0xaa   : > { %744 = sbr.rel (%p741_p9) target bundleno = 724 (0x2d4), region = 51  ;;  %v4609_v33 = vld [vmem:[%s4981_s0 + $0xc] ss:$24 sps:$4 sm:$0xff] (!%p741_p9)   ;;  %2608 = vmatprep.mubr.bf16.mxu1 (!%p741_p9), %v4602_v32 }
  0xab   : > { %s3461_s4 = smul.u32 (!%p741_p9), 2304, %s747_s28  ;;  %2651 = vmatprep.mubr.bf16.mxu0 (!%p741_p9), %v4609_v33  ;;  %p775_p10 = scmp.lt.s32.totalorder (!%p741_p9), %s774_s29, 17 }
  0xac   : > { %s3462_s6 = smul.u32 (!%p741_p9), 48, %s747_s28 }
  0xad   : > { %s4613_s7 = scalar_lea.vmem (!%p741_p9), [#allocation2], %s3461_s4 }
  0xae   : > { %v3487_v34 = vld [vmem:[%s4613_s7 + $0x4] ss:$24 sps:$4 sm:$0xff] (!%p741_p9)   ;;  %v3491_v36 = vld [vmem:[%s4613_s7] ss:$24 sps:$4 sm:$0xff] (!%p741_p9)   ;;  %v3493_v38 = vld [vmem:[%s4613_s7 + $0x34] ss:$24 sps:$4 sm:$0xff] (!%p741_p9)  }
  0xaf   : > { %v3489_v35 = vld [vmem:[%s4613_s7 + $0x304] ss:$24 sps:$4 sm:$0xff] (!%p741_p9)   ;;  %2576 = vmatprep.subr.bf16.mxu1 (!%p741_p9), %v3487_v34  ;;  %v3492_v37 = vld [vmem:[%s4613_s7 + $0x300] ss:$24 sps:$4 sm:$0xff] (!%p741_p9)   ;;  %v3495_v39 = vld [vmem:[%s4613_s7 + $0x334] ss:$24 sps:$4 sm:$0xff] (!%p741_p9)  }
  0xb0   : > { %2619 = vmatprep.subr.bf16.mxu0 (!%p741_p9), %v3489_v35  ;;  %2577 = vmatpush1.bf16.msra.mxu1 (!%p741_p9), %v3491_v36  ;;  %v3497_v40 = vld [vmem:[%s4613_s7 + $0x30] ss:$24 sps:$4 sm:$0xff] (!%p741_p9)   ;;  %v3499_v42 = vld [vmem:[%s4613_s7 + $0x64] ss:$24 sps:$4 sm:$0xff] (!%p741_p9)   ;;  %v3503_v44 = vld [vmem:[%s4613_s7 + $0x60] ss:$24 sps:$4 sm:$0xff] (!%p741_p9)  }
  0xb1   : > { %2620 = vmatpush1.bf16.msra.mxu0 %v3492_v37  ;;  %2578 = vmatprep.subr.bf16.mxu1 %v3493_v38  ;;  %v3498_v41 = vld [vmem:[%s4613_s7 + $0x330] ss:$24 sps:$4 sm:$0xff]   ;;  %v3501_v43 = vld [vmem:[%s4613_s7 + $0x364] ss:$24 sps:$4 sm:$0xff]   ;;  %v3504_v45 = vld [vmem:[%s4613_s7 + $0x360] ss:$24 sps:$4 sm:$0xff]  }
  0xb2   : > { %2621 = vmatprep.subr.bf16.mxu0 %v3495_v39  ;;  %v3505_v46 = vld [vmem:[%s4613_s7 + $0x94] ss:$24 sps:$4 sm:$0xff]   ;;  %v3509_v48 = vld [vmem:[%s4613_s7 + $0x90] ss:$24 sps:$4 sm:$0xff]   ;;  %v3511_v50 = vld [vmem:[%s4613_s7 + $0xc4] ss:$24 sps:$4 sm:$0xff]  }
  0xb3   : > { %v3507_v47 = vld [vmem:[%s4613_s7 + $0x394] ss:$24 sps:$4 sm:$0xff]   ;;  %v3510_v49 = vld [vmem:[%s4613_s7 + $0x390] ss:$24 sps:$4 sm:$0xff]   ;;  %v3513_v51 = vld [vmem:[%s4613_s7 + $0x3c4] ss:$24 sps:$4 sm:$0xff]  }
  0xb4   : > { %2579 = vmatpush1.bf16.msra.mxu1 %v3497_v40  ;;  %v3515_v52 = vld [vmem:[%s4613_s7 + $0xc0] ss:$24 sps:$4 sm:$0xff]   ;;  %v3517_v54 = vld [vmem:[%s4613_s7 + $0xf4] ss:$24 sps:$4 sm:$0xff]   ;;  %v3521_v56 = vld [vmem:[%s4613_s7 + $0xf0] ss:$24 sps:$4 sm:$0xff]  }
  0xb5   : > { %2622 = vmatpush1.bf16.msra.mxu0 %v3498_v41  ;;  %2580 = vmatprep.subr.bf16.mxu1 %v3499_v42  ;;  %v3516_v53 = vld [vmem:[%s4613_s7 + $0x3c0] ss:$24 sps:$4 sm:$0xff]   ;;  %v3519_v55 = vld [vmem:[%s4613_s7 + $0x3f4] ss:$24 sps:$4 sm:$0xff]   ;;  %v3522_v57 = vld [vmem:[%s4613_s7 + $0x3f0] ss:$24 sps:$4 sm:$0xff]  }
  0xb6   : > { %2623 = vmatprep.subr.bf16.mxu0 %v3501_v43  ;;  %v3523_v58 = vld [vmem:[%s4613_s7 + $0x124] ss:$24 sps:$4 sm:$0xff]   ;;  %v3527_v60 = vld [vmem:[%s4613_s7 + $0x120] ss:$24 sps:$4 sm:$0xff]   ;;  %v3529_v62 = vld [vmem:[%s4613_s7 + $0x154] ss:$24 sps:$4 sm:$0xff]  }
  0xb7   : > { %v3525_v59 = vld [vmem:[%s4613_s7 + $0x424] ss:$24 sps:$4 sm:$0xff]   ;;  %v3528_v61 = vld [vmem:[%s4613_s7 + $0x420] ss:$24 sps:$4 sm:$0xff]   ;;  %v3531_v63 = vld [vmem:[%s4613_s7 + $0x454] ss:$24 sps:$4 sm:$0xff]  }
  0xb8   : > { %2581 = vmatpush1.bf16.msra.mxu1 %v3503_v44  ;;  %v3533_v0 = vld [vmem:[%s4613_s7 + $0x150] ss:$24 sps:$4 sm:$0xff]   ;;  %v3535_v2 = vld [vmem:[%s4613_s7 + $0x184] ss:$24 sps:$4 sm:$0xff]   ;;  %v3539_v4 = vld [vmem:[%s4613_s7 + $0x180] ss:$24 sps:$4 sm:$0xff]  }
  0xb9   : > { %2624 = vmatpush1.bf16.msra.mxu0 %v3504_v45  ;;  %2582 = vmatprep.subr.bf16.mxu1 %v3505_v46  ;;  %v3534_v1 = vld [vmem:[%s4613_s7 + $0x450] ss:$24 sps:$4 sm:$0xff]   ;;  %v3537_v3 = vld [vmem:[%s4613_s7 + $0x484] ss:$24 sps:$4 sm:$0xff]   ;;  %v3540_v5 = vld [vmem:[%s4613_s7 + $0x480] ss:$24 sps:$4 sm:$0xff]  }
  0xba   : > { %2625 = vmatprep.subr.bf16.mxu0 %v3507_v47  ;;  %v3541_v6 = vld [vmem:[%s4613_s7 + $0x1b4] ss:$24 sps:$4 sm:$0xff]   ;;  %v3545_v8 = vld [vmem:[%s4613_s7 + $0x1b0] ss:$24 sps:$4 sm:$0xff]   ;;  %v3547_v10 = vld [vmem:[%s4613_s7 + $0x1e4] ss:$24 sps:$4 sm:$0xff]  }
  0xbb   : > { %v3543_v7 = vld [vmem:[%s4613_s7 + $0x4b4] ss:$24 sps:$4 sm:$0xff]   ;;  %v3546_v9 = vld [vmem:[%s4613_s7 + $0x4b0] ss:$24 sps:$4 sm:$0xff]   ;;  %v3549_v11 = vld [vmem:[%s4613_s7 + $0x4e4] ss:$24 sps:$4 sm:$0xff]  }
  0xbc   : > { %2583 = vmatpush1.bf16.msra.mxu1 %v3509_v48  ;;  %v3551_v12 = vld [vmem:[%s4613_s7 + $0x1e0] ss:$24 sps:$4 sm:$0xff]   ;;  %v3553_v14 = vld [vmem:[%s4613_s7 + $0x214] ss:$24 sps:$4 sm:$0xff]   ;;  %v3557_v16 = vld [vmem:[%s4613_s7 + $0x210] ss:$24 sps:$4 sm:$0xff]  }
  0xbd   : > { %2626 = vmatpush1.bf16.msra.mxu0 %v3510_v49  ;;  %2584 = vmatprep.subr.bf16.mxu1 %v3511_v50  ;;  %v3552_v13 = vld [vmem:[%s4613_s7 + $0x4e0] ss:$24 sps:$4 sm:$0xff]   ;;  %v3555_v15 = vld [vmem:[%s4613_s7 + $0x514] ss:$24 sps:$4 sm:$0xff]   ;;  %v3558_v17 = vld [vmem:[%s4613_s7 + $0x510] ss:$24 sps:$4 sm:$0xff]  }
  0xbe   : > { %2627 = vmatprep.subr.bf16.mxu0 %v3513_v51  ;;  %v3559_v18 = vld [vmem:[%s4613_s7 + $0x244] ss:$24 sps:$4 sm:$0xff]   ;;  %v3563_v20 = vld [vmem:[%s4613_s7 + $0x240] ss:$24 sps:$4 sm:$0xff]   ;;  %v3565_v22 = vld [vmem:[%s4613_s7 + $0x274] ss:$24 sps:$4 sm:$0xff]  }
  0xbf   : > { %v3561_v19 = vld [vmem:[%s4613_s7 + $0x544] ss:$24 sps:$4 sm:$0xff]   ;;  %v3564_v21 = vld [vmem:[%s4613_s7 + $0x540] ss:$24 sps:$4 sm:$0xff]   ;;  %v3567_v23 = vld [vmem:[%s4613_s7 + $0x574] ss:$24 sps:$4 sm:$0xff]  }
  0xc0   : > { %2585 = vmatpush1.bf16.msra.mxu1 %v3515_v52  ;;  %v3569_v24 = vld [vmem:[%s4613_s7 + $0x270] ss:$24 sps:$4 sm:$0xff]   ;;  %v3571_v26 = vld [vmem:[%s4613_s7 + $0x2a4] ss:$24 sps:$4 sm:$0xff]   ;;  %v3575_v28 = vld [vmem:[%s4613_s7 + $0x2a0] ss:$24 sps:$4 sm:$0xff]  }
  0xc1   : > { %2628 = vmatpush1.bf16.msra.mxu0 %v3516_v53  ;;  %2586 = vmatprep.subr.bf16.mxu1 %v3517_v54  ;;  %v3570_v25 = vld [vmem:[%s4613_s7 + $0x570] ss:$24 sps:$4 sm:$0xff]   ;;  %v3573_v27 = vld [vmem:[%s4613_s7 + $0x5a4] ss:$24 sps:$4 sm:$0xff]   ;;  %v3576_v29 = vld [vmem:[%s4613_s7 + $0x5a0] ss:$24 sps:$4 sm:$0xff]  }
  0xc2   : > { %2629 = vmatprep.subr.bf16.mxu0 %v3519_v55  ;;  %v3577_v30 = vld [vmem:[%s4613_s7 + $0x2d4] ss:$24 sps:$4 sm:$0xff]   ;;  %v3581_v34 = vld [vmem:[%s4613_s7 + $0x2d0] ss:$24 sps:$4 sm:$0xff]   ;;  %v3589_v36 = vld [vmem:[%s4613_s7 + $0x604] ss:$24 sps:$4 sm:$0xff]  }
  0xc3   : > { %v3579_v31 = vld [vmem:[%s4613_s7 + $0x5d4] ss:$24 sps:$4 sm:$0xff]   ;;  %v3582_v35 = vld [vmem:[%s4613_s7 + $0x5d0] ss:$24 sps:$4 sm:$0xff]   ;;  %v4684_v38 = vld [vmem:[%s4981_s0] ss:$24 sps:$4 sm:$0xff]  }
  0xc4   : > { %2587 = vmatpush1.bf16.msra.mxu1 %v3521_v56  ;;  %v3592_v37 = vld [vmem:[%s4613_s7 + $0xc] ss:$24 sps:$4 sm:$0xff]   ;;  %v4689_v39 = vld [vmem:[%s4981_s0 + $0x8] ss:$24 sps:$4 sm:$0xff]   ;;  %v3600_v43 = vld [vmem:[%s4613_s7 + $0x3c] ss:$24 sps:$4 sm:$0xff]  }
  0xc5   : > { %2630 = vmatpush1.bf16.msra.mxu0 %v3522_v57  ;;  %2588 = vmatprep.subr.bf16.mxu1 %v3523_v58  ;;  %v3587_v40 = vld [vmem:[%s4613_s7 + $0x600] ss:$24 sps:$4 sm:$0xff]   ;;  %v3597_v42 = vld [vmem:[%s4613_s7 + $0x634] ss:$24 sps:$4 sm:$0xff]   ;;  %v3595_v44 = vld [vmem:[%s4613_s7 + $0x630] ss:$24 sps:$4 sm:$0xff]  }
  0xc6   : > { %2631 = vmatprep.subr.bf16.mxu0 %v3525_v59  ;;  %v3590_v41 = vld [vmem:[%s4613_s7 + $0x8] ss:$24 sps:$4 sm:$0xff]   ;;  %v3598_v45 = vld [vmem:[%s4613_s7 + $0x38] ss:$24 sps:$4 sm:$0xff]   ;;  %v3603_v46 = vld [vmem:[%s4613_s7 + $0x664] ss:$24 sps:$4 sm:$0xff]  }
  0xc7   : > { %v3606_v47 = vld [vmem:[%s4613_s7 + $0x6c] ss:$24 sps:$4 sm:$0xff]   ;;  %v3601_v48 = vld [vmem:[%s4613_s7 + $0x660] ss:$24 sps:$4 sm:$0xff]   ;;  %v3612_v51 = vld [vmem:[%s4613_s7 + $0x9c] ss:$24 sps:$4 sm:$0xff]  }
  0xc8   : > { %2589 = vmatpush1.bf16.msra.mxu1 %v3527_v60  ;;  %v3604_v49 = vld [vmem:[%s4613_s7 + $0x68] ss:$24 sps:$4 sm:$0xff]   ;;  %v3609_v50 = vld [vmem:[%s4613_s7 + $0x694] ss:$24 sps:$4 sm:$0xff]   ;;  %v3610_v53 = vld [vmem:[%s4613_s7 + $0x98] ss:$24 sps:$4 sm:$0xff]  }
  0xc9   : > { %2632 = vmatpush1.bf16.msra.mxu0 %v3528_v61  ;;  %2590 = vmatprep.subr.bf16.mxu1 %v3529_v62  ;;  %v3607_v52 = vld [vmem:[%s4613_s7 + $0x690] ss:$24 sps:$4 sm:$0xff]   ;;  %v3615_v54 = vld [vmem:[%s4613_s7 + $0x6c4] ss:$24 sps:$4 sm:$0xff]   ;;  %v3613_v56 = vld [vmem:[%s4613_s7 + $0x6c0] ss:$24 sps:$4 sm:$0xff]  }
  0xca   : > { %2633 = vmatprep.subr.bf16.mxu0 %v3531_v63  ;;  %v3618_v55 = vld [vmem:[%s4613_s7 + $0xcc] ss:$24 sps:$4 sm:$0xff]   ;;  %v3616_v57 = vld [vmem:[%s4613_s7 + $0xc8] ss:$24 sps:$4 sm:$0xff]   ;;  %v3624_v59 = vld [vmem:[%s4613_s7 + $0xfc] ss:$24 sps:$4 sm:$0xff]  }
  0xcb   : > { %v3621_v58 = vld [vmem:[%s4613_s7 + $0x6f4] ss:$24 sps:$4 sm:$0xff]   ;;  %v3619_v60 = vld [vmem:[%s4613_s7 + $0x6f0] ss:$24 sps:$4 sm:$0xff]   ;;  %v3627_v62 = vld [vmem:[%s4613_s7 + $0x724] ss:$24 sps:$4 sm:$0xff]  }
  0xcc   : > { %2591 = vmatpush1.bf16.msra.mxu1 %v3533_v0  ;;  %v3622_v61 = vld [vmem:[%s4613_s7 + $0xf8] ss:$24 sps:$4 sm:$0xff]   ;;  %v3630_v63 = vld [vmem:[%s4613_s7 + $0x12c] ss:$24 sps:$4 sm:$0xff]   ;;  %s4990_s29 = smov (!%p775_p10, %s774_s29), 17  ;;  %s3423_s12 = smul.u32 (%p4006_p5), 24, %s3991_s15 }
  0xcd   : > { %2634 = vmatpush1.bf16.msra.mxu0 %v3534_v1  ;;  %2592 = vmatprep.subr.bf16.mxu1 %v3535_v2  ;;  %v4721_v0 = vld [vmem:[%s4981_s0 + $0x14] ss:$24 sps:$4 sm:$0xff]   ;;  %v3625_v1 = vld [vmem:[%s4613_s7 + $0x720] ss:$24 sps:$4 sm:$0xff]   ;;  %s777_s5 = scalar_lea.vmem %s4983_s2, %s4990_s29 }
  0xce   : > { %2635 = vmatprep.subr.bf16.mxu0 %v3537_v3  ;;  %v3628_v2 = vld [vmem:[%s4613_s7 + $0x128] ss:$24 sps:$4 sm:$0xff]   ;;  %v3633_v3 = vld [vmem:[%s4613_s7 + $0x754] ss:$24 sps:$4 sm:$0xff]   ;;  %s3014_s9 = scalar_lea.vmem (%p4006_p5), %s4984_s3, %s3423_s12 }
  0xd0   : > { %2593 = vmatpush1.bf16.msra.mxu1 %v3539_v4  ;;  %v3636_v4 = vld [vmem:[%s4613_s7 + $0x15c] ss:$24 sps:$4 sm:$0xff]  }
  0xd1   : > { %2636 = vmatpush1.bf16.msra.mxu0 %v3540_v5  ;;  %2594 = vmatprep.subr.bf16.mxu1 %v3541_v6  ;;  %v3631_v5 = vld [vmem:[%s4613_s7 + $0x750] ss:$24 sps:$4 sm:$0xff]  }
  0xd2   : > { %2637 = vmatprep.subr.bf16.mxu0 %v3543_v7  ;;  %v3634_v6 = vld [vmem:[%s4613_s7 + $0x158] ss:$24 sps:$4 sm:$0xff]   ;;  %v3639_v7 = vld [vmem:[%s4613_s7 + $0x784] ss:$24 sps:$4 sm:$0xff]  }
  0xd4   : > { %2595 = vmatpush1.bf16.msra.mxu1 %v3545_v8  ;;  %v3642_v8 = vld [vmem:[%s4613_s7 + $0x18c] ss:$24 sps:$4 sm:$0xff]  }
  0xd5   : > { %2638 = vmatpush1.bf16.msra.mxu0 %v3546_v9  ;;  %2596 = vmatprep.subr.bf16.mxu1 %v3547_v10  ;;  %v3637_v9 = vld [vmem:[%s4613_s7 + $0x780] ss:$24 sps:$4 sm:$0xff]  }
  0xd6   : > { %2639 = vmatprep.subr.bf16.mxu0 %v3549_v11  ;;  %v3640_v10 = vld [vmem:[%s4613_s7 + $0x188] ss:$24 sps:$4 sm:$0xff]   ;;  %v3645_v11 = vld [vmem:[%s4613_s7 + $0x7b4] ss:$24 sps:$4 sm:$0xff]  }
  0xd8   : > { %2597 = vmatpush1.bf16.msra.mxu1 %v3551_v12  ;;  %v3648_v12 = vld [vmem:[%s4613_s7 + $0x1bc] ss:$24 sps:$4 sm:$0xff]  }
  0xd9   : > { %2640 = vmatpush1.bf16.msra.mxu0 %v3552_v13  ;;  %2598 = vmatprep.subr.bf16.mxu1 %v3553_v14  ;;  %v3643_v13 = vld [vmem:[%s4613_s7 + $0x7b0] ss:$24 sps:$4 sm:$0xff]  }
  0xda   : > { %2641 = vmatprep.subr.bf16.mxu0 %v3555_v15  ;;  %v3646_v14 = vld [vmem:[%s4613_s7 + $0x1b8] ss:$24 sps:$4 sm:$0xff]   ;;  %v3651_v15 = vld [vmem:[%s4613_s7 + $0x7e4] ss:$24 sps:$4 sm:$0xff]  }
  0xdc   : > { %2599 = vmatpush1.bf16.msra.mxu1 %v3557_v16  ;;  %v3654_v16 = vld [vmem:[%s4613_s7 + $0x1ec] ss:$24 sps:$4 sm:$0xff]  }
  0xdd   : > { %2642 = vmatpush1.bf16.msra.mxu0 %v3558_v17  ;;  %2600 = vmatprep.subr.bf16.mxu1 %v3559_v18  ;;  %v3649_v17 = vld [vmem:[%s4613_s7 + $0x7e0] ss:$24 sps:$4 sm:$0xff]  }
  0xde   : > { %2643 = vmatprep.subr.bf16.mxu0 %v3561_v19  ;;  %v3652_v18 = vld [vmem:[%s4613_s7 + $0x1e8] ss:$24 sps:$4 sm:$0xff]   ;;  %v3657_v19 = vld [vmem:[%s4613_s7 + $0x814] ss:$24 sps:$4 sm:$0xff]  }
  0xe0   : > { %2601 = vmatpush1.bf16.msra.mxu1 %v3563_v20  ;;  %v3660_v20 = vld [vmem:[%s4613_s7 + $0x21c] ss:$24 sps:$4 sm:$0xff]  }
  0xe1   : > { %2644 = vmatpush1.bf16.msra.mxu0 %v3564_v21  ;;  %2602 = vmatprep.subr.bf16.mxu1 %v3565_v22  ;;  %v3655_v21 = vld [vmem:[%s4613_s7 + $0x810] ss:$24 sps:$4 sm:$0xff]  }
  0xe2   : > { %2645 = vmatprep.subr.bf16.mxu0 %v3567_v23  ;;  %v3658_v22 = vld [vmem:[%s4613_s7 + $0x218] ss:$24 sps:$4 sm:$0xff]   ;;  %v3663_v23 = vld [vmem:[%s4613_s7 + $0x844] ss:$24 sps:$4 sm:$0xff]  }
  0xe4   : > { %2603 = vmatpush1.bf16.msra.mxu1 %v3569_v24  ;;  %v3666_v24 = vld [vmem:[%s4613_s7 + $0x24c] ss:$24 sps:$4 sm:$0xff]  }
  0xe5   : > { %2646 = vmatpush1.bf16.msra.mxu0 %v3570_v25  ;;  %2604 = vmatprep.subr.bf16.mxu1 %v3571_v26  ;;  %v3661_v25 = vld [vmem:[%s4613_s7 + $0x840] ss:$24 sps:$4 sm:$0xff]  }
  0xe6   : > { %2647 = vmatprep.subr.bf16.mxu0 %v3573_v27  ;;  %v3664_v26 = vld [vmem:[%s4613_s7 + $0x248] ss:$24 sps:$4 sm:$0xff]   ;;  %v3669_v27 = vld [vmem:[%s4613_s7 + $0x874] ss:$24 sps:$4 sm:$0xff]  }
  0xe8   : > { %2605 = vmatpush1.bf16.msra.mxu1 %v3575_v28  ;;  %v3672_v28 = vld [vmem:[%s4613_s7 + $0x27c] ss:$24 sps:$4 sm:$0xff]  }
  0xe9   : > { %2648 = vmatpush1.bf16.msra.mxu0 %v3576_v29  ;;  %2606 = vmatprep.subr.bf16.mxu1 %v3577_v30  ;;  %v3667_v29 = vld [vmem:[%s4613_s7 + $0x870] ss:$24 sps:$4 sm:$0xff]  }
  0xea   : > { %2649 = vmatprep.subr.bf16.mxu0 %v3579_v31  ;;  %v3670_v30 = vld [vmem:[%s4613_s7 + $0x278] ss:$24 sps:$4 sm:$0xff]   ;;  %v3675_v31 = vld [vmem:[%s4613_s7 + $0x8a4] ss:$24 sps:$4 sm:$0xff]  }
  0xec   : > { %2607 = vmatpush1.bf16.msra.mxu1 %v3581_v34  ;;  %v3678_v34 = vld [vmem:[%s4613_s7 + $0x2ac] ss:$24 sps:$4 sm:$0xff]  }
  0xed   : > { %2650 = vmatpush1.bf16.msra.mxu0 %v3582_v35  ;;  %2705 = vmatprep.subr.bf16.mxu1 %v3592_v37  ;;  %v3673_v35 = vld [vmem:[%s4613_s7 + $0x8a0] ss:$24 sps:$4 sm:$0xff]   ;;  %v3681_v37 = vld [vmem:[%s4613_s7 + $0x8d4] ss:$24 sps:$4 sm:$0xff]  }
  0xee   : > { %2662 = vmatprep.subr.bf16.mxu0 %v3589_v36  ;;  %v3676_v36 = vld [vmem:[%s4613_s7 + $0x2a8] ss:$24 sps:$4 sm:$0xff]  }
  0xef   : > { %2609 = vmatmul.mubr.bf16.vlgmr.msra.gmra.mrb[0].mxu1 %v4684_v38 }
  0xf0   : > { %2652 = vmatmul.mubr.bf16.vlgmr.msra.gmra.mrb[0].mxu0 %v4689_v39  ;;  %2706 = vmatpush1.bf16.msra.mxu1 %v3590_v41  ;;  %v3679_v41 = vld [vmem:[%s4613_s7 + $0x8d0] ss:$24 sps:$4 sm:$0xff]  }
  0xf1   : > { %2663 = vmatpush1.bf16.msra.mxu0 %v3587_v40  ;;  %2707 = vmatprep.subr.bf16.mxu1 %v3600_v43  ;;  %v3684_v40 = vld [vmem:[%s4613_s7 + $0x2dc] ss:$24 sps:$4 sm:$0xff]   ;;  %v3690_v43 = vld [vmem:[%s4613_s7 + $0x30c] ss:$24 sps:$4 sm:$0xff]  }
  0xf2   : > { %2664 = vmatprep.subr.bf16.mxu0 %v3597_v42  ;;  %2737 = vmatprep.mubr.bf16.mxu1 %v4602_v32  ;;  %v3682_v42 = vld [vmem:[%s4613_s7 + $0x2d8] ss:$24 sps:$4 sm:$0xff]  }
  0xf3   : > { %2694 = vmatprep.mubr.bf16.mxu0 %v4721_v0 }
  0xf4   : > { %2708 = vmatpush1.bf16.msra.mxu1 %v3598_v45  ;;  %v4767_v45 = vld [vmem:[%s4981_s0 + $0x10] ss:$24 sps:$4 sm:$0xff]  }
  0xf5   : > { %2665 = vmatpush1.bf16.msra.mxu0 %v3595_v44  ;;  %2709 = vmatprep.subr.bf16.mxu1 %v3606_v47  ;;  %v3693_v44 = vld [vmem:[%s4613_s7 + $0x14] ss:$24 sps:$4 sm:$0xff]   ;;  %v3691_v47 = vld [vmem:[%s4613_s7 + $0x10] ss:$24 sps:$4 sm:$0xff]  }
  0xf6   : > { %2666 = vmatprep.subr.bf16.mxu0 %v3603_v46  ;;  %v3688_v46 = vld [vmem:[%s4613_s7 + $0x308] ss:$24 sps:$4 sm:$0xff]  }
  0xf8   : > { %2710 = vmatpush1.bf16.msra.mxu1 %v3604_v49  ;;  %v3699_v49 = vld [vmem:[%s4613_s7 + $0x44] ss:$24 sps:$4 sm:$0xff]  }
  0xf9   : > { %2667 = vmatpush1.bf16.msra.mxu0 %v3601_v48  ;;  %2711 = vmatprep.subr.bf16.mxu1 %v3612_v51  ;;  %v3696_v48 = vld [vmem:[%s4613_s7 + $0x33c] ss:$24 sps:$4 sm:$0xff]   ;;  %v3697_v51 = vld [vmem:[%s4613_s7 + $0x40] ss:$24 sps:$4 sm:$0xff]  }
  0xfa   : > { %2668 = vmatprep.subr.bf16.mxu0 %v3609_v50  ;;  %v3694_v50 = vld [vmem:[%s4613_s7 + $0x338] ss:$24 sps:$4 sm:$0xff]  }
  0xfc   : > { %2712 = vmatpush1.bf16.msra.mxu1 %v3610_v53  ;;  %v3705_v53 = vld [vmem:[%s4613_s7 + $0x74] ss:$24 sps:$4 sm:$0xff]  }
  0xfd   : > { %2669 = vmatpush1.bf16.msra.mxu0 %v3607_v52  ;;  %2713 = vmatprep.subr.bf16.mxu1 %v3618_v55  ;;  %v3702_v52 = vld [vmem:[%s4613_s7 + $0x36c] ss:$24 sps:$4 sm:$0xff]   ;;  %v3703_v55 = vld [vmem:[%s4613_s7 + $0x70] ss:$24 sps:$4 sm:$0xff]  }
  0xfe   : > { %2670 = vmatprep.subr.bf16.mxu0 %v3615_v54  ;;  %v3700_v54 = vld [vmem:[%s4613_s7 + $0x368] ss:$24 sps:$4 sm:$0xff]  }
 0x100   : > { %2714 = vmatpush1.bf16.msra.mxu1 %v3616_v57  ;;  %v3711_v57 = vld [vmem:[%s4613_s7 + $0xa4] ss:$24 sps:$4 sm:$0xff]  }
 0x101   : > { %2671 = vmatpush1.bf16.msra.mxu0 %v3613_v56  ;;  %2715 = vmatprep.subr.bf16.mxu1 %v3624_v59  ;;  %v3708_v56 = vld [vmem:[%s4613_s7 + $0x39c] ss:$24 sps:$4 sm:$0xff]  }
 0x102   : > { %2672 = vmatprep.subr.bf16.mxu0 %v3621_v58  ;;  %v3706_v58 = vld [vmem:[%s4613_s7 + $0x398] ss:$24 sps:$4 sm:$0xff]   ;;  %v3717_v59 = vld [vmem:[%s4613_s7 + $0xd4] ss:$24 sps:$4 sm:$0xff]  }
 0x104   : > { %2716 = vmatpush1.bf16.msra.mxu1 %v3622_v61  ;;  %v3715_v61 = vld [vmem:[%s4613_s7 + $0xd0] ss:$24 sps:$4 sm:$0xff]  }
 0x105   : > { %2673 = vmatpush1.bf16.msra.mxu0 %v3619_v60  ;;  %2717 = vmatprep.subr.bf16.mxu1 %v3630_v63  ;;  %v3712_v60 = vld [vmem:[%s4613_s7 + $0x3c8] ss:$24 sps:$4 sm:$0xff]   ;;  %v3723_v63 = vld [vmem:[%s4613_s7 + $0x104] ss:$24 sps:$4 sm:$0xff]  }
 0x106   : > { %2674 = vmatprep.subr.bf16.mxu0 %v3627_v62  ;;  %v3720_v62 = vld [vmem:[%s4613_s7 + $0x3fc] ss:$24 sps:$4 sm:$0xff]  }
 0x108   : > { %2718 = vmatpush1.bf16.msra.mxu1 %v3628_v2  ;;  %v3721_v2 = vld [vmem:[%s4613_s7 + $0x100] ss:$24 sps:$4 sm:$0xff]  }
 0x109   : > { %2675 = vmatpush1.bf16.msra.mxu0 %v3625_v1  ;;  %2719 = vmatprep.subr.bf16.mxu1 %v3636_v4  ;;  %v3718_v1 = vld [vmem:[%s4613_s7 + $0x3f8] ss:$24 sps:$4 sm:$0xff]   ;;  %v3729_v4 = vld [vmem:[%s4613_s7 + $0x134] ss:$24 sps:$4 sm:$0xff]  }
 0x10a   : > { %2676 = vmatprep.subr.bf16.mxu0 %v3633_v3  ;;  %v3726_v3 = vld [vmem:[%s4613_s7 + $0x42c] ss:$24 sps:$4 sm:$0xff]  }
 0x10c   : > { %2720 = vmatpush1.bf16.msra.mxu1 %v3634_v6  ;;  %v3727_v6 = vld [vmem:[%s4613_s7 + $0x130] ss:$24 sps:$4 sm:$0xff]  }
 0x10d   : > { %2677 = vmatpush1.bf16.msra.mxu0 %v3631_v5  ;;  %2721 = vmatprep.subr.bf16.mxu1 %v3642_v8  ;;  %v3724_v5 = vld [vmem:[%s4613_s7 + $0x428] ss:$24 sps:$4 sm:$0xff]   ;;  %v3735_v8 = vld [vmem:[%s4613_s7 + $0x164] ss:$24 sps:$4 sm:$0xff]  }
 0x10e   : > { %2678 = vmatprep.subr.bf16.mxu0 %v3639_v7  ;;  %v3732_v7 = vld [vmem:[%s4613_s7 + $0x45c] ss:$24 sps:$4 sm:$0xff]  }
 0x110   : > { %2722 = vmatpush1.bf16.msra.mxu1 %v3640_v10  ;;  %v3733_v10 = vld [vmem:[%s4613_s7 + $0x160] ss:$24 sps:$4 sm:$0xff]  }
 0x111   : > { %2679 = vmatpush1.bf16.msra.mxu0 %v3637_v9  ;;  %2723 = vmatprep.subr.bf16.mxu1 %v3648_v12  ;;  %v3730_v9 = vld [vmem:[%s4613_s7 + $0x458] ss:$24 sps:$4 sm:$0xff]   ;;  %v3741_v12 = vld [vmem:[%s4613_s7 + $0x194] ss:$24 sps:$4 sm:$0xff]  }
 0x112   : > { %2680 = vmatprep.subr.bf16.mxu0 %v3645_v11  ;;  %v3738_v11 = vld [vmem:[%s4613_s7 + $0x48c] ss:$24 sps:$4 sm:$0xff]  }
 0x114   : > { %2724 = vmatpush1.bf16.msra.mxu1 %v3646_v14  ;;  %v3739_v14 = vld [vmem:[%s4613_s7 + $0x190] ss:$24 sps:$4 sm:$0xff]  }
 0x115   : > { %2681 = vmatpush1.bf16.msra.mxu0 %v3643_v13  ;;  %2725 = vmatprep.subr.bf16.mxu1 %v3654_v16  ;;  %v3736_v13 = vld [vmem:[%s4613_s7 + $0x488] ss:$24 sps:$4 sm:$0xff]   ;;  %v3747_v16 = vld [vmem:[%s4613_s7 + $0x1c4] ss:$24 sps:$4 sm:$0xff]  }
 0x116   : > { %2682 = vmatprep.subr.bf16.mxu0 %v3651_v15  ;;  %v3744_v15 = vld [vmem:[%s4613_s7 + $0x4bc] ss:$24 sps:$4 sm:$0xff]  }
 0x118   : > { %2726 = vmatpush1.bf16.msra.mxu1 %v3652_v18  ;;  %v3745_v18 = vld [vmem:[%s4613_s7 + $0x1c0] ss:$24 sps:$4 sm:$0xff]  }
 0x119   : > { %2683 = vmatpush1.bf16.msra.mxu0 %v3649_v17  ;;  %2727 = vmatprep.subr.bf16.mxu1 %v3660_v20  ;;  %v3742_v17 = vld [vmem:[%s4613_s7 + $0x4b8] ss:$24 sps:$4 sm:$0xff]   ;;  %v3753_v20 = vld [vmem:[%s4613_s7 + $0x1f4] ss:$24 sps:$4 sm:$0xff]  }
 0x11a   : > { %2684 = vmatprep.subr.bf16.mxu0 %v3657_v19  ;;  %v3750_v19 = vld [vmem:[%s4613_s7 + $0x4ec] ss:$24 sps:$4 sm:$0xff]  }
 0x11c   : > { %2728 = vmatpush1.bf16.msra.mxu1 %v3658_v22  ;;  %v3751_v22 = vld [vmem:[%s4613_s7 + $0x1f0] ss:$24 sps:$4 sm:$0xff]  }
 0x11d   : > { %2685 = vmatpush1.bf16.msra.mxu0 %v3655_v21  ;;  %2729 = vmatprep.subr.bf16.mxu1 %v3666_v24  ;;  %v3748_v21 = vld [vmem:[%s4613_s7 + $0x4e8] ss:$24 sps:$4 sm:$0xff]   ;;  %v3759_v24 = vld [vmem:[%s4613_s7 + $0x224] ss:$24 sps:$4 sm:$0xff]  }
 0x11e   : > { %2686 = vmatprep.subr.bf16.mxu0 %v3663_v23  ;;  %v3756_v23 = vld [vmem:[%s4613_s7 + $0x51c] ss:$24 sps:$4 sm:$0xff]  }
 0x120   : > { %2730 = vmatpush1.bf16.msra.mxu1 %v3664_v26  ;;  %v3757_v26 = vld [vmem:[%s4613_s7 + $0x220] ss:$24 sps:$4 sm:$0xff]  }
 0x121   : > { %2687 = vmatpush1.bf16.msra.mxu0 %v3661_v25  ;;  %2731 = vmatprep.subr.bf16.mxu1 %v3672_v28  ;;  %v3754_v25 = vld [vmem:[%s4613_s7 + $0x518] ss:$24 sps:$4 sm:$0xff]   ;;  %v3765_v28 = vld [vmem:[%s4613_s7 + $0x254] ss:$24 sps:$4 sm:$0xff]  }
 0x122   : > { %2688 = vmatprep.subr.bf16.mxu0 %v3669_v27  ;;  %v3762_v27 = vld [vmem:[%s4613_s7 + $0x54c] ss:$24 sps:$4 sm:$0xff]  }
 0x124   : > { %2732 = vmatpush1.bf16.msra.mxu1 %v3670_v30  ;;  %v3763_v30 = vld [vmem:[%s4613_s7 + $0x250] ss:$24 sps:$4 sm:$0xff]  }
 0x125   : > { %2689 = vmatpush1.bf16.msra.mxu0 %v3667_v29  ;;  %2733 = vmatprep.subr.bf16.mxu1 %v3678_v34  ;;  %v3760_v29 = vld [vmem:[%s4613_s7 + $0x548] ss:$24 sps:$4 sm:$0xff]   ;;  %v3771_v34 = vld [vmem:[%s4613_s7 + $0x284] ss:$24 sps:$4 sm:$0xff]  }
 0x126   : > { %2690 = vmatprep.subr.bf16.mxu0 %v3675_v31  ;;  %v3768_v31 = vld [vmem:[%s4613_s7 + $0x57c] ss:$24 sps:$4 sm:$0xff]  }
 0x128   : > { %2734 = vmatpush1.bf16.msra.mxu1 %v3676_v36  ;;  %v3769_v36 = vld [vmem:[%s4613_s7 + $0x280] ss:$24 sps:$4 sm:$0xff]  }
 0x129   : > { %2691 = vmatpush1.bf16.msra.mxu0 %v3673_v35  ;;  %2735 = vmatprep.subr.bf16.mxu1 %v3684_v40  ;;  %v3766_v35 = vld [vmem:[%s4613_s7 + $0x578] ss:$24 sps:$4 sm:$0xff]   ;;  %v3777_v40 = vld [vmem:[%s4613_s7 + $0x2b4] ss:$24 sps:$4 sm:$0xff]  }
 0x12a   : > { %2692 = vmatprep.subr.bf16.mxu0 %v3681_v37  ;;  %v3774_v37 = vld [vmem:[%s4613_s7 + $0x5ac] ss:$24 sps:$4 sm:$0xff]  }
 0x12c   : > { %2736 = vmatpush1.bf16.msra.mxu1 %v3682_v42  ;;  %v3775_v42 = vld [vmem:[%s4613_s7 + $0x2b0] ss:$24 sps:$4 sm:$0xff]  }
 0x12d   : > { %2693 = vmatpush1.bf16.msra.mxu0 %v3679_v41  ;;  %2748 = vmatprep.subr.bf16.mxu1 %v3690_v43  ;;  %v3772_v41 = vld [vmem:[%s4613_s7 + $0x5a8] ss:$24 sps:$4 sm:$0xff]   ;;  %v3780_v43 = vld [vmem:[%s4613_s7 + $0x5dc] ss:$24 sps:$4 sm:$0xff]  }
 0x12e   : > { %2834 = vmatprep.subr.bf16.mxu0 %v3693_v44  ;;  %v3783_v44 = vld [vmem:[%s4613_s7 + $0x2e4] ss:$24 sps:$4 sm:$0xff]  }
 0x12f   : > { %2738 = vmatmul.mubr.bf16.vlgmr.msra.gmra.mrb[4].mxu1 %v4684_v38 }
 0x130   : > { %2695 = vmatmul.mubr.bf16.vlgmr.msra.gmra.mrb[0].mxu0 %v4767_v45  ;;  %2749 = vmatpush1.bf16.msra.mxu1 %v3688_v46  ;;  %v3778_v46 = vld [vmem:[%s4613_s7 + $0x5d8] ss:$24 sps:$4 sm:$0xff]  }
 0x131   : > { %2835 = vmatpush1.bf16.msra.mxu0 %v3691_v47  ;;  %2750 = vmatprep.subr.bf16.mxu1 %v3696_v48  ;;  %v3781_v47 = vld [vmem:[%s4613_s7 + $0x2e0] ss:$24 sps:$4 sm:$0xff]   ;;  %v3786_v48 = vld [vmem:[%s4613_s7 + $0x60c] ss:$24 sps:$4 sm:$0xff]  }
 0x132   : > { %2836 = vmatprep.subr.bf16.mxu0 %v3699_v49  ;;  %2780 = vmatprep.mubr.bf16.mxu1 %v4609_v33  ;;  %v3709_v33 = vld [vmem:[%s4613_s7 + $0xa0] ss:$24 sps:$4 sm:$0xff]   ;;  %v3789_v49 = vld [vmem:[%s4613_s7 + $0x314] ss:$24 sps:$4 sm:$0xff]  }
 0x133   : > { %2866 = vmatprep.mubr.bf16.mxu0 %v4602_v32  ;;  %v3714_v32 = vld [vmem:[%s4613_s7 + $0x3cc] ss:$24 sps:$4 sm:$0xff]  }
 0x134   : > { %2751 = vmatpush1.bf16.msra.mxu1 %v3694_v50  ;;  %v3784_v50 = vld [vmem:[%s4613_s7 + $0x608] ss:$24 sps:$4 sm:$0xff]  }
 0x135   : > { %2837 = vmatpush1.bf16.msra.mxu0 %v3697_v51  ;;  %2752 = vmatprep.subr.bf16.mxu1 %v3702_v52  ;;  %v3787_v51 = vld [vmem:[%s4613_s7 + $0x310] ss:$24 sps:$4 sm:$0xff]   ;;  %v3792_v52 = vld [vmem:[%s4613_s7 + $0x63c] ss:$24 sps:$4 sm:$0xff]  }
 0x136   : > { %2838 = vmatprep.subr.bf16.mxu0 %v3705_v53  ;;  %v3795_v53 = vld [vmem:[%s4613_s7 + $0x344] ss:$24 sps:$4 sm:$0xff]  }
 0x138   : > { %2753 = vmatpush1.bf16.msra.mxu1 %v3700_v54  ;;  %v3790_v54 = vld [vmem:[%s4613_s7 + $0x638] ss:$24 sps:$4 sm:$0xff]  }
 0x139   : > { %2839 = vmatpush1.bf16.msra.mxu0 %v3703_v55  ;;  %2754 = vmatprep.subr.bf16.mxu1 %v3708_v56  ;;  %v3793_v55 = vld [vmem:[%s4613_s7 + $0x340] ss:$24 sps:$4 sm:$0xff]   ;;  %v3798_v56 = vld [vmem:[%s4613_s7 + $0x66c] ss:$24 sps:$4 sm:$0xff]  }
 0x13a   : > { %2840 = vmatprep.subr.bf16.mxu0 %v3711_v57  ;;  %v3801_v57 = vld [vmem:[%s4613_s7 + $0x374] ss:$24 sps:$4 sm:$0xff]  }
 0x13c   : > { %2755 = vmatpush1.bf16.msra.mxu1 %v3706_v58  ;;  %v3799_v58 = vld [vmem:[%s4613_s7 + $0x370] ss:$24 sps:$4 sm:$0xff]  }
 0x13d   : > { %2841 = vmatpush1.bf16.msra.mxu0 %v3709_v33  ;;  %2756 = vmatprep.subr.bf16.mxu1 %v3714_v32  ;;  %v3804_v33 = vld [vmem:[%s4613_s7 + $0x69c] ss:$24 sps:$4 sm:$0xff]  }
 0x13e   : > { %2842 = vmatprep.subr.bf16.mxu0 %v3717_v59  ;;  %v3807_v32 = vld [vmem:[%s4613_s7 + $0x3a4] ss:$24 sps:$4 sm:$0xff]   ;;  %v3805_v59 = vld [vmem:[%s4613_s7 + $0x3a0] ss:$24 sps:$4 sm:$0xff]  }
 0x140   : > { %2757 = vmatpush1.bf16.msra.mxu1 %v3712_v60  ;;  %v3810_v60 = vld [vmem:[%s4613_s7 + $0x6cc] ss:$24 sps:$4 sm:$0xff]  }
 0x141   : > { %2843 = vmatpush1.bf16.msra.mxu0 %v3715_v61  ;;  %2758 = vmatprep.subr.bf16.mxu1 %v3720_v62  ;;  %v3813_v61 = vld [vmem:[%s4613_s7 + $0x3d4] ss:$24 sps:$4 sm:$0xff]   ;;  %v3808_v62 = vld [vmem:[%s4613_s7 + $0x6c8] ss:$24 sps:$4 sm:$0xff]  }
 0x142   : > { %2844 = vmatprep.subr.bf16.mxu0 %v3723_v63  ;;  %v3811_v63 = vld [vmem:[%s4613_s7 + $0x3d0] ss:$24 sps:$4 sm:$0xff]  }
 0x144   : > { %2759 = vmatpush1.bf16.msra.mxu1 %v3718_v1  ;;  %v3816_v1 = vld [vmem:[%s4613_s7 + $0x6fc] ss:$24 sps:$4 sm:$0xff]  }
 0x145   : > { %2845 = vmatpush1.bf16.msra.mxu0 %v3721_v2  ;;  %2760 = vmatprep.subr.bf16.mxu1 %v3726_v3  ;;  %v3819_v2 = vld [vmem:[%s4613_s7 + $0x404] ss:$24 sps:$4 sm:$0xff]   ;;  %v3814_v3 = vld [vmem:[%s4613_s7 + $0x6f8] ss:$24 sps:$4 sm:$0xff]  }
 0x146   : > { %2846 = vmatprep.subr.bf16.mxu0 %v3729_v4  ;;  %v3817_v4 = vld [vmem:[%s4613_s7 + $0x400] ss:$24 sps:$4 sm:$0xff]  }
 0x148   : > { %2761 = vmatpush1.bf16.msra.mxu1 %v3724_v5  ;;  %v3822_v5 = vld [vmem:[%s4613_s7 + $0x72c] ss:$24 sps:$4 sm:$0xff]  }
 0x149   : > { %2847 = vmatpush1.bf16.msra.mxu0 %v3727_v6  ;;  %2762 = vmatprep.subr.bf16.mxu1 %v3732_v7  ;;  %v3825_v6 = vld [vmem:[%s4613_s7 + $0x434] ss:$24 sps:$4 sm:$0xff]   ;;  %v3820_v7 = vld [vmem:[%s4613_s7 + $0x728] ss:$24 sps:$4 sm:$0xff]  }
 0x14a   : > { %2848 = vmatprep.subr.bf16.mxu0 %v3735_v8  ;;  %v3823_v8 = vld [vmem:[%s4613_s7 + $0x430] ss:$24 sps:$4 sm:$0xff]  }
 0x14c   : > { %2763 = vmatpush1.bf16.msra.mxu1 %v3730_v9  ;;  %v3828_v9 = vld [vmem:[%s4613_s7 + $0x75c] ss:$24 sps:$4 sm:$0xff]  }
 0x14d   : > { %2849 = vmatpush1.bf16.msra.mxu0 %v3733_v10  ;;  %2764 = vmatprep.subr.bf16.mxu1 %v3738_v11  ;;  %v3831_v10 = vld [vmem:[%s4613_s7 + $0x464] ss:$24 sps:$4 sm:$0xff]   ;;  %v3826_v11 = vld [vmem:[%s4613_s7 + $0x758] ss:$24 sps:$4 sm:$0xff]  }
 0x14e   : > { %2850 = vmatprep.subr.bf16.mxu0 %v3741_v12  ;;  %v3829_v12 = vld [vmem:[%s4613_s7 + $0x460] ss:$24 sps:$4 sm:$0xff]  }
 0x150   : > { %2765 = vmatpush1.bf16.msra.mxu1 %v3736_v13  ;;  %v3834_v13 = vld [vmem:[%s4613_s7 + $0x78c] ss:$24 sps:$4 sm:$0xff]  }
 0x151   : > { %2851 = vmatpush1.bf16.msra.mxu0 %v3739_v14  ;;  %2766 = vmatprep.subr.bf16.mxu1 %v3744_v15  ;;  %v3837_v14 = vld [vmem:[%s4613_s7 + $0x494] ss:$24 sps:$4 sm:$0xff]   ;;  %v3832_v15 = vld [vmem:[%s4613_s7 + $0x788] ss:$24 sps:$4 sm:$0xff]  }
 0x152   : > { %2852 = vmatprep.subr.bf16.mxu0 %v3747_v16  ;;  %v3835_v16 = vld [vmem:[%s4613_s7 + $0x490] ss:$24 sps:$4 sm:$0xff]  }
 0x154   : > { %2767 = vmatpush1.bf16.msra.mxu1 %v3742_v17  ;;  %v3840_v17 = vld [vmem:[%s4613_s7 + $0x7bc] ss:$24 sps:$4 sm:$0xff]  }
 0x155   : > { %2853 = vmatpush1.bf16.msra.mxu0 %v3745_v18  ;;  %2768 = vmatprep.subr.bf16.mxu1 %v3750_v19  ;;  %v3843_v18 = vld [vmem:[%s4613_s7 + $0x4c4] ss:$24 sps:$4 sm:$0xff]   ;;  %v3838_v19 = vld [vmem:[%s4613_s7 + $0x7b8] ss:$24 sps:$4 sm:$0xff]  }
 0x156   : > { %2854 = vmatprep.subr.bf16.mxu0 %v3753_v20  ;;  %v3841_v20 = vld [vmem:[%s4613_s7 + $0x4c0] ss:$24 sps:$4 sm:$0xff]  }
 0x158   : > { %2769 = vmatpush1.bf16.msra.mxu1 %v3748_v21  ;;  %v3846_v21 = vld [vmem:[%s4613_s7 + $0x7ec] ss:$24 sps:$4 sm:$0xff]  }
 0x159   : > { %2855 = vmatpush1.bf16.msra.mxu0 %v3751_v22  ;;  %2770 = vmatprep.subr.bf16.mxu1 %v3756_v23  ;;  %v3849_v22 = vld [vmem:[%s4613_s7 + $0x4f4] ss:$24 sps:$4 sm:$0xff]   ;;  %v3844_v23 = vld [vmem:[%s4613_s7 + $0x7e8] ss:$24 sps:$4 sm:$0xff]  }
 0x15a   : > { %2856 = vmatprep.subr.bf16.mxu0 %v3759_v24  ;;  %v3847_v24 = vld [vmem:[%s4613_s7 + $0x4f0] ss:$24 sps:$4 sm:$0xff]  }
 0x15c   : > { %2771 = vmatpush1.bf16.msra.mxu1 %v3754_v25  ;;  %v3852_v25 = vld [vmem:[%s4613_s7 + $0x81c] ss:$24 sps:$4 sm:$0xff]  }
 0x15d   : > { %2857 = vmatpush1.bf16.msra.mxu0 %v3757_v26  ;;  %2772 = vmatprep.subr.bf16.mxu1 %v3762_v27  ;;  %v3855_v26 = vld [vmem:[%s4613_s7 + $0x524] ss:$24 sps:$4 sm:$0xff]   ;;  %v3850_v27 = vld [vmem:[%s4613_s7 + $0x818] ss:$24 sps:$4 sm:$0xff]  }
 0x15e   : > { %2858 = vmatprep.subr.bf16.mxu0 %v3765_v28  ;;  %v3853_v28 = vld [vmem:[%s4613_s7 + $0x520] ss:$24 sps:$4 sm:$0xff]  }
 0x160   : > { %2773 = vmatpush1.bf16.msra.mxu1 %v3760_v29  ;;  %v3858_v29 = vld [vmem:[%s4613_s7 + $0x84c] ss:$24 sps:$4 sm:$0xff]  }
 0x161   : > { %2859 = vmatpush1.bf16.msra.mxu0 %v3763_v30  ;;  %2774 = vmatprep.subr.bf16.mxu1 %v3768_v31  ;;  %v3861_v30 = vld [vmem:[%s4613_s7 + $0x554] ss:$24 sps:$4 sm:$0xff]   ;;  %v3856_v31 = vld [vmem:[%s4613_s7 + $0x848] ss:$24 sps:$4 sm:$0xff]  }
 0x162   : > { %2860 = vmatprep.subr.bf16.mxu0 %v3771_v34  ;;  %v3859_v34 = vld [vmem:[%s4613_s7 + $0x550] ss:$24 sps:$4 sm:$0xff]  }
 0x164   : > { %2775 = vmatpush1.bf16.msra.mxu1 %v3766_v35  ;;  %v3864_v35 = vld [vmem:[%s4613_s7 + $0x87c] ss:$24 sps:$4 sm:$0xff]  }
 0x165   : > { %2861 = vmatpush1.bf16.msra.mxu0 %v3769_v36  ;;  %2776 = vmatprep.subr.bf16.mxu1 %v3774_v37  ;;  %v3867_v36 = vld [vmem:[%s4613_s7 + $0x584] ss:$24 sps:$4 sm:$0xff]   ;;  %v3862_v37 = vld [vmem:[%s4613_s7 + $0x878] ss:$24 sps:$4 sm:$0xff]  }
 0x166   : > { %2862 = vmatprep.subr.bf16.mxu0 %v3777_v40  ;;  %v3865_v40 = vld [vmem:[%s4613_s7 + $0x580] ss:$24 sps:$4 sm:$0xff]  }
 0x168   : > { %2777 = vmatpush1.bf16.msra.mxu1 %v3772_v41  ;;  %v3870_v41 = vld [vmem:[%s4613_s7 + $0x8ac] ss:$24 sps:$4 sm:$0xff]  }
 0x169   : > { %2863 = vmatpush1.bf16.msra.mxu0 %v3775_v42  ;;  %2778 = vmatprep.subr.bf16.mxu1 %v3780_v43  ;;  %v3873_v42 = vld [vmem:[%s4613_s7 + $0x5b4] ss:$24 sps:$4 sm:$0xff]   ;;  %v3868_v43 = vld [vmem:[%s4613_s7 + $0x8a8] ss:$24 sps:$4 sm:$0xff]  }
 0x16a   : > { %2864 = vmatprep.subr.bf16.mxu0 %v3783_v44  ;;  %v3871_v44 = vld [vmem:[%s4613_s7 + $0x5b0] ss:$24 sps:$4 sm:$0xff]  }
 0x16c   : > { %2779 = vmatpush1.bf16.msra.mxu1 %v3778_v46  ;;  %v3876_v46 = vld [vmem:[%s4613_s7 + $0x8dc] ss:$24 sps:$4 sm:$0xff]  }
 0x16d   : > { %2865 = vmatpush1.bf16.msra.mxu0 %v3781_v47  ;;  %2791 = vmatprep.subr.bf16.mxu1 %v3786_v48  ;;  %v3879_v47 = vld [vmem:[%s4613_s7 + $0x5e4] ss:$24 sps:$4 sm:$0xff]   ;;  %v3874_v48 = vld [vmem:[%s4613_s7 + $0x8d8] ss:$24 sps:$4 sm:$0xff]  }
 0x16e   : > { %2877 = vmatprep.subr.bf16.mxu0 %v3789_v49  ;;  %v3877_v49 = vld [vmem:[%s4613_s7 + $0x5e0] ss:$24 sps:$4 sm:$0xff]  }
 0x16f   : > { %2781 = vmatmul.mubr.bf16.vlgmr.msra.gmra.mrb[4].mxu1 %v4689_v39  ;;  %v3928_v39 = vld [vmem:[%s4981_s0 + $0xc] ss:$24 sps:$4 sm:$0xff]  }
 0x170   : > { %2867 = vmatmul.mubr.bf16.vlgmr.msra.gmra.mrb[4].mxu0 %v4684_v38  ;;  %2792 = vmatpush1.bf16.msra.mxu1 %v3784_v50  ;;  %v3796_v38 = vld [vmem:[%s4613_s7 + $0x668] ss:$24 sps:$4 sm:$0xff]   ;;  %v3882_v50 = vld [vmem:[%s4613_s7 + $0x614] ss:$24 sps:$4 sm:$0xff]  }
 0x171   : > { %2878 = vmatpush1.bf16.msra.mxu0 %v3787_v51  ;;  %2793 = vmatprep.subr.bf16.mxu1 %v3792_v52  ;;  %v3880_v51 = vld [vmem:[%s4613_s7 + $0x610] ss:$24 sps:$4 sm:$0xff]   ;;  %v3885_v52 = vld [vmem:[%s4613_s7 + $0x644] ss:$24 sps:$4 sm:$0xff]  }
 0x172   : > { %2879 = vmatprep.subr.bf16.mxu0 %v3795_v53  ;;  %2823 = vmatprep.mubr.bf16.mxu1 %v4721_v0  ;;  %v3802_v0 = vld [vmem:[%s4613_s7 + $0x698] ss:$24 sps:$4 sm:$0xff]   ;;  %v3929_v53 = vld [vmem:[%s4981_s0 + $0x8] ss:$24 sps:$4 sm:$0xff]  }
 0x173   : > { %2909 = vmatprep.mubr.bf16.mxu0 %v3928_v39  ;;  %v3891_v39 = vld [vmem:[%s4613_s7 + $0x6a4] ss:$24 sps:$4 sm:$0xff]  }
 0x174   : > { %2794 = vmatpush1.bf16.msra.mxu1 %v3790_v54  ;;  %v3883_v54 = vld [vmem:[%s4613_s7 + $0x640] ss:$24 sps:$4 sm:$0xff]  }
 0x175   : > { %2880 = vmatpush1.bf16.msra.mxu0 %v3793_v55  ;;  %2795 = vmatprep.subr.bf16.mxu1 %v3798_v56  ;;  %v3930_v55 = vld [vmem:[%s4981_s0 + $0x14] ss:$24 sps:$4 sm:$0xff]  }
 0x176   : > { %2881 = vmatprep.subr.bf16.mxu0 %v3801_v57  ;;  %v3888_v56 = vld [vmem:[%s4613_s7 + $0x674] ss:$24 sps:$4 sm:$0xff]   ;;  %v3886_v57 = vld [vmem:[%s4613_s7 + $0x670] ss:$24 sps:$4 sm:$0xff]  }
 0x178   : > { %2796 = vmatpush1.bf16.msra.mxu1 %v3796_v38  ;;  %v3889_v38 = vld [vmem:[%s4613_s7 + $0x6a0] ss:$24 sps:$4 sm:$0xff]  }
 0x179   : > { %2882 = vmatpush1.bf16.msra.mxu0 %v3799_v58  ;;  %2797 = vmatprep.subr.bf16.mxu1 %v3804_v33  ;;  %v3894_v58 = vld [vmem:[%s4613_s7 + $0x6d4] ss:$24 sps:$4 sm:$0xff]   ;;  %v3892_v33 = vld [vmem:[%s4613_s7 + $0x6d0] ss:$24 sps:$4 sm:$0xff]  }
 0x17a   : > { %2883 = vmatprep.subr.bf16.mxu0 %v3807_v32  ;;  %v3897_v32 = vld [vmem:[%s4613_s7 + $0x704] ss:$24 sps:$4 sm:$0xff]  }
 0x17c   : > { %2798 = vmatpush1.bf16.msra.mxu1 %v3802_v0  ;;  %v3895_v0 = vld [vmem:[%s4613_s7 + $0x700] ss:$24 sps:$4 sm:$0xff]  }
 0x17d   : > { %2884 = vmatpush1.bf16.msra.mxu0 %v3805_v59  ;;  %2799 = vmatprep.subr.bf16.mxu1 %v3810_v60  ;;  %v3900_v59 = vld [vmem:[%s4613_s7 + $0x734] ss:$24 sps:$4 sm:$0xff]  }
 0x17e   : > { %2885 = vmatprep.subr.bf16.mxu0 %v3813_v61 }
 0x180   : > { %2800 = vmatpush1.bf16.msra.mxu1 %v3808_v62  ;;  %v3898_v62 = vld [vmem:[%s4613_s7 + $0x730] ss:$24 sps:$4 sm:$0xff]  }
 0x181   : > { %2886 = vmatpush1.bf16.msra.mxu0 %v3811_v63  ;;  %2801 = vmatprep.subr.bf16.mxu1 %v3816_v1  ;;  %v3903_v1 = vld [vmem:[%s4613_s7 + $0x764] ss:$24 sps:$4 sm:$0xff]  }
 0x182   : > { %2887 = vmatprep.subr.bf16.mxu0 %v3819_v2 }
 0x184   : > { %2802 = vmatpush1.bf16.msra.mxu1 %v3814_v3  ;;  %v3901_v3 = vld [vmem:[%s4613_s7 + $0x760] ss:$24 sps:$4 sm:$0xff]  }
 0x185   : > { %2888 = vmatpush1.bf16.msra.mxu0 %v3817_v4  ;;  %2803 = vmatprep.subr.bf16.mxu1 %v3822_v5  ;;  %v3906_v4 = vld [vmem:[%s4613_s7 + $0x794] ss:$24 sps:$4 sm:$0xff]   ;;  %v3904_v5 = vld [vmem:[%s4613_s7 + $0x790] ss:$24 sps:$4 sm:$0xff]  }
 0x186   : > { %2889 = vmatprep.subr.bf16.mxu0 %v3825_v6  ;;  %v3909_v6 = vld [vmem:[%s4613_s7 + $0x7c4] ss:$24 sps:$4 sm:$0xff]  }
 0x188   : > { %2804 = vmatpush1.bf16.msra.mxu1 %v3820_v7  ;;  %v3907_v7 = vld [vmem:[%s4613_s7 + $0x7c0] ss:$24 sps:$4 sm:$0xff]  }
 0x189   : > { %2890 = vmatpush1.bf16.msra.mxu0 %v3823_v8  ;;  %2805 = vmatprep.subr.bf16.mxu1 %v3828_v9  ;;  %v3912_v8 = vld [vmem:[%s4613_s7 + $0x7f4] ss:$24 sps:$4 sm:$0xff]   ;;  %v3910_v9 = vld [vmem:[%s4613_s7 + $0x7f0] ss:$24 sps:$4 sm:$0xff]  }
 0x18a   : > { %2891 = vmatprep.subr.bf16.mxu0 %v3831_v10  ;;  %v3915_v10 = vld [vmem:[%s4613_s7 + $0x824] ss:$24 sps:$4 sm:$0xff]  }
 0x18c   : > { %2806 = vmatpush1.bf16.msra.mxu1 %v3826_v11  ;;  %v3913_v11 = vld [vmem:[%s4613_s7 + $0x820] ss:$24 sps:$4 sm:$0xff]  }
 0x18d   : > { %2892 = vmatpush1.bf16.msra.mxu0 %v3829_v12  ;;  %2807 = vmatprep.subr.bf16.mxu1 %v3834_v13  ;;  %v3918_v12 = vld [vmem:[%s4613_s7 + $0x854] ss:$24 sps:$4 sm:$0xff]   ;;  %v3916_v13 = vld [vmem:[%s4613_s7 + $0x850] ss:$24 sps:$4 sm:$0xff]  }
 0x18e   : > { %2893 = vmatprep.subr.bf16.mxu0 %v3837_v14  ;;  %v3921_v14 = vld [vmem:[%s4613_s7 + $0x884] ss:$24 sps:$4 sm:$0xff]  }
 0x190   : > { %2808 = vmatpush1.bf16.msra.mxu1 %v3832_v15  ;;  %v3919_v15 = vld [vmem:[%s4613_s7 + $0x880] ss:$24 sps:$4 sm:$0xff]  }
 0x191   : > { %2894 = vmatpush1.bf16.msra.mxu0 %v3835_v16  ;;  %2809 = vmatprep.subr.bf16.mxu1 %v3840_v17  ;;  %v3924_v16 = vld [vmem:[%s4613_s7 + $0x8b4] ss:$24 sps:$4 sm:$0xff]   ;;  %v3922_v17 = vld [vmem:[%s4613_s7 + $0x8b0] ss:$24 sps:$4 sm:$0xff]  }
 0x192   : > { %2895 = vmatprep.subr.bf16.mxu0 %v3843_v18  ;;  %v3927_v18 = vld [vmem:[%s4613_s7 + $0x8e4] ss:$24 sps:$4 sm:$0xff]  }
 0x194   : > { %2810 = vmatpush1.bf16.msra.mxu1 %v3838_v19  ;;  %v3925_v19 = vld [vmem:[%s4613_s7 + $0x8e0] ss:$24 sps:$4 sm:$0xff]   ;;  %s4951_s7 = scalar_lea.vmem [#allocation3], %s3462_s6 }
 0x195   : > { %2896 = vmatpush1.bf16.msra.mxu0 %v3841_v20  ;;  %2811 = vmatprep.subr.bf16.mxu1 %v3846_v21  ;;  %v1076_v20 = vlaneseq }
 0x196   : > { %2897 = vmatprep.subr.bf16.mxu0 %v3849_v22 }
 0x197   : > { %v1077_v21 = vshrl.u32 %v1076_v20, 7 }
 0x198   : > { %2812 = vmatpush1.bf16.msra.mxu1 %v3844_v23  ;;  %v1074_v23 = vld [vmem:[%s777_s5] sm:$0x3f] }
 0x199   : > { %2898 = vmatpush1.bf16.msra.mxu0 %v3847_v24  ;;  %2813 = vmatprep.subr.bf16.mxu1 %v3852_v25  ;;  %v1078_v22 = vsub.s32 0, %v1077_v21  ;;  %v1082_v24 = vsub.s32 1, %v1077_v21 }
 0x19a   : > { %2899 = vmatprep.subr.bf16.mxu0 %v3855_v26 }
 0x19b   : > { %v1079_v25 = vrot.slane %v1074_v23, %v1078_v22  ;;  %v1083_v26 = vrot.slane %v1074_v23, %v1082_v24 }
 0x19c   : > { %2814 = vmatpush1.bf16.msra.mxu1 %v3850_v27 }
 0x19d   : > { %2900 = vmatpush1.bf16.msra.mxu0 %v3853_v28  ;;  %2815 = vmatprep.subr.bf16.mxu1 %v3858_v29 }
 0x19e   : > { %2901 = vmatprep.subr.bf16.mxu0 %v3861_v30 }
 0x1a0   : > { %2816 = vmatpush1.bf16.msra.mxu1 %v3856_v31 }
 0x1a1   : > { %2902 = vmatpush1.bf16.msra.mxu0 %v3859_v34  ;;  %2817 = vmatprep.subr.bf16.mxu1 %v3864_v35 }
 0x1a2   : > { %2903 = vmatprep.subr.bf16.mxu0 %v3867_v36 }
 0x1a4   : > { %2818 = vmatpush1.bf16.msra.mxu1 %v3862_v37 }
 0x1a5   : > { %2904 = vmatpush1.bf16.msra.mxu0 %v3865_v40  ;;  %2819 = vmatprep.subr.bf16.mxu1 %v3870_v41 }
 0x1a6   : > { %2905 = vmatprep.subr.bf16.mxu0 %v3873_v42 }
 0x1a8   : > { %2820 = vmatpush1.bf16.msra.mxu1 %v3868_v43 }
 0x1a9   : > { %2906 = vmatpush1.bf16.msra.mxu0 %v3871_v44  ;;  %2821 = vmatprep.subr.bf16.mxu1 %v3876_v46  ;;  %v1086_v44 = vsub.s32 2, %v1077_v21  ;;  %v1090_v46 = vsub.s32 3, %v1077_v21 }
 0x1aa   : > { %2907 = vmatprep.subr.bf16.mxu0 %v3879_v47 }
 0x1ab   : > { %v1087_v47 = vrot.slane %v1074_v23, %v1086_v44 }
 0x1ac   : > { %2822 = vmatpush1.bf16.msra.mxu1 %v3874_v48  ;;  %v1091_v48 = vrot.slane %v1074_v23, %v1090_v46 }
 0x1ad   : > { %2908 = vmatpush1.bf16.msra.mxu0 %v3877_v49 }
 0x1ae   : > { %2920 = vmatprep.subr.bf16.mxu0 %v3882_v50 }
 0x1af   : > { %2824 = vmatmul.mubr.bf16.vlgmr.msra.gmra.mrb[4].mxu1 %v4767_v45 }
 0x1b0   : > { %2910 = vmatmul.mubr.bf16.vlgmr.msra.gmra.mrb[4].mxu0 %v3929_v53 }
 0x1b1   : > { %2921 = vmatpush1.bf16.msra.mxu0 %v3880_v51  ;;  %2952 = vmatprep.mubr.bf16.mxu0 %v3930_v55 }
 0x1b2   : > { %2922 = vmatprep.subr.bf16.mxu0 %v3885_v52 }
 0x1b5   : > { %2923 = vmatpush1.bf16.msra.mxu0 %v3883_v54 }
 0x1b6   : > { %2924 = vmatprep.subr.bf16.mxu0 %v3888_v56 }
 0x1b9   : > { %2925 = vmatpush1.bf16.msra.mxu0 %v3886_v57 }
 0x1ba   : > { %2926 = vmatprep.subr.bf16.mxu0 %v3891_v39 }
 0x1bd   : > { %2927 = vmatpush1.bf16.msra.mxu0 %v3889_v38  ;;  %v1094_v38 = vsub.s32 4, %v1077_v21 }
 0x1be   : > { %2928 = vmatprep.subr.bf16.mxu0 %v3894_v58  ;;  %v1098_v58 = vsub.s32 5, %v1077_v21 }
 0x1c1   : > { %2929 = vmatpush1.bf16.msra.mxu0 %v3892_v33  ;;  %v1095_v33 = vrot.slane %v1074_v23, %v1094_v38 }
 0x1c2   : > { %2930 = vmatprep.subr.bf16.mxu0 %v3897_v32  ;;  %v2610_v60 = vpop.f32.mrb[0].mxu1  ;;  %v1099_v32 = vrot.slane %v1074_v23, %v1098_v58 }
 0x1c3   : > { %v2612_v61 = vpop.f32.mrb[1].mxu1  ;;  %v2611_v27 = vadd.f32 %v2610_v60, %v1079_v25 }
 0x1c4   : > { %v2614_v63 = vpop.f32.mrb[2].mxu1  ;;  %v2613_v28 = vadd.f32 %v2612_v61, %v1083_v26 }
 0x1c5   : > { %2931 = vmatpush1.bf16.msra.mxu0 %v3895_v0  ;;  %v2616_v2 = vpop.f32.mrb[3].mxu1  ;;  %v2615_v29 = vadd.f32 %v2614_v63, %v1079_v25 }
 0x1c6   : > { %2932 = vmatprep.subr.bf16.mxu0 %v3900_v59  ;;  %v2617_v31 = vadd.f32 %v2616_v2, %v1083_v26 }
 0x1c9   : > { %2933 = vmatpush1.bf16.msra.mxu0 %v3898_v62 }
 0x1ca   : > { %2934 = vmatprep.subr.bf16.mxu0 %v3903_v1 }
 0x1cd   : > { %2935 = vmatpush1.bf16.msra.mxu0 %v3901_v3 }
 0x1ce   : > { %2936 = vmatprep.subr.bf16.mxu0 %v3906_v4 }
 0x1d1   : > { %2937 = vmatpush1.bf16.msra.mxu0 %v3904_v5 }
 0x1d2   : > { %2938 = vmatprep.subr.bf16.mxu0 %v3909_v6 }
 0x1d5   : > { %2939 = vmatpush1.bf16.msra.mxu0 %v3907_v7 }
 0x1d6   : > { %2940 = vmatprep.subr.bf16.mxu0 %v3912_v8 }
 0x1d9   : > { %2941 = vmatpush1.bf16.msra.mxu0 %v3910_v9 }
 0x1da   : > { %2942 = vmatprep.subr.bf16.mxu0 %v3915_v10 }
 0x1dd   : > { %2943 = vmatpush1.bf16.msra.mxu0 %v3913_v11 }
 0x1de   : > { %2944 = vmatprep.subr.bf16.mxu0 %v3918_v12 }
 0x1e1   : > { %2945 = vmatpush1.bf16.msra.mxu0 %v3916_v13 }
 0x1e2   : > { %2946 = vmatprep.subr.bf16.mxu0 %v3921_v14 }
 0x1e5   : > { %2947 = vmatpush1.bf16.msra.mxu0 %v3919_v15 }
 0x1e6   : > { %2948 = vmatprep.subr.bf16.mxu0 %v3924_v16 }
 0x1e9   : > { %2949 = vmatpush1.bf16.msra.mxu0 %v3922_v17 }
 0x1ea   : > { %2950 = vmatprep.subr.bf16.mxu0 %v3927_v18 }
 0x1ed   : > { %2951 = vmatpush1.bf16.msra.mxu0 %v3925_v19 }
 0x1f0   : > { %2953 = vmatmul.mubr.bf16.vlgmr.msra.gmra.mrb[4].mxu0 %v4767_v45 }
 0x203   : > { %v2696_v30 = vpop.f32.mrb[0].mxu0 }
 0x204   : > { %v3425_v45 = vadd.f32 %v2696_v30, %v2611_v27  ;;  %v2698_v34 = vpop.f32.mrb[1].mxu0 }
 0x205   : > { %v3427_v35 = vadd.f32 %v2698_v34, %v2613_v28  ;;  %v2700_v36 = vpop.f32.mrb[2].mxu0 }
 0x206   : > { %v3429_v37 = vadd.f32 %v2700_v36, %v2615_v29  ;;  %v2702_v40 = vpop.f32.mrb[3].mxu0 }
 0x207   : > { %v3417_v41 = vpack.c.bf16 %v3427_v35, %v3425_v45  ;;  %v3431_v42 = vadd.f32 %v2702_v40, %v2617_v31 }
 0x209   : > { %2999 = vst [vmem:[%s4951_s7] sm:$0xff] %v3417_v41  ;;  %v3420_v43 = vpack.c.bf16 %v3431_v42, %v3429_v37 }
 0x20b   : > { %3002 = vst [vmem:[%s4951_s7 + $0x18] sm:$0xff] %v3420_v43 }
 0x210   : > { %v3027_v5 = vld [vmem:[%s4951_s7] sm:$0xff] (%p4006_p5) }
 0x211   : > { %3028 = vst [vmem:[%s3014_s9] sm:$0xff] (%p4006_p5), %v3027_v5 }
 0x212   : > { %v3033_v8 = vld [vmem:[%s4951_s7 + $0x18] sm:$0xff] (%p4006_p5) }
 0x213   : > { %3034 = vst [vmem:[%s3014_s9 + $0x48] sm:$0xff] (%p4006_p5), %v3033_v8 }
 0x282   : > { %v2825_v49 = vpop.f32.mrb[4].mxu1 }
 0x283   : > { %v3432_v50 = vadd.f32 %v2825_v49, %v1087_v47  ;;  %v2827_v51 = vpop.f32.mrb[5].mxu1 }
 0x284   : > { %v3433_v52 = vadd.f32 %v2827_v51, %v1091_v48  ;;  %v2829_v53 = vpop.f32.mrb[6].mxu1 }
 0x285   : > { %v3434_v54 = vadd.f32 %v2829_v53, %v1087_v47  ;;  %v2831_v55 = vpop.f32.mrb[7].mxu1 }
 0x286   : > { %v3418_v56 = vpack.c.bf16 %v3433_v52, %v3432_v50  ;;  %v3435_v57 = vadd.f32 %v2831_v55, %v1091_v48 }
 0x288   : > { %3000 = vst [vmem:[%s4951_s7 + $0x8] sm:$0xff] %v3418_v56  ;;  %v3421_v39 = vpack.c.bf16 %v3435_v57, %v3434_v54 }
 0x28a   : > { %3003 = vst [vmem:[%s4951_s7 + $0x20] sm:$0xff] %v3421_v39 }
 0x28f   : > { %v3029_v6 = vld [vmem:[%s4951_s7 + $0x8] sm:$0xff] (%p4006_p5) }
 0x290   : > { %3030 = vst [vmem:[%s3014_s9 + $0x8] sm:$0xff] (%p4006_p5), %v3029_v6 }
 0x291   : > { %v3035_v9 = vld [vmem:[%s4951_s7 + $0x20] sm:$0xff] (%p4006_p5) }
 0x292   : > { %3036 = vst [vmem:[%s3014_s9 + $0x50] sm:$0xff] (%p4006_p5), %v3035_v9 }
 0x2c3   : > { %v2954_v0 = vpop.f32.mrb[4].mxu0 }
 0x2c4   : > { %v3436_v59 = vadd.f32 %v2954_v0, %v1095_v33  ;;  %v2956_v60 = vpop.f32.mrb[5].mxu0 }
 0x2c5   : > { %v3437_v61 = vadd.f32 %v2956_v60, %v1099_v32  ;;  %v2958_v62 = vpop.f32.mrb[6].mxu0  ;;  %3011 = sbr.rel (!%p4006_p5) target bundleno = 724 (0x2d4), region = 59 }
 0x2c6   : > { %v3438_v63 = vadd.f32 %v2958_v62, %v1095_v33  ;;  %v2960_v1 = vpop.f32.mrb[7].mxu0 }
 0x2c7   : > { %v3419_v2 = vpack.c.bf16 %v3437_v61, %v3436_v59  ;;  %v3439_v3 = vadd.f32 %v2960_v1, %v1099_v32 }
 0x2c9   : > { %3001 = vst [vmem:[%s4951_s7 + $0x10] sm:$0xff] %v3419_v2  ;;  %v3422_v4 = vpack.c.bf16 %v3439_v3, %v3438_v63 }
 0x2cb   : > { %3004 = vst [vmem:[%s4951_s7 + $0x28] sm:$0xff] %v3422_v4 }
 0x2d0   : > { %v3031_v7 = vld [vmem:[%s4951_s7 + $0x10] sm:$0xff] }
 0x2d1   : > { %3032 = vst [vmem:[%s3014_s9 + $0x10] sm:$0xff] %v3031_v7 }
 0x2d2   : > { %v3037_v10 = vld [vmem:[%s4951_s7 + $0x28] sm:$0xff] }
 0x2d3   : > { %3038 = vst [vmem:[%s3014_s9 + $0x58] sm:$0xff] %v3037_v10 }
 0x2d4 PF: > { %p10_p11 = scmp.ge.s32.totalorder %s3994_s16, 5   ;;  %s4986_s12 = smov %s3949_s13 }
 0x2d5   : > { %s4987_s13 = smov %s4004_s19  ;;  %s4988_s14 = smov %s3994_s16 }
 0x2d6   :  { %12 = sbr.rel (!%p10_p11) target bundleno = 2 (0x2), region = 116 }

</bundles_post_ra>
